<compile_context>
chip_gen: v5e
topology: v5e:2x2
jax: 0.10.0
libtpu: 0.0.40
codegen_flags: <defaults>
</compile_context>

<pallas_src>
import math

import jax
import jax.numpy as jnp
from jax import lax
from jax.experimental import pallas as pl
from jax.experimental.pallas import tpu as pltpu

# ---------------- config (small, consistent with the module) ----------------
HIDDEN = 32            # transformer hidden size
HEADS = 2              # attention heads
DOWNSAMPLE = 2         # attention_downsample_rate for cross attention
MLP_DIM = 64           # two-way block MLP dim
NUM_LAYERS = 2         # two-way transformer layers
NUM_MULTIMASK = 3
NUM_MASK_TOKENS = NUM_MULTIMASK + 1
EMB_SIZE = 8           # image_embedding_size (H = W = 8)

_SQRT1_2 = 0.7071067811865476


# --------------------------- in-kernel math helpers ---------------------------
def _erf(x):
    # Abramowitz & Stegun 7.1.26, |error| < 1.5e-7.  Only exp/mul/add/div/abs/
    # select, all guaranteed to lower in Mosaic.
    a1, a2, a3, a4, a5 = 0.254829592, -0.284496736, 1.421413741, -1.453152027, 1.061405429
    p = 0.3275911
    ax = jnp.abs(x)
    t = 1.0 / (1.0 + p * ax)
    poly = ((((a5 * t + a4) * t + a3) * t + a2) * t + a1) * t
    y = 1.0 - poly * jnp.exp(-ax * ax)
    return jnp.where(x < 0.0, -y, y)


def _gelu(x):
    # PyTorch nn.GELU() default (exact erf form).
    return 0.5 * x * (1.0 + _erf(x * _SQRT1_2))


# ------------------------------ weight slab -----------------------------------
class _SlabBuilder:
    """Packs many small prepared weights into one (rows, 128) f32 slab.
    Each block starts at an 8-row-aligned offset so in-kernel static slices
    stay tile-aligned."""

    def __init__(self, width=128, align=8):
        self.width = width
        self.align = align
        self.parts = []
        self.index = {}         # name -> (row0, nrows, ncols)   (static python ints)
        self.rows = 0

    def add(self, name, arr):
        arr = jnp.asarray(arr, jnp.float32)
        if arr.ndim == 1:
            arr = arr.reshape(1, -1)
        nr, nc = arr.shape
        assert nc <= self.width, (name, arr.shape)
        padded_rows = -(-nr // self.align) * self.align
        block = jnp.zeros((padded_rows, self.width), jnp.float32)
        block = block.at[:nr, :nc].set(arr)
        self.index[name] = (self.rows, nr, nc)
        self.parts.append(block)
        self.rows += padded_rows

    def build(self):
        return jnp.concatenate(self.parts, axis=0), self.index


def _add_attention(sb, name, p, heads):
    internal = p["q_w"].shape[1]
    scale = 1.0 / math.sqrt(internal // heads)          # fold score scale into q
    wqkv = jnp.concatenate([p["q_w"] * scale, p["k_w"], p["v_w"]], axis=1)
    bqkv = jnp.concatenate([p["q_b"] * scale, p["k_b"], p["v_b"]], axis=0).reshape(1, -1)
    sb.add(name + "_wqkv", wqkv)
    sb.add(name + "_bqkv", bqkv)
    sb.add(name + "_wo", p["o_w"])
    sb.add(name + "_bo", p["o_b"])


def _add_ln(sb, name, p):
    sb.add(name, jnp.stack([p["g"], p["b"]], axis=0))    # (2, C): gamma / beta rows


def image_pe_rows(pe_matrix, size):
    """SamPromptEncoder.get_image_wide_positional_embeddings -> (H*W, C) rows."""
    grid = jnp.ones((size, size), jnp.float32)
    y_embed = (jnp.cumsum(grid, axis=0) - 0.5) / size
    x_embed = (jnp.cumsum(grid, axis=1) - 0.5) / size
    coords = jnp.stack([x_embed, y_embed], axis=-1)      # (H, W, 2)
    coords = 2.0 * coords - 1.0
    coords = coords @ pe_matrix                          # (H, W, C//2)
    coords = 2.0 * jnp.pi * coords
    pe = jnp.concatenate([jnp.sin(coords), jnp.cos(coords)], axis=-1)   # (H, W, C)
    return pe.reshape(size * size, -1)


def prepare_txtsam_params(params):
    """One-time prep: fuse/fold/transpose all weights and pack them into one slab.
    Runs once; the per-call forward only does a couple of tiny JAX ops."""
    C = HIDDEN
    sb = _SlabBuilder(width=128)

    sb.add("key_pe", image_pe_rows(params["pe_matrix"], EMB_SIZE))      # (HW, C)

    for li, lyr in enumerate(params["layers"]):
        pre = "l%d_" % li
        _add_attention(sb, pre + "self", lyr["self_attn"], HEADS)
        _add_ln(sb, pre + "ln1", lyr["ln1"])
        _add_attention(sb, pre + "t2i", lyr["cross_t2i"], HEADS)
        _add_ln(sb, pre + "ln2", lyr["ln2"])
        sb.add(pre + "mlp_w1", lyr["mlp"]["lin1_w"])
        sb.add(pre + "mlp_b1", lyr["mlp"]["lin1_b"])
        sb.add(pre + "mlp_w2", lyr["mlp"]["lin2_w"])
        sb.add(pre + "mlp_b2", lyr["mlp"]["lin2_b"])
        _add_ln(sb, pre + "ln3", lyr["ln3"])
        _add_attention(sb, pre + "i2t", lyr["cross_i2t"], HEADS)
        _add_ln(sb, pre + "ln4", lyr["ln4"])
    _add_attention(sb, "final", params["final_attn"], HEADS)
    _add_ln(sb, "ln_final", params["ln_final"])

    # --- upscale path, prepared for the transposed (channels-on-sublanes) layout ---
    c1, c2 = C // 4, C // 8
    # up1: torch ConvTranspose2d weight (Cin, c1, 2, 2) -> rows (ph1=dy*2+dx, c1), cols Cin
    sb.add("up1_w", jnp.transpose(params["up1_w"], (2, 3, 1, 0)).reshape(4 * c1, C))
    sb.add("up1_b", params["up1_b"].reshape(c1, 1))
    sb.add("up_ln_g", params["up_ln"]["g"].reshape(c1, 1))
    sb.add("up_ln_b", params["up_ln"]["b"].reshape(c1, 1))
    # up2: (c1, c2, 2, 2) -> rows (ph2=ey*2+ex, c2), cols c1
    sb.add("up2_w", jnp.transpose(params["up2_w"], (2, 3, 1, 0)).reshape(4 * c2, c1))
    sb.add("up2_b", jnp.tile(params["up2_b"], 4).reshape(4 * c2, 1))

    # --- hypernetwork for mask token 0 only (pred_mask[:, 0, 0] is all that's used) ---
    hp = params["hyper"][0]
    sb.add("hyper_w0", hp["w0"])
    sb.add("hyper_b0", hp["b0"])
    sb.add("hyper_w1", hp["w1"])
    sb.add("hyper_b1", hp["b1"])
    sb.add("hyper_w2rep", jnp.tile(hp["w2"], (1, 4)))     # (C, 4*c2): hvec tiled 4x
    sb.add("hyper_b2rep", jnp.tile(hp["b2"], 4))
    sel = ((jnp.arange(4 * c2)[None, :] // c2) == jnp.arange(4)[:, None])
    sb.add("sel", sel.astype(jnp.float32))                # block-diagonal selector (4, 4*c2)

    slab, index = sb.build()
    out_tokens = jnp.concatenate([params["iou_token"], params["mask_tokens"]], axis=0)
    return {"slab": slab, "index": index, "out_tokens": out_tokens,
            "num_layers": len(params["layers"])}


# ------------------------- the fused mask-decoder kernel ----------------------
def _make_decoder_kernel(index, num_layers, heads, channels):
    c1 = channels // 4
    c2 = channels // 8

    def kernel(tok_ref, img_ref, slab_ref, out_ref, y1t_ref):
        f32 = jnp.float32

        def w(name):
            r0, nr, nc = index[name]
            return slab_ref[r0:r0 + nr, 0:nc]             # static slice of the slab

        def dot(a, b):
            return jnp.dot(a, b, preferred_element_type=f32)

        def dot_t(a, b):                                  # a @ b.T, no transpose materialized
            return lax.dot_general(a, b, (((1,), (1,)), ((), ())),
                                   preferred_element_type=f32)

        def layer_norm(x, name, eps=1e-5):
            gb = w(name)                                  # (2, C): row0 gamma, row1 beta
            mu = jnp.mean(x, axis=-1, keepdims=True)
            var = jnp.mean(jnp.square(x - mu), axis=-1, keepdims=True)
            return (x - mu) * lax.rsqrt(var + eps) * gb[0:1, :] + gb[1:2, :]

        def attention(name, q_in, k_in, v_in):
            # wqkv = [q|k|v] columns; 1/sqrt(head_dim) already folded into q columns.
            wqkv = w(name + "_wqkv")                      # (C, 3I)
            bqkv = w(name + "_bqkv")                      # (1, 3I)
            wo = w(name + "_wo")                          # (I, C)
            bo = w(name + "_bo")                          # (1, C)
            i_sz = index[name + "_wqkv"][2] // 3
            if (q_in is k_in) and (k_in is v_in):
                qkv = dot(q_in, wqkv) + bqkv
                q, k, v = qkv[:, :i_sz], qkv[:, i_sz:2 * i_sz], qkv[:, 2 * i_sz:]
            elif q_in is k_in:
                qk = dot(q_in, wqkv[:, :2 * i_sz]) + bqkv[:, :2 * i_sz]
                q, k = qk[:, :i_sz], qk[:, i_sz:]
                v = dot(v_in, wqkv[:, 2 * i_sz:]) + bqkv[:, 2 * i_sz:]
            else:
                q = dot(q_in, wqkv[:, :i_sz]) + bqkv[:, :i_sz]
                k = dot(k_in, wqkv[:, i_sz:2 * i_sz]) + bqkv[:, i_sz:2 * i_sz]
                v = dot(v_in, wqkv[:, 2 * i_sz:]) + bqkv[:, 2 * i_sz:]
            dh = i_sz // heads
            out = None
            for h in range(heads):                        # statically unrolled (2 heads)
                qh = q[:, h * dh:(h + 1) * dh]
                kh = k[:, h * dh:(h + 1) * dh]
                vh = v[:, h * dh:(h + 1) * dh]
                s = dot_t(qh, kh)                         # (Tq, Tk), scale pre-folded
                s = s - jnp.max(s, axis=-1, keepdims=True)
                p = jnp.exp(s)
                p = p * pl.reciprocal(jnp.sum(p, axis=-1, keepdims=True), approx=True)
                # accumulate the output projection per head (no lane concatenate)
                contrib = dot(dot(p, vh), wo[h * dh:(h + 1) * dh, :])
                out = contrib if out is None else out + contrib
            return out + bo

        # ------------------------- two-way transformer -------------------------
        tok = tok_ref[...]                                # (T, C)   prompt tokens
        img = img_ref[...]                                # (HW, C)  image tokens
        key_pe = w("key_pe")                              # (HW, C)  image pos. emb.

        point_pe = tok                                    # query PE = initial tokens
        queries = tok
        keys = img

        for li in range(num_layers):
            pre = "l%d_" % li
            if li == 0:                                   # skip_first_layer_pe
                queries = attention(pre + "self", queries, queries, queries)
            else:
                q = queries + point_pe
                queries = queries + attention(pre + "self", q, q, queries)
            queries = layer_norm(queries, pre + "ln1")

            q = queries + point_pe
            k = keys + key_pe
            queries = layer_norm(queries + attention(pre + "t2i", q, k, keys), pre + "ln2")

            h1 = jnp.maximum(dot(queries, w(pre + "mlp_w1")) + w(pre + "mlp_b1"), 0.0)
            queries = layer_norm(
                queries + dot(h1, w(pre + "mlp_w2")) + w(pre + "mlp_b2"), pre + "ln3")

            q = queries + point_pe
            k = keys + key_pe
            keys = layer_norm(keys + attention(pre + "i2t", k, q, queries), pre + "ln4")

        # final token -> image attention
        q = queries + point_pe
        k = keys + key_pe
        queries = layer_norm(queries + attention("final", q, k, keys), "ln_final")

        # ---- hypernetwork on mask token 0 (row 1) -> block-diagonal (4, 4*c2) ----
        t0 = queries[1:2, :]                              # (1, C)
        h = jnp.maximum(dot(t0, w("hyper_w0")) + w("hyper_b0"), 0.0)
        h = jnp.maximum(dot(h, w("hyper_w1")) + w("hyper_b1"), 0.0)
        row = dot(h, w("hyper_w2rep")) + w("hyper_b2rep")           # (1, 4*c2): hvec x4
        hbd = jnp.broadcast_to(row, (4, 4 * c2)) * w("sel")         # block-diag hvec

        # ------- upscale in transposed, lane-dense layout (channels on sublanes) -------
        # y1^T[c1, ph1*HW + pix] = convT1 output; built phase-by-phase into a (c1, 4*HW)
        # VMEM scratch so LN / GELU / the following matmuls run on fully packed lanes.
        hw = img.shape[0]
        w1all = w("up1_w")                                          # (4*c1, C)
        b1 = w("up1_b")                                             # (c1, 1)
        for ph in range(4):
            blk = dot_t(w1all[ph * c1:(ph + 1) * c1, :], keys) + b1   # (c1, HW)
            y1t_ref[:, ph * hw:(ph + 1) * hw] = blk
        y1t = y1t_ref[...]                                          # (c1, 4*HW)

        # channels-first LayerNorm (eps=1e-6) over the c1 channel rows, then GELU
        mu = jnp.mean(y1t, axis=0, keepdims=True)
        var = jnp.mean(jnp.square(y1t - mu), axis=0, keepdims=True)
        y1t = (y1t - mu) * lax.rsqrt(var + 1e-6) * w("up_ln_g") + w("up_ln_b")
        y1t = _gelu(y1t)

        y2t = _gelu(dot(w("up2_w"), y1t) + w("up2_b"))              # (4*c2, 4*HW)

        # final mask = hvec_blockdiag @ y2^T  -> (4, 4*HW); single lane-dense store
        out_ref[...] = dot(hbd, y2t).astype(out_ref.dtype)

    return kernel


# ------------------------------ forward (glue in JAX) --------------------------
def make_txtsam_forward(params):
    """Prepares weights once, returns a jitted forward(image_embeddings, sparse)."""
    prepared = prepare_txtsam_params(params)
    slab = prepared["slab"]
    index = prepared["index"]
    out_tok = prepared["out_tokens"]                      # (1 + num_mask_tokens, C)
    num_layers = prepared["num_layers"]

    def forward(image_embeddings, sparse_embeddings):
        B, C, H, W = image_embeddings.shape
        hw = H * W
        # TxtSam.forward returns pred_mask[:, 0, 0]: only prompt 0 / mask token 0 live.
        sparse0 = sparse_embeddings[:, 0].astype(jnp.float32)        # (B, Ts, C)
        tokens = jnp.concatenate(
            [jnp.broadcast_to(out_tok[None], (B, out_tok.shape[0], C)), sparse0], axis=1)
        t = tokens.shape[1]
        img_tok = jnp.transpose(image_embeddings, (0, 2, 3, 1)).reshape(B, hw, C)

        kernel = _make_decoder_kernel(index, num_layers, HEADS, C)
        raw = pl.pallas_call(
            kernel,
            out_shape=jax.ShapeDtypeStruct((B, 4, 4 * hw), jnp.float32),
            grid=(B,),
            in_specs=[
                pl.BlockSpec((None, t, C), lambda n: (n, 0, 0)),
                pl.BlockSpec((None, hw, C), lambda n: (n, 0, 0)),
                pl.BlockSpec(slab.shape, lambda n: (0, 0)),   # weight slab: fetched once
            ],
            out_specs=pl.BlockSpec((None, 4, 4 * hw), lambda n: (n, 0, 0)),
            scratch_shapes=[pltpu.VMEM((C // 4, 4 * hw), jnp.float32)],
            compiler_params=pltpu.CompilerParams(dimension_semantics=("parallel",)),
        )(tokens, img_tok, slab)

        # raw[b, ey*2+ex, (dy*2+dx)*HW + i*W + j] -> mask[b, 4i+2dy+ey, 4j+2dx+ex]
        m = raw.reshape(B, 2, 2, 2, 2, H, W)              # (b, ey, ex, dy, dx, i, j)
        m = jnp.transpose(m, (0, 5, 3, 1, 6, 4, 2))       # (b, i, dy, ey, j, dx, ex)
        # TODO(synk): IoU prediction head omitted — its output is discarded by the
        # pred_mask[:, 0, 0] slice in TxtSam.forward (as are mask tokens 1..3 and
        # prompts > 0, which are therefore never computed).
        return m.reshape(B, 4 * H, 4 * W)

    return jax.jit(forward)


# ------------------------------- parameters ----------------------------------
def _normal(key, shape, std=0.02):
    return std * jax.random.normal(key, shape, jnp.float32)


def init_attn(key, C, internal):
    ks = jax.random.split(key, 4)
    return {
        "q_w": _normal(ks[0], (C, internal)), "q_b": jnp.zeros((internal,), jnp.float32),
        "k_w": _normal(ks[1], (C, internal)), "k_b": jnp.zeros((internal,), jnp.float32),
        "v_w": _normal(ks[2], (C, internal)), "v_b": jnp.zeros((internal,), jnp.float32),
        "o_w": _normal(ks[3], (internal, C)), "o_b": jnp.zeros((C,), jnp.float32),
    }


def init_ln(C):
    return {"g": jnp.ones((C,), jnp.float32), "b": jnp.zeros((C,), jnp.float32)}


def init_params(key):
    C = HIDDEN
    it = iter(jax.random.split(key, 32))
    layers = []
    for _ in range(NUM_LAYERS):
        layers.append({
            "self_attn": init_attn(next(it), C, C),                 # downsample_rate = 1
            "ln1": init_ln(C),
            "cross_t2i": init_attn(next(it), C, C // DOWNSAMPLE),
            "ln2": init_ln(C),
            "mlp": {"lin1_w": _normal(next(it), (C, MLP_DIM)),
                    "lin1_b": jnp.zeros((MLP_DIM,), jnp.float32),
                    "lin2_w": _normal(next(it), (MLP_DIM, C)),
                    "lin2_b": jnp.zeros((C,), jnp.float32)},
            "ln3": init_ln(C),
            "cross_i2t": init_attn(next(it), C, C // DOWNSAMPLE),
            "ln4": init_ln(C),
        })
    hyper = []
    for _ in range(NUM_MASK_TOKENS):
        k0, k1, k2 = jax.random.split(next(it), 3)
        hyper.append({"w0": _normal(k0, (C, C)), "b0": jnp.zeros((C,), jnp.float32),
                      "w1": _normal(k1, (C, C)), "b1": jnp.zeros((C,), jnp.float32),
                      "w2": _normal(k2, (C, C // 8)), "b2": jnp.zeros((C // 8,), jnp.float32)})
    return {
        "pe_matrix": jax.random.normal(next(it), (2, C // 2), jnp.float32),
        "iou_token": _normal(next(it), (1, C)),
        "mask_tokens": _normal(next(it), (NUM_MASK_TOKENS, C)),
        "layers": layers,
        "final_attn": init_attn(next(it), C, C // DOWNSAMPLE),
        "ln_final": init_ln(C),
        "up1_w": _normal(next(it), (C, C // 4, 2, 2)),
        "up1_b": jnp.zeros((C // 4,), jnp.float32),
        "up_ln": init_ln(C // 4),
        "up2_w": _normal(next(it), (C // 4, C // 8, 2, 2)),
        "up2_b": jnp.zeros((C // 8,), jnp.float32),
        "hyper": hyper,
    }


# ---------------------------------- main --------------------------------------
if __name__ == "__main__":
    key = jax.random.PRNGKey(0)
    kp, ki, ks = jax.random.split(key, 3)
    params = init_params(kp)

    B = 2
    image_embeddings = jax.random.normal(ki, (B, HIDDEN, EMB_SIZE, EMB_SIZE), jnp.float32)
    sparse_embeddings = jax.random.normal(ks, (B, 1, 2, HIDDEN), jnp.float32)

    fwd = make_txtsam_forward(params)                     # weight prep hoisted: runs once
    out = jax.block_until_ready(fwd(image_embeddings, sparse_embeddings))

    assert out.shape == (B, 4 * EMB_SIZE, 4 * EMB_SIZE), out.shape
    assert bool(jnp.all(jnp.isfinite(out)))
    print("KERNEL_OK")
</pallas_src>

<mosaic_0001>
module attributes {stable_mosaic.version = 11 : i64} {
  func.func @kernel(%arg0: i32, %arg1: memref<1x7x32xf32, #tpu.memory_space<vmem>>, %arg2: memref<1x64x32xf32, #tpu.memory_space<vmem>>, %arg3: memref<1056x128xf32, #tpu.memory_space<vmem>>, %arg4: memref<1x4x256xf32, #tpu.memory_space<vmem>>, %arg5: memref<8x256xf32, #tpu.memory_space<vmem>>) attributes {dimension_semantics = [#tpu.dimension_semantics<parallel>], iteration_bounds = array<i64: 2>, scalar_prefetch = 0 : i64, scratch_operands = 1 : i64, tpu.core_type = #tpu.core_type<tc>, window_params = [{transform_indices = @transform_0, window_bounds = array<i64: 1, 7, 32>}, {transform_indices = @transform_1, window_bounds = array<i64: 1, 64, 32>}, {pipeline_mode = #tpu.pipeline_mode<synchronous>, transform_indices = @transform_2, window_bounds = array<i64: 1056, 128>}, {transform_indices = @transform_3, window_bounds = array<i64: 1, 4, 256>}]} {
    %c0 = arith.constant 0 : index
    %c0_0 = arith.constant 0 : index
    %c0_1 = arith.constant 0 : index
    %0 = vector.load %arg1[%c0, %c0_0, %c0_1] : memref<1x7x32xf32, #tpu.memory_space<vmem>>, vector<1x7x32xf32>
    %1 = vector.shape_cast %0 : vector<1x7x32xf32> to vector<7x32xf32>
    %c0_2 = arith.constant 0 : index
    %c0_3 = arith.constant 0 : index
    %c0_4 = arith.constant 0 : index
    %2 = vector.load %arg2[%c0_2, %c0_3, %c0_4] : memref<1x64x32xf32, #tpu.memory_space<vmem>>, vector<1x64x32xf32>
    %3 = vector.shape_cast %2 : vector<1x64x32xf32> to vector<64x32xf32>
    %c0_5 = arith.constant 0 : index
    %c0_6 = arith.constant 0 : index
    %4 = vector.load %arg3[%c0_5, %c0_6] : memref<1056x128xf32, #tpu.memory_space<vmem>>, vector<64x32xf32>
    %c64 = arith.constant 64 : index
    %c0_7 = arith.constant 0 : index
    %5 = vector.load %arg3[%c64, %c0_7] : memref<1056x128xf32, #tpu.memory_space<vmem>>, vector<32x96xf32>
    %c96 = arith.constant 96 : index
    %c0_8 = arith.constant 0 : index
    %6 = vector.load %arg3[%c96, %c0_8] : memref<1056x128xf32, #tpu.memory_space<vmem>>, vector<1x96xf32>
    %c104 = arith.constant 104 : index
    %c0_9 = arith.constant 0 : index
    %7 = vector.load %arg3[%c104, %c0_9] : memref<1056x128xf32, #tpu.memory_space<vmem>>, vector<32x32xf32>
    %c136 = arith.constant 136 : index
    %c0_10 = arith.constant 0 : index
    %8 = vector.load %arg3[%c136, %c0_10] : memref<1056x128xf32, #tpu.memory_space<vmem>>, vector<1x32xf32>
    %cst = arith.constant dense<0.000000e+00> : vector<7x96xf32>
    %9 = tpu.matmul %1, %5, %cst {dimension_numbers = #tpu.dot_dimension_numbers<[1], [0], [0], [1], [0, 0, 1, 1], [], []>} : vector<7x32xf32>, vector<32x96xf32>, vector<7x96xf32> -> vector<7x96xf32>
    %10 = vector.broadcast %6 : vector<1x96xf32> to vector<7x96xf32>
    %11 = arith.addf %9, %10 : vector<7x96xf32>
    %12 = vector.extract_strided_slice %11 {offsets = [0, 0], sizes = [7, 32], strides = [1, 1]} : vector<7x96xf32> to vector<7x32xf32>
    %13 = vector.extract_strided_slice %11 {offsets = [0, 32], sizes = [7, 32], strides = [1, 1]} : vector<7x96xf32> to vector<7x32xf32>
    %14 = vector.extract_strided_slice %11 {offsets = [0, 64], sizes = [7, 32], strides = [1, 1]} : vector<7x96xf32> to vector<7x32xf32>
    %15 = vector.extract_strided_slice %12 {offsets = [0, 0], sizes = [7, 16], strides = [1, 1]} : vector<7x32xf32> to vector<7x16xf32>
    %16 = vector.extract_strided_slice %13 {offsets = [0, 0], sizes = [7, 16], strides = [1, 1]} : vector<7x32xf32> to vector<7x16xf32>
    %17 = vector.extract_strided_slice %14 {offsets = [0, 0], sizes = [7, 16], strides = [1, 1]} : vector<7x32xf32> to vector<7x16xf32>
    %cst_11 = arith.constant dense<0.000000e+00> : vector<7x7xf32>
    %18 = tpu.matmul %15, %16, %cst_11 {dimension_numbers = #tpu.dot_dimension_numbers<[1], [1], [0], [0], [0, 0, 1, 0], [], []>} : vector<7x16xf32>, vector<7x16xf32>, vector<7x7xf32> -> vector<7x7xf32>
    %cst_12 = arith.constant dense<0xFF800000> : vector<7xf32>
    %19 = vector.multi_reduction <maximumf>, %18, %cst_12 [1] : vector<7x7xf32> to vector<7xf32>
    %20 = vector.shape_cast %19 : vector<7xf32> to vector<7x1xf32>
    %21 = vector.broadcast %20 : vector<7x1xf32> to vector<7x7xf32>
    %22 = arith.subf %18, %21 : vector<7x7xf32>
    %23 = math.exp %22 : vector<7x7xf32>
    %cst_13 = arith.constant dense<0.000000e+00> : vector<7xf32>
    %24 = vector.multi_reduction <add>, %23, %cst_13 [1] : vector<7x7xf32> to vector<7xf32>
    %25 = vector.shape_cast %24 : vector<7xf32> to vector<7x1xf32>
    %26 = tpu.reciprocal %25 {approx = true} : vector<7x1xf32> -> vector<7x1xf32>
    %27 = vector.broadcast %26 : vector<7x1xf32> to vector<7x7xf32>
    %28 = arith.mulf %23, %27 : vector<7x7xf32>
    %cst_14 = arith.constant dense<0.000000e+00> : vector<7x16xf32>
    %29 = tpu.matmul %28, %17, %cst_14 {dimension_numbers = #tpu.dot_dimension_numbers<[1], [0], [0], [1], [0, 0, 1, 1], [], []>} : vector<7x7xf32>, vector<7x16xf32>, vector<7x16xf32> -> vector<7x16xf32>
    %30 = vector.extract_strided_slice %7 {offsets = [0, 0], sizes = [16, 32], strides = [1, 1]} : vector<32x32xf32> to vector<16x32xf32>
    %cst_15 = arith.constant dense<0.000000e+00> : vector<7x32xf32>
    %31 = tpu.matmul %29, %30, %cst_15 {dimension_numbers = #tpu.dot_dimension_numbers<[1], [0], [0], [1], [0, 0, 1, 1], [], []>} : vector<7x16xf32>, vector<16x32xf32>, vector<7x32xf32> -> vector<7x32xf32>
    %32 = vector.extract_strided_slice %12 {offsets = [0, 16], sizes = [7, 16], strides = [1, 1]} : vector<7x32xf32> to vector<7x16xf32>
    %33 = vector.extract_strided_slice %13 {offsets = [0, 16], sizes = [7, 16], strides = [1, 1]} : vector<7x32xf32> to vector<7x16xf32>
    %34 = vector.extract_strided_slice %14 {offsets = [0, 16], sizes = [7, 16], strides = [1, 1]} : vector<7x32xf32> to vector<7x16xf32>
    %cst_16 = arith.constant dense<0.000000e+00> : vector<7x7xf32>
    %35 = tpu.matmul %32, %33, %cst_16 {dimension_numbers = #tpu.dot_dimension_numbers<[1], [1], [0], [0], [0, 0, 1, 0], [], []>} : vector<7x16xf32>, vector<7x16xf32>, vector<7x7xf32> -> vector<7x7xf32>
    %cst_17 = arith.constant dense<0xFF800000> : vector<7xf32>
    %36 = vector.multi_reduction <maximumf>, %35, %cst_17 [1] : vector<7x7xf32> to vector<7xf32>
    %37 = vector.shape_cast %36 : vector<7xf32> to vector<7x1xf32>
    %38 = vector.broadcast %37 : vector<7x1xf32> to vector<7x7xf32>
    %39 = arith.subf %35, %38 : vector<7x7xf32>
    %40 = math.exp %39 : vector<7x7xf32>
    %cst_18 = arith.constant dense<0.000000e+00> : vector<7xf32>
    %41 = vector.multi_reduction <add>, %40, %cst_18 [1] : vector<7x7xf32> to vector<7xf32>
    %42 = vector.shape_cast %41 : vector<7xf32> to vector<7x1xf32>
    %43 = tpu.reciprocal %42 {approx = true} : vector<7x1xf32> -> vector<7x1xf32>
    %44 = vector.broadcast %43 : vector<7x1xf32> to vector<7x7xf32>
    %45 = arith.mulf %40, %44 : vector<7x7xf32>
    %cst_19 = arith.constant dense<0.000000e+00> : vector<7x16xf32>
    %46 = tpu.matmul %45, %34, %cst_19 {dimension_numbers = #tpu.dot_dimension_numbers<[1], [0], [0], [1], [0, 0, 1, 1], [], []>} : vector<7x7xf32>, vector<7x16xf32>, vector<7x16xf32> -> vector<7x16xf32>
    %47 = vector.extract_strided_slice %7 {offsets = [16, 0], sizes = [16, 32], strides = [1, 1]} : vector<32x32xf32> to vector<16x32xf32>
    %cst_20 = arith.constant dense<0.000000e+00> : vector<7x32xf32>
    %48 = tpu.matmul %46, %47, %cst_20 {dimension_numbers = #tpu.dot_dimension_numbers<[1], [0], [0], [1], [0, 0, 1, 1], [], []>} : vector<7x16xf32>, vector<16x32xf32>, vector<7x32xf32> -> vector<7x32xf32>
    %49 = arith.addf %31, %48 : vector<7x32xf32>
    %50 = vector.broadcast %8 : vector<1x32xf32> to vector<7x32xf32>
    %51 = arith.addf %49, %50 : vector<7x32xf32>
    %c144 = arith.constant 144 : index
    %c0_21 = arith.constant 0 : index
    %52 = vector.load %arg3[%c144, %c0_21] : memref<1056x128xf32, #tpu.memory_space<vmem>>, vector<2x32xf32>
    %cst_22 = arith.constant dense<0.000000e+00> : vector<7xf32>
    %53 = vector.multi_reduction <add>, %51, %cst_22 [1] : vector<7x32xf32> to vector<7xf32>
    %54 = vector.shape_cast %53 : vector<7xf32> to vector<7x1xf32>
    %cst_23 = arith.constant 3.200000e+01 : f32
    %55 = vector.broadcast %cst_23 : f32 to vector<7x1xf32>
    %56 = arith.divf %54, %55 : vector<7x1xf32>
    %57 = vector.broadcast %56 : vector<7x1xf32> to vector<7x32xf32>
    %58 = arith.subf %51, %57 : vector<7x32xf32>
    %59 = arith.mulf %58, %58 : vector<7x32xf32>
    %cst_24 = arith.constant dense<0.000000e+00> : vector<7xf32>
    %60 = vector.multi_reduction <add>, %59, %cst_24 [1] : vector<7x32xf32> to vector<7xf32>
    %61 = vector.shape_cast %60 : vector<7xf32> to vector<7x1xf32>
    %cst_25 = arith.constant 3.200000e+01 : f32
    %62 = vector.broadcast %cst_25 : f32 to vector<7x1xf32>
    %63 = arith.divf %61, %62 : vector<7x1xf32>
    %64 = vector.broadcast %56 : vector<7x1xf32> to vector<7x32xf32>
    %65 = arith.subf %51, %64 : vector<7x32xf32>
    %cst_26 = arith.constant 9.99999974E-6 : f32
    %66 = vector.broadcast %cst_26 : f32 to vector<7x1xf32>
    %67 = arith.addf %63, %66 : vector<7x1xf32>
    %68 = math.rsqrt %67 : vector<7x1xf32>
    %69 = vector.broadcast %68 : vector<7x1xf32> to vector<7x32xf32>
    %70 = arith.mulf %65, %69 : vector<7x32xf32>
    %71 = vector.extract_strided_slice %52 {offsets = [0, 0], sizes = [1, 32], strides = [1, 1]} : vector<2x32xf32> to vector<1x32xf32>
    %72 = vector.broadcast %71 : vector<1x32xf32> to vector<7x32xf32>
    %73 = arith.mulf %70, %72 : vector<7x32xf32>
    %74 = vector.extract_strided_slice %52 {offsets = [1, 0], sizes = [1, 32], strides = [1, 1]} : vector<2x32xf32> to vector<1x32xf32>
    %75 = vector.broadcast %74 : vector<1x32xf32> to vector<7x32xf32>
    %76 = arith.addf %73, %75 : vector<7x32xf32>
    %77 = arith.addf %76, %1 : vector<7x32xf32>
    %78 = arith.addf %3, %4 : vector<64x32xf32>
    %c152 = arith.constant 152 : index
    %c0_27 = arith.constant 0 : index
    %79 = vector.load %arg3[%c152, %c0_27] : memref<1056x128xf32, #tpu.memory_space<vmem>>, vector<32x48xf32>
    %c184 = arith.constant 184 : index
    %c0_28 = arith.constant 0 : index
    %80 = vector.load %arg3[%c184, %c0_28] : memref<1056x128xf32, #tpu.memory_space<vmem>>, vector<1x48xf32>
    %c192 = arith.constant 192 : index
    %c0_29 = arith.constant 0 : index
    %81 = vector.load %arg3[%c192, %c0_29] : memref<1056x128xf32, #tpu.memory_space<vmem>>, vector<16x32xf32>
    %c208 = arith.constant 208 : index
    %c0_30 = arith.constant 0 : index
    %82 = vector.load %arg3[%c208, %c0_30] : memref<1056x128xf32, #tpu.memory_space<vmem>>, vector<1x32xf32>
    %83 = vector.extract_strided_slice %79 {offsets = [0, 0], sizes = [32, 16], strides = [1, 1]} : vector<32x48xf32> to vector<32x16xf32>
    %cst_31 = arith.constant dense<0.000000e+00> : vector<7x16xf32>
    %84 = tpu.matmul %77, %83, %cst_31 {dimension_numbers = #tpu.dot_dimension_numbers<[1], [0], [0], [1], [0, 0, 1, 1], [], []>} : vector<7x32xf32>, vector<32x16xf32>, vector<7x16xf32> -> vector<7x16xf32>
    %85 = vector.extract_strided_slice %80 {offsets = [0, 0], sizes = [1, 16], strides = [1, 1]} : vector<1x48xf32> to vector<1x16xf32>
    %86 = vector.broadcast %85 : vector<1x16xf32> to vector<7x16xf32>
    %87 = arith.addf %84, %86 : vector<7x16xf32>
    %88 = vector.extract_strided_slice %79 {offsets = [0, 16], sizes = [32, 16], strides = [1, 1]} : vector<32x48xf32> to vector<32x16xf32>
    %cst_32 = arith.constant dense<0.000000e+00> : vector<64x16xf32>
    %89 = tpu.matmul %78, %88, %cst_32 {dimension_numbers = #tpu.dot_dimension_numbers<[1], [0], [0], [1], [0, 0, 1, 1], [], []>} : vector<64x32xf32>, vector<32x16xf32>, vector<64x16xf32> -> vector<64x16xf32>
    %90 = vector.extract_strided_slice %80 {offsets = [0, 16], sizes = [1, 16], strides = [1, 1]} : vector<1x48xf32> to vector<1x16xf32>
    %91 = vector.broadcast %90 : vector<1x16xf32> to vector<64x16xf32>
    %92 = arith.addf %89, %91 : vector<64x16xf32>
    %93 = vector.extract_strided_slice %79 {offsets = [0, 32], sizes = [32, 16], strides = [1, 1]} : vector<32x48xf32> to vector<32x16xf32>
    %cst_33 = arith.constant dense<0.000000e+00> : vector<64x16xf32>
    %94 = tpu.matmul %3, %93, %cst_33 {dimension_numbers = #tpu.dot_dimension_numbers<[1], [0], [0], [1], [0, 0, 1, 1], [], []>} : vector<64x32xf32>, vector<32x16xf32>, vector<64x16xf32> -> vector<64x16xf32>
    %95 = vector.extract_strided_slice %80 {offsets = [0, 32], sizes = [1, 16], strides = [1, 1]} : vector<1x48xf32> to vector<1x16xf32>
    %96 = vector.broadcast %95 : vector<1x16xf32> to vector<64x16xf32>
    %97 = arith.addf %94, %96 : vector<64x16xf32>
    %98 = vector.extract_strided_slice %87 {offsets = [0, 0], sizes = [7, 8], strides = [1, 1]} : vector<7x16xf32> to vector<7x8xf32>
    %99 = vector.extract_strided_slice %92 {offsets = [0, 0], sizes = [64, 8], strides = [1, 1]} : vector<64x16xf32> to vector<64x8xf32>
    %100 = vector.extract_strided_slice %97 {offsets = [0, 0], sizes = [64, 8], strides = [1, 1]} : vector<64x16xf32> to vector<64x8xf32>
    %cst_34 = arith.constant dense<0.000000e+00> : vector<7x64xf32>
    %101 = tpu.matmul %98, %99, %cst_34 {dimension_numbers = #tpu.dot_dimension_numbers<[1], [1], [0], [0], [0, 0, 1, 0], [], []>} : vector<7x8xf32>, vector<64x8xf32>, vector<7x64xf32> -> vector<7x64xf32>
    %cst_35 = arith.constant dense<0xFF800000> : vector<7xf32>
    %102 = vector.multi_reduction <maximumf>, %101, %cst_35 [1] : vector<7x64xf32> to vector<7xf32>
    %103 = vector.shape_cast %102 : vector<7xf32> to vector<7x1xf32>
    %104 = vector.broadcast %103 : vector<7x1xf32> to vector<7x64xf32>
    %105 = arith.subf %101, %104 : vector<7x64xf32>
    %106 = math.exp %105 : vector<7x64xf32>
    %cst_36 = arith.constant dense<0.000000e+00> : vector<7xf32>
    %107 = vector.multi_reduction <add>, %106, %cst_36 [1] : vector<7x64xf32> to vector<7xf32>
    %108 = vector.shape_cast %107 : vector<7xf32> to vector<7x1xf32>
    %109 = tpu.reciprocal %108 {approx = true} : vector<7x1xf32> -> vector<7x1xf32>
    %110 = vector.broadcast %109 : vector<7x1xf32> to vector<7x64xf32>
    %111 = arith.mulf %106, %110 : vector<7x64xf32>
    %cst_37 = arith.constant dense<0.000000e+00> : vector<7x8xf32>
    %112 = tpu.matmul %111, %100, %cst_37 {dimension_numbers = #tpu.dot_dimension_numbers<[1], [0], [0], [1], [0, 0, 1, 1], [], []>} : vector<7x64xf32>, vector<64x8xf32>, vector<7x8xf32> -> vector<7x8xf32>
    %113 = vector.extract_strided_slice %81 {offsets = [0, 0], sizes = [8, 32], strides = [1, 1]} : vector<16x32xf32> to vector<8x32xf32>
    %cst_38 = arith.constant dense<0.000000e+00> : vector<7x32xf32>
    %114 = tpu.matmul %112, %113, %cst_38 {dimension_numbers = #tpu.dot_dimension_numbers<[1], [0], [0], [1], [0, 0, 1, 1], [], []>} : vector<7x8xf32>, vector<8x32xf32>, vector<7x32xf32> -> vector<7x32xf32>
    %115 = vector.extract_strided_slice %87 {offsets = [0, 8], sizes = [7, 8], strides = [1, 1]} : vector<7x16xf32> to vector<7x8xf32>
    %116 = vector.extract_strided_slice %92 {offsets = [0, 8], sizes = [64, 8], strides = [1, 1]} : vector<64x16xf32> to vector<64x8xf32>
    %117 = vector.extract_strided_slice %97 {offsets = [0, 8], sizes = [64, 8], strides = [1, 1]} : vector<64x16xf32> to vector<64x8xf32>
    %cst_39 = arith.constant dense<0.000000e+00> : vector<7x64xf32>
    %118 = tpu.matmul %115, %116, %cst_39 {dimension_numbers = #tpu.dot_dimension_numbers<[1], [1], [0], [0], [0, 0, 1, 0], [], []>} : vector<7x8xf32>, vector<64x8xf32>, vector<7x64xf32> -> vector<7x64xf32>
    %cst_40 = arith.constant dense<0xFF800000> : vector<7xf32>
    %119 = vector.multi_reduction <maximumf>, %118, %cst_40 [1] : vector<7x64xf32> to vector<7xf32>
    %120 = vector.shape_cast %119 : vector<7xf32> to vector<7x1xf32>
    %121 = vector.broadcast %120 : vector<7x1xf32> to vector<7x64xf32>
    %122 = arith.subf %118, %121 : vector<7x64xf32>
    %123 = math.exp %122 : vector<7x64xf32>
    %cst_41 = arith.constant dense<0.000000e+00> : vector<7xf32>
    %124 = vector.multi_reduction <add>, %123, %cst_41 [1] : vector<7x64xf32> to vector<7xf32>
    %125 = vector.shape_cast %124 : vector<7xf32> to vector<7x1xf32>
    %126 = tpu.reciprocal %125 {approx = true} : vector<7x1xf32> -> vector<7x1xf32>
    %127 = vector.broadcast %126 : vector<7x1xf32> to vector<7x64xf32>
    %128 = arith.mulf %123, %127 : vector<7x64xf32>
    %cst_42 = arith.constant dense<0.000000e+00> : vector<7x8xf32>
    %129 = tpu.matmul %128, %117, %cst_42 {dimension_numbers = #tpu.dot_dimension_numbers<[1], [0], [0], [1], [0, 0, 1, 1], [], []>} : vector<7x64xf32>, vector<64x8xf32>, vector<7x8xf32> -> vector<7x8xf32>
    %130 = vector.extract_strided_slice %81 {offsets = [8, 0], sizes = [8, 32], strides = [1, 1]} : vector<16x32xf32> to vector<8x32xf32>
    %cst_43 = arith.constant dense<0.000000e+00> : vector<7x32xf32>
    %131 = tpu.matmul %129, %130, %cst_43 {dimension_numbers = #tpu.dot_dimension_numbers<[1], [0], [0], [1], [0, 0, 1, 1], [], []>} : vector<7x8xf32>, vector<8x32xf32>, vector<7x32xf32> -> vector<7x32xf32>
    %132 = arith.addf %114, %131 : vector<7x32xf32>
    %133 = vector.broadcast %82 : vector<1x32xf32> to vector<7x32xf32>
    %134 = arith.addf %132, %133 : vector<7x32xf32>
    %135 = arith.addf %76, %134 : vector<7x32xf32>
    %c216 = arith.constant 216 : index
    %c0_44 = arith.constant 0 : index
    %136 = vector.load %arg3[%c216, %c0_44] : memref<1056x128xf32, #tpu.memory_space<vmem>>, vector<2x32xf32>
    %cst_45 = arith.constant dense<0.000000e+00> : vector<7xf32>
    %137 = vector.multi_reduction <add>, %135, %cst_45 [1] : vector<7x32xf32> to vector<7xf32>
    %138 = vector.shape_cast %137 : vector<7xf32> to vector<7x1xf32>
    %cst_46 = arith.constant 3.200000e+01 : f32
    %139 = vector.broadcast %cst_46 : f32 to vector<7x1xf32>
    %140 = arith.divf %138, %139 : vector<7x1xf32>
    %141 = vector.broadcast %140 : vector<7x1xf32> to vector<7x32xf32>
    %142 = arith.subf %135, %141 : vector<7x32xf32>
    %143 = arith.mulf %142, %142 : vector<7x32xf32>
    %cst_47 = arith.constant dense<0.000000e+00> : vector<7xf32>
    %144 = vector.multi_reduction <add>, %143, %cst_47 [1] : vector<7x32xf32> to vector<7xf32>
    %145 = vector.shape_cast %144 : vector<7xf32> to vector<7x1xf32>
    %cst_48 = arith.constant 3.200000e+01 : f32
    %146 = vector.broadcast %cst_48 : f32 to vector<7x1xf32>
    %147 = arith.divf %145, %146 : vector<7x1xf32>
    %148 = vector.broadcast %140 : vector<7x1xf32> to vector<7x32xf32>
    %149 = arith.subf %135, %148 : vector<7x32xf32>
    %cst_49 = arith.constant 9.99999974E-6 : f32
    %150 = vector.broadcast %cst_49 : f32 to vector<7x1xf32>
    %151 = arith.addf %147, %150 : vector<7x1xf32>
    %152 = math.rsqrt %151 : vector<7x1xf32>
    %153 = vector.broadcast %152 : vector<7x1xf32> to vector<7x32xf32>
    %154 = arith.mulf %149, %153 : vector<7x32xf32>
    %155 = vector.extract_strided_slice %136 {offsets = [0, 0], sizes = [1, 32], strides = [1, 1]} : vector<2x32xf32> to vector<1x32xf32>
    %156 = vector.broadcast %155 : vector<1x32xf32> to vector<7x32xf32>
    %157 = arith.mulf %154, %156 : vector<7x32xf32>
    %158 = vector.extract_strided_slice %136 {offsets = [1, 0], sizes = [1, 32], strides = [1, 1]} : vector<2x32xf32> to vector<1x32xf32>
    %159 = vector.broadcast %158 : vector<1x32xf32> to vector<7x32xf32>
    %160 = arith.addf %157, %159 : vector<7x32xf32>
    %c224 = arith.constant 224 : index
    %c0_50 = arith.constant 0 : index
    %161 = vector.load %arg3[%c224, %c0_50] : memref<1056x128xf32, #tpu.memory_space<vmem>>, vector<32x64xf32>
    %cst_51 = arith.constant dense<0.000000e+00> : vector<7x64xf32>
    %162 = tpu.matmul %160, %161, %cst_51 {dimension_numbers = #tpu.dot_dimension_numbers<[1], [0], [0], [1], [0, 0, 1, 1], [], []>} : vector<7x32xf32>, vector<32x64xf32>, vector<7x64xf32> -> vector<7x64xf32>
    %c256 = arith.constant 256 : index
    %c0_52 = arith.constant 0 : index
    %163 = vector.load %arg3[%c256, %c0_52] : memref<1056x128xf32, #tpu.memory_space<vmem>>, vector<1x64xf32>
    %164 = vector.broadcast %163 : vector<1x64xf32> to vector<7x64xf32>
    %165 = arith.addf %162, %164 : vector<7x64xf32>
    %cst_53 = arith.constant 0.000000e+00 : f32
    %166 = vector.broadcast %cst_53 : f32 to vector<7x64xf32>
    %167 = arith.maximumf %165, %166 : vector<7x64xf32>
    %c264 = arith.constant 264 : index
    %c0_54 = arith.constant 0 : index
    %168 = vector.load %arg3[%c264, %c0_54] : memref<1056x128xf32, #tpu.memory_space<vmem>>, vector<64x32xf32>
    %cst_55 = arith.constant dense<0.000000e+00> : vector<7x32xf32>
    %169 = tpu.matmul %167, %168, %cst_55 {dimension_numbers = #tpu.dot_dimension_numbers<[1], [0], [0], [1], [0, 0, 1, 1], [], []>} : vector<7x64xf32>, vector<64x32xf32>, vector<7x32xf32> -> vector<7x32xf32>
    %170 = arith.addf %160, %169 : vector<7x32xf32>
    %c328 = arith.constant 328 : index
    %c0_56 = arith.constant 0 : index
    %171 = vector.load %arg3[%c328, %c0_56] : memref<1056x128xf32, #tpu.memory_space<vmem>>, vector<1x32xf32>
    %172 = vector.broadcast %171 : vector<1x32xf32> to vector<7x32xf32>
    %173 = arith.addf %170, %172 : vector<7x32xf32>
    %c336 = arith.constant 336 : index
    %c0_57 = arith.constant 0 : index
    %174 = vector.load %arg3[%c336, %c0_57] : memref<1056x128xf32, #tpu.memory_space<vmem>>, vector<2x32xf32>
    %cst_58 = arith.constant dense<0.000000e+00> : vector<7xf32>
    %175 = vector.multi_reduction <add>, %173, %cst_58 [1] : vector<7x32xf32> to vector<7xf32>
    %176 = vector.shape_cast %175 : vector<7xf32> to vector<7x1xf32>
    %cst_59 = arith.constant 3.200000e+01 : f32
    %177 = vector.broadcast %cst_59 : f32 to vector<7x1xf32>
    %178 = arith.divf %176, %177 : vector<7x1xf32>
    %179 = vector.broadcast %178 : vector<7x1xf32> to vector<7x32xf32>
    %180 = arith.subf %173, %179 : vector<7x32xf32>
    %181 = arith.mulf %180, %180 : vector<7x32xf32>
    %cst_60 = arith.constant dense<0.000000e+00> : vector<7xf32>
    %182 = vector.multi_reduction <add>, %181, %cst_60 [1] : vector<7x32xf32> to vector<7xf32>
    %183 = vector.shape_cast %182 : vector<7xf32> to vector<7x1xf32>
    %cst_61 = arith.constant 3.200000e+01 : f32
    %184 = vector.broadcast %cst_61 : f32 to vector<7x1xf32>
    %185 = arith.divf %183, %184 : vector<7x1xf32>
    %186 = vector.broadcast %178 : vector<7x1xf32> to vector<7x32xf32>
    %187 = arith.subf %173, %186 : vector<7x32xf32>
    %cst_62 = arith.constant 9.99999974E-6 : f32
    %188 = vector.broadcast %cst_62 : f32 to vector<7x1xf32>
    %189 = arith.addf %185, %188 : vector<7x1xf32>
    %190 = math.rsqrt %189 : vector<7x1xf32>
    %191 = vector.broadcast %190 : vector<7x1xf32> to vector<7x32xf32>
    %192 = arith.mulf %187, %191 : vector<7x32xf32>
    %193 = vector.extract_strided_slice %174 {offsets = [0, 0], sizes = [1, 32], strides = [1, 1]} : vector<2x32xf32> to vector<1x32xf32>
    %194 = vector.broadcast %193 : vector<1x32xf32> to vector<7x32xf32>
    %195 = arith.mulf %192, %194 : vector<7x32xf32>
    %196 = vector.extract_strided_slice %174 {offsets = [1, 0], sizes = [1, 32], strides = [1, 1]} : vector<2x32xf32> to vector<1x32xf32>
    %197 = vector.broadcast %196 : vector<1x32xf32> to vector<7x32xf32>
    %198 = arith.addf %195, %197 : vector<7x32xf32>
    %199 = arith.addf %198, %1 : vector<7x32xf32>
    %200 = arith.addf %3, %4 : vector<64x32xf32>
    %c344 = arith.constant 344 : index
    %c0_63 = arith.constant 0 : index
    %201 = vector.load %arg3[%c344, %c0_63] : memref<1056x128xf32, #tpu.memory_space<vmem>>, vector<32x48xf32>
    %c376 = arith.constant 376 : index
    %c0_64 = arith.constant 0 : index
    %202 = vector.load %arg3[%c376, %c0_64] : memref<1056x128xf32, #tpu.memory_space<vmem>>, vector<1x48xf32>
    %c384 = arith.constant 384 : index
    %c0_65 = arith.constant 0 : index
    %203 = vector.load %arg3[%c384, %c0_65] : memref<1056x128xf32, #tpu.memory_space<vmem>>, vector<16x32xf32>
    %c400 = arith.constant 400 : index
    %c0_66 = arith.constant 0 : index
    %204 = vector.load %arg3[%c400, %c0_66] : memref<1056x128xf32, #tpu.memory_space<vmem>>, vector<1x32xf32>
    %205 = vector.extract_strided_slice %201 {offsets = [0, 0], sizes = [32, 16], strides = [1, 1]} : vector<32x48xf32> to vector<32x16xf32>
    %cst_67 = arith.constant dense<0.000000e+00> : vector<64x16xf32>
    %206 = tpu.matmul %200, %205, %cst_67 {dimension_numbers = #tpu.dot_dimension_numbers<[1], [0], [0], [1], [0, 0, 1, 1], [], []>} : vector<64x32xf32>, vector<32x16xf32>, vector<64x16xf32> -> vector<64x16xf32>
    %207 = vector.extract_strided_slice %202 {offsets = [0, 0], sizes = [1, 16], strides = [1, 1]} : vector<1x48xf32> to vector<1x16xf32>
    %208 = vector.broadcast %207 : vector<1x16xf32> to vector<64x16xf32>
    %209 = arith.addf %206, %208 : vector<64x16xf32>
    %210 = vector.extract_strided_slice %201 {offsets = [0, 16], sizes = [32, 16], strides = [1, 1]} : vector<32x48xf32> to vector<32x16xf32>
    %cst_68 = arith.constant dense<0.000000e+00> : vector<7x16xf32>
    %211 = tpu.matmul %199, %210, %cst_68 {dimension_numbers = #tpu.dot_dimension_numbers<[1], [0], [0], [1], [0, 0, 1, 1], [], []>} : vector<7x32xf32>, vector<32x16xf32>, vector<7x16xf32> -> vector<7x16xf32>
    %212 = vector.extract_strided_slice %202 {offsets = [0, 16], sizes = [1, 16], strides = [1, 1]} : vector<1x48xf32> to vector<1x16xf32>
    %213 = vector.broadcast %212 : vector<1x16xf32> to vector<7x16xf32>
    %214 = arith.addf %211, %213 : vector<7x16xf32>
    %215 = vector.extract_strided_slice %201 {offsets = [0, 32], sizes = [32, 16], strides = [1, 1]} : vector<32x48xf32> to vector<32x16xf32>
    %cst_69 = arith.constant dense<0.000000e+00> : vector<7x16xf32>
    %216 = tpu.matmul %198, %215, %cst_69 {dimension_numbers = #tpu.dot_dimension_numbers<[1], [0], [0], [1], [0, 0, 1, 1], [], []>} : vector<7x32xf32>, vector<32x16xf32>, vector<7x16xf32> -> vector<7x16xf32>
    %217 = vector.extract_strided_slice %202 {offsets = [0, 32], sizes = [1, 16], strides = [1, 1]} : vector<1x48xf32> to vector<1x16xf32>
    %218 = vector.broadcast %217 : vector<1x16xf32> to vector<7x16xf32>
    %219 = arith.addf %216, %218 : vector<7x16xf32>
    %220 = vector.extract_strided_slice %209 {offsets = [0, 0], sizes = [64, 8], strides = [1, 1]} : vector<64x16xf32> to vector<64x8xf32>
    %221 = vector.extract_strided_slice %214 {offsets = [0, 0], sizes = [7, 8], strides = [1, 1]} : vector<7x16xf32> to vector<7x8xf32>
    %222 = vector.extract_strided_slice %219 {offsets = [0, 0], sizes = [7, 8], strides = [1, 1]} : vector<7x16xf32> to vector<7x8xf32>
    %cst_70 = arith.constant dense<0.000000e+00> : vector<64x7xf32>
    %223 = tpu.matmul %220, %221, %cst_70 {dimension_numbers = #tpu.dot_dimension_numbers<[1], [1], [0], [0], [0, 0, 1, 0], [], []>} : vector<64x8xf32>, vector<7x8xf32>, vector<64x7xf32> -> vector<64x7xf32>
    %cst_71 = arith.constant dense<0xFF800000> : vector<64xf32>
    %224 = vector.multi_reduction <maximumf>, %223, %cst_71 [1] : vector<64x7xf32> to vector<64xf32>
    %225 = vector.shape_cast %224 : vector<64xf32> to vector<64x1xf32>
    %226 = vector.broadcast %225 : vector<64x1xf32> to vector<64x7xf32>
    %227 = arith.subf %223, %226 : vector<64x7xf32>
    %228 = math.exp %227 : vector<64x7xf32>
    %cst_72 = arith.constant dense<0.000000e+00> : vector<64xf32>
    %229 = vector.multi_reduction <add>, %228, %cst_72 [1] : vector<64x7xf32> to vector<64xf32>
    %230 = vector.shape_cast %229 : vector<64xf32> to vector<64x1xf32>
    %231 = tpu.reciprocal %230 {approx = true} : vector<64x1xf32> -> vector<64x1xf32>
    %232 = vector.broadcast %231 : vector<64x1xf32> to vector<64x7xf32>
    %233 = arith.mulf %228, %232 : vector<64x7xf32>
    %cst_73 = arith.constant dense<0.000000e+00> : vector<64x8xf32>
    %234 = tpu.matmul %233, %222, %cst_73 {dimension_numbers = #tpu.dot_dimension_numbers<[1], [0], [0], [1], [0, 0, 1, 1], [], []>} : vector<64x7xf32>, vector<7x8xf32>, vector<64x8xf32> -> vector<64x8xf32>
    %235 = vector.extract_strided_slice %203 {offsets = [0, 0], sizes = [8, 32], strides = [1, 1]} : vector<16x32xf32> to vector<8x32xf32>
    %cst_74 = arith.constant dense<0.000000e+00> : vector<64x32xf32>
    %236 = tpu.matmul %234, %235, %cst_74 {dimension_numbers = #tpu.dot_dimension_numbers<[1], [0], [0], [1], [0, 0, 1, 1], [], []>} : vector<64x8xf32>, vector<8x32xf32>, vector<64x32xf32> -> vector<64x32xf32>
    %237 = vector.extract_strided_slice %209 {offsets = [0, 8], sizes = [64, 8], strides = [1, 1]} : vector<64x16xf32> to vector<64x8xf32>
    %238 = vector.extract_strided_slice %214 {offsets = [0, 8], sizes = [7, 8], strides = [1, 1]} : vector<7x16xf32> to vector<7x8xf32>
    %239 = vector.extract_strided_slice %219 {offsets = [0, 8], sizes = [7, 8], strides = [1, 1]} : vector<7x16xf32> to vector<7x8xf32>
    %cst_75 = arith.constant dense<0.000000e+00> : vector<64x7xf32>
    %240 = tpu.matmul %237, %238, %cst_75 {dimension_numbers = #tpu.dot_dimension_numbers<[1], [1], [0], [0], [0, 0, 1, 0], [], []>} : vector<64x8xf32>, vector<7x8xf32>, vector<64x7xf32> -> vector<64x7xf32>
    %cst_76 = arith.constant dense<0xFF800000> : vector<64xf32>
    %241 = vector.multi_reduction <maximumf>, %240, %cst_76 [1] : vector<64x7xf32> to vector<64xf32>
    %242 = vector.shape_cast %241 : vector<64xf32> to vector<64x1xf32>
    %243 = vector.broadcast %242 : vector<64x1xf32> to vector<64x7xf32>
    %244 = arith.subf %240, %243 : vector<64x7xf32>
    %245 = math.exp %244 : vector<64x7xf32>
    %cst_77 = arith.constant dense<0.000000e+00> : vector<64xf32>
    %246 = vector.multi_reduction <add>, %245, %cst_77 [1] : vector<64x7xf32> to vector<64xf32>
    %247 = vector.shape_cast %246 : vector<64xf32> to vector<64x1xf32>
    %248 = tpu.reciprocal %247 {approx = true} : vector<64x1xf32> -> vector<64x1xf32>
    %249 = vector.broadcast %248 : vector<64x1xf32> to vector<64x7xf32>
    %250 = arith.mulf %245, %249 : vector<64x7xf32>
    %cst_78 = arith.constant dense<0.000000e+00> : vector<64x8xf32>
    %251 = tpu.matmul %250, %239, %cst_78 {dimension_numbers = #tpu.dot_dimension_numbers<[1], [0], [0], [1], [0, 0, 1, 1], [], []>} : vector<64x7xf32>, vector<7x8xf32>, vector<64x8xf32> -> vector<64x8xf32>
    %252 = vector.extract_strided_slice %203 {offsets = [8, 0], sizes = [8, 32], strides = [1, 1]} : vector<16x32xf32> to vector<8x32xf32>
    %cst_79 = arith.constant dense<0.000000e+00> : vector<64x32xf32>
    %253 = tpu.matmul %251, %252, %cst_79 {dimension_numbers = #tpu.dot_dimension_numbers<[1], [0], [0], [1], [0, 0, 1, 1], [], []>} : vector<64x8xf32>, vector<8x32xf32>, vector<64x32xf32> -> vector<64x32xf32>
    %254 = arith.addf %236, %253 : vector<64x32xf32>
    %255 = vector.broadcast %204 : vector<1x32xf32> to vector<64x32xf32>
    %256 = arith.addf %254, %255 : vector<64x32xf32>
    %257 = arith.addf %3, %256 : vector<64x32xf32>
    %c408 = arith.constant 408 : index
    %c0_80 = arith.constant 0 : index
    %258 = vector.load %arg3[%c408, %c0_80] : memref<1056x128xf32, #tpu.memory_space<vmem>>, vector<2x32xf32>
    %cst_81 = arith.constant dense<0.000000e+00> : vector<64xf32>
    %259 = vector.multi_reduction <add>, %257, %cst_81 [1] : vector<64x32xf32> to vector<64xf32>
    %260 = vector.shape_cast %259 : vector<64xf32> to vector<64x1xf32>
    %cst_82 = arith.constant 3.200000e+01 : f32
    %261 = vector.broadcast %cst_82 : f32 to vector<64x1xf32>
    %262 = arith.divf %260, %261 : vector<64x1xf32>
    %263 = vector.broadcast %262 : vector<64x1xf32> to vector<64x32xf32>
    %264 = arith.subf %257, %263 : vector<64x32xf32>
    %265 = arith.mulf %264, %264 : vector<64x32xf32>
    %cst_83 = arith.constant dense<0.000000e+00> : vector<64xf32>
    %266 = vector.multi_reduction <add>, %265, %cst_83 [1] : vector<64x32xf32> to vector<64xf32>
    %267 = vector.shape_cast %266 : vector<64xf32> to vector<64x1xf32>
    %cst_84 = arith.constant 3.200000e+01 : f32
    %268 = vector.broadcast %cst_84 : f32 to vector<64x1xf32>
    %269 = arith.divf %267, %268 : vector<64x1xf32>
    %270 = vector.broadcast %262 : vector<64x1xf32> to vector<64x32xf32>
    %271 = arith.subf %257, %270 : vector<64x32xf32>
    %cst_85 = arith.constant 9.99999974E-6 : f32
    %272 = vector.broadcast %cst_85 : f32 to vector<64x1xf32>
    %273 = arith.addf %269, %272 : vector<64x1xf32>
    %274 = math.rsqrt %273 : vector<64x1xf32>
    %275 = vector.broadcast %274 : vector<64x1xf32> to vector<64x32xf32>
    %276 = arith.mulf %271, %275 : vector<64x32xf32>
    %277 = vector.extract_strided_slice %258 {offsets = [0, 0], sizes = [1, 32], strides = [1, 1]} : vector<2x32xf32> to vector<1x32xf32>
    %278 = vector.broadcast %277 : vector<1x32xf32> to vector<64x32xf32>
    %279 = arith.mulf %276, %278 : vector<64x32xf32>
    %280 = vector.extract_strided_slice %258 {offsets = [1, 0], sizes = [1, 32], strides = [1, 1]} : vector<2x32xf32> to vector<1x32xf32>
    %281 = vector.broadcast %280 : vector<1x32xf32> to vector<64x32xf32>
    %282 = arith.addf %279, %281 : vector<64x32xf32>
    %283 = arith.addf %198, %1 : vector<7x32xf32>
    %c416 = arith.constant 416 : index
    %c0_86 = arith.constant 0 : index
    %284 = vector.load %arg3[%c416, %c0_86] : memref<1056x128xf32, #tpu.memory_space<vmem>>, vector<32x96xf32>
    %c448 = arith.constant 448 : index
    %c0_87 = arith.constant 0 : index
    %285 = vector.load %arg3[%c448, %c0_87] : memref<1056x128xf32, #tpu.memory_space<vmem>>, vector<1x96xf32>
    %c456 = arith.constant 456 : index
    %c0_88 = arith.constant 0 : index
    %286 = vector.load %arg3[%c456, %c0_88] : memref<1056x128xf32, #tpu.memory_space<vmem>>, vector<32x32xf32>
    %c488 = arith.constant 488 : index
    %c0_89 = arith.constant 0 : index
    %287 = vector.load %arg3[%c488, %c0_89] : memref<1056x128xf32, #tpu.memory_space<vmem>>, vector<1x32xf32>
    %288 = vector.extract_strided_slice %284 {offsets = [0, 0], sizes = [32, 64], strides = [1, 1]} : vector<32x96xf32> to vector<32x64xf32>
    %cst_90 = arith.constant dense<0.000000e+00> : vector<7x64xf32>
    %289 = tpu.matmul %283, %288, %cst_90 {dimension_numbers = #tpu.dot_dimension_numbers<[1], [0], [0], [1], [0, 0, 1, 1], [], []>} : vector<7x32xf32>, vector<32x64xf32>, vector<7x64xf32> -> vector<7x64xf32>
    %290 = vector.extract_strided_slice %285 {offsets = [0, 0], sizes = [1, 64], strides = [1, 1]} : vector<1x96xf32> to vector<1x64xf32>
    %291 = vector.broadcast %290 : vector<1x64xf32> to vector<7x64xf32>
    %292 = arith.addf %289, %291 : vector<7x64xf32>
    %293 = vector.extract_strided_slice %292 {offsets = [0, 0], sizes = [7, 32], strides = [1, 1]} : vector<7x64xf32> to vector<7x32xf32>
    %294 = vector.extract_strided_slice %292 {offsets = [0, 32], sizes = [7, 32], strides = [1, 1]} : vector<7x64xf32> to vector<7x32xf32>
    %295 = vector.extract_strided_slice %284 {offsets = [0, 64], sizes = [32, 32], strides = [1, 1]} : vector<32x96xf32> to vector<32x32xf32>
    %cst_91 = arith.constant dense<0.000000e+00> : vector<7x32xf32>
    %296 = tpu.matmul %198, %295, %cst_91 {dimension_numbers = #tpu.dot_dimension_numbers<[1], [0], [0], [1], [0, 0, 1, 1], [], []>} : vector<7x32xf32>, vector<32x32xf32>, vector<7x32xf32> -> vector<7x32xf32>
    %297 = vector.extract_strided_slice %285 {offsets = [0, 64], sizes = [1, 32], strides = [1, 1]} : vector<1x96xf32> to vector<1x32xf32>
    %298 = vector.broadcast %297 : vector<1x32xf32> to vector<7x32xf32>
    %299 = arith.addf %296, %298 : vector<7x32xf32>
    %300 = vector.extract_strided_slice %293 {offsets = [0, 0], sizes = [7, 16], strides = [1, 1]} : vector<7x32xf32> to vector<7x16xf32>
    %301 = vector.extract_strided_slice %294 {offsets = [0, 0], sizes = [7, 16], strides = [1, 1]} : vector<7x32xf32> to vector<7x16xf32>
    %302 = vector.extract_strided_slice %299 {offsets = [0, 0], sizes = [7, 16], strides = [1, 1]} : vector<7x32xf32> to vector<7x16xf32>
    %cst_92 = arith.constant dense<0.000000e+00> : vector<7x7xf32>
    %303 = tpu.matmul %300, %301, %cst_92 {dimension_numbers = #tpu.dot_dimension_numbers<[1], [1], [0], [0], [0, 0, 1, 0], [], []>} : vector<7x16xf32>, vector<7x16xf32>, vector<7x7xf32> -> vector<7x7xf32>
    %cst_93 = arith.constant dense<0xFF800000> : vector<7xf32>
    %304 = vector.multi_reduction <maximumf>, %303, %cst_93 [1] : vector<7x7xf32> to vector<7xf32>
    %305 = vector.shape_cast %304 : vector<7xf32> to vector<7x1xf32>
    %306 = vector.broadcast %305 : vector<7x1xf32> to vector<7x7xf32>
    %307 = arith.subf %303, %306 : vector<7x7xf32>
    %308 = math.exp %307 : vector<7x7xf32>
    %cst_94 = arith.constant dense<0.000000e+00> : vector<7xf32>
    %309 = vector.multi_reduction <add>, %308, %cst_94 [1] : vector<7x7xf32> to vector<7xf32>
    %310 = vector.shape_cast %309 : vector<7xf32> to vector<7x1xf32>
    %311 = tpu.reciprocal %310 {approx = true} : vector<7x1xf32> -> vector<7x1xf32>
    %312 = vector.broadcast %311 : vector<7x1xf32> to vector<7x7xf32>
    %313 = arith.mulf %308, %312 : vector<7x7xf32>
    %cst_95 = arith.constant dense<0.000000e+00> : vector<7x16xf32>
    %314 = tpu.matmul %313, %302, %cst_95 {dimension_numbers = #tpu.dot_dimension_numbers<[1], [0], [0], [1], [0, 0, 1, 1], [], []>} : vector<7x7xf32>, vector<7x16xf32>, vector<7x16xf32> -> vector<7x16xf32>
    %315 = vector.extract_strided_slice %286 {offsets = [0, 0], sizes = [16, 32], strides = [1, 1]} : vector<32x32xf32> to vector<16x32xf32>
    %cst_96 = arith.constant dense<0.000000e+00> : vector<7x32xf32>
    %316 = tpu.matmul %314, %315, %cst_96 {dimension_numbers = #tpu.dot_dimension_numbers<[1], [0], [0], [1], [0, 0, 1, 1], [], []>} : vector<7x16xf32>, vector<16x32xf32>, vector<7x32xf32> -> vector<7x32xf32>
    %317 = vector.extract_strided_slice %293 {offsets = [0, 16], sizes = [7, 16], strides = [1, 1]} : vector<7x32xf32> to vector<7x16xf32>
    %318 = vector.extract_strided_slice %294 {offsets = [0, 16], sizes = [7, 16], strides = [1, 1]} : vector<7x32xf32> to vector<7x16xf32>
    %319 = vector.extract_strided_slice %299 {offsets = [0, 16], sizes = [7, 16], strides = [1, 1]} : vector<7x32xf32> to vector<7x16xf32>
    %cst_97 = arith.constant dense<0.000000e+00> : vector<7x7xf32>
    %320 = tpu.matmul %317, %318, %cst_97 {dimension_numbers = #tpu.dot_dimension_numbers<[1], [1], [0], [0], [0, 0, 1, 0], [], []>} : vector<7x16xf32>, vector<7x16xf32>, vector<7x7xf32> -> vector<7x7xf32>
    %cst_98 = arith.constant dense<0xFF800000> : vector<7xf32>
    %321 = vector.multi_reduction <maximumf>, %320, %cst_98 [1] : vector<7x7xf32> to vector<7xf32>
    %322 = vector.shape_cast %321 : vector<7xf32> to vector<7x1xf32>
    %323 = vector.broadcast %322 : vector<7x1xf32> to vector<7x7xf32>
    %324 = arith.subf %320, %323 : vector<7x7xf32>
    %325 = math.exp %324 : vector<7x7xf32>
    %cst_99 = arith.constant dense<0.000000e+00> : vector<7xf32>
    %326 = vector.multi_reduction <add>, %325, %cst_99 [1] : vector<7x7xf32> to vector<7xf32>
    %327 = vector.shape_cast %326 : vector<7xf32> to vector<7x1xf32>
    %328 = tpu.reciprocal %327 {approx = true} : vector<7x1xf32> -> vector<7x1xf32>
    %329 = vector.broadcast %328 : vector<7x1xf32> to vector<7x7xf32>
    %330 = arith.mulf %325, %329 : vector<7x7xf32>
    %cst_100 = arith.constant dense<0.000000e+00> : vector<7x16xf32>
    %331 = tpu.matmul %330, %319, %cst_100 {dimension_numbers = #tpu.dot_dimension_numbers<[1], [0], [0], [1], [0, 0, 1, 1], [], []>} : vector<7x7xf32>, vector<7x16xf32>, vector<7x16xf32> -> vector<7x16xf32>
    %332 = vector.extract_strided_slice %286 {offsets = [16, 0], sizes = [16, 32], strides = [1, 1]} : vector<32x32xf32> to vector<16x32xf32>
    %cst_101 = arith.constant dense<0.000000e+00> : vector<7x32xf32>
    %333 = tpu.matmul %331, %332, %cst_101 {dimension_numbers = #tpu.dot_dimension_numbers<[1], [0], [0], [1], [0, 0, 1, 1], [], []>} : vector<7x16xf32>, vector<16x32xf32>, vector<7x32xf32> -> vector<7x32xf32>
    %334 = arith.addf %316, %333 : vector<7x32xf32>
    %335 = vector.broadcast %287 : vector<1x32xf32> to vector<7x32xf32>
    %336 = arith.addf %334, %335 : vector<7x32xf32>
    %337 = arith.addf %198, %336 : vector<7x32xf32>
    %c496 = arith.constant 496 : index
    %c0_102 = arith.constant 0 : index
    %338 = vector.load %arg3[%c496, %c0_102] : memref<1056x128xf32, #tpu.memory_space<vmem>>, vector<2x32xf32>
    %cst_103 = arith.constant dense<0.000000e+00> : vector<7xf32>
    %339 = vector.multi_reduction <add>, %337, %cst_103 [1] : vector<7x32xf32> to vector<7xf32>
    %340 = vector.shape_cast %339 : vector<7xf32> to vector<7x1xf32>
    %cst_104 = arith.constant 3.200000e+01 : f32
    %341 = vector.broadcast %cst_104 : f32 to vector<7x1xf32>
    %342 = arith.divf %340, %341 : vector<7x1xf32>
    %343 = vector.broadcast %342 : vector<7x1xf32> to vector<7x32xf32>
    %344 = arith.subf %337, %343 : vector<7x32xf32>
    %345 = arith.mulf %344, %344 : vector<7x32xf32>
    %cst_105 = arith.constant dense<0.000000e+00> : vector<7xf32>
    %346 = vector.multi_reduction <add>, %345, %cst_105 [1] : vector<7x32xf32> to vector<7xf32>
    %347 = vector.shape_cast %346 : vector<7xf32> to vector<7x1xf32>
    %cst_106 = arith.constant 3.200000e+01 : f32
    %348 = vector.broadcast %cst_106 : f32 to vector<7x1xf32>
    %349 = arith.divf %347, %348 : vector<7x1xf32>
    %350 = vector.broadcast %342 : vector<7x1xf32> to vector<7x32xf32>
    %351 = arith.subf %337, %350 : vector<7x32xf32>
    %cst_107 = arith.constant 9.99999974E-6 : f32
    %352 = vector.broadcast %cst_107 : f32 to vector<7x1xf32>
    %353 = arith.addf %349, %352 : vector<7x1xf32>
    %354 = math.rsqrt %353 : vector<7x1xf32>
    %355 = vector.broadcast %354 : vector<7x1xf32> to vector<7x32xf32>
    %356 = arith.mulf %351, %355 : vector<7x32xf32>
    %357 = vector.extract_strided_slice %338 {offsets = [0, 0], sizes = [1, 32], strides = [1, 1]} : vector<2x32xf32> to vector<1x32xf32>
    %358 = vector.broadcast %357 : vector<1x32xf32> to vector<7x32xf32>
    %359 = arith.mulf %356, %358 : vector<7x32xf32>
    %360 = vector.extract_strided_slice %338 {offsets = [1, 0], sizes = [1, 32], strides = [1, 1]} : vector<2x32xf32> to vector<1x32xf32>
    %361 = vector.broadcast %360 : vector<1x32xf32> to vector<7x32xf32>
    %362 = arith.addf %359, %361 : vector<7x32xf32>
    %363 = arith.addf %362, %1 : vector<7x32xf32>
    %364 = arith.addf %282, %4 : vector<64x32xf32>
    %c504 = arith.constant 504 : index
    %c0_108 = arith.constant 0 : index
    %365 = vector.load %arg3[%c504, %c0_108] : memref<1056x128xf32, #tpu.memory_space<vmem>>, vector<32x48xf32>
    %c536 = arith.constant 536 : index
    %c0_109 = arith.constant 0 : index
    %366 = vector.load %arg3[%c536, %c0_109] : memref<1056x128xf32, #tpu.memory_space<vmem>>, vector<1x48xf32>
    %c544 = arith.constant 544 : index
    %c0_110 = arith.constant 0 : index
    %367 = vector.load %arg3[%c544, %c0_110] : memref<1056x128xf32, #tpu.memory_space<vmem>>, vector<16x32xf32>
    %c560 = arith.constant 560 : index
    %c0_111 = arith.constant 0 : index
    %368 = vector.load %arg3[%c560, %c0_111] : memref<1056x128xf32, #tpu.memory_space<vmem>>, vector<1x32xf32>
    %369 = vector.extract_strided_slice %365 {offsets = [0, 0], sizes = [32, 16], strides = [1, 1]} : vector<32x48xf32> to vector<32x16xf32>
    %cst_112 = arith.constant dense<0.000000e+00> : vector<7x16xf32>
    %370 = tpu.matmul %363, %369, %cst_112 {dimension_numbers = #tpu.dot_dimension_numbers<[1], [0], [0], [1], [0, 0, 1, 1], [], []>} : vector<7x32xf32>, vector<32x16xf32>, vector<7x16xf32> -> vector<7x16xf32>
    %371 = vector.extract_strided_slice %366 {offsets = [0, 0], sizes = [1, 16], strides = [1, 1]} : vector<1x48xf32> to vector<1x16xf32>
    %372 = vector.broadcast %371 : vector<1x16xf32> to vector<7x16xf32>
    %373 = arith.addf %370, %372 : vector<7x16xf32>
    %374 = vector.extract_strided_slice %365 {offsets = [0, 16], sizes = [32, 16], strides = [1, 1]} : vector<32x48xf32> to vector<32x16xf32>
    %cst_113 = arith.constant dense<0.000000e+00> : vector<64x16xf32>
    %375 = tpu.matmul %364, %374, %cst_113 {dimension_numbers = #tpu.dot_dimension_numbers<[1], [0], [0], [1], [0, 0, 1, 1], [], []>} : vector<64x32xf32>, vector<32x16xf32>, vector<64x16xf32> -> vector<64x16xf32>
    %376 = vector.extract_strided_slice %366 {offsets = [0, 16], sizes = [1, 16], strides = [1, 1]} : vector<1x48xf32> to vector<1x16xf32>
    %377 = vector.broadcast %376 : vector<1x16xf32> to vector<64x16xf32>
    %378 = arith.addf %375, %377 : vector<64x16xf32>
    %379 = vector.extract_strided_slice %365 {offsets = [0, 32], sizes = [32, 16], strides = [1, 1]} : vector<32x48xf32> to vector<32x16xf32>
    %cst_114 = arith.constant dense<0.000000e+00> : vector<64x16xf32>
    %380 = tpu.matmul %282, %379, %cst_114 {dimension_numbers = #tpu.dot_dimension_numbers<[1], [0], [0], [1], [0, 0, 1, 1], [], []>} : vector<64x32xf32>, vector<32x16xf32>, vector<64x16xf32> -> vector<64x16xf32>
    %381 = vector.extract_strided_slice %366 {offsets = [0, 32], sizes = [1, 16], strides = [1, 1]} : vector<1x48xf32> to vector<1x16xf32>
    %382 = vector.broadcast %381 : vector<1x16xf32> to vector<64x16xf32>
    %383 = arith.addf %380, %382 : vector<64x16xf32>
    %384 = vector.extract_strided_slice %373 {offsets = [0, 0], sizes = [7, 8], strides = [1, 1]} : vector<7x16xf32> to vector<7x8xf32>
    %385 = vector.extract_strided_slice %378 {offsets = [0, 0], sizes = [64, 8], strides = [1, 1]} : vector<64x16xf32> to vector<64x8xf32>
    %386 = vector.extract_strided_slice %383 {offsets = [0, 0], sizes = [64, 8], strides = [1, 1]} : vector<64x16xf32> to vector<64x8xf32>
    %cst_115 = arith.constant dense<0.000000e+00> : vector<7x64xf32>
    %387 = tpu.matmul %384, %385, %cst_115 {dimension_numbers = #tpu.dot_dimension_numbers<[1], [1], [0], [0], [0, 0, 1, 0], [], []>} : vector<7x8xf32>, vector<64x8xf32>, vector<7x64xf32> -> vector<7x64xf32>
    %cst_116 = arith.constant dense<0xFF800000> : vector<7xf32>
    %388 = vector.multi_reduction <maximumf>, %387, %cst_116 [1] : vector<7x64xf32> to vector<7xf32>
    %389 = vector.shape_cast %388 : vector<7xf32> to vector<7x1xf32>
    %390 = vector.broadcast %389 : vector<7x1xf32> to vector<7x64xf32>
    %391 = arith.subf %387, %390 : vector<7x64xf32>
    %392 = math.exp %391 : vector<7x64xf32>
    %cst_117 = arith.constant dense<0.000000e+00> : vector<7xf32>
    %393 = vector.multi_reduction <add>, %392, %cst_117 [1] : vector<7x64xf32> to vector<7xf32>
    %394 = vector.shape_cast %393 : vector<7xf32> to vector<7x1xf32>
    %395 = tpu.reciprocal %394 {approx = true} : vector<7x1xf32> -> vector<7x1xf32>
    %396 = vector.broadcast %395 : vector<7x1xf32> to vector<7x64xf32>
    %397 = arith.mulf %392, %396 : vector<7x64xf32>
    %cst_118 = arith.constant dense<0.000000e+00> : vector<7x8xf32>
    %398 = tpu.matmul %397, %386, %cst_118 {dimension_numbers = #tpu.dot_dimension_numbers<[1], [0], [0], [1], [0, 0, 1, 1], [], []>} : vector<7x64xf32>, vector<64x8xf32>, vector<7x8xf32> -> vector<7x8xf32>
    %399 = vector.extract_strided_slice %367 {offsets = [0, 0], sizes = [8, 32], strides = [1, 1]} : vector<16x32xf32> to vector<8x32xf32>
    %cst_119 = arith.constant dense<0.000000e+00> : vector<7x32xf32>
    %400 = tpu.matmul %398, %399, %cst_119 {dimension_numbers = #tpu.dot_dimension_numbers<[1], [0], [0], [1], [0, 0, 1, 1], [], []>} : vector<7x8xf32>, vector<8x32xf32>, vector<7x32xf32> -> vector<7x32xf32>
    %401 = vector.extract_strided_slice %373 {offsets = [0, 8], sizes = [7, 8], strides = [1, 1]} : vector<7x16xf32> to vector<7x8xf32>
    %402 = vector.extract_strided_slice %378 {offsets = [0, 8], sizes = [64, 8], strides = [1, 1]} : vector<64x16xf32> to vector<64x8xf32>
    %403 = vector.extract_strided_slice %383 {offsets = [0, 8], sizes = [64, 8], strides = [1, 1]} : vector<64x16xf32> to vector<64x8xf32>
    %cst_120 = arith.constant dense<0.000000e+00> : vector<7x64xf32>
    %404 = tpu.matmul %401, %402, %cst_120 {dimension_numbers = #tpu.dot_dimension_numbers<[1], [1], [0], [0], [0, 0, 1, 0], [], []>} : vector<7x8xf32>, vector<64x8xf32>, vector<7x64xf32> -> vector<7x64xf32>
    %cst_121 = arith.constant dense<0xFF800000> : vector<7xf32>
    %405 = vector.multi_reduction <maximumf>, %404, %cst_121 [1] : vector<7x64xf32> to vector<7xf32>
    %406 = vector.shape_cast %405 : vector<7xf32> to vector<7x1xf32>
    %407 = vector.broadcast %406 : vector<7x1xf32> to vector<7x64xf32>
    %408 = arith.subf %404, %407 : vector<7x64xf32>
    %409 = math.exp %408 : vector<7x64xf32>
    %cst_122 = arith.constant dense<0.000000e+00> : vector<7xf32>
    %410 = vector.multi_reduction <add>, %409, %cst_122 [1] : vector<7x64xf32> to vector<7xf32>
    %411 = vector.shape_cast %410 : vector<7xf32> to vector<7x1xf32>
    %412 = tpu.reciprocal %411 {approx = true} : vector<7x1xf32> -> vector<7x1xf32>
    %413 = vector.broadcast %412 : vector<7x1xf32> to vector<7x64xf32>
    %414 = arith.mulf %409, %413 : vector<7x64xf32>
    %cst_123 = arith.constant dense<0.000000e+00> : vector<7x8xf32>
    %415 = tpu.matmul %414, %403, %cst_123 {dimension_numbers = #tpu.dot_dimension_numbers<[1], [0], [0], [1], [0, 0, 1, 1], [], []>} : vector<7x64xf32>, vector<64x8xf32>, vector<7x8xf32> -> vector<7x8xf32>
    %416 = vector.extract_strided_slice %367 {offsets = [8, 0], sizes = [8, 32], strides = [1, 1]} : vector<16x32xf32> to vector<8x32xf32>
    %cst_124 = arith.constant dense<0.000000e+00> : vector<7x32xf32>
    %417 = tpu.matmul %415, %416, %cst_124 {dimension_numbers = #tpu.dot_dimension_numbers<[1], [0], [0], [1], [0, 0, 1, 1], [], []>} : vector<7x8xf32>, vector<8x32xf32>, vector<7x32xf32> -> vector<7x32xf32>
    %418 = arith.addf %400, %417 : vector<7x32xf32>
    %419 = vector.broadcast %368 : vector<1x32xf32> to vector<7x32xf32>
    %420 = arith.addf %418, %419 : vector<7x32xf32>
    %421 = arith.addf %362, %420 : vector<7x32xf32>
    %c568 = arith.constant 568 : index
    %c0_125 = arith.constant 0 : index
    %422 = vector.load %arg3[%c568, %c0_125] : memref<1056x128xf32, #tpu.memory_space<vmem>>, vector<2x32xf32>
    %cst_126 = arith.constant dense<0.000000e+00> : vector<7xf32>
    %423 = vector.multi_reduction <add>, %421, %cst_126 [1] : vector<7x32xf32> to vector<7xf32>
    %424 = vector.shape_cast %423 : vector<7xf32> to vector<7x1xf32>
    %cst_127 = arith.constant 3.200000e+01 : f32
    %425 = vector.broadcast %cst_127 : f32 to vector<7x1xf32>
    %426 = arith.divf %424, %425 : vector<7x1xf32>
    %427 = vector.broadcast %426 : vector<7x1xf32> to vector<7x32xf32>
    %428 = arith.subf %421, %427 : vector<7x32xf32>
    %429 = arith.mulf %428, %428 : vector<7x32xf32>
    %cst_128 = arith.constant dense<0.000000e+00> : vector<7xf32>
    %430 = vector.multi_reduction <add>, %429, %cst_128 [1] : vector<7x32xf32> to vector<7xf32>
    %431 = vector.shape_cast %430 : vector<7xf32> to vector<7x1xf32>
    %cst_129 = arith.constant 3.200000e+01 : f32
    %432 = vector.broadcast %cst_129 : f32 to vector<7x1xf32>
    %433 = arith.divf %431, %432 : vector<7x1xf32>
    %434 = vector.broadcast %426 : vector<7x1xf32> to vector<7x32xf32>
    %435 = arith.subf %421, %434 : vector<7x32xf32>
    %cst_130 = arith.constant 9.99999974E-6 : f32
    %436 = vector.broadcast %cst_130 : f32 to vector<7x1xf32>
    %437 = arith.addf %433, %436 : vector<7x1xf32>
    %438 = math.rsqrt %437 : vector<7x1xf32>
    %439 = vector.broadcast %438 : vector<7x1xf32> to vector<7x32xf32>
    %440 = arith.mulf %435, %439 : vector<7x32xf32>
    %441 = vector.extract_strided_slice %422 {offsets = [0, 0], sizes = [1, 32], strides = [1, 1]} : vector<2x32xf32> to vector<1x32xf32>
    %442 = vector.broadcast %441 : vector<1x32xf32> to vector<7x32xf32>
    %443 = arith.mulf %440, %442 : vector<7x32xf32>
    %444 = vector.extract_strided_slice %422 {offsets = [1, 0], sizes = [1, 32], strides = [1, 1]} : vector<2x32xf32> to vector<1x32xf32>
    %445 = vector.broadcast %444 : vector<1x32xf32> to vector<7x32xf32>
    %446 = arith.addf %443, %445 : vector<7x32xf32>
    %c576 = arith.constant 576 : index
    %c0_131 = arith.constant 0 : index
    %447 = vector.load %arg3[%c576, %c0_131] : memref<1056x128xf32, #tpu.memory_space<vmem>>, vector<32x64xf32>
    %cst_132 = arith.constant dense<0.000000e+00> : vector<7x64xf32>
    %448 = tpu.matmul %446, %447, %cst_132 {dimension_numbers = #tpu.dot_dimension_numbers<[1], [0], [0], [1], [0, 0, 1, 1], [], []>} : vector<7x32xf32>, vector<32x64xf32>, vector<7x64xf32> -> vector<7x64xf32>
    %c608 = arith.constant 608 : index
    %c0_133 = arith.constant 0 : index
    %449 = vector.load %arg3[%c608, %c0_133] : memref<1056x128xf32, #tpu.memory_space<vmem>>, vector<1x64xf32>
    %450 = vector.broadcast %449 : vector<1x64xf32> to vector<7x64xf32>
    %451 = arith.addf %448, %450 : vector<7x64xf32>
    %cst_134 = arith.constant 0.000000e+00 : f32
    %452 = vector.broadcast %cst_134 : f32 to vector<7x64xf32>
    %453 = arith.maximumf %451, %452 : vector<7x64xf32>
    %c616 = arith.constant 616 : index
    %c0_135 = arith.constant 0 : index
    %454 = vector.load %arg3[%c616, %c0_135] : memref<1056x128xf32, #tpu.memory_space<vmem>>, vector<64x32xf32>
    %cst_136 = arith.constant dense<0.000000e+00> : vector<7x32xf32>
    %455 = tpu.matmul %453, %454, %cst_136 {dimension_numbers = #tpu.dot_dimension_numbers<[1], [0], [0], [1], [0, 0, 1, 1], [], []>} : vector<7x64xf32>, vector<64x32xf32>, vector<7x32xf32> -> vector<7x32xf32>
    %456 = arith.addf %446, %455 : vector<7x32xf32>
    %c680 = arith.constant 680 : index
    %c0_137 = arith.constant 0 : index
    %457 = vector.load %arg3[%c680, %c0_137] : memref<1056x128xf32, #tpu.memory_space<vmem>>, vector<1x32xf32>
    %458 = vector.broadcast %457 : vector<1x32xf32> to vector<7x32xf32>
    %459 = arith.addf %456, %458 : vector<7x32xf32>
    %c688 = arith.constant 688 : index
    %c0_138 = arith.constant 0 : index
    %460 = vector.load %arg3[%c688, %c0_138] : memref<1056x128xf32, #tpu.memory_space<vmem>>, vector<2x32xf32>
    %cst_139 = arith.constant dense<0.000000e+00> : vector<7xf32>
    %461 = vector.multi_reduction <add>, %459, %cst_139 [1] : vector<7x32xf32> to vector<7xf32>
    %462 = vector.shape_cast %461 : vector<7xf32> to vector<7x1xf32>
    %cst_140 = arith.constant 3.200000e+01 : f32
    %463 = vector.broadcast %cst_140 : f32 to vector<7x1xf32>
    %464 = arith.divf %462, %463 : vector<7x1xf32>
    %465 = vector.broadcast %464 : vector<7x1xf32> to vector<7x32xf32>
    %466 = arith.subf %459, %465 : vector<7x32xf32>
    %467 = arith.mulf %466, %466 : vector<7x32xf32>
    %cst_141 = arith.constant dense<0.000000e+00> : vector<7xf32>
    %468 = vector.multi_reduction <add>, %467, %cst_141 [1] : vector<7x32xf32> to vector<7xf32>
    %469 = vector.shape_cast %468 : vector<7xf32> to vector<7x1xf32>
    %cst_142 = arith.constant 3.200000e+01 : f32
    %470 = vector.broadcast %cst_142 : f32 to vector<7x1xf32>
    %471 = arith.divf %469, %470 : vector<7x1xf32>
    %472 = vector.broadcast %464 : vector<7x1xf32> to vector<7x32xf32>
    %473 = arith.subf %459, %472 : vector<7x32xf32>
    %cst_143 = arith.constant 9.99999974E-6 : f32
    %474 = vector.broadcast %cst_143 : f32 to vector<7x1xf32>
    %475 = arith.addf %471, %474 : vector<7x1xf32>
    %476 = math.rsqrt %475 : vector<7x1xf32>
    %477 = vector.broadcast %476 : vector<7x1xf32> to vector<7x32xf32>
    %478 = arith.mulf %473, %477 : vector<7x32xf32>
    %479 = vector.extract_strided_slice %460 {offsets = [0, 0], sizes = [1, 32], strides = [1, 1]} : vector<2x32xf32> to vector<1x32xf32>
    %480 = vector.broadcast %479 : vector<1x32xf32> to vector<7x32xf32>
    %481 = arith.mulf %478, %480 : vector<7x32xf32>
    %482 = vector.extract_strided_slice %460 {offsets = [1, 0], sizes = [1, 32], strides = [1, 1]} : vector<2x32xf32> to vector<1x32xf32>
    %483 = vector.broadcast %482 : vector<1x32xf32> to vector<7x32xf32>
    %484 = arith.addf %481, %483 : vector<7x32xf32>
    %485 = arith.addf %484, %1 : vector<7x32xf32>
    %486 = arith.addf %282, %4 : vector<64x32xf32>
    %c696 = arith.constant 696 : index
    %c0_144 = arith.constant 0 : index
    %487 = vector.load %arg3[%c696, %c0_144] : memref<1056x128xf32, #tpu.memory_space<vmem>>, vector<32x48xf32>
    %c728 = arith.constant 728 : index
    %c0_145 = arith.constant 0 : index
    %488 = vector.load %arg3[%c728, %c0_145] : memref<1056x128xf32, #tpu.memory_space<vmem>>, vector<1x48xf32>
    %c736 = arith.constant 736 : index
    %c0_146 = arith.constant 0 : index
    %489 = vector.load %arg3[%c736, %c0_146] : memref<1056x128xf32, #tpu.memory_space<vmem>>, vector<16x32xf32>
    %c752 = arith.constant 752 : index
    %c0_147 = arith.constant 0 : index
    %490 = vector.load %arg3[%c752, %c0_147] : memref<1056x128xf32, #tpu.memory_space<vmem>>, vector<1x32xf32>
    %491 = vector.extract_strided_slice %487 {offsets = [0, 0], sizes = [32, 16], strides = [1, 1]} : vector<32x48xf32> to vector<32x16xf32>
    %cst_148 = arith.constant dense<0.000000e+00> : vector<64x16xf32>
    %492 = tpu.matmul %486, %491, %cst_148 {dimension_numbers = #tpu.dot_dimension_numbers<[1], [0], [0], [1], [0, 0, 1, 1], [], []>} : vector<64x32xf32>, vector<32x16xf32>, vector<64x16xf32> -> vector<64x16xf32>
    %493 = vector.extract_strided_slice %488 {offsets = [0, 0], sizes = [1, 16], strides = [1, 1]} : vector<1x48xf32> to vector<1x16xf32>
    %494 = vector.broadcast %493 : vector<1x16xf32> to vector<64x16xf32>
    %495 = arith.addf %492, %494 : vector<64x16xf32>
    %496 = vector.extract_strided_slice %487 {offsets = [0, 16], sizes = [32, 16], strides = [1, 1]} : vector<32x48xf32> to vector<32x16xf32>
    %cst_149 = arith.constant dense<0.000000e+00> : vector<7x16xf32>
    %497 = tpu.matmul %485, %496, %cst_149 {dimension_numbers = #tpu.dot_dimension_numbers<[1], [0], [0], [1], [0, 0, 1, 1], [], []>} : vector<7x32xf32>, vector<32x16xf32>, vector<7x16xf32> -> vector<7x16xf32>
    %498 = vector.extract_strided_slice %488 {offsets = [0, 16], sizes = [1, 16], strides = [1, 1]} : vector<1x48xf32> to vector<1x16xf32>
    %499 = vector.broadcast %498 : vector<1x16xf32> to vector<7x16xf32>
    %500 = arith.addf %497, %499 : vector<7x16xf32>
    %501 = vector.extract_strided_slice %487 {offsets = [0, 32], sizes = [32, 16], strides = [1, 1]} : vector<32x48xf32> to vector<32x16xf32>
    %cst_150 = arith.constant dense<0.000000e+00> : vector<7x16xf32>
    %502 = tpu.matmul %484, %501, %cst_150 {dimension_numbers = #tpu.dot_dimension_numbers<[1], [0], [0], [1], [0, 0, 1, 1], [], []>} : vector<7x32xf32>, vector<32x16xf32>, vector<7x16xf32> -> vector<7x16xf32>
    %503 = vector.extract_strided_slice %488 {offsets = [0, 32], sizes = [1, 16], strides = [1, 1]} : vector<1x48xf32> to vector<1x16xf32>
    %504 = vector.broadcast %503 : vector<1x16xf32> to vector<7x16xf32>
    %505 = arith.addf %502, %504 : vector<7x16xf32>
    %506 = vector.extract_strided_slice %495 {offsets = [0, 0], sizes = [64, 8], strides = [1, 1]} : vector<64x16xf32> to vector<64x8xf32>
    %507 = vector.extract_strided_slice %500 {offsets = [0, 0], sizes = [7, 8], strides = [1, 1]} : vector<7x16xf32> to vector<7x8xf32>
    %508 = vector.extract_strided_slice %505 {offsets = [0, 0], sizes = [7, 8], strides = [1, 1]} : vector<7x16xf32> to vector<7x8xf32>
    %cst_151 = arith.constant dense<0.000000e+00> : vector<64x7xf32>
    %509 = tpu.matmul %506, %507, %cst_151 {dimension_numbers = #tpu.dot_dimension_numbers<[1], [1], [0], [0], [0, 0, 1, 0], [], []>} : vector<64x8xf32>, vector<7x8xf32>, vector<64x7xf32> -> vector<64x7xf32>
    %cst_152 = arith.constant dense<0xFF800000> : vector<64xf32>
    %510 = vector.multi_reduction <maximumf>, %509, %cst_152 [1] : vector<64x7xf32> to vector<64xf32>
    %511 = vector.shape_cast %510 : vector<64xf32> to vector<64x1xf32>
    %512 = vector.broadcast %511 : vector<64x1xf32> to vector<64x7xf32>
    %513 = arith.subf %509, %512 : vector<64x7xf32>
    %514 = math.exp %513 : vector<64x7xf32>
    %cst_153 = arith.constant dense<0.000000e+00> : vector<64xf32>
    %515 = vector.multi_reduction <add>, %514, %cst_153 [1] : vector<64x7xf32> to vector<64xf32>
    %516 = vector.shape_cast %515 : vector<64xf32> to vector<64x1xf32>
    %517 = tpu.reciprocal %516 {approx = true} : vector<64x1xf32> -> vector<64x1xf32>
    %518 = vector.broadcast %517 : vector<64x1xf32> to vector<64x7xf32>
    %519 = arith.mulf %514, %518 : vector<64x7xf32>
    %cst_154 = arith.constant dense<0.000000e+00> : vector<64x8xf32>
    %520 = tpu.matmul %519, %508, %cst_154 {dimension_numbers = #tpu.dot_dimension_numbers<[1], [0], [0], [1], [0, 0, 1, 1], [], []>} : vector<64x7xf32>, vector<7x8xf32>, vector<64x8xf32> -> vector<64x8xf32>
    %521 = vector.extract_strided_slice %489 {offsets = [0, 0], sizes = [8, 32], strides = [1, 1]} : vector<16x32xf32> to vector<8x32xf32>
    %cst_155 = arith.constant dense<0.000000e+00> : vector<64x32xf32>
    %522 = tpu.matmul %520, %521, %cst_155 {dimension_numbers = #tpu.dot_dimension_numbers<[1], [0], [0], [1], [0, 0, 1, 1], [], []>} : vector<64x8xf32>, vector<8x32xf32>, vector<64x32xf32> -> vector<64x32xf32>
    %523 = vector.extract_strided_slice %495 {offsets = [0, 8], sizes = [64, 8], strides = [1, 1]} : vector<64x16xf32> to vector<64x8xf32>
    %524 = vector.extract_strided_slice %500 {offsets = [0, 8], sizes = [7, 8], strides = [1, 1]} : vector<7x16xf32> to vector<7x8xf32>
    %525 = vector.extract_strided_slice %505 {offsets = [0, 8], sizes = [7, 8], strides = [1, 1]} : vector<7x16xf32> to vector<7x8xf32>
    %cst_156 = arith.constant dense<0.000000e+00> : vector<64x7xf32>
    %526 = tpu.matmul %523, %524, %cst_156 {dimension_numbers = #tpu.dot_dimension_numbers<[1], [1], [0], [0], [0, 0, 1, 0], [], []>} : vector<64x8xf32>, vector<7x8xf32>, vector<64x7xf32> -> vector<64x7xf32>
    %cst_157 = arith.constant dense<0xFF800000> : vector<64xf32>
    %527 = vector.multi_reduction <maximumf>, %526, %cst_157 [1] : vector<64x7xf32> to vector<64xf32>
    %528 = vector.shape_cast %527 : vector<64xf32> to vector<64x1xf32>
    %529 = vector.broadcast %528 : vector<64x1xf32> to vector<64x7xf32>
    %530 = arith.subf %526, %529 : vector<64x7xf32>
    %531 = math.exp %530 : vector<64x7xf32>
    %cst_158 = arith.constant dense<0.000000e+00> : vector<64xf32>
    %532 = vector.multi_reduction <add>, %531, %cst_158 [1] : vector<64x7xf32> to vector<64xf32>
    %533 = vector.shape_cast %532 : vector<64xf32> to vector<64x1xf32>
    %534 = tpu.reciprocal %533 {approx = true} : vector<64x1xf32> -> vector<64x1xf32>
    %535 = vector.broadcast %534 : vector<64x1xf32> to vector<64x7xf32>
    %536 = arith.mulf %531, %535 : vector<64x7xf32>
    %cst_159 = arith.constant dense<0.000000e+00> : vector<64x8xf32>
    %537 = tpu.matmul %536, %525, %cst_159 {dimension_numbers = #tpu.dot_dimension_numbers<[1], [0], [0], [1], [0, 0, 1, 1], [], []>} : vector<64x7xf32>, vector<7x8xf32>, vector<64x8xf32> -> vector<64x8xf32>
    %538 = vector.extract_strided_slice %489 {offsets = [8, 0], sizes = [8, 32], strides = [1, 1]} : vector<16x32xf32> to vector<8x32xf32>
    %cst_160 = arith.constant dense<0.000000e+00> : vector<64x32xf32>
    %539 = tpu.matmul %537, %538, %cst_160 {dimension_numbers = #tpu.dot_dimension_numbers<[1], [0], [0], [1], [0, 0, 1, 1], [], []>} : vector<64x8xf32>, vector<8x32xf32>, vector<64x32xf32> -> vector<64x32xf32>
    %540 = arith.addf %522, %539 : vector<64x32xf32>
    %541 = vector.broadcast %490 : vector<1x32xf32> to vector<64x32xf32>
    %542 = arith.addf %540, %541 : vector<64x32xf32>
    %543 = arith.addf %282, %542 : vector<64x32xf32>
    %c760 = arith.constant 760 : index
    %c0_161 = arith.constant 0 : index
    %544 = vector.load %arg3[%c760, %c0_161] : memref<1056x128xf32, #tpu.memory_space<vmem>>, vector<2x32xf32>
    %cst_162 = arith.constant dense<0.000000e+00> : vector<64xf32>
    %545 = vector.multi_reduction <add>, %543, %cst_162 [1] : vector<64x32xf32> to vector<64xf32>
    %546 = vector.shape_cast %545 : vector<64xf32> to vector<64x1xf32>
    %cst_163 = arith.constant 3.200000e+01 : f32
    %547 = vector.broadcast %cst_163 : f32 to vector<64x1xf32>
    %548 = arith.divf %546, %547 : vector<64x1xf32>
    %549 = vector.broadcast %548 : vector<64x1xf32> to vector<64x32xf32>
    %550 = arith.subf %543, %549 : vector<64x32xf32>
    %551 = arith.mulf %550, %550 : vector<64x32xf32>
    %cst_164 = arith.constant dense<0.000000e+00> : vector<64xf32>
    %552 = vector.multi_reduction <add>, %551, %cst_164 [1] : vector<64x32xf32> to vector<64xf32>
    %553 = vector.shape_cast %552 : vector<64xf32> to vector<64x1xf32>
    %cst_165 = arith.constant 3.200000e+01 : f32
    %554 = vector.broadcast %cst_165 : f32 to vector<64x1xf32>
    %555 = arith.divf %553, %554 : vector<64x1xf32>
    %556 = vector.broadcast %548 : vector<64x1xf32> to vector<64x32xf32>
    %557 = arith.subf %543, %556 : vector<64x32xf32>
    %cst_166 = arith.constant 9.99999974E-6 : f32
    %558 = vector.broadcast %cst_166 : f32 to vector<64x1xf32>
    %559 = arith.addf %555, %558 : vector<64x1xf32>
    %560 = math.rsqrt %559 : vector<64x1xf32>
    %561 = vector.broadcast %560 : vector<64x1xf32> to vector<64x32xf32>
    %562 = arith.mulf %557, %561 : vector<64x32xf32>
    %563 = vector.extract_strided_slice %544 {offsets = [0, 0], sizes = [1, 32], strides = [1, 1]} : vector<2x32xf32> to vector<1x32xf32>
    %564 = vector.broadcast %563 : vector<1x32xf32> to vector<64x32xf32>
    %565 = arith.mulf %562, %564 : vector<64x32xf32>
    %566 = vector.extract_strided_slice %544 {offsets = [1, 0], sizes = [1, 32], strides = [1, 1]} : vector<2x32xf32> to vector<1x32xf32>
    %567 = vector.broadcast %566 : vector<1x32xf32> to vector<64x32xf32>
    %568 = arith.addf %565, %567 : vector<64x32xf32>
    %569 = arith.addf %484, %1 : vector<7x32xf32>
    %570 = arith.addf %568, %4 : vector<64x32xf32>
    %c768 = arith.constant 768 : index
    %c0_167 = arith.constant 0 : index
    %571 = vector.load %arg3[%c768, %c0_167] : memref<1056x128xf32, #tpu.memory_space<vmem>>, vector<32x48xf32>
    %c800 = arith.constant 800 : index
    %c0_168 = arith.constant 0 : index
    %572 = vector.load %arg3[%c800, %c0_168] : memref<1056x128xf32, #tpu.memory_space<vmem>>, vector<1x48xf32>
    %c808 = arith.constant 808 : index
    %c0_169 = arith.constant 0 : index
    %573 = vector.load %arg3[%c808, %c0_169] : memref<1056x128xf32, #tpu.memory_space<vmem>>, vector<16x32xf32>
    %c824 = arith.constant 824 : index
    %c0_170 = arith.constant 0 : index
    %574 = vector.load %arg3[%c824, %c0_170] : memref<1056x128xf32, #tpu.memory_space<vmem>>, vector<1x32xf32>
    %575 = vector.extract_strided_slice %571 {offsets = [0, 0], sizes = [32, 16], strides = [1, 1]} : vector<32x48xf32> to vector<32x16xf32>
    %cst_171 = arith.constant dense<0.000000e+00> : vector<7x16xf32>
    %576 = tpu.matmul %569, %575, %cst_171 {dimension_numbers = #tpu.dot_dimension_numbers<[1], [0], [0], [1], [0, 0, 1, 1], [], []>} : vector<7x32xf32>, vector<32x16xf32>, vector<7x16xf32> -> vector<7x16xf32>
    %577 = vector.extract_strided_slice %572 {offsets = [0, 0], sizes = [1, 16], strides = [1, 1]} : vector<1x48xf32> to vector<1x16xf32>
    %578 = vector.broadcast %577 : vector<1x16xf32> to vector<7x16xf32>
    %579 = arith.addf %576, %578 : vector<7x16xf32>
    %580 = vector.extract_strided_slice %571 {offsets = [0, 16], sizes = [32, 16], strides = [1, 1]} : vector<32x48xf32> to vector<32x16xf32>
    %cst_172 = arith.constant dense<0.000000e+00> : vector<64x16xf32>
    %581 = tpu.matmul %570, %580, %cst_172 {dimension_numbers = #tpu.dot_dimension_numbers<[1], [0], [0], [1], [0, 0, 1, 1], [], []>} : vector<64x32xf32>, vector<32x16xf32>, vector<64x16xf32> -> vector<64x16xf32>
    %582 = vector.extract_strided_slice %572 {offsets = [0, 16], sizes = [1, 16], strides = [1, 1]} : vector<1x48xf32> to vector<1x16xf32>
    %583 = vector.broadcast %582 : vector<1x16xf32> to vector<64x16xf32>
    %584 = arith.addf %581, %583 : vector<64x16xf32>
    %585 = vector.extract_strided_slice %571 {offsets = [0, 32], sizes = [32, 16], strides = [1, 1]} : vector<32x48xf32> to vector<32x16xf32>
    %cst_173 = arith.constant dense<0.000000e+00> : vector<64x16xf32>
    %586 = tpu.matmul %568, %585, %cst_173 {dimension_numbers = #tpu.dot_dimension_numbers<[1], [0], [0], [1], [0, 0, 1, 1], [], []>} : vector<64x32xf32>, vector<32x16xf32>, vector<64x16xf32> -> vector<64x16xf32>
    %587 = vector.extract_strided_slice %572 {offsets = [0, 32], sizes = [1, 16], strides = [1, 1]} : vector<1x48xf32> to vector<1x16xf32>
    %588 = vector.broadcast %587 : vector<1x16xf32> to vector<64x16xf32>
    %589 = arith.addf %586, %588 : vector<64x16xf32>
    %590 = vector.extract_strided_slice %579 {offsets = [0, 0], sizes = [7, 8], strides = [1, 1]} : vector<7x16xf32> to vector<7x8xf32>
    %591 = vector.extract_strided_slice %584 {offsets = [0, 0], sizes = [64, 8], strides = [1, 1]} : vector<64x16xf32> to vector<64x8xf32>
    %592 = vector.extract_strided_slice %589 {offsets = [0, 0], sizes = [64, 8], strides = [1, 1]} : vector<64x16xf32> to vector<64x8xf32>
    %cst_174 = arith.constant dense<0.000000e+00> : vector<7x64xf32>
    %593 = tpu.matmul %590, %591, %cst_174 {dimension_numbers = #tpu.dot_dimension_numbers<[1], [1], [0], [0], [0, 0, 1, 0], [], []>} : vector<7x8xf32>, vector<64x8xf32>, vector<7x64xf32> -> vector<7x64xf32>
    %cst_175 = arith.constant dense<0xFF800000> : vector<7xf32>
    %594 = vector.multi_reduction <maximumf>, %593, %cst_175 [1] : vector<7x64xf32> to vector<7xf32>
    %595 = vector.shape_cast %594 : vector<7xf32> to vector<7x1xf32>
    %596 = vector.broadcast %595 : vector<7x1xf32> to vector<7x64xf32>
    %597 = arith.subf %593, %596 : vector<7x64xf32>
    %598 = math.exp %597 : vector<7x64xf32>
    %cst_176 = arith.constant dense<0.000000e+00> : vector<7xf32>
    %599 = vector.multi_reduction <add>, %598, %cst_176 [1] : vector<7x64xf32> to vector<7xf32>
    %600 = vector.shape_cast %599 : vector<7xf32> to vector<7x1xf32>
    %601 = tpu.reciprocal %600 {approx = true} : vector<7x1xf32> -> vector<7x1xf32>
    %602 = vector.broadcast %601 : vector<7x1xf32> to vector<7x64xf32>
    %603 = arith.mulf %598, %602 : vector<7x64xf32>
    %cst_177 = arith.constant dense<0.000000e+00> : vector<7x8xf32>
    %604 = tpu.matmul %603, %592, %cst_177 {dimension_numbers = #tpu.dot_dimension_numbers<[1], [0], [0], [1], [0, 0, 1, 1], [], []>} : vector<7x64xf32>, vector<64x8xf32>, vector<7x8xf32> -> vector<7x8xf32>
    %605 = vector.extract_strided_slice %573 {offsets = [0, 0], sizes = [8, 32], strides = [1, 1]} : vector<16x32xf32> to vector<8x32xf32>
    %cst_178 = arith.constant dense<0.000000e+00> : vector<7x32xf32>
    %606 = tpu.matmul %604, %605, %cst_178 {dimension_numbers = #tpu.dot_dimension_numbers<[1], [0], [0], [1], [0, 0, 1, 1], [], []>} : vector<7x8xf32>, vector<8x32xf32>, vector<7x32xf32> -> vector<7x32xf32>
    %607 = vector.extract_strided_slice %579 {offsets = [0, 8], sizes = [7, 8], strides = [1, 1]} : vector<7x16xf32> to vector<7x8xf32>
    %608 = vector.extract_strided_slice %584 {offsets = [0, 8], sizes = [64, 8], strides = [1, 1]} : vector<64x16xf32> to vector<64x8xf32>
    %609 = vector.extract_strided_slice %589 {offsets = [0, 8], sizes = [64, 8], strides = [1, 1]} : vector<64x16xf32> to vector<64x8xf32>
    %cst_179 = arith.constant dense<0.000000e+00> : vector<7x64xf32>
    %610 = tpu.matmul %607, %608, %cst_179 {dimension_numbers = #tpu.dot_dimension_numbers<[1], [1], [0], [0], [0, 0, 1, 0], [], []>} : vector<7x8xf32>, vector<64x8xf32>, vector<7x64xf32> -> vector<7x64xf32>
    %cst_180 = arith.constant dense<0xFF800000> : vector<7xf32>
    %611 = vector.multi_reduction <maximumf>, %610, %cst_180 [1] : vector<7x64xf32> to vector<7xf32>
    %612 = vector.shape_cast %611 : vector<7xf32> to vector<7x1xf32>
    %613 = vector.broadcast %612 : vector<7x1xf32> to vector<7x64xf32>
    %614 = arith.subf %610, %613 : vector<7x64xf32>
    %615 = math.exp %614 : vector<7x64xf32>
    %cst_181 = arith.constant dense<0.000000e+00> : vector<7xf32>
    %616 = vector.multi_reduction <add>, %615, %cst_181 [1] : vector<7x64xf32> to vector<7xf32>
    %617 = vector.shape_cast %616 : vector<7xf32> to vector<7x1xf32>
    %618 = tpu.reciprocal %617 {approx = true} : vector<7x1xf32> -> vector<7x1xf32>
    %619 = vector.broadcast %618 : vector<7x1xf32> to vector<7x64xf32>
    %620 = arith.mulf %615, %619 : vector<7x64xf32>
    %cst_182 = arith.constant dense<0.000000e+00> : vector<7x8xf32>
    %621 = tpu.matmul %620, %609, %cst_182 {dimension_numbers = #tpu.dot_dimension_numbers<[1], [0], [0], [1], [0, 0, 1, 1], [], []>} : vector<7x64xf32>, vector<64x8xf32>, vector<7x8xf32> -> vector<7x8xf32>
    %622 = vector.extract_strided_slice %573 {offsets = [8, 0], sizes = [8, 32], strides = [1, 1]} : vector<16x32xf32> to vector<8x32xf32>
    %cst_183 = arith.constant dense<0.000000e+00> : vector<7x32xf32>
    %623 = tpu.matmul %621, %622, %cst_183 {dimension_numbers = #tpu.dot_dimension_numbers<[1], [0], [0], [1], [0, 0, 1, 1], [], []>} : vector<7x8xf32>, vector<8x32xf32>, vector<7x32xf32> -> vector<7x32xf32>
    %624 = arith.addf %606, %623 : vector<7x32xf32>
    %625 = vector.broadcast %574 : vector<1x32xf32> to vector<7x32xf32>
    %626 = arith.addf %624, %625 : vector<7x32xf32>
    %627 = arith.addf %484, %626 : vector<7x32xf32>
    %c832 = arith.constant 832 : index
    %c0_184 = arith.constant 0 : index
    %628 = vector.load %arg3[%c832, %c0_184] : memref<1056x128xf32, #tpu.memory_space<vmem>>, vector<2x32xf32>
    %cst_185 = arith.constant dense<0.000000e+00> : vector<7xf32>
    %629 = vector.multi_reduction <add>, %627, %cst_185 [1] : vector<7x32xf32> to vector<7xf32>
    %630 = vector.shape_cast %629 : vector<7xf32> to vector<7x1xf32>
    %cst_186 = arith.constant 3.200000e+01 : f32
    %631 = vector.broadcast %cst_186 : f32 to vector<7x1xf32>
    %632 = arith.divf %630, %631 : vector<7x1xf32>
    %633 = vector.broadcast %632 : vector<7x1xf32> to vector<7x32xf32>
    %634 = arith.subf %627, %633 : vector<7x32xf32>
    %635 = arith.mulf %634, %634 : vector<7x32xf32>
    %cst_187 = arith.constant dense<0.000000e+00> : vector<7xf32>
    %636 = vector.multi_reduction <add>, %635, %cst_187 [1] : vector<7x32xf32> to vector<7xf32>
    %637 = vector.shape_cast %636 : vector<7xf32> to vector<7x1xf32>
    %cst_188 = arith.constant 3.200000e+01 : f32
    %638 = vector.broadcast %cst_188 : f32 to vector<7x1xf32>
    %639 = arith.divf %637, %638 : vector<7x1xf32>
    %640 = vector.broadcast %632 : vector<7x1xf32> to vector<7x32xf32>
    %641 = arith.subf %627, %640 : vector<7x32xf32>
    %cst_189 = arith.constant 9.99999974E-6 : f32
    %642 = vector.broadcast %cst_189 : f32 to vector<7x1xf32>
    %643 = arith.addf %639, %642 : vector<7x1xf32>
    %644 = math.rsqrt %643 : vector<7x1xf32>
    %645 = vector.broadcast %644 : vector<7x1xf32> to vector<7x32xf32>
    %646 = arith.mulf %641, %645 : vector<7x32xf32>
    %647 = vector.extract_strided_slice %628 {offsets = [0, 0], sizes = [1, 32], strides = [1, 1]} : vector<2x32xf32> to vector<1x32xf32>
    %648 = vector.broadcast %647 : vector<1x32xf32> to vector<7x32xf32>
    %649 = arith.mulf %646, %648 : vector<7x32xf32>
    %650 = vector.extract_strided_slice %628 {offsets = [1, 0], sizes = [1, 32], strides = [1, 1]} : vector<2x32xf32> to vector<1x32xf32>
    %651 = vector.broadcast %650 : vector<1x32xf32> to vector<7x32xf32>
    %652 = arith.addf %649, %651 : vector<7x32xf32>
    %653 = vector.extract_strided_slice %652 {offsets = [1, 0], sizes = [1, 32], strides = [1, 1]} : vector<7x32xf32> to vector<1x32xf32>
    %c928 = arith.constant 928 : index
    %c0_190 = arith.constant 0 : index
    %654 = vector.load %arg3[%c928, %c0_190] : memref<1056x128xf32, #tpu.memory_space<vmem>>, vector<32x32xf32>
    %cst_191 = arith.constant dense<0.000000e+00> : vector<1x32xf32>
    %655 = tpu.matmul %653, %654, %cst_191 {dimension_numbers = #tpu.dot_dimension_numbers<[1], [0], [0], [1], [0, 0, 1, 1], [], []>} : vector<1x32xf32>, vector<32x32xf32>, vector<1x32xf32> -> vector<1x32xf32>
    %c960 = arith.constant 960 : index
    %c0_192 = arith.constant 0 : index
    %656 = vector.load %arg3[%c960, %c0_192] : memref<1056x128xf32, #tpu.memory_space<vmem>>, vector<1x32xf32>
    %657 = arith.addf %655, %656 : vector<1x32xf32>
    %cst_193 = arith.constant 0.000000e+00 : f32
    %658 = vector.broadcast %cst_193 : f32 to vector<1x32xf32>
    %659 = arith.maximumf %657, %658 : vector<1x32xf32>
    %c968 = arith.constant 968 : index
    %c0_194 = arith.constant 0 : index
    %660 = vector.load %arg3[%c968, %c0_194] : memref<1056x128xf32, #tpu.memory_space<vmem>>, vector<32x32xf32>
    %cst_195 = arith.constant dense<0.000000e+00> : vector<1x32xf32>
    %661 = tpu.matmul %659, %660, %cst_195 {dimension_numbers = #tpu.dot_dimension_numbers<[1], [0], [0], [1], [0, 0, 1, 1], [], []>} : vector<1x32xf32>, vector<32x32xf32>, vector<1x32xf32> -> vector<1x32xf32>
    %c1000 = arith.constant 1000 : index
    %c0_196 = arith.constant 0 : index
    %662 = vector.load %arg3[%c1000, %c0_196] : memref<1056x128xf32, #tpu.memory_space<vmem>>, vector<1x32xf32>
    %663 = arith.addf %661, %662 : vector<1x32xf32>
    %cst_197 = arith.constant 0.000000e+00 : f32
    %664 = vector.broadcast %cst_197 : f32 to vector<1x32xf32>
    %665 = arith.maximumf %663, %664 : vector<1x32xf32>
    %c1008 = arith.constant 1008 : index
    %c0_198 = arith.constant 0 : index
    %666 = vector.load %arg3[%c1008, %c0_198] : memref<1056x128xf32, #tpu.memory_space<vmem>>, vector<32x16xf32>
    %cst_199 = arith.constant dense<0.000000e+00> : vector<1x16xf32>
    %667 = tpu.matmul %665, %666, %cst_199 {dimension_numbers = #tpu.dot_dimension_numbers<[1], [0], [0], [1], [0, 0, 1, 1], [], []>} : vector<1x32xf32>, vector<32x16xf32>, vector<1x16xf32> -> vector<1x16xf32>
    %c1040 = arith.constant 1040 : index
    %c0_200 = arith.constant 0 : index
    %668 = vector.load %arg3[%c1040, %c0_200] : memref<1056x128xf32, #tpu.memory_space<vmem>>, vector<1x16xf32>
    %669 = arith.addf %667, %668 : vector<1x16xf32>
    %670 = vector.shape_cast %669 : vector<1x16xf32> to vector<1x16xf32>
    %671 = vector.broadcast %670 : vector<1x16xf32> to vector<4x16xf32>
    %c1048 = arith.constant 1048 : index
    %c0_201 = arith.constant 0 : index
    %672 = vector.load %arg3[%c1048, %c0_201] : memref<1056x128xf32, #tpu.memory_space<vmem>>, vector<4x16xf32>
    %673 = arith.mulf %671, %672 : vector<4x16xf32>
    %c840 = arith.constant 840 : index
    %c0_202 = arith.constant 0 : index
    %674 = vector.load %arg3[%c840, %c0_202] : memref<1056x128xf32, #tpu.memory_space<vmem>>, vector<32x32xf32>
    %c872 = arith.constant 872 : index
    %c0_203 = arith.constant 0 : index
    %675 = vector.load %arg3[%c872, %c0_203] : memref<1056x128xf32, #tpu.memory_space<vmem>>, vector<8x1xf32>
    %676 = vector.extract_strided_slice %674 {offsets = [0, 0], sizes = [8, 32], strides = [1, 1]} : vector<32x32xf32> to vector<8x32xf32>
    %cst_204 = arith.constant dense<0.000000e+00> : vector<8x64xf32>
    %677 = tpu.matmul %676, %568, %cst_204 {dimension_numbers = #tpu.dot_dimension_numbers<[1], [1], [0], [0], [0, 0, 1, 0], [], []>} : vector<8x32xf32>, vector<64x32xf32>, vector<8x64xf32> -> vector<8x64xf32>
    %678 = vector.broadcast %675 : vector<8x1xf32> to vector<8x64xf32>
    %679 = arith.addf %677, %678 : vector<8x64xf32>
    %c0_205 = arith.constant 0 : index
    %c0_206 = arith.constant 0 : index
    %680 = vector.load %arg5[%c0_205, %c0_206] : memref<8x256xf32, #tpu.memory_space<vmem>>, vector<8x64xf32>
    tpu.vector_store %arg5[%c0_205, %c0_206], %679 {strides = array<i32>} : memref<8x256xf32, #tpu.memory_space<vmem>>, vector<8x64xf32>,
    %681 = vector.extract_strided_slice %674 {offsets = [8, 0], sizes = [8, 32], strides = [1, 1]} : vector<32x32xf32> to vector<8x32xf32>
    %cst_207 = arith.constant dense<0.000000e+00> : vector<8x64xf32>
    %682 = tpu.matmul %681, %568, %cst_207 {dimension_numbers = #tpu.dot_dimension_numbers<[1], [1], [0], [0], [0, 0, 1, 0], [], []>} : vector<8x32xf32>, vector<64x32xf32>, vector<8x64xf32> -> vector<8x64xf32>
    %683 = vector.broadcast %675 : vector<8x1xf32> to vector<8x64xf32>
    %684 = arith.addf %682, %683 : vector<8x64xf32>
    %c0_208 = arith.constant 0 : index
    %c64_209 = arith.constant 64 : index
    %685 = vector.load %arg5[%c0_208, %c64_209] : memref<8x256xf32, #tpu.memory_space<vmem>>, vector<8x64xf32>
    tpu.vector_store %arg5[%c0_208, %c64_209], %684 {strides = array<i32>} : memref<8x256xf32, #tpu.memory_space<vmem>>, vector<8x64xf32>,
    %686 = vector.extract_strided_slice %674 {offsets = [16, 0], sizes = [8, 32], strides = [1, 1]} : vector<32x32xf32> to vector<8x32xf32>
    %cst_210 = arith.constant dense<0.000000e+00> : vector<8x64xf32>
    %687 = tpu.matmul %686, %568, %cst_210 {dimension_numbers = #tpu.dot_dimension_numbers<[1], [1], [0], [0], [0, 0, 1, 0], [], []>} : vector<8x32xf32>, vector<64x32xf32>, vector<8x64xf32> -> vector<8x64xf32>
    %688 = vector.broadcast %675 : vector<8x1xf32> to vector<8x64xf32>
    %689 = arith.addf %687, %688 : vector<8x64xf32>
    %c0_211 = arith.constant 0 : index
    %c128 = arith.constant 128 : index
    %690 = vector.load %arg5[%c0_211, %c128] : memref<8x256xf32, #tpu.memory_space<vmem>>, vector<8x64xf32>
    tpu.vector_store %arg5[%c0_211, %c128], %689 {strides = array<i32>} : memref<8x256xf32, #tpu.memory_space<vmem>>, vector<8x64xf32>,
    %691 = vector.extract_strided_slice %674 {offsets = [24, 0], sizes = [8, 32], strides = [1, 1]} : vector<32x32xf32> to vector<8x32xf32>
    %cst_212 = arith.constant dense<0.000000e+00> : vector<8x64xf32>
    %692 = tpu.matmul %691, %568, %cst_212 {dimension_numbers = #tpu.dot_dimension_numbers<[1], [1], [0], [0], [0, 0, 1, 0], [], []>} : vector<8x32xf32>, vector<64x32xf32>, vector<8x64xf32> -> vector<8x64xf32>
    %693 = vector.broadcast %675 : vector<8x1xf32> to vector<8x64xf32>
    %694 = arith.addf %692, %693 : vector<8x64xf32>
    %c0_213 = arith.constant 0 : index
    %c192_214 = arith.constant 192 : index
    %695 = vector.load %arg5[%c0_213, %c192_214] : memref<8x256xf32, #tpu.memory_space<vmem>>, vector<8x64xf32>
    tpu.vector_store %arg5[%c0_213, %c192_214], %694 {strides = array<i32>} : memref<8x256xf32, #tpu.memory_space<vmem>>, vector<8x64xf32>,
    %c0_215 = arith.constant 0 : index
    %c0_216 = arith.constant 0 : index
    %696 = vector.load %arg5[%c0_215, %c0_216] : memref<8x256xf32, #tpu.memory_space<vmem>>, vector<8x256xf32>
    %cst_217 = arith.constant dense<0.000000e+00> : vector<256xf32>
    %697 = vector.multi_reduction <add>, %696, %cst_217 [0] : vector<8x256xf32> to vector<256xf32>
    %698 = vector.shape_cast %697 : vector<256xf32> to vector<1x256xf32>
    %cst_218 = arith.constant 8.000000e+00 : f32
    %699 = vector.broadcast %cst_218 : f32 to vector<1x256xf32>
    %700 = arith.divf %698, %699 : vector<1x256xf32>
    %701 = vector.broadcast %700 : vector<1x256xf32> to vector<8x256xf32>
    %702 = arith.subf %696, %701 : vector<8x256xf32>
    %703 = arith.mulf %702, %702 : vector<8x256xf32>
    %cst_219 = arith.constant dense<0.000000e+00> : vector<256xf32>
    %704 = vector.multi_reduction <add>, %703, %cst_219 [0] : vector<8x256xf32> to vector<256xf32>
    %705 = vector.shape_cast %704 : vector<256xf32> to vector<1x256xf32>
    %cst_220 = arith.constant 8.000000e+00 : f32
    %706 = vector.broadcast %cst_220 : f32 to vector<1x256xf32>
    %707 = arith.divf %705, %706 : vector<1x256xf32>
    %708 = vector.broadcast %700 : vector<1x256xf32> to vector<8x256xf32>
    %709 = arith.subf %696, %708 : vector<8x256xf32>
    %cst_221 = arith.constant 9.99999997E-7 : f32
    %710 = vector.broadcast %cst_221 : f32 to vector<1x256xf32>
    %711 = arith.addf %707, %710 : vector<1x256xf32>
    %712 = math.rsqrt %711 : vector<1x256xf32>
    %713 = vector.broadcast %712 : vector<1x256xf32> to vector<8x256xf32>
    %714 = arith.mulf %709, %713 : vector<8x256xf32>
    %c880 = arith.constant 880 : index
    %c0_222 = arith.constant 0 : index
    %715 = vector.load %arg3[%c880, %c0_222] : memref<1056x128xf32, #tpu.memory_space<vmem>>, vector<8x1xf32>
    %716 = vector.broadcast %715 : vector<8x1xf32> to vector<8x256xf32>
    %717 = arith.mulf %714, %716 : vector<8x256xf32>
    %c888 = arith.constant 888 : index
    %c0_223 = arith.constant 0 : index
    %718 = vector.load %arg3[%c888, %c0_223] : memref<1056x128xf32, #tpu.memory_space<vmem>>, vector<8x1xf32>
    %719 = vector.broadcast %718 : vector<8x1xf32> to vector<8x256xf32>
    %720 = arith.addf %717, %719 : vector<8x256xf32>
    %cst_224 = arith.constant 5.000000e-01 : f32
    %721 = vector.broadcast %cst_224 : f32 to vector<8x256xf32>
    %722 = arith.mulf %721, %720 : vector<8x256xf32>
    %cst_225 = arith.constant 0.707106769 : f32
    %723 = vector.broadcast %cst_225 : f32 to vector<8x256xf32>
    %724 = arith.mulf %720, %723 : vector<8x256xf32>
    %725 = math.absf %724 : vector<8x256xf32>
    %cst_226 = arith.constant 0.327591091 : f32
    %726 = vector.broadcast %cst_226 : f32 to vector<8x256xf32>
    %727 = arith.mulf %726, %725 : vector<8x256xf32>
    %cst_227 = arith.constant 1.000000e+00 : f32
    %728 = vector.broadcast %cst_227 : f32 to vector<8x256xf32>
    %729 = arith.addf %728, %727 : vector<8x256xf32>
    %cst_228 = arith.constant 1.000000e+00 : f32
    %730 = vector.broadcast %cst_228 : f32 to vector<8x256xf32>
    %731 = arith.divf %730, %729 : vector<8x256xf32>
    %cst_229 = arith.constant 1.06140542 : f32
    %732 = vector.broadcast %cst_229 : f32 to vector<8x256xf32>
    %733 = arith.mulf %732, %731 : vector<8x256xf32>
    %cst_230 = arith.constant -1.45315206 : f32
    %734 = vector.broadcast %cst_230 : f32 to vector<8x256xf32>
    %735 = arith.addf %733, %734 : vector<8x256xf32>
    %736 = arith.mulf %735, %731 : vector<8x256xf32>
    %cst_231 = arith.constant 1.42141378 : f32
    %737 = vector.broadcast %cst_231 : f32 to vector<8x256xf32>
    %738 = arith.addf %736, %737 : vector<8x256xf32>
    %739 = arith.mulf %738, %731 : vector<8x256xf32>
    %cst_232 = arith.constant -0.284496725 : f32
    %740 = vector.broadcast %cst_232 : f32 to vector<8x256xf32>
    %741 = arith.addf %739, %740 : vector<8x256xf32>
    %742 = arith.mulf %741, %731 : vector<8x256xf32>
    %cst_233 = arith.constant 0.254829586 : f32
    %743 = vector.broadcast %cst_233 : f32 to vector<8x256xf32>
    %744 = arith.addf %742, %743 : vector<8x256xf32>
    %745 = arith.mulf %744, %731 : vector<8x256xf32>
    %cst_234 = arith.constant 0.000000e+00 : f32
    %746 = vector.broadcast %cst_234 : f32 to vector<8x256xf32>
    %747 = arith.subf %746, %725 : vector<8x256xf32>
    %748 = arith.mulf %747, %725 : vector<8x256xf32>
    %749 = math.exp %748 : vector<8x256xf32>
    %750 = arith.mulf %745, %749 : vector<8x256xf32>
    %cst_235 = arith.constant 1.000000e+00 : f32
    %751 = vector.broadcast %cst_235 : f32 to vector<8x256xf32>
    %752 = arith.subf %751, %750 : vector<8x256xf32>
    %cst_236 = arith.constant 0.000000e+00 : f32
    %753 = vector.broadcast %cst_236 : f32 to vector<8x256xf32>
    %754 = arith.cmpf olt, %724, %753 : vector<8x256xf32>
    %cst_237 = arith.constant 0.000000e+00 : f32
    %755 = vector.broadcast %cst_237 : f32 to vector<8x256xf32>
    %756 = arith.subf %755, %752 : vector<8x256xf32>
    %757 = arith.select %754, %756, %752 : vector<8x256xi1>, vector<8x256xf32>
    %cst_238 = arith.constant 1.000000e+00 : f32
    %758 = vector.broadcast %cst_238 : f32 to vector<8x256xf32>
    %759 = arith.addf %758, %757 : vector<8x256xf32>
    %760 = arith.mulf %722, %759 : vector<8x256xf32>
    %c896 = arith.constant 896 : index
    %c0_239 = arith.constant 0 : index
    %761 = vector.load %arg3[%c896, %c0_239] : memref<1056x128xf32, #tpu.memory_space<vmem>>, vector<16x8xf32>
    %cst_240 = arith.constant dense<0.000000e+00> : vector<16x256xf32>
    %762 = tpu.matmul %761, %760, %cst_240 {dimension_numbers = #tpu.dot_dimension_numbers<[1], [0], [0], [1], [0, 0, 1, 1], [], []>} : vector<16x8xf32>, vector<8x256xf32>, vector<16x256xf32> -> vector<16x256xf32>
    %c912 = arith.constant 912 : index
    %c0_241 = arith.constant 0 : index
    %763 = vector.load %arg3[%c912, %c0_241] : memref<1056x128xf32, #tpu.memory_space<vmem>>, vector<16x1xf32>
    %764 = vector.broadcast %763 : vector<16x1xf32> to vector<16x256xf32>
    %765 = arith.addf %762, %764 : vector<16x256xf32>
    %cst_242 = arith.constant 5.000000e-01 : f32
    %766 = vector.broadcast %cst_242 : f32 to vector<16x256xf32>
    %767 = arith.mulf %766, %765 : vector<16x256xf32>
    %cst_243 = arith.constant 0.707106769 : f32
    %768 = vector.broadcast %cst_243 : f32 to vector<16x256xf32>
    %769 = arith.mulf %765, %768 : vector<16x256xf32>
    %770 = math.absf %769 : vector<16x256xf32>
    %cst_244 = arith.constant 0.327591091 : f32
    %771 = vector.broadcast %cst_244 : f32 to vector<16x256xf32>
    %772 = arith.mulf %771, %770 : vector<16x256xf32>
    %cst_245 = arith.constant 1.000000e+00 : f32
    %773 = vector.broadcast %cst_245 : f32 to vector<16x256xf32>
    %774 = arith.addf %773, %772 : vector<16x256xf32>
    %cst_246 = arith.constant 1.000000e+00 : f32
    %775 = vector.broadcast %cst_246 : f32 to vector<16x256xf32>
    %776 = arith.divf %775, %774 : vector<16x256xf32>
    %cst_247 = arith.constant 1.06140542 : f32
    %777 = vector.broadcast %cst_247 : f32 to vector<16x256xf32>
    %778 = arith.mulf %777, %776 : vector<16x256xf32>
    %cst_248 = arith.constant -1.45315206 : f32
    %779 = vector.broadcast %cst_248 : f32 to vector<16x256xf32>
    %780 = arith.addf %778, %779 : vector<16x256xf32>
    %781 = arith.mulf %780, %776 : vector<16x256xf32>
    %cst_249 = arith.constant 1.42141378 : f32
    %782 = vector.broadcast %cst_249 : f32 to vector<16x256xf32>
    %783 = arith.addf %781, %782 : vector<16x256xf32>
    %784 = arith.mulf %783, %776 : vector<16x256xf32>
    %cst_250 = arith.constant -0.284496725 : f32
    %785 = vector.broadcast %cst_250 : f32 to vector<16x256xf32>
    %786 = arith.addf %784, %785 : vector<16x256xf32>
    %787 = arith.mulf %786, %776 : vector<16x256xf32>
    %cst_251 = arith.constant 0.254829586 : f32
    %788 = vector.broadcast %cst_251 : f32 to vector<16x256xf32>
    %789 = arith.addf %787, %788 : vector<16x256xf32>
    %790 = arith.mulf %789, %776 : vector<16x256xf32>
    %cst_252 = arith.constant 0.000000e+00 : f32
    %791 = vector.broadcast %cst_252 : f32 to vector<16x256xf32>
    %792 = arith.subf %791, %770 : vector<16x256xf32>
    %793 = arith.mulf %792, %770 : vector<16x256xf32>
    %794 = math.exp %793 : vector<16x256xf32>
    %795 = arith.mulf %790, %794 : vector<16x256xf32>
    %cst_253 = arith.constant 1.000000e+00 : f32
    %796 = vector.broadcast %cst_253 : f32 to vector<16x256xf32>
    %797 = arith.subf %796, %795 : vector<16x256xf32>
    %cst_254 = arith.constant 0.000000e+00 : f32
    %798 = vector.broadcast %cst_254 : f32 to vector<16x256xf32>
    %799 = arith.cmpf olt, %769, %798 : vector<16x256xf32>
    %cst_255 = arith.constant 0.000000e+00 : f32
    %800 = vector.broadcast %cst_255 : f32 to vector<16x256xf32>
    %801 = arith.subf %800, %797 : vector<16x256xf32>
    %802 = arith.select %799, %801, %797 : vector<16x256xi1>, vector<16x256xf32>
    %cst_256 = arith.constant 1.000000e+00 : f32
    %803 = vector.broadcast %cst_256 : f32 to vector<16x256xf32>
    %804 = arith.addf %803, %802 : vector<16x256xf32>
    %805 = arith.mulf %767, %804 : vector<16x256xf32>
    %cst_257 = arith.constant dense<0.000000e+00> : vector<4x256xf32>
    %806 = tpu.matmul %673, %805, %cst_257 {dimension_numbers = #tpu.dot_dimension_numbers<[1], [0], [0], [1], [0, 0, 1, 1], [], []>} : vector<4x16xf32>, vector<16x256xf32>, vector<4x256xf32> -> vector<4x256xf32>
    %c0_258 = arith.constant 0 : index
    %c0_259 = arith.constant 0 : index
    %c0_260 = arith.constant 0 : index
    %807 = vector.load %arg4[%c0_258, %c0_259, %c0_260] : memref<1x4x256xf32, #tpu.memory_space<vmem>>, vector<1x4x256xf32>
    %808 = vector.shape_cast %807 : vector<1x4x256xf32> to vector<4x256xf32>
    %809 = vector.shape_cast %806 : vector<4x256xf32> to vector<1x4x256xf32>
    tpu.vector_store %arg4[%c0_258, %c0_259, %c0_260], %809 {strides = array<i32>} : memref<1x4x256xf32, #tpu.memory_space<vmem>>, vector<1x4x256xf32>,
    return
  }
  func.func @transform_0(%arg0: i32) -> (i32, i32, i32) {
    %c0_i32 = arith.constant 0 : i32
    %c0_i32_0 = arith.constant 0 : i32
    %c0_i32_1 = arith.constant 0 : i32
    return %arg0, %c0_i32, %c0_i32_0 : i32, i32, i32
  }
  func.func @transform_1(%arg0: i32) -> (i32, i32, i32) {
    %c0_i32 = arith.constant 0 : i32
    %c0_i32_0 = arith.constant 0 : i32
    %c0_i32_1 = arith.constant 0 : i32
    return %arg0, %c0_i32, %c0_i32_0 : i32, i32, i32
  }
  func.func @transform_2(%arg0: i32) -> (i32, i32) {
    %c0_i32 = arith.constant 0 : i32
    %c0_i32_0 = arith.constant 0 : i32
    %c0_i32_1 = arith.constant 0 : i32
    return %c0_i32, %c0_i32_0 : i32, i32
  }
  func.func @transform_3(%arg0: i32) -> (i32, i32, i32) {
    %c0_i32 = arith.constant 0 : i32
    %c0_i32_0 = arith.constant 0 : i32
    %c0_i32_1 = arith.constant 0 : i32
    return %arg0, %c0_i32, %c0_i32_0 : i32, i32, i32
  }
}

</mosaic_0001>

<bundles_post_ra>
// kernel: forward.1
= control target key start
LH: loop header
LB: loop body
LE: loop exit
PB: predicated region body
PF: predicated region fallthrough
CT: control target
= control target key end

     0   :  { %8 = vsyncpa [#allocation4], 0  ;;  %s7499_s0 = inlined_call_operand.vmem [shape: f32[2,7,32], index: 0, kind: input, shape index: {}]   ;;  %s7500_s1 = inlined_call_operand.hbm [shape: f32[2,64,32], index: 1, kind: input, shape index: {}]   ;;  %s7501_s2 = inlined_call_operand.hbm [shape: f32[1056,128], index: 2, kind: input, shape index: {}]   ;;  %s7502_s3 = inlined_call_operand.vmem [shape: f32[2,4,256], index: 3, kind: output, shape index: {}]  }
   0x1   :  { %10 = vsyncpa [#allocation4 + $0x1], 0 }
   0x2   :  { %11 = vsyncpa [#allocation6], 0  ;;  %s5991_s12 = smov 0   ;;  %s5993_s13 = smov 0  }
   0x3   :  { %s5995_s14 = smov 0   ;;  %s5997_s15 = smov 0  }
   0x4 LB: > { %s6010_s16 = sadd.s32 4294967295, %s5957_s15   ;;  %p63_p0 = scmp.ne.s32.totalorder %s5949_s13, %s5945_s12  ;;  %s5957_s15 = sphi %s5997_s15, %s7509_s15   ;;  %s5953_s14 = sphi %s5995_s14, %s7508_s14   ;;  %s5949_s13 = sphi %s5993_s13, %s7507_s13   ;;  %s5945_s12 = sphi %s5991_s12, %s7506_s12  }
   0x5   : > { %p64_p1 = scmp.eq.s32.totalorder %s6010_s16, 0  ;;  %p5008_p2 = scmp.ge.s32.totalorder %s5957_s15, 1 }
   0x6   : > { %p121_p3 = scmp.lt.s32.totalorder %s5957_s15, 3  ;;  %s132_s20 = sshll.u32 %s7501_s2, 4  ;;  %s133_s20 = int_to_ptr.hbm [resolvable:$true] %s132_s20 }
   0x7   : > { %p6018_p4 = por %p64_p1, %p63_p0  ;;  %s5959_s22 = smov [#allocation5]  }
   0x8   : > { %p6025_p5 = pnand %p5008_p2, %p121_p3  ;;  %s134_s23 = sshll.u32 %s5959_s22, 4  ;;  %s135_s23 = int_to_ptr.vmem [resolvable:$true] %s134_s23 }
   0x9   : > { %s6034_s24 = sadd.s32 1, %s5957_s15   ;;  %s5960_s25 = smov 128  }
   0xa   : > { %p5343_p6 = pneg %p6025_p5  ;;  %s5961_s26 = smov 8  }
   0xb   : > { %s47_s27 = ssub.s32 %s5957_s15, %s6034_s24  ;;  %s50_s28 = sadd.s32 1, %s5953_s14 }
   0xc   : > { %p5344_p7 = pnand %p5343_p6, %p64_p1  ;;  %p48_p8 = scmp.eq.s32.totalorder %s47_s27, 0 }
   0xd   : > { %p57_p9 = scmp.ne.s32.totalorder %s5953_s14, %s5949_s13  ;;  %p58_p10 = scmp.eq.s32.totalorder %s5957_s15, 0 }
   0xe   : > { %5346 = dma.hbm_to_vmem [thread:$0]  (!%p5344_p7), %s133_s20, 16896, %s135_s23, [#allocation6], %s5960_s25, %s5960_s25, %s5961_s26  }
   0xf   : > { %p5352_p11 = scmp.lt.s32.totalorder %s5957_s15, 2  ;;  %p59_p12 = por %p58_p10, %p57_p9 }
  0x10   : > { %s6047_s29 = scalar_select %p48_p8, %s5953_s14, %s50_s28  }
  0x11   : > { %s155_s30 = sand.u32 1, %s5953_s14   ;;  %s5335_s5 = sshll.u32 %s5957_s15, 6 }
  0x12   : > { %s5011_s4 = sshll.u32 %s155_s30, 6  ;;  %s164_s8 = scalar_lea.hbm %s7500_s1, %s5335_s5 }
  0x13   : > { %s159_s9 = scalar_lea.vmem [#allocation3], %s5011_s4  ;;  %s165_s11 = sshll.u32 %s164_s8, 4  ;;  %s166_s11 = int_to_ptr.hbm [resolvable:$true] %s165_s11 }
  0x14   : > { %s167_s10 = sshll.u32 %s159_s9, 4  ;;  %p6054_p13 = pnand %p5352_p11, %p59_p12  ;;  %s168_s10 = int_to_ptr.vmem [resolvable:$true] %s167_s10 }
  0x15   : > { %s156_s18 = scalar_lea.sflag [#allocation4], %s155_s30  ;;  %s5889_s19 = sshra.s32 %s166_s11, 4  ;;  %s5890_s19 = int_to_ptr.hbm [resolvable:$true] %s5889_s19 }
  0x16   : > { %s5891_s20 = scalar_lea.hbm %s5890_s19, 64  ;;  %p5893_p2 = pneg %p6054_p13 }
  0x17   : > { %p5892_p0 = scmp.ne.s32.totalorder %s5890_s19, %s5891_s20  ;;  %s5896_s23 = scalar_lea.hbm %s7500_s1, 128 }
  0x18   : > { %p5897_p7 = scmp.lt.s32.totalorder %s5890_s19, %s7500_s1  ;;  %p5898_p8 = scmp.lt.s32.totalorder %s5896_s23, %s5891_s20 }
  0x19   : > { %p5894_p3 = pnand %p5893_p2, %p5892_p0 }
  0x1a   : > { %p5899_p9 = por %p5898_p8, %p5897_p7 }
  0x1b   : > { %p5895_p6 = pneg %p5894_p3 }
  0x1d   : > { %p5900_p10 = pnand %p5899_p9, %p5895_p6 }
  0x1f   : > { %5903 = shalt.err (!%p5900_p10)
}
  0x20   : > { %5350 = dma.hbm_to_vmem [thread:$0]  (!%p6054_p13), %s166_s11, 1024, %s168_s10, %s156_s18, %s5960_s25, %s5960_s25, %s5961_s26  }
  0x21   : > { %179 = sbr.rel (%p6025_p5) target bundleno = 10228 (0x27f4), region = 32  ;;  %s181_s30 = sand.u32 (!%p6025_p5), 1, %s5949_s13  }
  0x22   : > { %s5015_s4 = sshll.u32 (!%p6025_p5), %s181_s30, 6  ;;  %s182_s5 = scalar_lea.sflag (!%p6025_p5), [#allocation4], %s181_s30 }
  0x23   : > { %s6074_s6 = scalar_lea.vmem (!%p6025_p5), [#allocation3], %s5015_s4 }
  0x26   : > { %5936 = dma.done.wait (%p6018_p4), %s182_s5, 1024  }
  0x27   : > { %5938 = vsyncadd (%p6018_p4), %s182_s5, 4294966272 }
  0x28   : > { %5940 = dma.done.wait (%p64_p1), [#allocation6], 16896  }
  0x29   : > { %5942 = vsyncadd (%p64_p1), [#allocation6], 4294950400  ;;  %p218_p5 = scmp.lt.s32.totalorder %s6010_s16, 1  ;;  %v247_v0 = vld [vmem:[#allocation5 + $0x58] sm:$0xff]  ;;  %v246_v1 = vld [vmem:[#allocation5 + $0x50] sm:$0xff]  ;;  %vm255_vm0 = vcmask 261120  }
  0x2a   : > { %271 = vmatpush.msra.mxu0 %v247_v0  ;;  %v245_v2 = vld [vmem:[#allocation5 + $0x48] sm:$0xff]  ;;  %v244_v3 = vld [vmem:[#allocation5 + $0x40] sm:$0xff]  ;;  %s5962_s7 = smov 112   ;;  %s5963_s8 = smov 96   ;;  %vm282_vm1 = vcmask 130048   ;;  %vm307_vm2 = vcmask 55296  }
  0x2b   : > { %s7511_s16 = smov (!%p218_p5, %s6010_s16), 1  ;;  %v5570_v5 = vld [vmem:[#allocation5 + $0x60] ss:$0 sm:$0xff]  ;;  %s5964_s9 = smov 80   ;;  %v250_v25 = vld [vmem:[#allocation5 + $0x70] sm:$0xff]  ;;  %vm325_vm3 = vcmask 1046528  }
  0x2c   : > { %s5017_s21 = sshll.u32 %s7511_s16, 3  ;;  %272 = vmatpush.msra.mxu0 %v246_v1  ;;  %s5965_s10 = smov 64   ;;  %vm321_vm4 = vcmask 56320   ;;  %v249_v34 = vld [vmem:[#allocation5 + $0x68] sm:$0xff]  ;;  %v252_v35 = vld [vmem:[#allocation5 + $0x80] sm:$0xff]  ;;  %v251_v36 = vld [vmem:[#allocation5 + $0x78] sm:$0xff] }
  0x2d   : > { %s6094_s26 = scalar_lea.vmem %s7499_s0, %s5017_s21  ;;  %s5966_s11 = smov 48   ;;  %v506_v37 = vld [vmem:[#allocation5 + $0x98] sm:$0xff]  ;;  %v507_v38 = vld [vmem:[#allocation5 + $0xa0] sm:$0xff]  ;;  %v508_v39 = vld [vmem:[#allocation5 + $0xa8] sm:$0xff]  ;;  %vm463_vm5 = vcmask 260096   ;;  %vm703_vm8 = vcmask 64512  }
  0x2e   : > { %v6097_v4 = vld [vmem:[%s6094_s26] sm:$0x7f]  ;;  %273 = vmatpush.msra.mxu0 %v245_v2  ;;  %v5403_v40 = vpack.i.bf16 %v506_v37, %v507_v38  ;;  %v6122_v50 = vld [vmem:[%s6074_s6] sm:$0xff]  ;;  %v6130_v54 = vld [vmem:[%s6074_s6 + $0x8] sm:$0xff]  ;;  %s5968_s12 = smov 120   ;;  %vm751_vm11 = vcmask 522240   ;;  %s226_s20 = scalar_lea.vmem %s7502_s3, %s5017_s21 }
  0x2f   : > { %v509_v41 = vld [vmem:[#allocation5 + $0xb0] sm:$0xff]  ;;  %v236_v51 = vld [vmem:[#allocation5] sm:$0xff]  ;;  %v237_v55 = vld [vmem:[#allocation5 + $0x8] sm:$0xff]  ;;  %vm763_vm12 = vcmask 523264  }
  0x30   : > { %274 = vmatpush.msra.mxu0 %v244_v3  ;;  %v5398_v42 = vpack.i.bf16 %v508_v39, %v509_v41  ;;  %v6125_v53 = vadd.f32 %v236_v51, %v6122_v50  ;;  %v6134_v56 = vadd.f32 %v237_v55, %v6130_v54  ;;  %v230_v57 = vld [vmem:[%s6074_s6 + $0x10] sm:$0xff]  ;;  %v5571_v60 = vld [vmem:[#allocation5 + $0x88] ss:$0 sm:$0xff]  ;;  %v231_v0 = vld [vmem:[%s6074_s6 + $0x18] sm:$0xff] }
  0x31   : > { %5020 = vmatmul.msk.f32.vlgmr.msra.gmra.mxu0 %vm255_vm0, %v6097_v4  ;;  %v238_v58 = vld [vmem:[#allocation5 + $0x10] sm:$0xff]  ;;  %v239_v1 = vld [vmem:[#allocation5 + $0x18] sm:$0xff] }
  0x32   : > { %530 = vmatpush.msrb.mxu0 %v509_v41  ;;  %v6140_v59 = vadd.f32 %v238_v58, %v230_v57  ;;  %v6145_v3 = vadd.f32 %v239_v1, %v231_v0 }
  0x34   : > { %531 = vmatpush.msrb.mxu0 %v508_v39 }
  0x36   : > { %532 = vmatpush.msrb.mxu0 %v507_v38 }
  0x38   : > { %533 = vmatpush.msrb.mxu0 %v506_v37 }
  0xae   : > { %v276_v6 = vpop.f32.mrf.mxu0 }
  0xaf   : > { %v277_v7 = vadd.f32 %v5570_v5, %v276_v6  ;;  %v232_v6 = vld [vmem:[%s6074_s6 + $0x20] sm:$0xff] }
  0xb1   : > { %348 = vrot.lane.b32.xlu1 %v277_v7, %s5962_s7  ;;  %280 = vrot.lane.b32.xlu0 %v277_v7, %s5963_s8 }
  0xb9   : > { %350 = vrot.lane.b32.xlu0 %v277_v7, %s5964_s9 }
 0x123   : > { %v281_v8 = vpop.permute.xlu0 %280  ;;  %v349_v10 = vpop.permute.xlu1 %348 }
 0x124   : > { %5021 = vmatpush.xpose.msk.msra.mxu1 %vm282_vm1, %v281_v8 }
 0x127   : > { %5022 = vmatmul.msk.f32.vlgmr.msra.gmra.mxu1 %vm282_vm1, %v277_v7 }
 0x128   : > { %431 = vmatpush.msrb.mxu1 %v252_v35 }
 0x12a   : > { %432 = vmatpush.msrb.mxu1 %v251_v36  ;;  %v6178_v36 = vld [vmem:[#allocation5 + $0xb8] ss:$0 sm:$0xff] }
 0x12b   : > { %v351_v9 = vpop.permute.xlu0 %350 }
 0x12c   : > { %5025 = vmatpush.xpose.msk.msra.mxu3 %vm282_vm1, %v351_v9  ;;  %v233_v9 = vld [vmem:[%s6074_s6 + $0x28] sm:$0xff] }
 0x12f   : > { %5026 = vmatmul.msk.f32.vlgmr.msra.gmra.mxu3 %vm282_vm1, %v349_v10  ;;  %v241_v10 = vld [vmem:[#allocation5 + $0x28] sm:$0xff] }
 0x130   : > { %454 = vmatpush.msrb.mxu3 %v250_v25 }
 0x132   : > { %455 = vmatpush.msrb.mxu3 %v249_v34 }
 0x1a4   : > { %v304_v11 = vpop.f32.mrf.mxu1 }
 0x1a5   : > { %v308_v12 = vsel %vm307_vm2, %v304_v11, -inf }
 0x1a6   : > { %309 = vmax.xlane.f32.xlu1 %v308_v12  ;;  %v234_v12 = vld [vmem:[%s6074_s6 + $0x30] sm:$0xff] }
 0x1b2   : > { %v373_v13 = vpop.f32.mrf.mxu3 }
 0x1b3   : > { %v376_v14 = vsel %vm307_vm2, %v373_v13, -inf }
 0x1b4   : > { %377 = vmax.xlane.f32.xlu2 %v376_v14 }
 0x1bf   : > { %5404 = vrot.lane.b32.xlu1 %v5403_v40, %s5962_s7 }
 0x1c7   : > { %5409 = vrot.lane.b32.xlu1 %v5398_v42, %s5963_s8 }
 0x1cf   : > { %5414 = vrot.lane.b32.xlu1 %v5403_v40, %s5963_s8 }
 0x219   : > { %v310_v15 = vpop.xlane.xlu1 %309 }
 0x21a   : > { %v311_v16 = vsub.f32 %v304_v11, %v310_v15  ;;  %v6156_v11 = vadd.f32 %v241_v10, %v233_v9  ;;  %v5967_v15 = vmov 32.0  }
 0x21c   : > { %v312_v17 = vmul.f32 1.442695, %v311_v16  ;;  %v235_v16 = vld [vmem:[%s6074_s6 + $0x38] sm:$0xff] }
 0x21e   : > { %5588 = vpow2.f32 %v312_v17  ;;  %v243_v17 = vld [vmem:[#allocation5 + $0x38] sm:$0xff] }
 0x224   : > { %v5589_v18 = vpop.eup %5588 }
 0x225   : > { %v314_v19 = vsel %vm307_vm2, %v5589_v18, 0.0 }
 0x226   : > { %315 = vadd.xlane.f32.xlu2 %v314_v19 }
 0x227   : > { %v378_v20 = vpop.xlane.xlu2 %377 }
 0x228   : > { %v379_v21 = vsub.f32 %v373_v13, %v378_v20  ;;  %v242_v13 = vld [vmem:[#allocation5 + $0x30] sm:$0xff] }
 0x229   : > { %v6161_v14 = vadd.f32 %v242_v13, %v234_v12 }
 0x22a   : > { %v380_v22 = vmul.f32 1.442695, %v379_v21 }
 0x22c   : > { %5590 = vpow2.f32 %v380_v22 }
 0x231   : > { %v5405_v46 = vpop.permute.xlu1 %5404 }
 0x232   : > { %v5591_v23 = vpop.eup %5590  ;;  %v5406_v49 = vunpack.i.l.bf16 %v5405_v46  ;;  %v5407_v52 = vunpack.i.h.bf16 %v5405_v46 }
 0x233   : > { %v382_v24 = vsel %vm307_vm2, %v5591_v23, 0.0 }
 0x234   : > { %383 = vadd.xlane.f32.xlu0 %v382_v24 }
 0x239   : > { %v5410_v24 = vpop.permute.xlu1 %5409 }
 0x23a   : > { %v5412_v25 = vunpack.i.h.bf16 %v5410_v24 }
 0x23e   : > { %319 = vrot.lane.b32.xlu2 %v277_v7, %s5965_s10 }
 0x246   : > { %387 = vrot.lane.b32.xlu2 %v277_v7, %s5966_s11  ;;  %v240_v7 = vld [vmem:[#allocation5 + $0x20] sm:$0xff] }
 0x247   : > { %v6151_v8 = vadd.f32 %v240_v7, %v232_v6 }
 0x24e   : > { %5399 = vrot.lane.b32.xlu2 %v5398_v42, %s5962_s7 }
 0x299   : > { %v316_v26 = vpop.xlane.xlu2 %315 }
 0x29a   : > { %5592 = vrcp.f32 %v316_v26  ;;  %v5411_v26 = vunpack.i.l.bf16 %v5410_v24 }
 0x29c   : > { %674 = vmatpush.msra.mxu1 %v5411_v26 }
 0x29e   : > { %675 = vmatpush.msra.mxu1 %v5412_v25 }
 0x2a0   : > { %v5593_v27 = vpop.eup %5592 }
 0x2a1   : > { %v320_v28 = vpop.permute.xlu2 %319  ;;  %v318_v29 = vmul.f32 %v5593_v27, %v5589_v18  ;;  %v6166_v18 = vadd.f32 %v243_v17, %v235_v16 }
 0x2a2   : > { %5023 = vmatpush.msk.msra.mxu2 %vm325_vm3, %v320_v28 }
 0x2a3   : > { %5024 = vmatmul.msk.f32.vlgmr.msra.gmra.mxu2 %vm321_vm4, %v318_v29 }
 0x2a7   : > { %v384_v30 = vpop.xlane.xlu0 %383 }
 0x2a8   : > { %5594 = vrcp.f32 %v384_v30 }
 0x2a9   : > { %v388_v31 = vpop.permute.xlu2 %387  ;;  %5596 = vrcp.f32 %v5967_v15 }
 0x2aa   : > { %5027 = vmatpush.msk.msrb.mxu2 %vm325_vm3, %v388_v31  ;;  %v5415_v31 = vpop.permute.xlu1 %5414 }
 0x2ab   : > { %v5416_v34 = vunpack.i.l.bf16 %v5415_v31 }
 0x2ad   : > { %676 = vmatpush.msra.mxu1 %v5416_v34 }
 0x2ae   : > { %v5595_v32 = vpop.eup %5594 }
 0x2af   : > { %v386_v33 = vmul.f32 %v5595_v32, %v5591_v23  ;;  %v5597_v19 = vpop.eup %5596 }
 0x2b0   : > { %v468_v20 = vmul.f32 32.0, %v5597_v19  ;;  %vm472_vm6 = vweird.f32 %v5597_v19 }
 0x2b1   : > { %5028 = vmatmul.msk.f32.vlgmr.msrb.gmra.mxu2 %vm321_vm4, %v386_v33  ;;  %v5400_v45 = vpop.permute.xlu2 %5399  ;;  %v5417_v33 = vunpack.i.h.bf16 %v5415_v31 }
 0x2b2   : > { %v5402_v47 = vunpack.i.h.bf16 %v5400_v45  ;;  %v5401_v48 = vunpack.i.l.bf16 %v5400_v45  ;;  %v469_v21 = vsub.f32 1.0, %v468_v20 }
 0x2b3   : > { %677 = vmatpush.msra.mxu1 %v5417_v33 }
 0x2b4   : > { %594 = vmatpush.msra.mxu2 %v5401_v48  ;;  %v470_v22 = vmul.f32 %v5597_v19, %v469_v21 }
 0x2b6   : > { %595 = vmatpush.msra.mxu2 %v5402_v47  ;;  %v471_v23 = vadd.f32 %v5597_v19, %v470_v22 }
 0x2b8   : > { %596 = vmatpush.msra.mxu2 %v5406_v49  ;;  %v6170_v27 = vsel %vm472_vm6, %v5597_v19, %v471_v23 }
 0x2ba   : > { %597 = vmatpush.msra.mxu2 %v5407_v52 }
 0x2bb   : > { %5032 = vmatmul.msk.f32.vlgmr.msra.gmra.mxu2 %vm255_vm0, %v6125_v53 }
 0x2c3   : > { %5033 = vmatmul.msk.f32.gmra.mxu2 %vm255_vm0, %v6134_v56 }
 0x2cb   : > { %5034 = vmatmul.msk.f32.gmra.mxu2 %vm255_vm0, %v6140_v59 }
 0x2d3   : > { %5035 = vmatmul.msk.f32.gmra.mxu2 %vm255_vm0, %v6145_v3 }
 0x2db   : > { %5036 = vmatmul.msk.f32.gmra.mxu2 %vm255_vm0, %v6151_v8 }
 0x2e3   : > { %5037 = vmatmul.msk.f32.gmra.mxu2 %vm255_vm0, %v6156_v11 }
 0x2eb   : > { %5038 = vmatmul.msk.f32.gmra.mxu2 %vm255_vm0, %v6161_v14 }
 0x2f3   : > { %5039 = vmatmul.msk.f32.gmra.mxu2 %vm255_vm0, %v6166_v18 }
 0x326   : > { %v345_v43 = vpop.f32.mrf.mxu2 }
 0x327   : > { %5030 = vmatmul.msk.f32.vlgmr.msrb.gmra.mxu3 %vm282_vm1, %v345_v43 }
 0x334   : > { %v411_v44 = vpop.f32.mrf.mxu2 }
 0x335   : > { %5029 = vmatmul.msk.f32.vlgmr.msrb.gmra.mxu1 %vm282_vm1, %v411_v44 }
 0x33d   : > { %5040 = vmatmul.msk.f32.vlgmr.msra.gmra.mxu1 %vm255_vm0, %v6122_v50 }
 0x33e   : > { %v599_v37 = vpop.f32.mrf.mxu2 }
 0x345   : > { %5041 = vmatmul.msk.f32.gmra.mxu1 %vm255_vm0, %v6130_v54  ;;  %v462_v54 = vld [vmem:[#allocation5 + $0x90] sm:$0x3] }
 0x346   : > { %v602_v38 = vpop.f32.mrf.mxu2 }
 0x34d   : > { %5042 = vmatmul.msk.f32.gmra.mxu1 %vm255_vm0, %v230_v57 }
 0x34e   : > { %v605_v39 = vpop.f32.mrf.mxu2 }
 0x355   : > { %5043 = vmatmul.msk.f32.gmra.mxu1 %vm255_vm0, %v231_v0  ;;  %v495_v0 = vperm.slane %v462_v54, 1 }
 0x356   : > { %v608_v40 = vpop.f32.mrf.mxu2 }
 0x35d   : > { %5044 = vmatmul.msk.f32.gmra.mxu1 %vm255_vm0, %v232_v6 }
 0x35e   : > { %v611_v41 = vpop.f32.mrf.mxu2 }
 0x365   : > { %5045 = vmatmul.msk.f32.gmra.mxu1 %vm255_vm0, %v233_v9 }
 0x366   : > { %v614_v42 = vpop.f32.mrf.mxu2 }
 0x36d   : > { %5046 = vmatmul.msk.f32.gmra.mxu1 %vm255_vm0, %v234_v12 }
 0x36e   : > { %v617_v46 = vpop.f32.mrf.mxu2 }
 0x375   : > { %5047 = vmatmul.msk.f32.gmra.mxu1 %vm255_vm0, %v235_v16 }
 0x376   : > { %v620_v51 = vpop.f32.mrf.mxu2 }
 0x3aa   : > { %v457_v61 = vpop.f32.mrf.mxu3 }
 0x3b2   : > { %v434_v62 = vpop.f32.mrf.mxu1 }
 0x3b3   : > { %v458_v63 = vadd.f32 %v457_v61, %v434_v62 }
 0x3b5   : > { %v461_v2 = vadd.f32 %v5571_v60, %v458_v63  ;;  %v493_v60 = vperm.slane %v462_v54, 0 }
 0x3b7   : > { %v464_v5 = vsel %vm463_vm5, %v461_v2, 0.0 }
 0x3b8   : > { %465 = vadd.xlane.f32.xlu2 %v464_v5 }
 0x3ba   : > { %v679_v15 = vpop.f32.mrf.mxu1 }
 0x3c2   : > { %v682_v16 = vpop.f32.mrf.mxu1 }
 0x3ca   : > { %v685_v17 = vpop.f32.mrf.mxu1 }
 0x3d2   : > { %v688_v19 = vpop.f32.mrf.mxu1 }
 0x3da   : > { %v691_v20 = vpop.f32.mrf.mxu1 }
 0x3e2   : > { %v694_v21 = vpop.f32.mrf.mxu1 }
 0x3ea   : > { %v697_v22 = vpop.f32.mrf.mxu1 }
 0x3f2   : > { %v700_v24 = vpop.f32.mrf.mxu1 }
 0x42b   : > { %v466_v28 = vpop.xlane.xlu2 %465 }
 0x42c   : > { %v474_v29 = vmul.f32 %v6170_v27, %v466_v28 }
 0x42e   : > { %v475_v30 = vsub.f32 %v461_v2, %v474_v29 }
 0x430   : > { %v476_v32 = vmul.f32 %v475_v30, %v475_v30 }
 0x432   : > { %v477_v35 = vsel %vm463_vm5, %v476_v32, 0.0 }
 0x433   : > { %478 = vadd.xlane.f32.xlu0 %v477_v35 }
 0x447   : > { %555 = vrot.lane.b32.xlu0 %v6178_v36, %s5962_s7 }
 0x4a6   : > { %v479_v43 = vpop.xlane.xlu0 %478 }
 0x4a7   : > { %v480_v44 = vmul.f32 %v479_v43, %v6170_v27 }
 0x4a9   : > { %v481_v45 = vadd.f32 1e-05, %v480_v44 }
 0x4ab   : > { %5598 = vrsqrt.f32 %v481_v45  ;;  %vm488_vm9 = vweird.f32 %v481_v45 }
 0x4b1   : > { %v5599_v47 = vpop.eup %5598 }
 0x4b2   : > { %v483_v48 = vmul.f32 %v5599_v47, %v481_v45  ;;  %vm489_vm7 = vweird.f32 %v5599_v47 }
 0x4b3   : > { %vm490_vm10 = vmor %vm488_vm9, %vm489_vm7 }
 0x4b4   : > { %v484_v49 = vmul.f32 %v5599_v47, %v483_v48 }
 0x4b6   : > { %v485_v50 = vmul.f32 0.5, %v484_v49 }
 0x4b8   : > { %v486_v52 = vsub.f32 1.5, %v485_v50 }
 0x4b9   : > { %v556_v55 = vpop.permute.xlu0 %555 }
 0x4ba   : > { %v487_v57 = vmul.f32 %v5599_v47, %v486_v52  ;;  %v621_v58 = vadd.f32 %v620_v51, %v556_v55  ;;  %v618_v61 = vadd.f32 %v617_v46, %v556_v55  ;;  %v615_v5 = vadd.f32 %v614_v42, %v556_v55 }
 0x4bb   : > { %v612_v7 = vadd.f32 %v611_v41, %v556_v55  ;;  %v609_v9 = vadd.f32 %v608_v40, %v556_v55  ;;  %v606_v10 = vadd.f32 %v605_v39, %v556_v55  ;;  %v603_v12 = vadd.f32 %v602_v38, %v556_v55 }
 0x4bc   : > { %v491_v62 = vsel %vm490_vm10, %v5599_v47, %v487_v57  ;;  %803 = vrot.lane.b32.xlu1 %v621_v58, %s5968_s12  ;;  %5048 = vmatpush.xpose.msk.msra.mxu3 %vm703_vm8, %v621_v58  ;;  %v600_v13 = vadd.f32 %v599_v37, %v556_v55 }
 0x4bd   : > { %v492_v63 = vmul.f32 %v491_v62, %v475_v30  ;;  %801 = vrot.lane.b32.xlu2 %v618_v61, %s5968_s12 }
 0x4bf   : > { %v494_v1 = vmul.f32 %v493_v60, %v492_v63 }
 0x4c0   : > { %5049 = vmatpush.xpose.msk.msra.mxu3 %vm703_vm8, %v618_v61 }
 0x4c1   : > { %v6193_v2 = vadd.f32 %v495_v0, %v494_v1 }
 0x4c3   : > { %v497_v6 = vadd.f32 %v6193_v2, %v6097_v4 }
 0x4c4   : > { %635 = vrot.lane.b32.xlu1 %v6178_v36, %s5963_s8  ;;  %5050 = vmatpush.xpose.msk.msra.mxu3 %vm703_vm8, %v615_v5 }
 0x4c5   : > { %5031 = vmatmul.msk.f32.vlgmr.msrb.gmra.mxu0 %vm255_vm0, %v497_v6 }
 0x4c8   : > { %5051 = vmatpush.xpose.msk.msra.mxu3 %vm703_vm8, %v612_v7 }
 0x4cc   : > { %799 = vrot.lane.b32.xlu1 %v615_v5, %s5968_s12  ;;  %5052 = vmatpush.xpose.msk.msra.mxu3 %vm703_vm8, %v609_v9 }
 0x4d0   : > { %5053 = vmatpush.xpose.msk.msra.mxu3 %vm703_vm8, %v606_v10 }
 0x4d4   : > { %797 = vrot.lane.b32.xlu1 %v612_v7, %s5968_s12  ;;  %5054 = vmatpush.xpose.msk.msra.mxu3 %vm703_vm8, %v603_v12 }
 0x4d8   : > { %5055 = vmatpush.xpose.msk.msra.mxu3 %vm703_vm8, %v600_v13 }
 0x4dc   : > { %795 = vrot.lane.b32.xlu1 %v609_v9, %s5968_s12 }
 0x4e4   : > { %791 = vrot.lane.b32.xlu1 %v603_v12, %s5968_s12 }
 0x4ec   : > { %789 = vrot.lane.b32.xlu1 %v600_v13, %s5968_s12 }
 0x517   : > { %v802_v41 = vpop.permute.xlu2 %801 }
 0x52e   : > { %v804_v23 = vpop.permute.xlu1 %803 }
 0x536   : > { %v636_v25 = vpop.permute.xlu1 %635 }
 0x537   : > { %v692_v26 = vadd.f32 %v691_v20, %v636_v25  ;;  %v695_v28 = vadd.f32 %v694_v21, %v636_v25  ;;  %v698_v29 = vadd.f32 %v697_v22, %v636_v25  ;;  %v701_v30 = vadd.f32 %v700_v24, %v636_v25 }
 0x538   : > { %v689_v32 = vadd.f32 %v688_v19, %v636_v25  ;;  %v686_v33 = vadd.f32 %v685_v17, %v636_v25  ;;  %v6211_v35 = vadd.f32 %v682_v16, %v636_v25  ;;  %v6214_v39 = vadd.f32 %v679_v15, %v636_v25 }
 0x539   : > { %v5423_v31 = vpack.i.bf16 %v692_v26, %v695_v28  ;;  %775 = vmatpush.msra.mxu0 %v701_v30  ;;  %v5418_v40 = vpack.i.bf16 %v698_v29, %v701_v30  ;;  %v512_v30 = vld [vmem:[#allocation5 + $0xc8] sm:$0xff] }
 0x53a   : > { %v5428_v54 = vpack.i.bf16 %v686_v33, %v689_v32  ;;  %v5433_v16 = vpack.i.bf16 %v6214_v39, %v6211_v35 }
 0x53b   : > { %776 = vmatpush.msra.mxu0 %v698_v29 }
 0x53d   : > { %777 = vmatpush.msra.mxu0 %v695_v28 }
 0x53e   : > { %v800_v38 = vpop.permute.xlu1 %799 }
 0x53f   : > { %778 = vmatpush.msra.mxu0 %v692_v26 }
 0x541   : > { %779 = vmatpush.msra.mxu0 %v689_v32  ;;  %v5573_v32 = vld [vmem:[#allocation5 + $0xd0] ss:$0 sm:$0xff] }
 0x542   : > { %v535_v34 = vpop.f32.mrf.mxu0 }
 0x543   : > { %v536_v37 = vadd.f32 %v6178_v36, %v535_v34  ;;  %780 = vmatpush.msra.mxu0 %v686_v33 }
 0x545   : > { %787 = vrot.lane.b32.xlu1 %v536_v37, %s5968_s12  ;;  %5056 = vmatmul.msk.f32.vlgmr.msra.gmra.mxu3 %vm703_vm8, %v536_v37 }
 0x546   : > { %781 = vmatpush.msra.mxu0 %v6211_v35  ;;  %v798_v36 = vpop.permute.xlu1 %797 }
 0x548   : > { %782 = vmatpush.msra.mxu0 %v6214_v39 }
 0x54a   : > { %5058 = vmatpush.xpose.msk.msrb.mxu0 %vm703_vm8, %v804_v23 }
 0x54d   : > { %5419 = vrot.lane.b32.xlu1 %v5418_v40, %s5968_s12 }
 0x54e   : > { %5059 = vmatpush.xpose.msk.msrb.mxu0 %vm703_vm8, %v802_v41  ;;  %v796_v42 = vpop.permute.xlu1 %795 }
 0x552   : > { %5060 = vmatpush.xpose.msk.msrb.mxu0 %vm703_vm8, %v800_v38 }
 0x556   : > { %5061 = vmatpush.xpose.msk.msrb.mxu0 %vm703_vm8, %v798_v36  ;;  %v792_v50 = vpop.permute.xlu1 %791 }
 0x55a   : > { %5062 = vmatpush.xpose.msk.msrb.mxu0 %vm703_vm8, %v796_v42 }
 0x55e   : > { %v790_v52 = vpop.permute.xlu1 %789 }
 0x5b7   : > { %v788_v55 = vpop.permute.xlu1 %787 }
 0x5bf   : > { %v5420_v57 = vpop.permute.xlu1 %5419 }
 0x5c0   : > { %v5422_v58 = vunpack.i.h.bf16 %v5420_v57  ;;  %v5421_v60 = vunpack.i.l.bf16 %v5420_v57 }
 0x5c2   : > { %897 = vmatpush.msrb.mxu3 %v5421_v60 }
 0x5c4   : > { %898 = vmatpush.msrb.mxu3 %v5422_v58 }
 0x5c8   : > { %v748_v43 = vpop.f32.mrf.mxu3 }
 0x5c9   : > { %v752_v44 = vsel %vm751_vm11, %v748_v43, -inf }
 0x5ca   : > { %753 = vmax.xlane.f32.xlu0 %v752_v44  ;;  %v988_v44 = vld [vmem:[#allocation5 + $0xf8] sm:$0xff] }
 0x5de   : > { %793 = vrot.lane.b32.xlu0 %v606_v10, %s5968_s12  ;;  %v511_v10 = vld [vmem:[#allocation5 + $0xc0] sm:$0xff] }
 0x63d   : > { %v754_v45 = vpop.xlane.xlu0 %753 }
 0x63e   : > { %v755_v46 = vsub.f32 %v748_v43, %v754_v45  ;;  %v987_v45 = vld [vmem:[#allocation5 + $0xf0] sm:$0xff] }
 0x640   : > { %v756_v47 = vmul.f32 1.442695, %v755_v46  ;;  %v986_v46 = vld [vmem:[#allocation5 + $0xe8] sm:$0xff] }
 0x642   : > { %5600 = vpow2.f32 %v756_v47  ;;  %v985_v47 = vld [vmem:[#allocation5 + $0xe0] sm:$0xff] }
 0x648   : > { %v5601_v48 = vpop.eup %5600 }
 0x649   : > { %v758_v49 = vsel %vm751_vm11, %v5601_v48, 0.0 }
 0x64a   : > { %759 = vadd.xlane.f32.xlu2 %v758_v49  ;;  %v1020_v49 = vld [vmem:[#allocation5 + $0x130] sm:$0xff] }
 0x650   : > { %v794_v51 = vpop.permute.xlu0 %793 }
 0x651   : > { %5063 = vmatpush.xpose.msk.msrb.mxu0 %vm703_vm8, %v794_v51 }
 0x655   : > { %5064 = vmatpush.xpose.msk.msrb.mxu0 %vm703_vm8, %v792_v50 }
 0x659   : > { %5065 = vmatpush.xpose.msk.msrb.mxu0 %vm703_vm8, %v790_v52  ;;  %v1019_v52 = vld [vmem:[#allocation5 + $0x128] sm:$0xff] }
 0x662   : > { %5424 = vrot.lane.b32.xlu2 %v5423_v31, %s5968_s12 }
 0x66a   : > { %5429 = vrot.lane.b32.xlu2 %v5428_v54, %s5968_s12 }
 0x6bd   : > { %v760_v61 = vpop.xlane.xlu2 %759 }
 0x6be   : > { %5602 = vrcp.f32 %v760_v61 }
 0x6c4   : > { %v5603_v62 = vpop.eup %5602 }
 0x6c5   : > { %v762_v63 = vmul.f32 %v5603_v62, %v5601_v48  ;;  %v5425_v0 = vpop.permute.xlu2 %5424  ;;  %v1021_v48 = vld [vmem:[#allocation5 + $0x138] sm:$0xff] }
 0x6c6   : > { %v5427_v1 = vunpack.i.h.bf16 %v5425_v0  ;;  %v5426_v5 = vunpack.i.l.bf16 %v5425_v0  ;;  %v958_v62 = vld [vmem:[#allocation5 + $0xd8] sm:$0x3] }
 0x6c7   : > { %5057 = vmatmul.msk.f32.vlgmr.msra.gmra.mxu0 %vm763_vm12, %v762_v63 }
 0x6c8   : > { %899 = vmatpush.msrb.mxu3 %v5426_v5  ;;  %950 = vmatpush.msra.mxu0 %v511_v10 }
 0x6ca   : > { %900 = vmatpush.msrb.mxu3 %v5427_v1  ;;  %v981_v1 = vperm.slane %v958_v62, 0 }
 0x6cd   : > { %v5430_v6 = vpop.permute.xlu2 %5429 }
 0x6ce   : > { %v5432_v7 = vunpack.i.h.bf16 %v5430_v6  ;;  %v5431_v9 = vunpack.i.l.bf16 %v5430_v6 }
 0x6cf   : > { %5066 = vmatmul.msk.f32.vlgmr.msrb.gmra.mxu0 %vm703_vm8, %v788_v55  ;;  %v1018_v55 = vld [vmem:[#allocation5 + $0x120] sm:$0xff] }
 0x6d0   : > { %901 = vmatpush.msrb.mxu3 %v5431_v9 }
 0x6d2   : > { %902 = vmatpush.msrb.mxu3 %v5432_v7  ;;  %v983_v7 = vperm.slane %v958_v62, 1 }
 0x744   : > { %v784_v12 = vpop.f32.mrf.mxu0 }
 0x745   : > { %5069 = vmatmul.msk.f32.vlgmr.msra.gmra.mxu0 %vm703_vm8, %v784_v12  ;;  %v1017_v12 = vld [vmem:[#allocation5 + $0x118] sm:$0xff] }
 0x74c   : > { %v840_v13 = vpop.f32.mrf.mxu0 }
 0x74d   : > { %v843_v15 = vsel %vm751_vm11, %v840_v13, -inf }
 0x74e   : > { %844 = vmax.xlane.f32.xlu0 %v843_v15  ;;  %v1015_v15 = vld [vmem:[#allocation5 + $0x108] sm:$0xff] }
 0x762   : > { %5434 = vrot.lane.b32.xlu0 %v5433_v16, %s5968_s12  ;;  %v5574_v16 = vld [vmem:[#allocation5 + $0x100] ss:$0 sm:$0xff] }
 0x7c1   : > { %v845_v17 = vpop.xlane.xlu0 %844 }
 0x7c2   : > { %v846_v19 = vsub.f32 %v840_v13, %v845_v17  ;;  %v952_v33 = vpop.f32.mrf.mxu0  ;;  %v1016_v13 = vld [vmem:[#allocation5 + $0x110] sm:$0xff] }
 0x7c4   : > { %v847_v20 = vmul.f32 1.442695, %v846_v19 }
 0x7c6   : > { %5604 = vpow2.f32 %v847_v20 }
 0x7cc   : > { %v5605_v21 = vpop.eup %5604 }
 0x7cd   : > { %v849_v22 = vsel %vm751_vm11, %v5605_v21, 0.0 }
 0x7ce   : > { %850 = vadd.xlane.f32.xlu1 %v849_v22 }
 0x7d4   : > { %v5435_v23 = vpop.permute.xlu0 %5434 }
 0x7d5   : > { %v5436_v24 = vunpack.i.l.bf16 %v5435_v23  ;;  %v5437_v25 = vunpack.i.h.bf16 %v5435_v23 }
 0x7d7   : > { %903 = vmatpush.msrb.mxu3 %v5436_v24 }
 0x7d9   : > { %904 = vmatpush.msrb.mxu3 %v5437_v25 }
 0x7db   : > { %927 = vmatpush.msra.mxu3 %v512_v30 }
 0x841   : > { %v851_v26 = vpop.xlane.xlu1 %850 }
 0x842   : > { %5606 = vrcp.f32 %v851_v26  ;;  %v1081_v26 = vld [vmem:[#allocation5 + $0x170] sm:$0xff] }
 0x843   : > { %1099 = vmatpush.msrb.mxu0 %v1081_v26 }
 0x848   : > { %v5607_v28 = vpop.eup %5606 }
 0x849   : > { %v853_v29 = vmul.f32 %v5607_v28, %v5605_v21  ;;  %v5575_v21 = vld [vmem:[#allocation5 + $0x148] ss:$0 sm:$0xff] }
 0x84a   : > { %v1080_v28 = vld [vmem:[#allocation5 + $0x168] sm:$0xff] }
 0x84b   : > { %5067 = vmatmul.msk.f32.vlgmr.msrb.gmra.mxu3 %vm763_vm12, %v853_v29  ;;  %1100 = vmatpush.msrb.mxu0 %v1080_v28 }
 0x84c   : > { %1006 = vmatpush.msrb.mxu3 %v988_v44  ;;  %v1050_v44 = vld [vmem:[#allocation5 + $0x150] sm:$0x3] }
 0x84e   : > { %1007 = vmatpush.msrb.mxu3 %v987_v45 }
 0x850   : > { %1008 = vmatpush.msrb.mxu3 %v986_v46  ;;  %v1073_v46 = vperm.slane %v1050_v44, 0 }
 0x852   : > { %1009 = vmatpush.msrb.mxu3 %v985_v47 }
 0x8ce   : > { %v906_v31 = vpop.f32.mrf.mxu3 }
 0x8cf   : > { %5068 = vmatmul.msk.f32.vlgmr.msra.gmra.mxu3 %vm703_vm8, %v906_v31 }
 0x952   : > { %v929_v34 = vpop.f32.mrf.mxu3 }
 0x953   : > { %v953_v35 = vadd.f32 %v952_v33, %v929_v34  ;;  %v5448_v34 = vpack.i.bf16 %v1080_v28, %v1081_v26 }
 0x955   : > { %v956_v37 = vadd.f32 %v5573_v32, %v953_v35  ;;  %v1079_v35 = vld [vmem:[#allocation5 + $0x160] sm:$0xff] }
 0x956   : > { %1101 = vmatpush.msrb.mxu0 %v1079_v35 }
 0x957   : > { %v957_v38 = vadd.f32 %v956_v37, %v6193_v2  ;;  %v1022_v2 = vld [vmem:[#allocation5 + $0x140] sm:$0xff]  ;;  %v1078_v37 = vld [vmem:[#allocation5 + $0x158] sm:$0xff] }
 0x958   : > { %1034 = vmatpush.msrb.mxu2 %v1022_v2  ;;  %1102 = vmatpush.msrb.mxu0 %v1078_v37 }
 0x959   : > { %v959_v39 = vsel %vm463_vm5, %v957_v38, 0.0  ;;  %5072 = vmatmul.msk.f32.vlgmr.msrb.gmra.mxu0 %vm255_vm0, %v6125_v53 }
 0x95a   : > { %960 = vadd.xlane.f32.xlu2 %v959_v39  ;;  %1035 = vmatpush.msrb.mxu2 %v1021_v48  ;;  %v6263_v39 = vld [vmem:[#allocation5 + $0x178] ss:$0 sm:$0xff] }
 0x95c   : > { %1036 = vmatpush.msrb.mxu2 %v1020_v49  ;;  %v1075_v49 = vperm.slane %v1050_v44, 1 }
 0x95e   : > { %1037 = vmatpush.msrb.mxu2 %v1019_v52 }
 0x960   : > { %1038 = vmatpush.msrb.mxu2 %v1018_v55 }
 0x961   : > { %5073 = vmatmul.msk.f32.gmra.mxu0 %vm255_vm0, %v6134_v56 }
 0x962   : > { %1039 = vmatpush.msrb.mxu2 %v1017_v12 }
 0x964   : > { %1040 = vmatpush.msrb.mxu2 %v1016_v13 }
 0x966   : > { %1041 = vmatpush.msrb.mxu2 %v1015_v15 }
 0x969   : > { %5074 = vmatmul.msk.f32.gmra.mxu0 %vm255_vm0, %v6140_v59 }
 0x971   : > { %5075 = vmatmul.msk.f32.gmra.mxu0 %vm255_vm0, %v6145_v3 }
 0x979   : > { %5076 = vmatmul.msk.f32.gmra.mxu0 %vm255_vm0, %v6151_v8 }
 0x981   : > { %5077 = vmatmul.msk.f32.gmra.mxu0 %vm255_vm0, %v6156_v11 }
 0x989   : > { %5078 = vmatmul.msk.f32.gmra.mxu0 %vm255_vm0, %v6161_v14 }
 0x991   : > { %5079 = vmatmul.msk.f32.gmra.mxu0 %vm255_vm0, %v6166_v18 }
 0x9cd   : > { %v961_v40 = vpop.xlane.xlu2 %960 }
 0x9ce   : > { %v962_v41 = vmul.f32 %v961_v40, %v6170_v27 }
 0x9d0   : > { %v963_v36 = vsub.f32 %v957_v38, %v962_v41  ;;  %v5443_v38 = vpack.i.bf16 %v1078_v37, %v1079_v35 }
 0x9d2   : > { %v964_v42 = vmul.f32 %v963_v36, %v963_v36  ;;  %5444 = vrot.lane.b32.xlu2 %v5443_v38, %s5962_s7 }
 0x9d4   : > { %v965_v43 = vsel %vm463_vm5, %v964_v42, 0.0 }
 0x9d5   : > { %966 = vadd.xlane.f32.xlu1 %v965_v43 }
 0x9d6   : > { %v1104_v11 = vpop.f32.mrf.mxu0 }
 0x9d7   : > { %v1105_v14 = vadd.f32 %v6263_v39, %v1104_v11 }
 0x9de   : > { %v1107_v48 = vpop.f32.mrf.mxu0 }
 0xa48   : > { %v967_v50 = vpop.xlane.xlu1 %966 }
 0xa49   : > { %v968_v51 = vmul.f32 %v967_v50, %v6170_v27 }
 0xa4b   : > { %v969_v54 = vadd.f32 1e-05, %v968_v51  ;;  %v5445_v51 = vpop.permute.xlu2 %5444 }
 0xa4d   : > { %5608 = vrsqrt.f32 %v969_v54  ;;  %vm976_vm14 = vweird.f32 %v969_v54 }
 0xa53   : > { %v5609_v57 = vpop.eup %5608 }
 0xa54   : > { %v971_v58 = vmul.f32 %v5609_v57, %v969_v54  ;;  %vm977_vm13 = vweird.f32 %v5609_v57 }
 0xa55   : > { %vm978_vm15 = vmor %vm976_vm14, %vm977_vm13 }
 0xa56   : > { %v972_v60 = vmul.f32 %v5609_v57, %v971_v58 }
 0xa58   : > { %v973_v61 = vmul.f32 0.5, %v972_v60  ;;  %v5447_v60 = vunpack.i.h.bf16 %v5445_v51 }
 0xa5a   : > { %v974_v63 = vsub.f32 1.5, %v973_v61  ;;  %v1110_v61 = vpop.f32.mrf.mxu0 }
 0xa5c   : > { %v975_v0 = vmul.f32 %v5609_v57, %v974_v63 }
 0xa5e   : > { %v979_v5 = vsel %vm978_vm15, %v5609_v57, %v975_v0  ;;  %v5446_v57 = vunpack.i.l.bf16 %v5445_v51  ;;  %v1111_v0 = vadd.f32 %v6263_v39, %v1110_v61 }
 0xa5f   : > { %v980_v6 = vmul.f32 %v979_v5, %v963_v36 }
 0xa61   : > { %v982_v9 = vmul.f32 %v981_v1, %v980_v6 }
 0xa63   : > { %v984_v10 = vadd.f32 %v983_v7, %v982_v9  ;;  %v1113_v7 = vpop.f32.mrf.mxu0 }
 0xa65   : > { %5070 = vmatmul.msk.f32.vlgmr.msrb.gmra.mxu3 %vm255_vm0, %v984_v10 }
 0xa6b   : > { %v1116_v9 = vpop.f32.mrf.mxu0 }
 0xa6c   : > { %v1117_v26 = vadd.f32 %v6263_v39, %v1116_v9 }
 0xae8   : > { %v1011_v17 = vpop.f32.mrf.mxu3 }
 0xae9   : > { %v1012_v19 = vadd.f32 %v5574_v16, %v1011_v17 }
 0xaeb   : > { %v1014_v20 = vmax.f32 %v1012_v19, 0.0  ;;  %v2011_v19 = vld [vmem:[#allocation5 + $0x1b0] sm:$0xff] }
 0xaed   : > { %5071 = vmatmul.msk.f32.vlgmr.msrb.gmra.mxu2 %vm763_vm12, %v1014_v20  ;;  %v2012_v20 = vld [vmem:[#allocation5 + $0x1b8] sm:$0xff] }
 0xb70   : > { %v1043_v22 = vpop.f32.mrf.mxu2 }
 0xb71   : > { %v1046_v23 = vadd.f32 %v1043_v22, %v984_v10  ;;  %v1119_v10 = vpop.f32.mrf.mxu0  ;;  %v1108_v22 = vadd.f32 %v6263_v39, %v1107_v48 }
 0xb72   : > { %v1120_v12 = vadd.f32 %v6263_v39, %v1119_v10 }
 0xb73   : > { %v1049_v24 = vadd.f32 %v5575_v21, %v1046_v23  ;;  %v5458_v21 = vpack.i.bf16 %v2011_v19, %v2012_v20  ;;  %v2009_v23 = vld [vmem:[#allocation5 + $0x1a0] sm:$0xff] }
 0xb75   : > { %v1051_v25 = vsel %vm463_vm5, %v1049_v24, 0.0 }
 0xb76   : > { %1052 = vadd.xlane.f32.xlu0 %v1051_v25 }
 0xb79   : > { %v1122_v13 = vpop.f32.mrf.mxu0 }
 0xb7a   : > { %v1123_v15 = vadd.f32 %v6263_v39, %v1122_v13 }
 0xb81   : > { %v1125_v28 = vpop.f32.mrf.mxu0 }
 0xb8a   : > { %5449 = vrot.lane.b32.xlu0 %v5448_v34, %s5963_s8 }
 0xbe9   : > { %v1053_v29 = vpop.xlane.xlu0 %1052 }
 0xbea   : > { %v1054_v30 = vmul.f32 %v1053_v29, %v6170_v27  ;;  %v1126_v29 = vadd.f32 %v6263_v39, %v1125_v28 }
 0xbec   : > { %v1055_v31 = vsub.f32 %v1049_v24, %v1054_v30  ;;  %v2010_v24 = vld [vmem:[#allocation5 + $0x1a8] sm:$0xff] }
 0xbed   : > { %v5463_v25 = vpack.i.bf16 %v2009_v23, %v2010_v24 }
 0xbee   : > { %v1056_v32 = vmul.f32 %v1055_v31, %v1055_v31 }
 0xbf0   : > { %v1057_v33 = vsel %vm463_vm5, %v1056_v32, 0.0 }
 0xbf1   : > { %1058 = vadd.xlane.f32.xlu1 %v1057_v33 }
 0xbfc   : > { %v5450_v59 = vpop.permute.xlu0 %5449 }
 0xbfd   : > { %v5452_v40 = vunpack.i.h.bf16 %v5450_v59  ;;  %v5451_v41 = vunpack.i.l.bf16 %v5450_v59 }
 0xbff   : > { %1201 = vmatpush.msra.mxu3 %v5451_v41 }
 0xc01   : > { %1202 = vmatpush.msra.mxu3 %v5452_v40 }
 0xc0a   : > { %5439 = vrot.lane.b32.xlu1 %v5448_v34, %s5962_s7 }
 0xc12   : > { %1145 = vrot.lane.b32.xlu1 %v6263_v39, %s5962_s7 }
 0xc1a   : > { %5454 = vrot.lane.b32.xlu1 %v5443_v38, %s5963_s8 }
 0xc22   : > { %1433 = vrot.lane.b32.xlu1 %v1105_v14, %s5968_s12 }
 0xc2a   : > { %1437 = vrot.lane.b32.xlu1 %v1111_v0, %s5968_s12 }
 0xc32   : > { %1443 = vrot.lane.b32.xlu1 %v1120_v12, %s5968_s12 }
 0xc3a   : > { %5459 = vrot.lane.b32.xlu1 %v5458_v21, %s5965_s10 }
 0xc64   : > { %v1059_v53 = vpop.xlane.xlu1 %1058 }
 0xc65   : > { %v1060_v56 = vmul.f32 %v1059_v53, %v6170_v27 }
 0xc67   : > { %v1061_v3 = vadd.f32 1e-05, %v1060_v56 }
 0xc69   : > { %5610 = vrsqrt.f32 %v1061_v3  ;;  %vm1068_vm7 = vweird.f32 %v1061_v3 }
 0xc6f   : > { %v5611_v8 = vpop.eup %5610 }
 0xc70   : > { %v1063_v36 = vmul.f32 %v5611_v8, %v1061_v3  ;;  %vm1069_vm6 = vweird.f32 %v5611_v8 }
 0xc71   : > { %vm1070_vm9 = vmor %vm1068_vm7, %vm1069_vm6 }
 0xc72   : > { %v1064_v42 = vmul.f32 %v5611_v8, %v1063_v36 }
 0xc74   : > { %v1065_v43 = vmul.f32 0.5, %v1064_v42 }
 0xc76   : > { %v1066_v45 = vsub.f32 1.5, %v1065_v43 }
 0xc78   : > { %v1067_v18 = vmul.f32 %v5611_v8, %v1066_v45 }
 0xc7a   : > { %v1071_v47 = vsel %vm1070_vm9, %v5611_v8, %v1067_v18 }
 0xc7b   : > { %v1072_v2 = vmul.f32 %v1071_v47, %v1055_v31  ;;  %v5577_v47 = vld [vmem:[#allocation5 + $0x1c0] ss:$0 sm:$0xff] }
 0xc7c   : > { %v5440_v50 = vpop.permute.xlu1 %5439 }
 0xc7d   : > { %v1074_v52 = vmul.f32 %v1073_v46, %v1072_v2  ;;  %v5441_v54 = vunpack.i.l.bf16 %v5440_v50  ;;  %v5442_v55 = vunpack.i.h.bf16 %v5440_v50 }
 0xc7f   : > { %1163 = vmatpush.msrb.mxu1 %v5441_v54  ;;  %v6281_v58 = vadd.f32 %v1075_v49, %v1074_v52 }
 0xc81   : > { %1164 = vmatpush.msrb.mxu1 %v5442_v55  ;;  %v6285_v63 = vadd.f32 %v6281_v58, %v6097_v4  ;;  %v1114_v4 = vadd.f32 %v6263_v39, %v1113_v7 }
 0xc83   : > { %1165 = vmatpush.msrb.mxu1 %v5446_v57  ;;  %1439 = vrot.lane.b32.xlu0 %v1114_v4, %s5968_s12 }
 0xc84   : > { %v1146_v62 = vpop.permute.xlu1 %1145 }
 0xc85   : > { %1166 = vmatpush.msrb.mxu1 %v5447_v60 }
 0xc86   : > { %5080 = vmatmul.msk.f32.vlgmr.msrb.gmra.mxu1 %vm255_vm0, %v6285_v63 }
 0xc8b   : > { %1445 = vrot.lane.b32.xlu0 %v1123_v15, %s5968_s12 }
 0xc8c   : > { %v5455_v1 = vpop.permute.xlu1 %5454 }
 0xc8d   : > { %v5457_v5 = vunpack.i.h.bf16 %v5455_v1  ;;  %v5456_v6 = vunpack.i.l.bf16 %v5455_v1 }
 0xc8f   : > { %1203 = vmatpush.msra.mxu3 %v5456_v6 }
 0xc91   : > { %1204 = vmatpush.msra.mxu3 %v5457_v5 }
 0xc92   : > { %5081 = vmatmul.msk.f32.vlgmr.msra.gmra.mxu3 %vm255_vm0, %v6281_v58 }
 0xc93   : > { %5464 = vrot.lane.b32.xlu0 %v5463_v25, %s5965_s10 }
 0xc94   : > { %v1434_v31 = vpop.permute.xlu1 %1433 }
 0xc9c   : > { %v1438_v33 = vpop.permute.xlu1 %1437 }
 0xca4   : > { %v1444_v35 = vpop.permute.xlu1 %1443 }
 0xcac   : > { %v5460_v38 = vpop.permute.xlu1 %5459 }
 0xcad   : > { %v5462_v53 = vunpack.i.h.bf16 %v5460_v38  ;;  %v5461_v56 = vunpack.i.l.bf16 %v5460_v38 }
 0xcf5   : > { %v1440_v34 = vpop.permute.xlu0 %1439 }
 0xcfd   : > { %v1446_v37 = vpop.permute.xlu0 %1445 }
 0xd03   : > { %v1168_v16 = vpop.f32.mrf.mxu1 }
 0xd04   : > { %v1169_v17 = vadd.f32 %v1168_v16, %v1146_v62 }
 0xd05   : > { %v5465_v3 = vpop.permute.xlu0 %5464 }
 0xd06   : > { %1449 = vrot.lane.b32.xlu2 %v1169_v17, %s5968_s12  ;;  %5082 = vmatpush.xpose.msk.msra.mxu2 %vm703_vm8, %v1169_v17  ;;  %v5467_v40 = vunpack.i.h.bf16 %v5465_v3  ;;  %v5466_v41 = vunpack.i.l.bf16 %v5465_v3 }
 0xd09   : > { %5083 = vmatmul.msk.f32.vlgmr.msra.gmra.mxu2 %vm703_vm8, %v1105_v14 }
 0xd0e   : > { %1435 = vrot.lane.b32.xlu2 %v1108_v22, %s5968_s12 }
 0xd11   : > { %5084 = vmatmul.msk.f32.gmra.mxu2 %vm703_vm8, %v1108_v22 }
 0xd15   : > { %v6330_v36 = vpop.f32.mrf.mxu3 }
 0xd16   : > { %1441 = vrot.lane.b32.xlu2 %v1117_v26, %s5968_s12 }
 0xd19   : > { %5085 = vmatmul.msk.f32.gmra.mxu2 %vm703_vm8, %v1111_v0 }
 0xd1e   : > { %1447 = vrot.lane.b32.xlu2 %v1126_v29, %s5968_s12 }
 0xd21   : > { %5086 = vmatmul.msk.f32.gmra.mxu2 %vm703_vm8, %v1114_v4 }
 0xd29   : > { %5087 = vmatmul.msk.f32.gmra.mxu2 %vm703_vm8, %v1117_v26 }
 0xd31   : > { %5088 = vmatmul.msk.f32.gmra.mxu2 %vm703_vm8, %v1120_v12 }
 0xd39   : > { %5089 = vmatmul.msk.f32.gmra.mxu2 %vm703_vm8, %v1123_v15 }
 0xd41   : > { %5090 = vmatmul.msk.f32.gmra.mxu2 %vm703_vm8, %v1126_v29 }
 0xd60   : > { %v1450_v30 = vpop.permute.xlu2 %1449 }
 0xd61   : > { %5100 = vmatpush.xpose.msk.msrb.mxu3 %vm703_vm8, %v1450_v30 }
 0xd64   : > { %5101 = vmatmul.msk.f32.vlgmr.msrb.gmra.mxu3 %vm703_vm8, %v1434_v31 }
 0xd65   : > { %2032 = vmatpush.msra.mxu3 %v2012_v20 }
 0xd67   : > { %2033 = vmatpush.msra.mxu3 %v2011_v19 }
 0xd68   : > { %v1436_v32 = vpop.permute.xlu2 %1435 }
 0xd69   : > { %2034 = vmatpush.msra.mxu3 %v2010_v24 }
 0xd6b   : > { %2035 = vmatpush.msra.mxu3 %v2009_v23 }
 0xd6c   : > { %5102 = vmatmul.msk.f32.gmra.mxu3 %vm703_vm8, %v1436_v32 }
 0xd6d   : > { %2072 = vmatpush.msrb.mxu3 %v5461_v56 }
 0xd6f   : > { %2073 = vmatpush.msrb.mxu3 %v5462_v53 }
 0xd70   : > { %v1442_v59 = vpop.permute.xlu2 %1441 }
 0xd71   : > { %2074 = vmatpush.msrb.mxu3 %v5466_v41 }
 0xd73   : > { %2075 = vmatpush.msrb.mxu3 %v5467_v40 }
 0xd74   : > { %5103 = vmatmul.msk.f32.gmra.mxu3 %vm703_vm8, %v1438_v33 }
 0xd78   : > { %v1448_v8 = vpop.permute.xlu2 %1447 }
 0xd7c   : > { %5104 = vmatmul.msk.f32.gmra.mxu3 %vm703_vm8, %v1440_v34 }
 0xd84   : > { %5105 = vmatmul.msk.f32.gmra.mxu3 %vm703_vm8, %v1442_v59 }
 0xd8c   : > { %5106 = vmatmul.msk.f32.gmra.mxu3 %vm703_vm8, %v1444_v35  ;;  %v1253_v49 = vpop.f32.mrf.mxu2 }
 0xd8d   : > { %v1277_v12 = vsel %vm321_vm4, %v1253_v49, -inf }
 0xd94   : > { %5107 = vmatmul.msk.f32.gmra.mxu3 %vm703_vm8, %v1446_v37  ;;  %v6352_v50 = vpop.f32.mrf.mxu2 }
 0xd95   : > { %v1280_v13 = vsel %vm321_vm4, %v6352_v50, -inf }
 0xd9c   : > { %5108 = vmatmul.msk.f32.gmra.mxu3 %vm703_vm8, %v1448_v8  ;;  %v6354_v51 = vpop.f32.mrf.mxu2 }
 0xd9d   : > { %v1283_v30 = vsel %vm321_vm4, %v6354_v51, -inf }
 0xda4   : > { %5134 = vmatmul.msk.f32.vlgmr.msra.gmra.mxu3 %vm255_vm0, %v6285_v63  ;;  %v6356_v52 = vpop.f32.mrf.mxu2 }
 0xda5   : > { %v1286_v55 = vsel %vm321_vm4, %v6356_v52, -inf }
 0xdac   : > { %5135 = vmatmul.msk.f32.vlgmr.msrb.gmra.mxu3 %vm255_vm0, %v6281_v58  ;;  %v6362_v57 = vpop.f32.mrf.mxu2 }
 0xdad   : > { %v1289_v60 = vsel %vm321_vm4, %v6362_v57, -inf }
 0xdb4   : > { %v6366_v61 = vpop.f32.mrf.mxu2 }
 0xdb5   : > { %v1292_v56 = vsel %vm321_vm4, %v6366_v61, -inf }
 0xdbc   : > { %v6371_v0 = vpop.f32.mrf.mxu2 }
 0xdbd   : > { %v1295_v1 = vsel %vm321_vm4, %v6371_v0, -inf }
 0xde7   : > { %v6332_v42 = vpop.f32.mrf.mxu3 }
 0xde8   : > { %v1510_v54 = vsel %vm321_vm4, %v6332_v42, -inf }
 0xdef   : > { %v6334_v11 = vpop.f32.mrf.mxu3 }
 0xdf7   : > { %v6336_v43 = vpop.f32.mrf.mxu3 }
 0xdf8   : > { %v1516_v28 = vsel %vm321_vm4, %v6336_v43, -inf }
 0xdff   : > { %v6338_v14 = vpop.f32.mrf.mxu3 }
 0xe00   : > { %v1519_v34 = vsel %vm321_vm4, %v6338_v14, -inf }
 0xe07   : > { %v6340_v44 = vpop.f32.mrf.mxu3 }
 0xe08   : > { %v1522_v38 = vsel %vm321_vm4, %v6340_v44, -inf }
 0xe0f   : > { %v6342_v45 = vpop.f32.mrf.mxu3 }
 0xe10   : > { %v1525_v15 = vsel %vm321_vm4, %v6342_v45, -inf }
 0xe17   : > { %v6344_v18 = vpop.f32.mrf.mxu3 }
 0xe18   : > { %v1528_v62 = vsel %vm321_vm4, %v6344_v18, -inf }
 0xe1f   : > { %v6346_v46 = vpop.f32.mrf.mxu3 }
 0xe20   : > { %v1531_v40 = vsel %vm321_vm4, %v6346_v46, -inf }
 0xe27   : > { %v2037_v2 = vpop.f32.mrf.mxu3 }
 0xe28   : > { %v2038_v48 = vadd.f32 %v5577_v47, %v2037_v2 }
 0xe2a   : > { %2081 = vrot.lane.b32.xlu2 %v2038_v48, %s5963_s8 }
 0xe2f   : > { %v2077_v5 = vpop.f32.mrf.mxu3 }
 0xe32   : > { %2057 = vrot.lane.b32.xlu2 %v5577_v47, %s5965_s10 }
 0xe3a   : > { %2146 = vrot.lane.b32.xlu2 %v2038_v48, %s5964_s9 }
 0xe42   : > { %2144 = vrot.lane.b32.xlu2 %v2038_v48, %s5962_s7 }
 0xe6b   : > { %1511 = vmax.xlane.f32.xlu2 %v1510_v54 }
 0xe73   : > { %1287 = vmax.xlane.f32.xlu2 %v1286_v55 }
 0xe7b   : > { %1290 = vmax.xlane.f32.xlu2 %v1289_v60 }
 0xe83   : > { %1529 = vmax.xlane.f32.xlu2 %v1528_v62 }
 0xe84   : > { %v2082_v63 = vpop.permute.xlu2 %2081 }
 0xe85   : > { %5136 = vmatpush.xpose.msk.msra.mxu3 %vm282_vm1, %v2082_v63 }
 0xe88   : > { %5137 = vmatmul.msk.f32.vlgmr.msra.gmra.mxu3 %vm282_vm1, %v2038_v48 }
 0xe8b   : > { %1296 = vmax.xlane.f32.xlu2 %v1295_v1 }
 0xe8c   : > { %v2058_v6 = vpop.permute.xlu2 %2057 }
 0xe8d   : > { %v6376_v7 = vadd.f32 %v2077_v5, %v2058_v6 }
 0xe8f   : > { %5138 = vmatpush.msk.msrb.mxu3 %vm325_vm3, %v6376_v7 }
 0xe94   : > { %v2147_v4 = vpop.permute.xlu2 %2146 }
 0xe95   : > { %5140 = vmatpush.xpose.msk.msra.mxu3 %vm282_vm1, %v2147_v4 }
 0xe9c   : > { %v2145_v31 = vpop.permute.xlu2 %2144 }
 0xede   : > { %v1512_v35 = vpop.xlane.xlu2 %1511 }
 0xedf   : > { %v1534_v37 = vsub.f32 %v6332_v42, %v1512_v35 }
 0xee1   : > { %v1542_v53 = vmul.f32 1.442695, %v1534_v37 }
 0xee6   : > { %v1288_v41 = vpop.xlane.xlu2 %1287 }
 0xeee   : > { %v1291_v8 = vpop.xlane.xlu2 %1290 }
 0xf0b   : > { %v2104_v9 = vpop.f32.mrf.mxu3 }
 0xf0c   : > { %v2107_v10 = vsel %vm307_vm2, %v2104_v9, -inf }
 0xf0d   : > { %2108 = vmax.xlane.f32.xlu1 %v2107_v10 }
 0xf15   : > { %1278 = vmax.xlane.f32.xlu1 %v1277_v12 }
 0xf1d   : > { %1281 = vmax.xlane.f32.xlu1 %v1280_v13 }
 0xf36   : > { %1183 = vrot.lane.b32.xlu1 %v6263_v39, %s5963_s8  ;;  %v1513_v39 = vsel %vm321_vm4, %v6334_v11, -inf }
 0xf60   : > { %1526 = vmax.xlane.f32.xlu1 %v1525_v15  ;;  %v6428_v15 = vpop.f32.mrf.mxu2 }
 0xf80   : > { %v2109_v16 = vpop.xlane.xlu1 %2108 }
 0xf81   : > { %v2110_v17 = vsub.f32 %v2104_v9, %v2109_v16 }
 0xf83   : > { %v2111_v19 = vmul.f32 1.442695, %v2110_v17 }
 0xf85   : > { %5612 = vpow2.f32 %v2111_v19 }
 0xf88   : > { %v1279_v20 = vpop.xlane.xlu1 %1278 }
 0xf89   : > { %v1301_v21 = vsub.f32 %v1253_v49, %v1279_v20 }
 0xf8b   : > { %v5613_v22 = vpop.eup %5612  ;;  %v1309_v23 = vmul.f32 1.442695, %v1301_v21 }
 0xf8c   : > { %v2113_v24 = vsel %vm307_vm2, %v5613_v22, 0.0 }
 0xf8d   : > { %5614 = vpow2.f32 %v1309_v23  ;;  %2114 = vadd.xlane.f32.xlu0 %v2113_v24  ;;  %v1304_v23 = vsub.f32 %v6356_v52, %v1288_v41 }
 0xf8e   : > { %5616 = vpow2.f32 %v1542_v53 }
 0xf90   : > { %v1282_v29 = vpop.xlane.xlu1 %1281 }
 0xf93   : > { %v5615_v25 = vpop.eup %5614 }
 0xf94   : > { %v1325_v26 = vsel %vm321_vm4, %v5615_v25, 0.0  ;;  %v6407_v59 = vpop.eup %5616 }
 0xf95   : > { %1514 = vmax.xlane.f32.xlu0 %v1513_v39  ;;  %1326 = vadd.xlane.f32.xlu2 %v1325_v26  ;;  %v1558_v3 = vsel %vm321_vm4, %v6407_v59, 0.0 }
 0xf9d   : > { %1517 = vmax.xlane.f32.xlu0 %v1516_v28 }
 0xfa5   : > { %1284 = vmax.xlane.f32.xlu0 %v1283_v30 }
 0xfa8   : > { %v1184_v32 = vpop.permute.xlu1 %1183 }
 0xfa9   : > { %v1207_v33 = vadd.f32 %v6330_v36, %v1184_v32  ;;  %v6413_v36 = vpop.xlane.xlu2 %1529 }
 0xfab   : > { %5091 = vmatpush.msk.msra.mxu1 %vm325_vm3, %v1207_v33 }
 0xfad   : > { %1520 = vmax.xlane.f32.xlu0 %v1519_v34  ;;  %1598 = vrot.lane.b32.xlu2 %v1207_v33, %s5968_s12 }
 0xfb1   : > { %v6415_v42 = vpop.xlane.xlu2 %1296 }
 0xfb5   : > { %1523 = vmax.xlane.f32.xlu0 %v1522_v38  ;;  %v1307_v38 = vsub.f32 %v6371_v0, %v6415_v42 }
 0xfbd   : > { %1293 = vmax.xlane.f32.xlu0 %v1292_v56 }
 0xfc5   : > { %1559 = vadd.xlane.f32.xlu0 %v1558_v3  ;;  %v1321_v3 = vmul.f32 1.442695, %v1307_v38 }
 0xfcd   : > { %1532 = vmax.xlane.f32.xlu0 %v1531_v40 }
0x1000   : > { %v2115_v47 = vpop.xlane.xlu0 %2114 }
0x1001   : > { %5618 = vrcp.f32 %v2115_v47 }
0x1007   : > { %v5619_v2 = vpop.eup %5618 }
0x1008   : > { %v2117_v48 = vmul.f32 %v5619_v2, %v5613_v22  ;;  %v1515_v49 = vpop.xlane.xlu0 %1514  ;;  %v1327_v54 = vpop.xlane.xlu2 %1326 }
0x1009   : > { %v1535_v55 = vsub.f32 %v6334_v11, %v1515_v49  ;;  %5620 = vrcp.f32 %v1327_v54  ;;  %v1302_v11 = vsub.f32 %v6352_v50, %v1282_v29  ;;  %v1298_v50 = vsel %vm321_vm4, %v6428_v15, -inf }
0x100a   : > { %5139 = vmatmul.msk.f32.vlgmr.msrb.gmra.mxu3 %vm321_vm4, %v2117_v48  ;;  %v1305_v29 = vsub.f32 %v6362_v57, %v1291_v8 }
0x100b   : > { %v1544_v60 = vmul.f32 1.442695, %v1535_v55  ;;  %v1311_v12 = vmul.f32 1.442695, %v1302_v11 }
0x100c   : > { %v1317_v30 = vmul.f32 1.442695, %v1305_v29 }
0x100d   : > { %5622 = vpow2.f32 %v1544_v60 }
0x100f   : > { %v5621_v62 = vpop.eup %5620 }
0x1010   : > { %v1357_v63 = vmul.f32 %v5621_v62, %v5615_v25  ;;  %v1518_v1 = vpop.xlane.xlu0 %1517  ;;  %v1599_v5 = vpop.permute.xlu2 %1598  ;;  %v1315_v25 = vmul.f32 1.442695, %v1304_v23 }
0x1011   : > { %v1536_v6 = vsub.f32 %v6336_v43, %v1518_v1  ;;  %5109 = vmatpush.msk.msra.mxu0 %vm325_vm3, %v1599_v5 }
0x1012   : > { %5092 = vmatmul.msk.f32.vlgmr.msra.gmra.mxu1 %vm321_vm4, %v1357_v63  ;;  %5141 = vmatmul.msk.f32.vlgmr.msra.gmra.mxu3 %vm282_vm1, %v2145_v31 }
0x1013   : > { %v6423_v4 = vpop.eup %5622  ;;  %v1546_v9 = vmul.f32 1.442695, %v1536_v6 }
0x1014   : > { %v1561_v10 = vsel %vm321_vm4, %v6423_v4, 0.0 }
0x1015   : > { %5624 = vpow2.f32 %v1546_v9  ;;  %1562 = vadd.xlane.f32.xlu0 %v1561_v10 }
0x1016   : > { %5626 = vpow2.f32 %v1311_v12 }
0x1018   : > { %v1285_v13 = vpop.xlane.xlu0 %1284 }
0x1019   : > { %v1303_v16 = vsub.f32 %v6354_v51, %v1285_v13  ;;  %v1540_v13 = vsub.f32 %v6344_v18, %v6413_v36 }
0x101b   : > { %v6430_v43 = vpop.eup %5624  ;;  %v1313_v19 = vmul.f32 1.442695, %v1303_v16  ;;  %v1084_v16 = vld [vmem:[#allocation5 + $0x188] sm:$0xff] }
0x101c   : > { %v1564_v17 = vsel %vm321_vm4, %v6430_v43, 0.0  ;;  %v6437_v21 = vpop.eup %5626  ;;  %1706 = vmatpush.msrb.mxu2 %v1084_v16 }
0x101d   : > { %1565 = vadd.xlane.f32.xlu1 %v1564_v17  ;;  %1299 = vmax.xlane.f32.xlu0 %v1298_v50  ;;  %5628 = vpow2.f32 %v1313_v19  ;;  %v1328_v51 = vsel %vm321_vm4, %v6437_v21, 0.0 }
0x1020   : > { %v1521_v20 = vpop.xlane.xlu0 %1520 }
0x1021   : > { %v1537_v22 = vsub.f32 %v6338_v14, %v1521_v20  ;;  %v1554_v20 = vmul.f32 1.442695, %v1540_v13 }
0x1023   : > { %v1548_v24 = vmul.f32 1.442695, %v1537_v22  ;;  %v6443_v26 = vpop.eup %5628 }
0x1024   : > { %v1331_v52 = vsel %vm321_vm4, %v6443_v26, 0.0 }
0x1025   : > { %5630 = vpow2.f32 %v1548_v24  ;;  %1329 = vadd.xlane.f32.xlu0 %v1328_v51 }
0x1026   : > { %5632 = vpow2.f32 %v1315_v25 }
0x1027   : > { %5634 = vpow2.f32 %v1317_v30 }
0x1028   : > { %v1524_v39 = vpop.xlane.xlu0 %1523 }
0x1029   : > { %v1538_v2 = vsub.f32 %v6340_v44, %v1524_v39 }
0x102b   : > { %v6445_v28 = vpop.eup %5630  ;;  %v1550_v54 = vmul.f32 1.442695, %v1538_v2 }
0x102c   : > { %v1567_v14 = vsel %vm321_vm4, %v6445_v28, 0.0  ;;  %v6452_v32 = vpop.eup %5632 }
0x102d   : > { %1568 = vadd.xlane.f32.xlu2 %v1567_v14  ;;  %1332 = vadd.xlane.f32.xlu0 %v1331_v52  ;;  %v1334_v34 = vsel %vm321_vm4, %v6452_v32, 0.0  ;;  %v6457_v37 = vpop.eup %5634 }
0x102e   : > { %v1337_v53 = vsel %vm321_vm4, %v6457_v37, 0.0 }
0x1030   : > { %v1294_v31 = vpop.xlane.xlu0 %1293 }
0x1031   : > { %v1306_v33 = vsub.f32 %v6366_v61, %v1294_v31 }
0x1033   : > { %v1319_v57 = vmul.f32 1.442695, %v1306_v33 }
0x1035   : > { %1335 = vadd.xlane.f32.xlu0 %v1334_v34 }
0x1038   : > { %v1560_v35 = vpop.xlane.xlu0 %1559 }
0x1039   : > { %5636 = vrcp.f32 %v1560_v35 }
0x103a   : > { %5638 = vpow2.f32 %v1319_v57 }
0x103b   : > { %5640 = vpow2.f32 %v1321_v3 }
0x103d   : > { %1338 = vadd.xlane.f32.xlu0 %v1337_v53 }
0x103f   : > { %v5637_v56 = vpop.eup %5636 }
0x1040   : > { %v1590_v61 = vmul.f32 %v5637_v56, %v6407_v59  ;;  %v6464_v40 = vpop.eup %5638  ;;  %v1533_v42 = vpop.xlane.xlu0 %1532 }
0x1041   : > { %v1340_v41 = vsel %vm321_vm4, %v6464_v40, 0.0  ;;  %v6471_v0 = vpop.eup %5640  ;;  %v1527_v59 = vpop.xlane.xlu1 %1526  ;;  %v1541_v18 = vsub.f32 %v6346_v46, %v1533_v42 }
0x1042   : > { %5110 = vmatmul.msk.f32.vlgmr.msra.gmra.mxu0 %vm321_vm4, %v1590_v61  ;;  %v1343_v8 = vsel %vm321_vm4, %v6471_v0, 0.0  ;;  %v1539_v1 = vsub.f32 %v6342_v45, %v1527_v59  ;;  %v1083_v61 = vld [vmem:[#allocation5 + $0x180] sm:$0xff] }
0x1043   : > { %v1556_v39 = vmul.f32 1.442695, %v1541_v18  ;;  %1771 = vmatpush.msrb.mxu1 %v1083_v61 }
0x1044   : > { %v1552_v9 = vmul.f32 1.442695, %v1539_v1  ;;  %v2014_v1 = vld [vmem:[#allocation5 + $0x1c8] sm:$0xff] }
0x1045   : > { %2183 = vrot.lane.b32.xlu2 %v6376_v7, %s5962_s7  ;;  %1341 = vadd.xlane.f32.xlu0 %v1340_v41 }
0x104d   : > { %1344 = vadd.xlane.f32.xlu0 %v1343_v8 }
0x1088   : > { %v1563_v47 = vpop.xlane.xlu0 %1562 }
0x1089   : > { %5642 = vrcp.f32 %v1563_v47 }
0x108d   : > { %v6476_v48 = vpop.f32.mrf.mxu3 }
0x108f   : > { %v5643_v49 = vpop.eup %5642 }
0x1090   : > { %v1566_v55 = vpop.xlane.xlu1 %1565  ;;  %v1300_v60 = vpop.xlane.xlu0 %1299  ;;  %v1591_v7 = vmul.f32 %v5643_v49, %v6423_v4 }
0x1091   : > { %5644 = vrcp.f32 %v1566_v55  ;;  %v1308_v62 = vsub.f32 %v6428_v15, %v1300_v60  ;;  %v1409_v49 = vpop.f32.mrf.mxu1  ;;  %v2015_v60 = vld [vmem:[#allocation5 + $0x1d0] sm:$0xff] }
0x1092   : > { %5111 = vmatmul.msk.f32.gmra.mxu0 %vm321_vm4, %v1591_v7  ;;  %5646 = vpow2.f32 %v1550_v54 }
0x1093   : > { %v1323_v63 = vmul.f32 1.442695, %v1308_v62  ;;  %2250 = vmatpush.msrb.mxu0 %v2015_v60 }
0x1095   : > { %5648 = vpow2.f32 %v1323_v63  ;;  %v6482_v5 = vpop.f32.mrf.mxu3  ;;  %2251 = vmatpush.msrb.mxu0 %v2014_v1 }
0x1096   : > { %v2172_v44 = vsel %vm307_vm2, %v6482_v5, -inf }
0x1097   : > { %v5645_v6 = vpop.eup %5644  ;;  %2173 = vmax.xlane.f32.xlu1 %v2172_v44 }
0x1098   : > { %v1330_v11 = vpop.xlane.xlu0 %1329  ;;  %v1592_v4 = vmul.f32 %v5645_v6, %v6430_v43  ;;  %v6487_v10 = vpop.eup %5646 }
0x1099   : > { %5650 = vrcp.f32 %v1330_v11  ;;  %v1570_v15 = vsel %vm321_vm4, %v6487_v10, 0.0 }
0x109a   : > { %5112 = vmatmul.msk.f32.gmra.mxu0 %vm321_vm4, %v1592_v4  ;;  %5652 = vpow2.f32 %v1552_v9 }
0x109b   : > { %v6490_v12 = vpop.eup %5648 }
0x109c   : > { %v1346_v45 = vsel %vm321_vm4, %v6490_v12, 0.0 }
0x109d   : > { %1347 = vadd.xlane.f32.xlu0 %v1346_v45 }
0x109f   : > { %v5651_v43 = vpop.eup %5650  ;;  %1571 = vadd.xlane.f32.xlu1 %v1570_v15 }
0x10a0   : > { %v1569_v17 = vpop.xlane.xlu2 %1568  ;;  %v1333_v50 = vpop.xlane.xlu0 %1332  ;;  %v1358_v19 = vmul.f32 %v5651_v43, %v6437_v21 }
0x10a1   : > { %5654 = vrcp.f32 %v1569_v17  ;;  %v6500_v22 = vpop.eup %5652 }
0x10a2   : > { %5656 = vrcp.f32 %v1333_v50  ;;  %5093 = vmatmul.msk.f32.gmra.mxu1 %vm321_vm4, %v1358_v19  ;;  %v1573_v36 = vsel %vm321_vm4, %v6500_v22, 0.0 }
0x10a3   : > { %5658 = vpow2.f32 %v1554_v20 }
0x10a7   : > { %v5655_v23 = vpop.eup %5654  ;;  %1574 = vadd.xlane.f32.xlu1 %v1573_v36 }
0x10a8   : > { %v5657_v24 = vpop.eup %5656  ;;  %v2184_v51 = vpop.permute.xlu2 %2183  ;;  %v1593_v21 = vmul.f32 %v5655_v23, %v6445_v28  ;;  %v6554_v23 = vld [vmem:[#allocation5 + $0x190] ss:$0 sm:$0xff] }
0x10a9   : > { %v1336_v25 = vpop.xlane.xlu0 %1335  ;;  %5142 = vmatpush.msk.msrb.mxu3 %vm325_vm3, %v2184_v51  ;;  %v1359_v29 = vmul.f32 %v5657_v24, %v6443_v26  ;;  %v6509_v14 = vpop.eup %5658 }
0x10aa   : > { %5660 = vrcp.f32 %v1336_v25  ;;  %5113 = vmatmul.msk.f32.gmra.mxu0 %vm321_vm4, %v1593_v21  ;;  %v1576_v46 = vsel %vm321_vm4, %v6509_v14, 0.0 }
0x10ab   : > { %5094 = vmatmul.msk.f32.gmra.mxu1 %vm321_vm4, %v1359_v29  ;;  %5662 = vpow2.f32 %v1556_v39  ;;  %v5834_v39 = vld [vmem:[%s6074_s6] sm:$0xff] }
0x10af   : > { %1577 = vadd.xlane.f32.xlu1 %v1576_v46 }
0x10b0   : > { %v5661_v52 = vpop.eup %5660 }
0x10b1   : > { %v1339_v30 = vpop.xlane.xlu0 %1338  ;;  %v1360_v28 = vmul.f32 %v5661_v52, %v6452_v32  ;;  %v6515_v31 = vpop.eup %5662 }
0x10b2   : > { %5664 = vrcp.f32 %v1339_v30  ;;  %v1579_v26 = vsel %vm321_vm4, %v6515_v31, 0.0 }
0x10b3   : > { %5095 = vmatmul.msk.f32.gmra.mxu1 %vm321_vm4, %v1360_v28 }
0x10b7   : > { %1580 = vadd.xlane.f32.xlu1 %v1579_v26  ;;  %v5835_v26 = vld [vmem:[%s6074_s6 + $0x8] sm:$0xff] }
0x10b8   : > { %v5665_v33 = vpop.eup %5664 }
0x10b9   : > { %v1342_v34 = vpop.xlane.xlu0 %1341  ;;  %v1361_v57 = vmul.f32 %v5665_v33, %v6457_v37 }
0x10ba   : > { %5666 = vrcp.f32 %v1342_v34 }
0x10bb   : > { %5096 = vmatmul.msk.f32.gmra.mxu1 %vm321_vm4, %v1361_v57 }
0x10bf   : > { %v1643_v38 = vpop.f32.mrf.mxu0 }
0x10c0   : > { %v5667_v35 = vpop.eup %5666  ;;  %5118 = vmatmul.msk.f32.vlgmr.msrb.gmra.mxu2 %vm703_vm8, %v1643_v38 }
0x10c1   : > { %v1345_v32 = vpop.xlane.xlu0 %1344  ;;  %v1362_v53 = vmul.f32 %v5667_v35, %v6464_v40 }
0x10c2   : > { %5668 = vrcp.f32 %v1345_v32 }
0x10c3   : > { %5097 = vmatmul.msk.f32.gmra.mxu1 %vm321_vm4, %v1362_v53 }
0x10c8   : > { %v5669_v56 = vpop.eup %5668 }
0x10c9   : > { %v1363_v3 = vmul.f32 %v5669_v56, %v6471_v0  ;;  %v5836_v56 = vld [vmem:[%s6074_s6 + $0x10] sm:$0xff] }
0x10cb   : > { %5098 = vmatmul.msk.f32.gmra.mxu1 %vm321_vm4, %v1363_v3 }
0x110a   : > { %v2174_v37 = vpop.xlane.xlu1 %2173 }
0x110b   : > { %v2175_v41 = vsub.f32 %v6482_v5, %v2174_v37 }
0x110d   : > { %v2176_v8 = vmul.f32 1.442695, %v2175_v41 }
0x110f   : > { %5670 = vpow2.f32 %v2176_v8  ;;  %v1646_v42 = vpop.f32.mrf.mxu0 }
0x1110   : > { %5119 = vmatmul.msk.f32.gmra.mxu2 %vm703_vm8, %v1646_v42  ;;  %v1348_v59 = vpop.xlane.xlu0 %1347 }
0x1111   : > { %5672 = vrcp.f32 %v1348_v59  ;;  %v5837_v59 = vld [vmem:[%s6074_s6 + $0x18] sm:$0xff] }
0x1112   : > { %v1572_v40 = vpop.xlane.xlu1 %1571 }
0x1113   : > { %5674 = vrcp.f32 %v1572_v40 }
0x1115   : > { %v5671_v47 = vpop.eup %5670 }
0x1116   : > { %v2178_v2 = vsel %vm307_vm2, %v5671_v47, 0.0 }
0x1117   : > { %v5673_v0 = vpop.eup %5672  ;;  %2179 = vadd.xlane.f32.xlu1 %v2178_v2  ;;  %v1649_v54 = vpop.f32.mrf.mxu0  ;;  %v2017_v2 = vld [vmem:[#allocation5 + $0x1e0] sm:$0xff] }
0x1118   : > { %5120 = vmatmul.msk.f32.gmra.mxu2 %vm703_vm8, %v1649_v54  ;;  %v1364_v55 = vmul.f32 %v5673_v0, %v6490_v12  ;;  %2227 = vmatpush.msra.mxu3 %v2017_v2  ;;  %v2016_v0 = vld [vmem:[#allocation5 + $0x1d8] sm:$0xff] }
0x1119   : > { %v5675_v7 = vpop.eup %5674 }
0x111a   : > { %v1575_v62 = vpop.xlane.xlu1 %1574  ;;  %5099 = vmatmul.msk.f32.gmra.mxu1 %vm321_vm4, %v1364_v55  ;;  %v1594_v63 = vmul.f32 %v5675_v7, %v6487_v10  ;;  %2228 = vmatpush.msra.mxu3 %v2016_v0 }
0x111b   : > { %5676 = vrcp.f32 %v1575_v62 }
0x111c   : > { %5114 = vmatmul.msk.f32.gmra.mxu0 %vm321_vm4, %v1594_v63 }
0x111f   : > { %v1412_v5 = vpop.f32.mrf.mxu1 }
0x1121   : > { %v5677_v44 = vpop.eup %5676 }
0x1122   : > { %v1578_v6 = vpop.xlane.xlu1 %1577  ;;  %5126 = vmatmul.msk.f32.vlgmr.msrb.gmra.mxu1 %vm703_vm8, %v1409_v49  ;;  %v1595_v11 = vmul.f32 %v5677_v44, %v6500_v22 }
0x1123   : > { %5678 = vrcp.f32 %v1578_v6 }
0x1124   : > { %5115 = vmatmul.msk.f32.gmra.mxu0 %vm321_vm4, %v1595_v11  ;;  %v5838_v11 = vld [vmem:[%s6074_s6 + $0x20] sm:$0xff] }
0x1127   : > { %v1652_v4 = vpop.f32.mrf.mxu0 }
0x1128   : > { %5121 = vmatmul.msk.f32.gmra.mxu2 %vm703_vm8, %v1652_v4  ;;  %v1415_v10 = vpop.f32.mrf.mxu1 }
0x1129   : > { %v5679_v9 = vpop.eup %5678 }
0x112a   : > { %v1581_v12 = vpop.xlane.xlu1 %1580  ;;  %5127 = vmatmul.msk.f32.gmra.mxu1 %vm703_vm8, %v1412_v5  ;;  %v1596_v45 = vmul.f32 %v5679_v9, %v6509_v14 }
0x112b   : > { %5680 = vrcp.f32 %v1581_v12 }
0x112c   : > { %5116 = vmatmul.msk.f32.gmra.mxu0 %vm321_vm4, %v1596_v45  ;;  %v2298_v45 = vld [vmem:[#allocation5 + $0x210] sm:$0xff] }
0x1130   : > { %v1418_v43 = vpop.f32.mrf.mxu1 }
0x1131   : > { %v5681_v13 = vpop.eup %5680 }
0x1132   : > { %5128 = vmatmul.msk.f32.gmra.mxu1 %vm703_vm8, %v1415_v10  ;;  %v1597_v15 = vmul.f32 %v5681_v13, %v6515_v31 }
0x1134   : > { %5117 = vmatmul.msk.f32.gmra.mxu0 %vm321_vm4, %v1597_v15  ;;  %v2297_v15 = vld [vmem:[#allocation5 + $0x208] sm:$0xff] }
0x1138   : > { %v1421_v16 = vpop.f32.mrf.mxu1 }
0x113a   : > { %5129 = vmatmul.msk.f32.gmra.mxu1 %vm703_vm8, %v1418_v43 }
0x113c   : > { %5145 = vmatmul.msk.f32.vlgmr.msrb.gmra.mxu0 %vm282_vm1, %v6476_v48 }
0x1140   : > { %v1424_v17 = vpop.f32.mrf.mxu1 }
0x1142   : > { %5130 = vmatmul.msk.f32.gmra.mxu1 %vm703_vm8, %v1421_v16 }
0x1143   : > { %v1708_v36 = vpop.f32.mrf.mxu2 }
0x1148   : > { %v1427_v50 = vpop.f32.mrf.mxu1 }
0x114a   : > { %5131 = vmatmul.msk.f32.gmra.mxu1 %vm703_vm8, %v1424_v17  ;;  %v5839_v17 = vld [vmem:[%s6074_s6 + $0x28] sm:$0xff] }
0x1152   : > { %5132 = vmatmul.msk.f32.gmra.mxu1 %vm703_vm8, %v1427_v50 }
0x118a   : > { %v2180_v19 = vpop.xlane.xlu1 %2179 }
0x118b   : > { %5682 = vrcp.f32 %v2180_v19 }
0x1191   : > { %v5683_v20 = vpop.eup %5682 }
0x1192   : > { %v2182_v22 = vmul.f32 %v5683_v20, %v5671_v47 }
0x1193   : > { %v1711_v14 = vpop.f32.mrf.mxu2 }
0x1194   : > { %5143 = vmatmul.msk.f32.vlgmr.msrb.gmra.mxu3 %vm321_vm4, %v2182_v22 }
0x1195   : > { %2319 = vmatpush.msrb.mxu3 %v2298_v45 }
0x1197   : > { %v1430_v18 = vpop.f32.mrf.mxu1  ;;  %2320 = vmatpush.msrb.mxu3 %v2297_v15 }
0x1198   : > { %5133 = vmatmul.msk.f32.gmra.mxu1 %vm703_vm8, %v1430_v18 }
0x1199   : > { %v1655_v48 = vpop.f32.mrf.mxu0 }
0x119a   : > { %5122 = vmatmul.msk.f32.gmra.mxu2 %vm703_vm8, %v1655_v48 }
0x119b   : > { %v1714_v57 = vpop.f32.mrf.mxu2 }
0x119f   : > { %v1773_v24 = vpop.f32.mrf.mxu1 }
0x11a0   : > { %v1774_v51 = vadd.f32 %v1773_v24, %v1708_v36 }
0x11a1   : > { %v1658_v25 = vpop.f32.mrf.mxu0 }
0x11a2   : > { %v1798_v21 = vadd.f32 %v6554_v23, %v1774_v51  ;;  %5123 = vmatmul.msk.f32.gmra.mxu2 %vm703_vm8, %v1658_v25 }
0x11a4   : > { %v1806_v29 = vadd.f32 %v5834_v39, %v1798_v21  ;;  %v5840_v21 = vld [vmem:[%s6074_s6 + $0x30] sm:$0xff] }
0x11a6   : > { %v1815_v46 = vsel %vm255_vm0, %v1806_v29, 0.0 }
0x11a7   : > { %v1776_v52 = vpop.f32.mrf.mxu1  ;;  %1816 = vadd.xlane.f32.xlu0 %v1815_v46 }
0x11a8   : > { %v1777_v30 = vadd.f32 %v1776_v52, %v1711_v14 }
0x11a9   : > { %v1661_v28 = vpop.f32.mrf.mxu0 }
0x11aa   : > { %v1799_v31 = vadd.f32 %v6554_v23, %v1777_v30  ;;  %5124 = vmatmul.msk.f32.gmra.mxu2 %vm703_vm8, %v1661_v28 }
0x11ab   : > { %v1717_v37 = vpop.f32.mrf.mxu2 }
0x11ac   : > { %v1807_v33 = vadd.f32 %v5835_v26, %v1799_v31  ;;  %v2296_v26 = vld [vmem:[#allocation5 + $0x200] sm:$0xff] }
0x11ad   : > { %2321 = vmatpush.msrb.mxu3 %v2296_v26 }
0x11ae   : > { %v1818_v34 = vsel %vm255_vm0, %v1807_v33, 0.0 }
0x11af   : > { %v1779_v35 = vpop.f32.mrf.mxu1  ;;  %1819 = vadd.xlane.f32.xlu1 %v1818_v34 }
0x11b0   : > { %v1780_v38 = vadd.f32 %v1779_v35, %v1714_v57  ;;  %v2295_v35 = vld [vmem:[#allocation5 + $0x1f8] sm:$0xff] }
0x11b1   : > { %v1664_v32 = vpop.f32.mrf.mxu0  ;;  %2322 = vmatpush.msrb.mxu3 %v2295_v35 }
0x11b2   : > { %v1800_v53 = vadd.f32 %v6554_v23, %v1780_v38  ;;  %5125 = vmatmul.msk.f32.gmra.mxu2 %vm703_vm8, %v1664_v32  ;;  %v5841_v38 = vld [vmem:[%s6074_s6 + $0x38] sm:$0xff] }
0x11b4   : > { %v1808_v3 = vadd.f32 %v5836_v56, %v1800_v53 }
0x11b6   : > { %v1821_v61 = vsel %vm255_vm0, %v1808_v3, 0.0 }
0x11b7   : > { %v1782_v41 = vpop.f32.mrf.mxu1  ;;  %1822 = vadd.xlane.f32.xlu0 %v1821_v61 }
0x11b8   : > { %v1783_v8 = vadd.f32 %v1782_v41, %v1717_v37  ;;  %v6612_v37 = vpack.i.bf16 %v2297_v15, %v2298_v45  ;;  %v6614_v41 = vpack.i.bf16 %v2295_v35, %v2296_v26 }
0x11ba   : > { %v1801_v42 = vadd.f32 %v6554_v23, %v1783_v8 }
0x11bc   : > { %v6570_v40 = vadd.f32 %v5837_v59, %v1801_v42 }
0x11be   : > { %v1824_v47 = vsel %vm255_vm0, %v6570_v40, 0.0 }
0x11bf   : > { %1825 = vadd.xlane.f32.xlu1 %v1824_v47  ;;  %v1785_v54 = vpop.f32.mrf.mxu1  ;;  %v2253_v47 = vpop.f32.mrf.mxu0 }
0x11c7   : > { %v1788_v6 = vpop.f32.mrf.mxu1 }
0x11cf   : > { %v1791_v19 = vpop.f32.mrf.mxu1 }
0x1217   : > { %v2207_v49 = vpop.f32.mrf.mxu3 }
0x1218   : > { %5144 = vmatmul.msk.f32.vlgmr.msra.gmra.mxu3 %vm282_vm1, %v2207_v49 }
0x121a   : > { %v1817_v55 = vpop.xlane.xlu0 %1816 }
0x121b   : > { %v1839_v60 = vmul.f32 %v1817_v55, %v6170_v27 }
0x121d   : > { %v6576_v7 = vsub.f32 %v1806_v29, %v1839_v60  ;;  %v1720_v62 = vpop.f32.mrf.mxu2  ;;  %v1794_v29 = vpop.f32.mrf.mxu1 }
0x121e   : > { %v1786_v63 = vadd.f32 %v1785_v54, %v1720_v62 }
0x121f   : > { %v1855_v1 = vmul.f32 %v6576_v7, %v6576_v7 }
0x1220   : > { %v1802_v5 = vadd.f32 %v6554_v23, %v1786_v63 }
0x1221   : > { %v1863_v44 = vsel %vm255_vm0, %v1855_v1, 0.0 }
0x1222   : > { %1864 = vadd.xlane.f32.xlu2 %v1863_v44  ;;  %v1810_v4 = vadd.f32 %v5838_v11, %v1802_v5  ;;  %v1820_v10 = vpop.xlane.xlu1 %1819 }
0x1223   : > { %v1840_v43 = vmul.f32 %v1820_v10, %v6170_v27 }
0x1224   : > { %v1827_v9 = vsel %vm255_vm0, %v1810_v4, 0.0 }
0x1225   : > { %v1723_v12 = vpop.f32.mrf.mxu2  ;;  %1828 = vadd.xlane.f32.xlu0 %v1827_v9  ;;  %v6587_v20 = vsub.f32 %v1807_v33, %v1840_v43 }
0x1226   : > { %v1789_v13 = vadd.f32 %v1788_v6, %v1723_v12 }
0x1227   : > { %v1856_v25 = vmul.f32 %v6587_v20, %v6587_v20 }
0x1228   : > { %v1803_v16 = vadd.f32 %v6554_v23, %v1789_v13 }
0x1229   : > { %v1866_v46 = vsel %vm255_vm0, %v1856_v25, 0.0 }
0x122a   : > { %v1811_v50 = vadd.f32 %v5839_v17, %v1803_v16  ;;  %v1823_v18 = vpop.xlane.xlu0 %1822 }
0x122b   : > { %v1841_v24 = vmul.f32 %v1823_v18, %v6170_v27 }
0x122c   : > { %v1830_v22 = vsel %vm255_vm0, %v1811_v50, 0.0 }
0x122d   : > { %v1726_v48 = vpop.f32.mrf.mxu2  ;;  %1831 = vadd.xlane.f32.xlu1 %v1830_v22  ;;  %v6595_v14 = vsub.f32 %v1808_v3, %v1841_v24 }
0x122e   : > { %v1792_v36 = vadd.f32 %v1791_v19, %v1726_v48 }
0x122f   : > { %v1857_v57 = vmul.f32 %v6595_v14, %v6595_v14 }
0x1230   : > { %v1804_v51 = vadd.f32 %v6554_v23, %v1792_v36 }
0x1231   : > { %v1869_v3 = vsel %vm255_vm0, %v1857_v57, 0.0 }
0x1232   : > { %v1812_v39 = vadd.f32 %v5840_v21, %v1804_v51  ;;  %v1826_v30 = vpop.xlane.xlu1 %1825 }
0x1233   : > { %v1842_v33 = vmul.f32 %v1826_v30, %v6170_v27 }
0x1234   : > { %v1833_v52 = vsel %vm255_vm0, %v1812_v39, 0.0 }
0x1235   : > { %v1729_v28 = vpop.f32.mrf.mxu2  ;;  %1867 = vadd.xlane.f32.xlu1 %v1866_v46  ;;  %1834 = vadd.xlane.f32.xlu0 %v1833_v52  ;;  %v6605_v53 = vsub.f32 %v6570_v40, %v1842_v33  ;;  %v5579_v40 = vld [vmem:[#allocation5 + $0x1e8] ss:$0 sm:$0xff] }
0x1236   : > { %v1795_v31 = vadd.f32 %v1794_v29, %v1729_v28 }
0x1237   : > { %v1858_v61 = vmul.f32 %v6605_v53, %v6605_v53 }
0x1238   : > { %v1805_v34 = vadd.f32 %v6554_v23, %v1795_v31 }
0x1239   : > { %v1872_v23 = vsel %vm255_vm0, %v1858_v61, 0.0 }
0x123a   : > { %v1813_v32 = vadd.f32 %v5841_v38, %v1805_v34 }
0x123c   : > { %v1836_v56 = vsel %vm255_vm0, %v1813_v32, 0.0 }
0x123d   : > { %1837 = vadd.xlane.f32.xlu0 %v1836_v56  ;;  %1870 = vadd.xlane.f32.xlu1 %v1869_v3 }
0x1245   : > { %1873 = vadd.xlane.f32.xlu0 %v1872_v23 }
0x1256   : > { %5469 = vrot.lane.b32.xlu1 %v6612_v37, %s5962_s7 }
0x1259   : > { %5474 = vrot.lane.b32.xlu0 %v6614_v41, %s5962_s7 }
0x1295   : > { %v1865_v42 = vpop.xlane.xlu2 %1864 }
0x1296   : > { %v1887_v49 = vmul.f32 %v1865_v42, %v6170_v27 }
0x1298   : > { %v1829_v8 = vpop.xlane.xlu0 %1828  ;;  %v1895_v63 = vadd.f32 1e-05, %v1887_v49 }
0x1299   : > { %v1843_v59 = vmul.f32 %v1829_v8, %v6170_v27 }
0x129a   : > { %5684 = vrsqrt.f32 %v1895_v63  ;;  %vm1909_vm10 = vweird.f32 %v1895_v63 }
0x129b   : > { %v6621_v2 = vsub.f32 %v1810_v4, %v1843_v59  ;;  %v2230_v0 = vpop.f32.mrf.mxu3 }
0x129c   : > { %v2254_v54 = vadd.f32 %v2253_v47, %v2230_v0 }
0x129d   : > { %v1859_v55 = vmul.f32 %v6621_v2, %v6621_v2 }
0x129e   : > { %v2257_v60 = vadd.f32 %v5579_v40, %v2254_v54 }
0x129f   : > { %v1875_v62 = vsel %vm255_vm0, %v1859_v55, 0.0 }
0x12a0   : > { %v1832_v1 = vpop.xlane.xlu1 %1831  ;;  %1876 = vadd.xlane.f32.xlu2 %v1875_v62  ;;  %v6628_v5 = vadd.f32 %v2257_v60, %v6281_v58  ;;  %v5685_v13 = vpop.eup %5684 }
0x12a1   : > { %v1844_v44 = vmul.f32 %v1832_v1, %v6170_v27  ;;  %v1904_v16 = vmul.f32 %v5685_v13, %v1895_v63  ;;  %vm1910_vm2 = vweird.f32 %v5685_v13 }
0x12a2   : > { %v2260_v6 = vsel %vm463_vm5, %v6628_v5, 0.0  ;;  %vm1911_vm13 = vmor %vm1909_vm10, %vm1910_vm2 }
0x12a3   : > { %v6633_v11 = vsub.f32 %v1811_v50, %v1844_v44  ;;  %2261 = vadd.xlane.f32.xlu1 %v2260_v6  ;;  %v1905_v18 = vmul.f32 %v5685_v13, %v1904_v16 }
0x12a5   : > { %v1860_v4 = vmul.f32 %v6633_v11, %v6633_v11 }
0x12a7   : > { %v1878_v9 = vsel %vm255_vm0, %v1860_v4, 0.0 }
0x12a8   : > { %v1868_v10 = vpop.xlane.xlu1 %1867  ;;  %1879 = vadd.xlane.f32.xlu0 %v1878_v9  ;;  %v1835_v12 = vpop.xlane.xlu0 %1834 }
0x12a9   : > { %v1888_v58 = vmul.f32 %v1868_v10, %v6170_v27  ;;  %v1845_v45 = vmul.f32 %v1835_v12, %v6170_v27  ;;  %v5842_v12 = vld [vmem:[#allocation5] sm:$0xff] }
0x12ab   : > { %v1896_v15 = vadd.f32 1e-05, %v1888_v58  ;;  %v6640_v43 = vsub.f32 %v1812_v39, %v1845_v45  ;;  %v1906_v39 = vmul.f32 0.5, %v1905_v18 }
0x12ad   : > { %5686 = vrsqrt.f32 %v1896_v15  ;;  %v1861_v17 = vmul.f32 %v6640_v43, %v6640_v43  ;;  %v1907_v28 = vsub.f32 1.5, %v1906_v39  ;;  %vm1919_vm15 = vweird.f32 %v1896_v15  ;;  %v5845_v39 = vld [vmem:[#allocation5 + $0x18] sm:$0xff] }
0x12af   : > { %v1881_v50 = vsel %vm255_vm0, %v1861_v17, 0.0  ;;  %v1908_v57 = vmul.f32 %v5685_v13, %v1907_v28 }
0x12b0   : > { %v1871_v19 = vpop.xlane.xlu1 %1870  ;;  %1882 = vadd.xlane.f32.xlu2 %v1881_v50  ;;  %v1838_v22 = vpop.xlane.xlu0 %1837 }
0x12b1   : > { %v1889_v48 = vmul.f32 %v1871_v19, %v6170_v27  ;;  %v1846_v36 = vmul.f32 %v1838_v22, %v6170_v27  ;;  %v1912_v56 = vsel %vm1911_vm13, %v5685_v13, %v1908_v57  ;;  %v5843_v19 = vld [vmem:[#allocation5 + $0x8] sm:$0xff] }
0x12b2   : > { %v1983_v8 = vmul.f32 %v1912_v56, %v6576_v7 }
0x12b3   : > { %v5687_v24 = vpop.eup %5686  ;;  %v1897_v51 = vadd.f32 1e-05, %v1889_v48  ;;  %v6647_v25 = vsub.f32 %v1813_v32, %v1846_v36  ;;  %v1814_v32 = vld [vmem:[#allocation5 + $0x198] sm:$0x3] }
0x12b4   : > { %v1914_v21 = vmul.f32 %v5687_v24, %v1896_v15  ;;  %v6653_v23 = vperm.slane %v1814_v32, 0  ;;  %vm1920_vm14 = vweird.f32 %v5687_v24  ;;  %v6656_v47 = vperm.slane %v1814_v32, 1 }
0x12b5   : > { %5688 = vrsqrt.f32 %v1897_v51  ;;  %v1862_v29 = vmul.f32 %v6647_v25, %v6647_v25  ;;  %vm1921_vm6 = vmor %vm1919_vm15, %vm1920_vm14  ;;  %vm1929_vm9 = vweird.f32 %v1897_v51 }
0x12b6   : > { %v1915_v52 = vmul.f32 %v5687_v24, %v1914_v21  ;;  %v1992_v0 = vmul.f32 %v6653_v23, %v1983_v8 }
0x12b7   : > { %v1884_v46 = vsel %vm255_vm0, %v1862_v29, 0.0 }
0x12b8   : > { %1885 = vadd.xlane.f32.xlu2 %v1884_v46  ;;  %v1874_v30 = vpop.xlane.xlu0 %1873  ;;  %v1916_v34 = vmul.f32 0.5, %v1915_v52  ;;  %v6660_v7 = vadd.f32 %v6656_v47, %v1992_v0 }
0x12b9   : > { %v1890_v31 = vmul.f32 %v1874_v30, %v6170_v27 }
0x12ba   : > { %v1917_v38 = vsub.f32 1.5, %v1916_v34  ;;  %v6664_v58 = vadd.f32 %v5842_v12, %v6660_v7 }
0x12bb   : > { %v5689_v26 = vpop.eup %5688  ;;  %v1898_v33 = vadd.f32 1e-05, %v1890_v31 }
0x12bc   : > { %v1924_v35 = vmul.f32 %v5689_v26, %v1897_v51  ;;  %v1918_v42 = vmul.f32 %v5687_v24, %v1917_v38  ;;  %vm1930_vm7 = vweird.f32 %v5689_v26 }
0x12bd   : > { %5690 = vrsqrt.f32 %v1898_v33  ;;  %vm1931_vm2 = vmor %vm1929_vm9, %vm1930_vm7  ;;  %vm1939_vm13 = vweird.f32 %v1898_v33 }
0x12be   : > { %v1925_v3 = vmul.f32 %v5689_v26, %v1924_v35  ;;  %v1922_v49 = vsel %vm1921_vm6, %v5687_v24, %v1918_v42  ;;  %v5844_v24 = vld [vmem:[#allocation5 + $0x10] sm:$0xff] }
0x12bf   : > { %v1984_v44 = vmul.f32 %v1922_v49, %v6587_v20 }
0x12c0   : > { %v1926_v59 = vmul.f32 0.5, %v1925_v3 }
0x12c1   : > { %v1993_v45 = vmul.f32 %v6653_v23, %v1984_v44 }
0x12c2   : > { %v1927_v55 = vsub.f32 1.5, %v1926_v59 }
0x12c3   : > { %v5691_v61 = vpop.eup %5690  ;;  %v6671_v16 = vadd.f32 %v6656_v47, %v1993_v45  ;;  %v5846_v45 = vld [vmem:[#allocation5 + $0x20] sm:$0xff] }
0x12c4   : > { %v1934_v40 = vmul.f32 %v5691_v61, %v1898_v33  ;;  %v1928_v4 = vmul.f32 %v5689_v26, %v1927_v55  ;;  %vm1940_vm10 = vweird.f32 %v5691_v61 }
0x12c5   : > { %vm1941_vm14 = vmor %vm1939_vm13, %vm1940_vm10  ;;  %v6675_v22 = vadd.f32 %v5843_v19, %v6671_v16 }
0x12c6   : > { %v1935_v60 = vmul.f32 %v5691_v61, %v1934_v40  ;;  %v1932_v13 = vsel %vm1931_vm2, %v5689_v26, %v1928_v4 }
0x12c7   : > { %v1985_v20 = vmul.f32 %v1932_v13, %v6595_v14 }
0x12c8   : > { %v5470_v54 = vpop.permute.xlu1 %5469  ;;  %v1936_v9 = vmul.f32 0.5, %v1935_v60 }
0x12c9   : > { %v5472_v62 = vunpack.i.h.bf16 %v5470_v54  ;;  %v5471_v63 = vunpack.i.l.bf16 %v5470_v54  ;;  %v1994_v50 = vmul.f32 %v6653_v23, %v1985_v20 }
0x12ca   : > { %v1937_v15 = vsub.f32 1.5, %v1936_v9 }
0x12cb   : > { %2383 = vmatpush.msra.mxu0 %v5471_v63  ;;  %v5475_v1 = vpop.permute.xlu0 %5474  ;;  %v6681_v14 = vadd.f32 %v6656_v47, %v1994_v50 }
0x12cc   : > { %v5476_v6 = vunpack.i.l.bf16 %v5475_v1  ;;  %v5477_v10 = vunpack.i.h.bf16 %v5475_v1  ;;  %v1938_v17 = vmul.f32 %v5691_v61, %v1937_v15 }
0x12cd   : > { %2384 = vmatpush.msra.mxu0 %v5472_v62  ;;  %v6685_v51 = vadd.f32 %v5844_v24, %v6681_v14 }
0x12ce   : > { %v1942_v18 = vsel %vm1941_vm14, %v5691_v61, %v1938_v17  ;;  %v6719_v17 = vld [vmem:[#allocation5 + $0x218] ss:$0 sm:$0xff] }
0x12cf   : > { %2385 = vmatpush.msra.mxu0 %v5476_v6  ;;  %v1986_v48 = vmul.f32 %v1942_v18, %v6605_v53 }
0x12d1   : > { %2386 = vmatpush.msra.mxu0 %v5477_v10  ;;  %v1995_v36 = vmul.f32 %v6653_v23, %v1986_v48 }
0x12d2   : > { %5147 = vmatmul.msk.f32.vlgmr.msra.gmra.mxu0 %vm255_vm0, %v6664_v58 }
0x12d3   : > { %v6690_v21 = vadd.f32 %v6656_v47, %v1995_v36 }
0x12d5   : > { %v6693_v29 = vadd.f32 %v5845_v39, %v6690_v21  ;;  %v5847_v39 = vld [vmem:[#allocation5 + $0x28] sm:$0xff] }
0x12da   : > { %5148 = vmatmul.msk.f32.gmra.mxu0 %vm255_vm0, %v6675_v22 }
0x12e2   : > { %5149 = vmatmul.msk.f32.gmra.mxu0 %vm255_vm0, %v6685_v51 }
0x12ea   : > { %5150 = vmatmul.msk.f32.gmra.mxu0 %vm255_vm0, %v6693_v29 }
0x1313   : > { %v1877_v53 = vpop.xlane.xlu2 %1876 }
0x1314   : > { %v1891_v46 = vmul.f32 %v1877_v53, %v6170_v27 }
0x1316   : > { %v1899_v52 = vadd.f32 1e-05, %v1891_v46  ;;  %v2262_v30 = vpop.xlane.xlu1 %2261 }
0x1317   : > { %v2263_v28 = vmul.f32 %v2262_v30, %v6170_v27 }
0x1318   : > { %5692 = vrsqrt.f32 %v1899_v52  ;;  %vm1949_vm6 = vweird.f32 %v1899_v52 }
0x1319   : > { %v6700_v31 = vsub.f32 %v6628_v5, %v2263_v28 }
0x131b   : > { %v1880_v26 = vpop.xlane.xlu0 %1879  ;;  %v2265_v33 = vmul.f32 %v6700_v31, %v6700_v31 }
0x131c   : > { %v1892_v34 = vmul.f32 %v1880_v26, %v6170_v27 }
0x131d   : > { %v2266_v57 = vsel %vm463_vm5, %v2265_v33, 0.0 }
0x131e   : > { %v5693_v35 = vpop.eup %5692  ;;  %v1900_v38 = vadd.f32 1e-05, %v1892_v34  ;;  %2267 = vadd.xlane.f32.xlu2 %v2266_v57 }
0x131f   : > { %v1944_v32 = vmul.f32 %v5693_v35, %v1899_v52  ;;  %vm1950_vm15 = vweird.f32 %v5693_v35 }
0x1320   : > { %5694 = vrsqrt.f32 %v1900_v38  ;;  %vm1951_vm7 = vmor %vm1949_vm6, %vm1950_vm15  ;;  %vm1959_vm2 = vweird.f32 %v1900_v38 }
0x1321   : > { %v1945_v56 = vmul.f32 %v5693_v35, %v1944_v32 }
0x1323   : > { %v1946_v3 = vmul.f32 0.5, %v1945_v56  ;;  %v1883_v61 = vpop.xlane.xlu2 %1882 }
0x1324   : > { %v1893_v8 = vmul.f32 %v1883_v61, %v6170_v27  ;;  %v5849_v61 = vld [vmem:[#allocation5 + $0x38] sm:$0xff] }
0x1325   : > { %v1947_v5 = vsub.f32 1.5, %v1946_v3 }
0x1326   : > { %v5695_v42 = vpop.eup %5694  ;;  %v1901_v59 = vadd.f32 1e-05, %v1893_v8 }
0x1327   : > { %v1948_v40 = vmul.f32 %v5693_v35, %v1947_v5  ;;  %v1954_v0 = vmul.f32 %v5695_v42, %v1900_v38  ;;  %vm1960_vm9 = vweird.f32 %v5695_v42 }
0x1328   : > { %5696 = vrsqrt.f32 %v1901_v59  ;;  %vm1961_vm10 = vmor %vm1959_vm2, %vm1960_vm9  ;;  %vm1969_vm14 = vweird.f32 %v1901_v59 }
0x1329   : > { %v1952_v49 = vsel %vm1951_vm7, %v5693_v35, %v1948_v40  ;;  %v1955_v54 = vmul.f32 %v5695_v42, %v1954_v0  ;;  %v5848_v35 = vld [vmem:[#allocation5 + $0x30] sm:$0xff] }
0x132a   : > { %v1987_v55 = vmul.f32 %v1952_v49, %v6621_v2 }
0x132b   : > { %v1956_v60 = vmul.f32 0.5, %v1955_v54  ;;  %v1886_v62 = vpop.xlane.xlu2 %1885 }
0x132c   : > { %v1996_v63 = vmul.f32 %v6653_v23, %v1987_v55  ;;  %v1894_v1 = vmul.f32 %v1886_v62, %v6170_v27  ;;  %v2259_v55 = vld [vmem:[#allocation5 + $0x1f0] sm:$0x3] }
0x132d   : > { %v1957_v44 = vsub.f32 1.5, %v1956_v60 }
0x132e   : > { %v5697_v6 = vpop.eup %5696  ;;  %v1902_v4 = vadd.f32 1e-05, %v1894_v1  ;;  %v6711_v9 = vadd.f32 %v6656_v47, %v1996_v63  ;;  %v2282_v63 = vperm.slane %v2259_v55, 0 }
0x132f   : > { %v1958_v10 = vmul.f32 %v5695_v42, %v1957_v44  ;;  %v1964_v12 = vmul.f32 %v5697_v6, %v1901_v59  ;;  %vm1970_vm13 = vweird.f32 %v5697_v6 }
0x1330   : > { %5698 = vrsqrt.f32 %v1902_v4  ;;  %v6714_v2 = vadd.f32 %v5846_v45, %v6711_v9  ;;  %vm1971_vm15 = vmor %vm1969_vm14, %vm1970_vm13  ;;  %vm1979_vm7 = vweird.f32 %v1902_v4 }
0x1331   : > { %v1962_v13 = vsel %vm1961_vm10, %v5695_v42, %v1958_v10  ;;  %v1965_v15 = vmul.f32 %v5697_v6, %v1964_v12  ;;  %v6759_v12 = vld [vmem:[%s6094_s26] sm:$0x7f] }
0x1332   : > { %v1988_v20 = vmul.f32 %v1962_v13, %v6633_v11  ;;  %5151 = vmatmul.msk.f32.gmra.mxu0 %vm255_vm0, %v6714_v2 }
0x1333   : > { %v1966_v50 = vmul.f32 0.5, %v1965_v15 }
0x1334   : > { %v1997_v19 = vmul.f32 %v6653_v23, %v1988_v20 }
0x1335   : > { %v1967_v18 = vsub.f32 1.5, %v1966_v50 }
0x1336   : > { %v5699_v48 = vpop.eup %5698  ;;  %v6723_v36 = vadd.f32 %v6656_v47, %v1997_v19  ;;  %2344 = vrot.lane.b32.xlu2 %v6719_v17, %s5962_s7 }
0x1337   : > { %v1968_v24 = vmul.f32 %v5697_v6, %v1967_v18  ;;  %v1974_v11 = vmul.f32 %v5699_v48, %v1902_v4  ;;  %vm1980_vm6 = vweird.f32 %v5699_v48 }
0x1338   : > { %v6728_v53 = vadd.f32 %v5847_v39, %v6723_v36  ;;  %vm1981_vm9 = vmor %vm1979_vm7, %vm1980_vm6 }
0x1339   : > { %v1972_v46 = vsel %vm1971_vm15, %v5697_v6, %v1968_v24  ;;  %v1975_v52 = vmul.f32 %v5699_v48, %v1974_v11  ;;  %v2284_v6 = vperm.slane %v2259_v55, 1 }
0x133a   : > { %v1989_v30 = vmul.f32 %v1972_v46, %v6640_v43  ;;  %5152 = vmatmul.msk.f32.gmra.mxu0 %vm255_vm0, %v6728_v53 }
0x133b   : > { %v1976_v28 = vmul.f32 0.5, %v1975_v52 }
0x133c   : > { %v1998_v26 = vmul.f32 %v6653_v23, %v1989_v30 }
0x133d   : > { %v1977_v33 = vsub.f32 1.5, %v1976_v28 }
0x133e   : > { %v6735_v34 = vadd.f32 %v6656_v47, %v1998_v26  ;;  %5479 = vrot.lane.b32.xlu2 %v6612_v37, %s5963_s8 }
0x133f   : > { %v1978_v57 = vmul.f32 %v5699_v48, %v1977_v33 }
0x1340   : > { %v6738_v38 = vadd.f32 %v5848_v35, %v6735_v34 }
0x1341   : > { %v1982_v32 = vsel %vm1981_vm9, %v5699_v48, %v1978_v57 }
0x1342   : > { %v1990_v43 = vmul.f32 %v1982_v32, %v6647_v25  ;;  %5153 = vmatmul.msk.f32.gmra.mxu0 %vm255_vm0, %v6738_v38 }
0x1344   : > { %v1999_v56 = vmul.f32 %v6653_v23, %v1990_v43 }
0x1346   : > { %v6745_v3 = vadd.f32 %v6656_v47, %v1999_v56 }
0x1348   : > { %v6748_v8 = vadd.f32 %v5849_v61, %v6745_v3 }
0x134a   : > { %5154 = vmatmul.msk.f32.gmra.mxu0 %vm255_vm0, %v6748_v8 }
0x134f   : > { %v2388_v5 = vpop.f32.mrf.mxu0 }
0x1357   : > { %v2391_v25 = vpop.f32.mrf.mxu0 }
0x135f   : > { %v2394_v47 = vpop.f32.mrf.mxu0 }
0x1367   : > { %v2397_v1 = vpop.f32.mrf.mxu0 }
0x1391   : > { %v2268_v42 = vpop.xlane.xlu2 %2267 }
0x1392   : > { %v2269_v59 = vmul.f32 %v2268_v42, %v6170_v27 }
0x1394   : > { %v2270_v40 = vadd.f32 1e-05, %v2269_v59 }
0x1396   : > { %5700 = vrsqrt.f32 %v2270_v40  ;;  %vm2277_vm10 = vweird.f32 %v2270_v40 }
0x1399   : > { %v2345_v15 = vpop.permute.xlu2 %2344 }
0x139a   : > { %v2392_v11 = vadd.f32 %v2391_v25, %v2345_v15  ;;  %v2398_v39 = vadd.f32 %v2397_v1, %v2345_v15  ;;  %v2395_v46 = vadd.f32 %v2394_v47, %v2345_v15  ;;  %v2389_v52 = vadd.f32 %v2388_v5, %v2345_v15 }
0x139c   : > { %v5701_v23 = vpop.eup %5700 }
0x139d   : > { %v2272_v0 = vmul.f32 %v5701_v23, %v2270_v40  ;;  %vm2278_vm2 = vweird.f32 %v5701_v23 }
0x139e   : > { %vm2279_vm13 = vmor %vm2277_vm10, %vm2278_vm2 }
0x139f   : > { %v2273_v49 = vmul.f32 %v5701_v23, %v2272_v0 }
0x13a1   : > { %v2274_v54 = vmul.f32 0.5, %v2273_v49 }
0x13a3   : > { %v2275_v60 = vsub.f32 1.5, %v2274_v54 }
0x13a5   : > { %v2276_v62 = vmul.f32 %v5701_v23, %v2275_v60 }
0x13a7   : > { %v2280_v44 = vsel %vm2279_vm13, %v5701_v23, %v2276_v62 }
0x13a8   : > { %v2281_v37 = vmul.f32 %v2280_v44, %v6700_v31 }
0x13aa   : > { %v2283_v4 = vmul.f32 %v2282_v63, %v2281_v37 }
0x13ac   : > { %v6756_v10 = vadd.f32 %v2284_v6, %v2283_v4 }
0x13ae   : > { %v2286_v45 = vadd.f32 %v6759_v12, %v6756_v10 }
0x13af   : > { %v2400_v13 = vpop.f32.mrf.mxu0 }
0x13b0   : > { %5146 = vmatmul.msk.f32.vlgmr.msrb.gmra.mxu3 %vm255_vm0, %v2286_v45  ;;  %v2401_v18 = vadd.f32 %v2400_v13, %v2345_v15 }
0x13b7   : > { %v2403_v20 = vpop.f32.mrf.mxu0 }
0x13b8   : > { %v2404_v50 = vadd.f32 %v2403_v20, %v2345_v15 }
0x13ba   : > { %2585 = vrot.lane.b32.xlu2 %v2404_v50, %s5968_s12 }
0x13bf   : > { %v2406_v19 = vpop.f32.mrf.mxu0 }
0x13c0   : > { %v2407_v48 = vadd.f32 %v2406_v19, %v2345_v15 }
0x13c2   : > { %2587 = vrot.lane.b32.xlu0 %v2407_v48, %s5968_s12  ;;  %2583 = vrot.lane.b32.xlu2 %v2401_v18, %s5968_s12 }
0x13c7   : > { %v2409_v31 = vpop.f32.mrf.mxu0 }
0x13c8   : > { %v2410_v24 = vadd.f32 %v2409_v31, %v2345_v15 }
0x13ca   : > { %2589 = vrot.lane.b32.xlu1 %v2410_v24, %s5968_s12  ;;  %5163 = vmatpush.xpose.msk.msra.mxu1 %vm703_vm8, %v2410_v24 }
0x13cb   : > { %5484 = vrot.lane.b32.xlu0 %v6614_v41, %s5963_s8  ;;  %2577 = vrot.lane.b32.xlu2 %v2392_v11, %s5968_s12  ;;  %v5480_v41 = vpop.permute.xlu2 %5479 }
0x13cc   : > { %v5482_v30 = vunpack.i.h.bf16 %v5480_v41  ;;  %v5481_v28 = vunpack.i.l.bf16 %v5480_v41 }
0x13ce   : > { %5164 = vmatpush.xpose.msk.msra.mxu1 %vm703_vm8, %v2407_v48  ;;  %2463 = vmatpush.msra.mxu2 %v5481_v28 }
0x13d0   : > { %2464 = vmatpush.msra.mxu2 %v5482_v30 }
0x13d2   : > { %5165 = vmatpush.xpose.msk.msra.mxu1 %vm703_vm8, %v2404_v50  ;;  %2581 = vrot.lane.b32.xlu1 %v2398_v39, %s5968_s12 }
0x13d3   : > { %2579 = vrot.lane.b32.xlu0 %v2395_v46, %s5968_s12 }
0x13d6   : > { %5166 = vmatpush.xpose.msk.msra.mxu1 %vm703_vm8, %v2401_v18 }
0x13da   : > { %5167 = vmatpush.xpose.msk.msra.mxu1 %vm703_vm8, %v2398_v39  ;;  %2575 = vrot.lane.b32.xlu1 %v2389_v52, %s5968_s12 }
0x13de   : > { %5168 = vmatpush.xpose.msk.msra.mxu1 %vm703_vm8, %v2395_v46 }
0x13e2   : > { %5169 = vmatpush.xpose.msk.msra.mxu1 %vm703_vm8, %v2392_v11 }
0x13e6   : > { %5170 = vmatpush.xpose.msk.msra.mxu1 %vm703_vm8, %v2389_v52 }
0x1414   : > { %v2586_v43 = vpop.permute.xlu2 %2585 }
0x141c   : > { %v2584_v5 = vpop.permute.xlu2 %2583 }
0x1433   : > { %v2324_v26 = vpop.f32.mrf.mxu3 }
0x1434   : > { %v2325_v33 = vadd.f32 %v6719_v17, %v2324_v26  ;;  %v2588_v57 = vpop.permute.xlu0 %2587 }
0x1436   : > { %2573 = vrot.lane.b32.xlu0 %v2325_v33, %s5968_s12  ;;  %5171 = vmatmul.msk.f32.vlgmr.msra.gmra.mxu1 %vm703_vm8, %v2325_v33 }
0x143c   : > { %v2590_v35 = vpop.permute.xlu1 %2589 }
0x143d   : > { %v5485_v32 = vpop.permute.xlu0 %5484  ;;  %5173 = vmatpush.xpose.msk.msrb.mxu1 %vm703_vm8, %v2590_v35 }
0x143e   : > { %v5487_v56 = vunpack.i.h.bf16 %v5485_v32  ;;  %v5486_v61 = vunpack.i.l.bf16 %v5485_v32  ;;  %2424 = vrot.lane.b32.xlu0 %v6719_v17, %s5963_s8  ;;  %v2578_v17 = vpop.permute.xlu2 %2577 }
0x1440   : > { %2465 = vmatpush.msra.mxu2 %v5486_v61 }
0x1441   : > { %5174 = vmatpush.xpose.msk.msrb.mxu1 %vm703_vm8, %v2588_v57 }
0x1442   : > { %2466 = vmatpush.msra.mxu2 %v5487_v56 }
0x1443   : > { %5155 = vmatmul.msk.f32.vlgmr.msra.gmra.mxu2 %vm255_vm0, %v6660_v7 }
0x1444   : > { %v2582_v42 = vpop.permute.xlu1 %2581 }
0x1445   : > { %5175 = vmatpush.xpose.msk.msrb.mxu1 %vm703_vm8, %v2586_v43  ;;  %v2580_v59 = vpop.permute.xlu0 %2579 }
0x1449   : > { %5176 = vmatpush.xpose.msk.msrb.mxu1 %vm703_vm8, %v2584_v5 }
0x144b   : > { %5156 = vmatmul.msk.f32.gmra.mxu2 %vm255_vm0, %v6671_v16 }
0x144c   : > { %v2576_v25 = vpop.permute.xlu1 %2575 }
0x144d   : > { %5177 = vmatpush.xpose.msk.msrb.mxu1 %vm703_vm8, %v2582_v42 }
0x1451   : > { %5178 = vmatpush.xpose.msk.msrb.mxu1 %vm703_vm8, %v2580_v59 }
0x1453   : > { %5157 = vmatmul.msk.f32.gmra.mxu2 %vm255_vm0, %v6681_v14 }
0x1455   : > { %5179 = vmatpush.xpose.msk.msrb.mxu1 %vm703_vm8, %v2578_v17 }
0x1459   : > { %5180 = vmatpush.xpose.msk.msrb.mxu1 %vm703_vm8, %v2576_v25 }
0x145b   : > { %5158 = vmatmul.msk.f32.gmra.mxu2 %vm255_vm0, %v6690_v21 }
0x1463   : > { %5159 = vmatmul.msk.f32.gmra.mxu2 %vm255_vm0, %v6711_v9 }
0x146b   : > { %5160 = vmatmul.msk.f32.gmra.mxu2 %vm255_vm0, %v6723_v36 }
0x1473   : > { %5161 = vmatmul.msk.f32.gmra.mxu2 %vm255_vm0, %v6735_v34 }
0x147b   : > { %5162 = vmatmul.msk.f32.gmra.mxu2 %vm255_vm0, %v6745_v3 }
0x14a8   : > { %v2574_v40 = vpop.permute.xlu0 %2573 }
0x14a9   : > { %5181 = vmatmul.msk.f32.vlgmr.msrb.gmra.mxu1 %vm703_vm8, %v2574_v40  ;;  %v2300_v40 = vld [vmem:[#allocation5 + $0x220] sm:$0xff] }
0x14aa   : > { %2736 = vmatpush.msra.mxu1 %v2300_v40 }
0x14b0   : > { %v2425_v55 = vpop.permute.xlu0 %2424 }
0x14b3   : > { %v2536_v23 = vpop.f32.mrf.mxu1 }
0x14b4   : > { %v2539_v47 = vsel %vm751_vm11, %v2536_v23, -inf }
0x14b5   : > { %2540 = vmax.xlane.f32.xlu2 %v2539_v47 }
0x14c6   : > { %v2468_v0 = vpop.f32.mrf.mxu2 }
0x14c7   : > { %v2469_v18 = vadd.f32 %v2468_v0, %v2425_v55 }
0x14ce   : > { %v2471_v49 = vpop.f32.mrf.mxu2 }
0x14cf   : > { %v2472_v50 = vadd.f32 %v2471_v49, %v2425_v55 }
0x14d1   : > { %v5503_v48 = vpack.i.bf16 %v2469_v18, %v2472_v50 }
0x14d6   : > { %v2474_v54 = vpop.f32.mrf.mxu2 }
0x14d7   : > { %v2475_v62 = vadd.f32 %v2474_v54, %v2425_v55 }
0x14de   : > { %v2477_v60 = vpop.f32.mrf.mxu2 }
0x14df   : > { %v2478_v63 = vadd.f32 %v2477_v60, %v2425_v55 }
0x14e1   : > { %v5498_v1 = vpack.i.bf16 %v2475_v62, %v2478_v63 }
0x14e6   : > { %v2480_v44 = vpop.f32.mrf.mxu2 }
0x14e7   : > { %v2481_v19 = vadd.f32 %v2480_v44, %v2425_v55 }
0x14ee   : > { %v2483_v6 = vpop.f32.mrf.mxu2 }
0x14ef   : > { %v2484_v20 = vadd.f32 %v2483_v6, %v2425_v55 }
0x14f1   : > { %v5493_v30 = vpack.i.bf16 %v2481_v19, %v2484_v20 }
0x14f6   : > { %v2486_v37 = vpop.f32.mrf.mxu2 }
0x14f7   : > { %v2487_v45 = vadd.f32 %v2486_v37, %v2425_v55  ;;  %v5581_v37 = vld [vmem:[#allocation5 + $0x230] ss:$0 sm:$0xff] }
0x14fe   : > { %v2489_v4 = vpop.f32.mrf.mxu2 }
0x14ff   : > { %v2490_v13 = vadd.f32 %v2489_v4, %v2425_v55 }
0x1501   : > { %v5488_v15 = vpack.i.bf16 %v2487_v45, %v2490_v13  ;;  %2561 = vmatpush.msra.mxu3 %v2490_v13 }
0x1503   : > { %2562 = vmatpush.msra.mxu3 %v2487_v45  ;;  %5489 = vrot.lane.b32.xlu2 %v5488_v15, %s5968_s12 }
0x1505   : > { %2563 = vmatpush.msra.mxu3 %v2484_v20 }
0x1507   : > { %2564 = vmatpush.msra.mxu3 %v2481_v19 }
0x1509   : > { %2565 = vmatpush.msra.mxu3 %v2478_v63 }
0x150b   : > { %2566 = vmatpush.msra.mxu3 %v2475_v62  ;;  %5504 = vrot.lane.b32.xlu2 %v5503_v48, %s5968_s12 }
0x150d   : > { %2567 = vmatpush.msra.mxu3 %v2472_v50 }
0x150f   : > { %2568 = vmatpush.msra.mxu3 %v2469_v18 }
0x1526   : > { %v2626_v31 = vpop.f32.mrf.mxu1 }
0x1527   : > { %v2629_v24 = vsel %vm751_vm11, %v2626_v31, -inf }
0x1528   : > { %2630 = vmax.xlane.f32.xlu1 %v2629_v24  ;;  %v2541_v11 = vpop.xlane.xlu2 %2540 }
0x1529   : > { %v2542_v39 = vsub.f32 %v2536_v23, %v2541_v11  ;;  %v2774_v11 = vld [vmem:[#allocation5 + $0x258] sm:$0xff] }
0x152b   : > { %v2543_v46 = vmul.f32 1.442695, %v2542_v39  ;;  %v2773_v39 = vld [vmem:[#allocation5 + $0x250] sm:$0xff] }
0x152d   : > { %5702 = vpow2.f32 %v2543_v46  ;;  %v2772_v46 = vld [vmem:[#allocation5 + $0x248] sm:$0xff] }
0x1533   : > { %v5703_v52 = vpop.eup %5702 }
0x1534   : > { %v2545_v41 = vsel %vm751_vm11, %v5703_v52, 0.0 }
0x1535   : > { %2546 = vadd.xlane.f32.xlu0 %v2545_v41  ;;  %v2866_v41 = vld [vmem:[#allocation5 + $0x2c8] sm:$0xff] }
0x1541   : > { %5494 = vrot.lane.b32.xlu1 %v5493_v30, %s5968_s12  ;;  %v2865_v30 = vld [vmem:[#allocation5 + $0x2c0] sm:$0xff] }
0x155d   : > { %v5490_v28 = vpop.permute.xlu2 %5489 }
0x155e   : > { %v5491_v26 = vunpack.i.l.bf16 %v5490_v28  ;;  %v5492_v33 = vunpack.i.h.bf16 %v5490_v28  ;;  %v2864_v28 = vld [vmem:[#allocation5 + $0x2b8] sm:$0xff] }
0x1560   : > { %2683 = vmatpush.msrb.mxu3 %v5491_v26  ;;  %v6828_v26 = vpack.i.bf16 %v2864_v28, %v2865_v30 }
0x1562   : > { %2684 = vmatpush.msrb.mxu3 %v5492_v33 }
0x1565   : > { %v5505_v49 = vpop.permute.xlu2 %5504 }
0x1566   : > { %v5506_v60 = vunpack.i.l.bf16 %v5505_v49  ;;  %v5507_v62 = vunpack.i.h.bf16 %v5505_v49  ;;  %v2808_v49 = vld [vmem:[#allocation5 + $0x2a0] sm:$0xff] }
0x1567   : > { %2820 = vmatpush.msrb.mxu1 %v2808_v49 }
0x159b   : > { %v2631_v57 = vpop.xlane.xlu1 %2630 }
0x159c   : > { %v2632_v35 = vsub.f32 %v2626_v31, %v2631_v57 }
0x159e   : > { %v2633_v32 = vmul.f32 1.442695, %v2632_v35 }
0x15a0   : > { %5704 = vpow2.f32 %v2633_v32 }
0x15a6   : > { %v5705_v43 = vpop.eup %5704 }
0x15a7   : > { %v2635_v56 = vsel %vm751_vm11, %v5705_v43, 0.0 }
0x15a8   : > { %2636 = vadd.xlane.f32.xlu0 %v2635_v56  ;;  %v2547_v61 = vpop.xlane.xlu0 %2546 }
0x15a9   : > { %5706 = vrcp.f32 %v2547_v61 }
0x15af   : > { %v5707_v5 = vpop.eup %5706 }
0x15b0   : > { %v2549_v42 = vmul.f32 %v5707_v5, %v5703_v52  ;;  %v2771_v52 = vld [vmem:[#allocation5 + $0x240] sm:$0xff]  ;;  %v2744_v5 = vld [vmem:[#allocation5 + $0x238] sm:$0x3] }
0x15b1   : > { %v2769_v40 = vperm.slane %v2744_v5, 1 }
0x15b2   : > { %5172 = vmatmul.msk.f32.vlgmr.msra.gmra.mxu3 %vm763_vm12, %v2549_v42 }
0x15b3   : > { %v5495_v59 = vpop.permute.xlu1 %5494 }
0x15b4   : > { %v5496_v17 = vunpack.i.l.bf16 %v5495_v59  ;;  %v5497_v25 = vunpack.i.h.bf16 %v5495_v59 }
0x15b6   : > { %2685 = vmatpush.msrb.mxu3 %v5496_v17  ;;  %v2767_v17 = vperm.slane %v2744_v5, 0 }
0x15b8   : > { %2686 = vmatpush.msrb.mxu3 %v5497_v25 }
0x15bc   : > { %5499 = vrot.lane.b32.xlu0 %v5498_v1, %s5968_s12  ;;  %v2301_v1 = vld [vmem:[#allocation5 + $0x228] sm:$0xff] }
0x161b   : > { %v2637_v23 = vpop.xlane.xlu0 %2636 }
0x161c   : > { %5708 = vrcp.f32 %v2637_v23 }
0x1622   : > { %v5709_v55 = vpop.eup %5708 }
0x1623   : > { %v2639_v44 = vmul.f32 %v5709_v55, %v5705_v43 }
0x162e   : > { %v5500_v47 = vpop.permute.xlu0 %5499 }
0x162f   : > { %v5501_v0 = vunpack.i.l.bf16 %v5500_v47  ;;  %v5502_v54 = vunpack.i.h.bf16 %v5500_v47 }
0x1631   : > { %2687 = vmatpush.msrb.mxu3 %v5501_v0 }
0x1633   : > { %2688 = vmatpush.msrb.mxu3 %v5502_v54  ;;  %v2807_v54 = vld [vmem:[#allocation5 + $0x298] sm:$0xff] }
0x1634   : > { %2821 = vmatpush.msrb.mxu1 %v2807_v54 }
0x1635   : > { %v2570_v63 = vpop.f32.mrf.mxu3  ;;  %2689 = vmatpush.msrb.mxu3 %v5506_v60  ;;  %v2806_v60 = vld [vmem:[#allocation5 + $0x290] sm:$0xff] }
0x1636   : > { %5184 = vmatmul.msk.f32.vlgmr.msra.gmra.mxu1 %vm703_vm8, %v2570_v63  ;;  %v5582_v63 = vld [vmem:[#allocation5 + $0x260] ss:$0 sm:$0xff] }
0x1637   : > { %2690 = vmatpush.msrb.mxu3 %v5507_v62  ;;  %v2805_v62 = vld [vmem:[#allocation5 + $0x288] sm:$0xff]  ;;  %2822 = vmatpush.msrb.mxu1 %v2806_v60 }
0x1638   : > { %5182 = vmatmul.msk.f32.vlgmr.msrb.gmra.mxu3 %vm763_vm12, %v2639_v44 }
0x1639   : > { %2713 = vmatpush.msra.mxu3 %v2301_v1  ;;  %2823 = vmatpush.msrb.mxu1 %v2805_v62 }
0x163b   : > { %2792 = vmatpush.msrb.mxu3 %v2774_v11 }
0x163d   : > { %2793 = vmatpush.msrb.mxu3 %v2773_v39  ;;  %v5584_v39 = vld [vmem:[#allocation5 + $0x2a8] ss:$0 sm:$0xff] }
0x163f   : > { %2794 = vmatpush.msrb.mxu3 %v2772_v46 }
0x1641   : > { %2795 = vmatpush.msrb.mxu3 %v2771_v52 }
0x16b3   : > { %v2738_v4 = vpop.f32.mrf.mxu1 }
0x16bb   : > { %v2692_v6 = vpop.f32.mrf.mxu3 }
0x16bc   : > { %5183 = vmatmul.msk.f32.vlgmr.msra.gmra.mxu3 %vm703_vm8, %v2692_v6 }
0x173f   : > { %v2715_v45 = vpop.f32.mrf.mxu3 }
0x1740   : > { %v2739_v13 = vadd.f32 %v2738_v4, %v2715_v45 }
0x1742   : > { %v2742_v15 = vadd.f32 %v5581_v37, %v2739_v13 }
0x1744   : > { %v2743_v20 = vadd.f32 %v2742_v15, %v6756_v10  ;;  %v2867_v10 = vld [vmem:[#allocation5 + $0x2d0] sm:$0xff] }
0x1745   : > { %2885 = vmatpush.msra.mxu3 %v2867_v10  ;;  %v5508_v55 = vpack.i.bf16 %v2866_v41, %v2867_v10 }
0x1746   : > { %v2745_v50 = vsel %vm463_vm5, %v2743_v20, 0.0 }
0x1747   : > { %2746 = vadd.xlane.f32.xlu1 %v2745_v50  ;;  %2886 = vmatpush.msra.mxu3 %v2866_v41 }
0x1749   : > { %2887 = vmatpush.msra.mxu3 %v2865_v30 }
0x174b   : > { %2888 = vmatpush.msra.mxu3 %v2864_v28 }
0x17ba   : > { %v2747_v19 = vpop.xlane.xlu1 %2746 }
0x17bb   : > { %v2748_v18 = vmul.f32 %v2747_v19, %v6170_v27 }
0x17bd   : > { %v2749_v48 = vsub.f32 %v2743_v20, %v2748_v18 }
0x17bf   : > { %v2750_v31 = vmul.f32 %v2749_v48, %v2749_v48 }
0x17c1   : > { %v2751_v24 = vsel %vm463_vm5, %v2750_v31, 0.0 }
0x17c2   : > { %2752 = vadd.xlane.f32.xlu2 %v2751_v24 }
0x17da   : > { %5509 = vrot.lane.b32.xlu2 %v5508_v55, %s5962_s7 }
0x17e2   : > { %5519 = vrot.lane.b32.xlu2 %v5508_v55, %s5963_s8 }
0x1835   : > { %v2753_v33 = vpop.xlane.xlu2 %2752 }
0x1836   : > { %v2754_v57 = vmul.f32 %v2753_v33, %v6170_v27 }
0x1838   : > { %v2755_v35 = vadd.f32 1e-05, %v2754_v57 }
0x183a   : > { %5710 = vrsqrt.f32 %v2755_v35  ;;  %vm2762_vm15 = vweird.f32 %v2755_v35 }
0x183d   : > { %v5510_v13 = vpop.permute.xlu2 %5509 }
0x183e   : > { %v5512_v15 = vunpack.i.h.bf16 %v5510_v13  ;;  %v5511_v20 = vunpack.i.l.bf16 %v5510_v13 }
0x1840   : > { %v5711_v32 = vpop.eup %5710  ;;  %2949 = vmatpush.msrb.mxu0 %v5511_v20 }
0x1841   : > { %v2757_v43 = vmul.f32 %v5711_v32, %v2755_v35  ;;  %vm2763_vm14 = vweird.f32 %v5711_v32 }
0x1842   : > { %vm2764_vm6 = vmor %vm2762_vm15, %vm2763_vm14  ;;  %2950 = vmatpush.msrb.mxu0 %v5512_v15 }
0x1843   : > { %v2758_v56 = vmul.f32 %v5711_v32, %v2757_v43 }
0x1845   : > { %v2759_v61 = vmul.f32 0.5, %v2758_v56  ;;  %v5520_v31 = vpop.permute.xlu2 %5519 }
0x1846   : > { %v5522_v24 = vunpack.i.h.bf16 %v5520_v31  ;;  %v5521_v11 = vunpack.i.l.bf16 %v5520_v31  ;;  %v3806_v31 = vld [vmem:[#allocation5 + $0x318] sm:$0xff] }
0x1847   : > { %v2760_v42 = vsub.f32 1.5, %v2759_v61 }
0x1848   : > { %2987 = vmatpush.msrb.mxu2 %v5521_v11  ;;  %v3805_v11 = vld [vmem:[#allocation5 + $0x310] sm:$0xff] }
0x1849   : > { %v2761_v59 = vmul.f32 %v5711_v32, %v2760_v42 }
0x184a   : > { %2988 = vmatpush.msrb.mxu2 %v5522_v24 }
0x184b   : > { %v2765_v25 = vsel %vm2764_vm6, %v5711_v32, %v2761_v59 }
0x184c   : > { %v2766_v23 = vmul.f32 %v2765_v25, %v2749_v48 }
0x184e   : > { %v2768_v47 = vmul.f32 %v2767_v17, %v2766_v23  ;;  %v2836_v23 = vld [vmem:[#allocation5 + $0x2b0] sm:$0x3] }
0x184f   : > { %v2859_v49 = vperm.slane %v2836_v23, 0  ;;  %v2861_v55 = vperm.slane %v2836_v23, 1 }
0x1850   : > { %v2770_v0 = vadd.f32 %v2769_v40, %v2768_v47 }
0x1852   : > { %5185 = vmatmul.msk.f32.vlgmr.msrb.gmra.mxu3 %vm255_vm0, %v2770_v0 }
0x185a   : > { %5187 = vmatmul.msk.f32.vlgmr.msra.gmra.mxu3 %vm255_vm0, %v6664_v58  ;;  %v2804_v58 = vld [vmem:[#allocation5 + $0x280] sm:$0xff] }
0x185b   : > { %2824 = vmatpush.msrb.mxu1 %v2804_v58 }
0x1862   : > { %5188 = vmatmul.msk.f32.gmra.mxu3 %vm255_vm0, %v6675_v22  ;;  %v2803_v22 = vld [vmem:[#allocation5 + $0x278] sm:$0xff] }
0x1863   : > { %2825 = vmatpush.msrb.mxu1 %v2803_v22 }
0x186a   : > { %5189 = vmatmul.msk.f32.gmra.mxu3 %vm255_vm0, %v6685_v51  ;;  %v2802_v51 = vld [vmem:[#allocation5 + $0x270] sm:$0xff] }
0x186b   : > { %2826 = vmatpush.msrb.mxu1 %v2802_v51 }
0x1872   : > { %5190 = vmatmul.msk.f32.gmra.mxu3 %vm255_vm0, %v6693_v29  ;;  %v2801_v29 = vld [vmem:[#allocation5 + $0x268] sm:$0xff] }
0x1873   : > { %2827 = vmatpush.msrb.mxu1 %v2801_v29 }
0x187a   : > { %5191 = vmatmul.msk.f32.gmra.mxu3 %vm255_vm0, %v6714_v2 }
0x1882   : > { %5192 = vmatmul.msk.f32.gmra.mxu3 %vm255_vm0, %v6728_v53  ;;  %v6851_v53 = vld [vmem:[#allocation5 + $0x2d8] ss:$0 sm:$0xff] }
0x188a   : > { %5193 = vmatmul.msk.f32.gmra.mxu3 %vm255_vm0, %v6738_v38 }
0x1892   : > { %5194 = vmatmul.msk.f32.gmra.mxu3 %vm255_vm0, %v6748_v8 }
0x18d5   : > { %v2797_v2 = vpop.f32.mrf.mxu3 }
0x18d6   : > { %v2798_v44 = vadd.f32 %v5582_v63, %v2797_v2 }
0x18d8   : > { %v2800_v1 = vmax.f32 %v2798_v44, 0.0 }
0x18da   : > { %5186 = vmatmul.msk.f32.vlgmr.msrb.gmra.mxu1 %vm763_vm12, %v2800_v1 }
0x18dd   : > { %v2890_v38 = vpop.f32.mrf.mxu3 }
0x18de   : > { %v6854_v6 = vadd.f32 %v6851_v53, %v2890_v38 }
0x18e0   : > { %3219 = vrot.lane.b32.xlu2 %v6854_v6, %s5968_s12 }
0x18e5   : > { %v2893_v8 = vpop.f32.mrf.mxu3 }
0x18e6   : > { %v2894_v32 = vadd.f32 %v6851_v53, %v2893_v8 }
0x18ed   : > { %v6858_v37 = vpop.f32.mrf.mxu3 }
0x18f5   : > { %v2899_v4 = vpop.f32.mrf.mxu3 }
0x18f6   : > { %v6861_v45 = vadd.f32 %v6851_v53, %v2899_v4 }
0x18f8   : > { %3225 = vrot.lane.b32.xlu2 %v6861_v45, %s5968_s12 }
0x18fd   : > { %v2902_v50 = vpop.f32.mrf.mxu3 }
0x18fe   : > { %v2903_v43 = vadd.f32 %v6851_v53, %v2902_v50 }
0x1905   : > { %v6865_v19 = vpop.f32.mrf.mxu3 }
0x1906   : > { %v2906_v13 = vadd.f32 %v6851_v53, %v6865_v19 }
0x190d   : > { %v2908_v18 = vpop.f32.mrf.mxu3 }
0x190e   : > { %v6868_v48 = vadd.f32 %v6851_v53, %v2908_v18 }
0x1910   : > { %3231 = vrot.lane.b32.xlu2 %v6868_v48, %s5968_s12 }
0x1915   : > { %v2911_v56 = vpop.f32.mrf.mxu3 }
0x1916   : > { %v2912_v61 = vadd.f32 %v6851_v53, %v2911_v56 }
0x1957   : > { %v2829_v46 = vpop.f32.mrf.mxu1 }
0x1958   : > { %v2832_v52 = vadd.f32 %v2829_v46, %v2770_v0  ;;  %v6931_v46 = vpack.i.bf16 %v3805_v11, %v3806_v31 }
0x195a   : > { %v2835_v10 = vadd.f32 %v5584_v39, %v2832_v52  ;;  %v3804_v52 = vld [vmem:[#allocation5 + $0x308] sm:$0xff] }
0x195c   : > { %v2837_v41 = vsel %vm463_vm5, %v2835_v10, 0.0 }
0x195d   : > { %2838 = vadd.xlane.f32.xlu0 %v2837_v41 }
0x1971   : > { %2931 = vrot.lane.b32.xlu0 %v6851_v53, %s5962_s7 }
0x19d0   : > { %v2839_v30 = vpop.xlane.xlu0 %2838 }
0x19d1   : > { %v2840_v28 = vmul.f32 %v2839_v30, %v6170_v27 }
0x19d3   : > { %v2841_v33 = vsub.f32 %v2835_v10, %v2840_v28  ;;  %v3803_v10 = vld [vmem:[#allocation5 + $0x300] sm:$0xff] }
0x19d4   : > { %v6933_v41 = vpack.i.bf16 %v3803_v10, %v3804_v52 }
0x19d5   : > { %v2842_v57 = vmul.f32 %v2841_v33, %v2841_v33 }
0x19d7   : > { %v2843_v35 = vsel %vm463_vm5, %v2842_v57, 0.0 }
0x19d8   : > { %2844 = vadd.xlane.f32.xlu1 %v2843_v35 }
0x19e3   : > { %v2932_v38 = vpop.permute.xlu0 %2931 }
0x19f1   : > { %5514 = vrot.lane.b32.xlu1 %v6828_v26, %s5962_s7 }
0x19f9   : > { %5524 = vrot.lane.b32.xlu1 %v6828_v26, %s5963_s8 }
0x1a01   : > { %3221 = vrot.lane.b32.xlu1 %v2894_v32, %s5968_s12 }
0x1a09   : > { %3227 = vrot.lane.b32.xlu1 %v2903_v43, %s5968_s12 }
0x1a11   : > { %3233 = vrot.lane.b32.xlu1 %v2912_v61, %s5968_s12 }
0x1a4b   : > { %v2845_v5 = vpop.xlane.xlu1 %2844 }
0x1a4c   : > { %v2846_v42 = vmul.f32 %v2845_v5, %v6170_v27 }
0x1a4e   : > { %v2847_v59 = vadd.f32 1e-05, %v2846_v42 }
0x1a50   : > { %5712 = vrsqrt.f32 %v2847_v59  ;;  %vm2854_vm9 = vweird.f32 %v2847_v59 }
0x1a56   : > { %v5713_v17 = vpop.eup %5712 }
0x1a57   : > { %v2849_v26 = vmul.f32 %v5713_v17, %v2847_v59  ;;  %vm2855_vm7 = vweird.f32 %v5713_v17 }
0x1a58   : > { %vm2856_vm2 = vmor %vm2854_vm9, %vm2855_vm7 }
0x1a59   : > { %v2850_v25 = vmul.f32 %v5713_v17, %v2849_v26 }
0x1a5b   : > { %v2851_v40 = vmul.f32 0.5, %v2850_v25 }
0x1a5d   : > { %v2852_v47 = vsub.f32 1.5, %v2851_v40 }
0x1a5f   : > { %v2853_v0 = vmul.f32 %v5713_v17, %v2852_v47 }
0x1a61   : > { %v2857_v54 = vsel %vm2856_vm2, %v5713_v17, %v2853_v0 }
0x1a62   : > { %v2858_v60 = vmul.f32 %v2857_v54, %v2841_v33 }
0x1a63   : > { %v5515_v62 = vpop.permute.xlu1 %5514 }
0x1a64   : > { %v2860_v58 = vmul.f32 %v2859_v49, %v2858_v60  ;;  %v5517_v22 = vunpack.i.h.bf16 %v5515_v62  ;;  %v5516_v51 = vunpack.i.l.bf16 %v5515_v62 }
0x1a66   : > { %v6888_v29 = vadd.f32 %v2861_v55, %v2860_v58  ;;  %2951 = vmatpush.msrb.mxu0 %v5516_v51 }
0x1a68   : > { %2952 = vmatpush.msrb.mxu0 %v5517_v22  ;;  %v6892_v63 = vadd.f32 %v6759_v12, %v6888_v29  ;;  %v2897_v12 = vadd.f32 %v6851_v53, %v6858_v37  ;;  %v3220_v37 = vpop.permute.xlu2 %3219 }
0x1a6a   : > { %5195 = vmatmul.msk.f32.vlgmr.msrb.gmra.mxu0 %vm255_vm0, %v6892_v63 }
0x1a6b   : > { %v5525_v2 = vpop.permute.xlu1 %5524 }
0x1a6c   : > { %v5527_v44 = vunpack.i.h.bf16 %v5525_v2  ;;  %v5526_v1 = vunpack.i.l.bf16 %v5525_v2 }
0x1a6e   : > { %2989 = vmatpush.msrb.mxu2 %v5526_v1 }
0x1a70   : > { %2990 = vmatpush.msrb.mxu2 %v5527_v44 }
0x1a71   : > { %5196 = vmatmul.msk.f32.vlgmr.msrb.gmra.mxu2 %vm255_vm0, %v6888_v29 }
0x1a73   : > { %v3222_v15 = vpop.permute.xlu1 %3221 }
0x1a7b   : > { %v3228_v30 = vpop.permute.xlu1 %3227 }
0x1ae7   : > { %v2954_v8 = vpop.f32.mrf.mxu0 }
0x1ae8   : > { %v2955_v4 = vadd.f32 %v2954_v8, %v2932_v38 }
0x1aea   : > { %3235 = vrot.lane.b32.xlu0 %v2955_v4, %s5968_s12  ;;  %5197 = vmatpush.xpose.msk.msra.mxu1 %vm703_vm8, %v2955_v4 }
0x1aed   : > { %5198 = vmatmul.msk.f32.vlgmr.msra.gmra.mxu1 %vm703_vm8, %v6854_v6 }
0x1af2   : > { %3223 = vrot.lane.b32.xlu0 %v2897_v12, %s5968_s12 }
0x1af4   : > { %v6955_v59 = vpop.f32.mrf.mxu2 }
0x1af5   : > { %5199 = vmatmul.msk.f32.gmra.mxu1 %vm703_vm8, %v2894_v32 }
0x1afa   : > { %3229 = vrot.lane.b32.xlu0 %v2906_v13, %s5968_s12 }
0x1afd   : > { %5200 = vmatmul.msk.f32.gmra.mxu1 %vm703_vm8, %v2897_v12 }
0x1b05   : > { %5201 = vmatmul.msk.f32.gmra.mxu1 %vm703_vm8, %v6861_v45 }
0x1b0d   : > { %5202 = vmatmul.msk.f32.gmra.mxu1 %vm703_vm8, %v2903_v43 }
0x1b15   : > { %5203 = vmatmul.msk.f32.gmra.mxu1 %vm703_vm8, %v2906_v13 }
0x1b1d   : > { %5204 = vmatmul.msk.f32.gmra.mxu1 %vm703_vm8, %v6868_v48  ;;  %v3226_v48 = vpop.permute.xlu2 %3225 }
0x1b25   : > { %5205 = vmatmul.msk.f32.gmra.mxu1 %vm703_vm8, %v2912_v61  ;;  %v3232_v43 = vpop.permute.xlu2 %3231  ;;  %v3234_v61 = vpop.permute.xlu1 %3233 }
0x1b5c   : > { %v3236_v6 = vpop.permute.xlu0 %3235 }
0x1b5d   : > { %5215 = vmatpush.xpose.msk.msra.mxu2 %vm703_vm8, %v3236_v6 }
0x1b60   : > { %5216 = vmatmul.msk.f32.vlgmr.msra.gmra.mxu2 %vm703_vm8, %v3220_v37 }
0x1b61   : > { %3824 = vmatpush.msrb.mxu2 %v3806_v31 }
0x1b63   : > { %3825 = vmatpush.msrb.mxu2 %v3805_v11 }
0x1b64   : > { %v3224_v50 = vpop.permute.xlu0 %3223 }
0x1b65   : > { %3826 = vmatpush.msrb.mxu2 %v3804_v52 }
0x1b67   : > { %3827 = vmatpush.msrb.mxu2 %v3803_v10 }
0x1b68   : > { %5217 = vmatmul.msk.f32.gmra.mxu2 %vm703_vm8, %v3222_v15 }
0x1b6a   : > { %v3039_v20 = vpop.f32.mrf.mxu1 }
0x1b6b   : > { %v3063_v45 = vsel %vm321_vm4, %v3039_v20, -inf }
0x1b6c   : > { %3064 = vmax.xlane.f32.xlu2 %v3063_v45  ;;  %v3230_v57 = vpop.permute.xlu0 %3229 }
0x1b70   : > { %5218 = vmatmul.msk.f32.gmra.mxu2 %vm703_vm8, %v3224_v50 }
0x1b72   : > { %v6922_v19 = vpop.f32.mrf.mxu1 }
0x1b73   : > { %v3066_v18 = vsel %vm321_vm4, %v6922_v19, -inf }
0x1b74   : > { %3067 = vmax.xlane.f32.xlu2 %v3066_v18 }
0x1b78   : > { %5219 = vmatmul.msk.f32.gmra.mxu2 %vm703_vm8, %v3226_v48 }
0x1b7a   : > { %v6927_v24 = vpop.f32.mrf.mxu1 }
0x1b7b   : > { %v3069_v39 = vsel %vm321_vm4, %v6927_v24, -inf }
0x1b7c   : > { %3070 = vmax.xlane.f32.xlu2 %v3069_v39 }
0x1b80   : > { %5220 = vmatmul.msk.f32.gmra.mxu2 %vm703_vm8, %v3228_v30 }
0x1b82   : > { %v6936_v28 = vpop.f32.mrf.mxu1 }
0x1b83   : > { %v3072_v33 = vsel %vm321_vm4, %v6936_v28, -inf }
0x1b84   : > { %3073 = vmax.xlane.f32.xlu2 %v3072_v33 }
0x1b88   : > { %5221 = vmatmul.msk.f32.gmra.mxu2 %vm703_vm8, %v3230_v57 }
0x1b8a   : > { %v6941_v35 = vpop.f32.mrf.mxu1 }
0x1b8b   : > { %v3075_v32 = vsel %vm321_vm4, %v6941_v35, -inf }
0x1b8c   : > { %3076 = vmax.xlane.f32.xlu2 %v3075_v32 }
0x1b90   : > { %5222 = vmatmul.msk.f32.gmra.mxu2 %vm703_vm8, %v3232_v43 }
0x1b92   : > { %v6946_v56 = vpop.f32.mrf.mxu1 }
0x1b98   : > { %5223 = vmatmul.msk.f32.gmra.mxu2 %vm703_vm8, %v3234_v61 }
0x1b9a   : > { %v6949_v5 = vpop.f32.mrf.mxu1 }
0x1b9b   : > { %v3081_v42 = vsel %vm321_vm4, %v6949_v5, -inf }
0x1b9c   : > { %3082 = vmax.xlane.f32.xlu2 %v3081_v42 }
0x1ba0   : > { %5249 = vmatmul.msk.f32.vlgmr.msrb.gmra.mxu2 %vm255_vm0, %v6892_v63 }
0x1ba2   : > { %v6979_v8 = vpop.f32.mrf.mxu1 }
0x1bdf   : > { %v3065_v17 = vpop.xlane.xlu2 %3064 }
0x1be0   : > { %v3087_v26 = vsub.f32 %v3039_v20, %v3065_v17 }
0x1be2   : > { %v3095_v25 = vmul.f32 1.442695, %v3087_v26 }
0x1be3   : > { %v3272_v40 = vpop.f32.mrf.mxu2 }
0x1be4   : > { %5714 = vpow2.f32 %v3095_v25  ;;  %v3296_v23 = vsel %vm321_vm4, %v3272_v40, -inf }
0x1be5   : > { %3297 = vmax.xlane.f32.xlu0 %v3296_v23 }
0x1be7   : > { %v3068_v63 = vpop.xlane.xlu2 %3067 }
0x1be8   : > { %v3088_v2 = vsub.f32 %v6922_v19, %v3068_v63  ;;  %v3078_v19 = vsel %vm321_vm4, %v6946_v56, -inf }
0x1bea   : > { %v6958_v47 = vpop.eup %5714  ;;  %v3097_v38 = vmul.f32 1.442695, %v3088_v2 }
0x1beb   : > { %v3275_v0 = vpop.f32.mrf.mxu2  ;;  %v3111_v49 = vsel %vm321_vm4, %v6958_v47, 0.0 }
0x1bec   : > { %3112 = vadd.xlane.f32.xlu2 %v3111_v49  ;;  %v3299_v54 = vsel %vm321_vm4, %v3275_v0, -inf  ;;  %5716 = vpow2.f32 %v3097_v38 }
0x1bed   : > { %3300 = vmax.xlane.f32.xlu1 %v3299_v54 }
0x1bef   : > { %v3071_v15 = vpop.xlane.xlu2 %3070 }
0x1bf0   : > { %v3089_v45 = vsub.f32 %v6927_v24, %v3071_v15 }
0x1bf2   : > { %v6987_v13 = vpop.eup %5716  ;;  %v3099_v50 = vmul.f32 1.442695, %v3089_v45 }
0x1bf3   : > { %v3278_v55 = vpop.f32.mrf.mxu2  ;;  %v3114_v6 = vsel %vm321_vm4, %v6987_v13, 0.0 }
0x1bf4   : > { %v3302_v60 = vsel %vm321_vm4, %v3278_v55, -inf  ;;  %5718 = vpow2.f32 %v3099_v50 }
0x1bf5   : > { %3303 = vmax.xlane.f32.xlu0 %v3302_v60 }
0x1bf7   : > { %v3074_v31 = vpop.xlane.xlu2 %3073 }
0x1bf8   : > { %v3090_v26 = vsub.f32 %v6936_v28, %v3074_v31 }
0x1bfa   : > { %v6998_v18 = vpop.eup %5718 }
0x1bfb   : > { %v6964_v62 = vpop.f32.mrf.mxu2  ;;  %v3117_v48 = vsel %vm321_vm4, %v6998_v18, 0.0 }
0x1bfc   : > { %v3305_v58 = vsel %vm321_vm4, %v6964_v62, -inf }
0x1bfd   : > { %3306 = vmax.xlane.f32.xlu0 %v3305_v58 }
0x1bff   : > { %v3077_v10 = vpop.xlane.xlu2 %3076 }
0x1c00   : > { %v3091_v60 = vsub.f32 %v6941_v35, %v3077_v10 }
0x1c02   : > { %v3103_v58 = vmul.f32 1.442695, %v3091_v60 }
0x1c03   : > { %v6968_v22 = vpop.f32.mrf.mxu2 }
0x1c04   : > { %v3308_v51 = vsel %vm321_vm4, %v6968_v22, -inf }
0x1c05   : > { %3309 = vmax.xlane.f32.xlu0 %v3308_v51 }
0x1c06   : > { %2969 = vrot.lane.b32.xlu1 %v6851_v53, %s5963_s8  ;;  %v3084_v53 = vsel %vm321_vm4, %v6979_v8, -inf }
0x1c0b   : > { %v6975_v44 = vpop.f32.mrf.mxu2 }
0x1c0c   : > { %v3311_v1 = vsel %vm321_vm4, %v6975_v44, -inf }
0x1c0d   : > { %3312 = vmax.xlane.f32.xlu0 %v3311_v1 }
0x1c0f   : > { %v7006_v43 = vpop.xlane.xlu2 %3082 }
0x1c13   : > { %v6981_v4 = vpop.f32.mrf.mxu2 }
0x1c14   : > { %v3314_v12 = vsel %vm321_vm4, %v6981_v4, -inf }
0x1c15   : > { %3315 = vmax.xlane.f32.xlu2 %v3314_v12  ;;  %3085 = vmax.xlane.f32.xlu0 %v3084_v53 }
0x1c1b   : > { %v6991_v37 = vpop.f32.mrf.mxu2 }
0x1c1c   : > { %v3317_v20 = vsel %vm321_vm4, %v6991_v37, -inf }
0x1c1d   : > { %3115 = vadd.xlane.f32.xlu0 %v3114_v6 }
0x1c25   : > { %3318 = vmax.xlane.f32.xlu0 %v3317_v20 }
0x1c30   : > { %3079 = vmax.xlane.f32.xlu1 %v3078_v19 }
0x1c38   : > { %3118 = vadd.xlane.f32.xlu1 %v3117_v48 }
0x1c58   : > { %v3298_v11 = vpop.xlane.xlu0 %3297 }
0x1c59   : > { %v3320_v39 = vsub.f32 %v3272_v40, %v3298_v11 }
0x1c5b   : > { %v3328_v52 = vmul.f32 1.442695, %v3320_v39 }
0x1c5d   : > { %5720 = vpow2.f32 %v3328_v52 }
0x1c5f   : > { %v3113_v23 = vpop.xlane.xlu2 %3112 }
0x1c60   : > { %v3301_v30 = vpop.xlane.xlu1 %3300 }
0x1c61   : > { %v3321_v24 = vsub.f32 %v3275_v0, %v3301_v30  ;;  %v3101_v0 = vmul.f32 1.442695, %v3090_v26 }
0x1c63   : > { %v7002_v33 = vpop.eup %5720  ;;  %v3330_v57 = vmul.f32 1.442695, %v3321_v24 }
0x1c64   : > { %v3344_v32 = vsel %vm321_vm4, %v7002_v33, 0.0 }
0x1c65   : > { %5722 = vpow2.f32 %v3330_v57  ;;  %3345 = vadd.xlane.f32.xlu0 %v3344_v32 }
0x1c68   : > { %v3304_v61 = vpop.xlane.xlu0 %3303 }
0x1c69   : > { %v3322_v42 = vsub.f32 %v3278_v55, %v3304_v61 }
0x1c6b   : > { %v7008_v17 = vpop.eup %5722  ;;  %v3332_v25 = vmul.f32 1.442695, %v3322_v42 }
0x1c6c   : > { %v3347_v40 = vsel %vm321_vm4, %v7008_v17, 0.0 }
0x1c6d   : > { %5724 = vpow2.f32 %v3332_v25  ;;  %3348 = vadd.xlane.f32.xlu0 %v3347_v40 }
0x1c6e   : > { %5726 = vrcp.f32 %v3113_v23 }
0x1c6f   : > { %5728 = vpow2.f32 %v3101_v0 }
0x1c70   : > { %v3307_v49 = vpop.xlane.xlu0 %3306  ;;  %5730 = vpow2.f32 %v3103_v58 }
0x1c71   : > { %v3323_v52 = vsub.f32 %v6964_v62, %v3307_v49 }
0x1c73   : > { %v7013_v54 = vpop.eup %5724  ;;  %v3334_v24 = vmul.f32 1.442695, %v3323_v52 }
0x1c74   : > { %v3350_v55 = vsel %vm321_vm4, %v7013_v54, 0.0  ;;  %v5727_v28 = vpop.eup %5726 }
0x1c75   : > { %3351 = vadd.xlane.f32.xlu0 %v3350_v55  ;;  %v7018_v2 = vpop.eup %5728  ;;  %v3143_v12 = vmul.f32 %v5727_v28, %v6958_v47 }
0x1c76   : > { %v3120_v35 = vsel %vm321_vm4, %v7018_v2, 0.0  ;;  %v7028_v15 = vpop.eup %5730 }
0x1c77   : > { %v3123_v45 = vsel %vm321_vm4, %v7028_v15, 0.0 }
0x1c78   : > { %v2970_v51 = vpop.permute.xlu1 %2969  ;;  %v3310_v63 = vpop.xlane.xlu0 %3309 }
0x1c79   : > { %v2993_v1 = vadd.f32 %v6955_v59, %v2970_v51  ;;  %v3324_v38 = vsub.f32 %v6968_v22, %v3310_v63 }
0x1c7b   : > { %v3336_v53 = vmul.f32 1.442695, %v3324_v38  ;;  %5206 = vmatpush.msk.msra.mxu0 %vm325_vm3, %v2993_v1  ;;  %3384 = vrot.lane.b32.xlu2 %v2993_v1, %s5968_s12 }
0x1c7c   : > { %5207 = vmatmul.msk.f32.vlgmr.msra.gmra.mxu0 %vm321_vm4, %v3143_v12 }
0x1c7d   : > { %5732 = vpow2.f32 %v3336_v53  ;;  %3121 = vadd.xlane.f32.xlu0 %v3120_v35 }
0x1c80   : > { %v3313_v6 = vpop.xlane.xlu0 %3312 }
0x1c81   : > { %v3325_v59 = vsub.f32 %v6975_v44, %v3313_v6 }
0x1c83   : > { %v7031_v22 = vpop.eup %5732  ;;  %v3338_v47 = vmul.f32 1.442695, %v3325_v59 }
0x1c84   : > { %v3356_v20 = vsel %vm321_vm4, %v7031_v22, 0.0 }
0x1c85   : > { %5734 = vpow2.f32 %v3338_v47  ;;  %3357 = vadd.xlane.f32.xlu1 %v3356_v20  ;;  %3124 = vadd.xlane.f32.xlu0 %v3123_v45 }
0x1c88   : > { %v3316_v50 = vpop.xlane.xlu2 %3315  ;;  %v3086_v19 = vpop.xlane.xlu0 %3085 }
0x1c89   : > { %v3326_v48 = vsub.f32 %v6981_v4, %v3316_v50  ;;  %v3094_v28 = vsub.f32 %v6979_v8, %v3086_v19 }
0x1c8b   : > { %v7038_v31 = vpop.eup %5734  ;;  %v3340_v11 = vmul.f32 1.442695, %v3326_v48  ;;  %v3109_v51 = vmul.f32 1.442695, %v3094_v28 }
0x1c8c   : > { %v3359_v44 = vsel %vm321_vm4, %v7038_v31, 0.0 }
0x1c8d   : > { %5736 = vpow2.f32 %v3340_v11  ;;  %3360 = vadd.xlane.f32.xlu1 %v3359_v44 }
0x1c90   : > { %v3116_v39 = vpop.xlane.xlu0 %3115 }
0x1c91   : > { %5738 = vrcp.f32 %v3116_v39 }
0x1c92   : > { %5740 = vpow2.f32 %v3334_v24  ;;  %v2869_v24 = vld [vmem:[#allocation5 + $0x2e0] sm:$0xff] }
0x1c93   : > { %v7043_v10 = vpop.eup %5736  ;;  %3557 = vmatpush.msrb.mxu0 %v2869_v24 }
0x1c94   : > { %v3362_v30 = vsel %vm321_vm4, %v7043_v10, 0.0 }
0x1c95   : > { %3363 = vadd.xlane.f32.xlu1 %v3362_v30 }
0x1c97   : > { %v5739_v4 = vpop.eup %5738 }
0x1c98   : > { %v3319_v57 = vpop.xlane.xlu0 %3318  ;;  %v3144_v32 = vmul.f32 %v5739_v4, %v6987_v13  ;;  %v5741_v26 = vpop.eup %5740  ;;  %v3093_v13 = vsub.f32 %v6949_v5, %v7006_v43 }
0x1c99   : > { %v3327_v61 = vsub.f32 %v6991_v37, %v3319_v57  ;;  %v3353_v40 = vsel %vm321_vm4, %v5741_v26, 0.0 }
0x1c9a   : > { %5208 = vmatmul.msk.f32.gmra.mxu0 %vm321_vm4, %v3144_v32  ;;  %v3107_v49 = vmul.f32 1.442695, %v3093_v13 }
0x1c9b   : > { %v3342_v42 = vmul.f32 1.442695, %v3327_v61 }
0x1c9d   : > { %5742 = vpow2.f32 %v3342_v42 }
0x1ca3   : > { %v7050_v62 = vpop.eup %5742  ;;  %v3080_v25 = vpop.xlane.xlu1 %3079 }
0x1ca4   : > { %v3092_v23 = vsub.f32 %v6946_v56, %v3080_v25  ;;  %3354 = vadd.xlane.f32.xlu2 %v3353_v40  ;;  %v3365_v0 = vsel %vm321_vm4, %v7050_v62, 0.0 }
0x1ca5   : > { %3366 = vadd.xlane.f32.xlu1 %v3365_v0 }
0x1ca6   : > { %v3105_v37 = vmul.f32 1.442695, %v3092_v23 }
0x1ca8   : > { %5744 = vpow2.f32 %v3105_v37  ;;  %v2870_v37 = vld [vmem:[#allocation5 + $0x2e8] sm:$0xff] }
0x1ca9   : > { %3492 = vmatpush.msrb.mxu1 %v2870_v37 }
0x1cab   : > { %v3119_v60 = vpop.xlane.xlu1 %3118 }
0x1cac   : > { %5746 = vrcp.f32 %v3119_v60 }
0x1cad   : > { %5748 = vpow2.f32 %v3107_v49 }
0x1cae   : > { %v5745_v55 = vpop.eup %5744  ;;  %5750 = vpow2.f32 %v3109_v51 }
0x1caf   : > { %v3126_v58 = vsel %vm321_vm4, %v5745_v55, 0.0 }
0x1cb0   : > { %3127 = vadd.xlane.f32.xlu0 %v3126_v58 }
0x1cb2   : > { %v5747_v56 = vpop.eup %5746 }
0x1cb3   : > { %v3145_v63 = vmul.f32 %v5747_v56, %v6998_v18  ;;  %v7061_v1 = vpop.eup %5748 }
0x1cb4   : > { %v3129_v5 = vsel %vm321_vm4, %v7061_v1, 0.0  ;;  %v7066_v43 = vpop.eup %5750 }
0x1cb5   : > { %5209 = vmatmul.msk.f32.gmra.mxu0 %vm321_vm4, %v3145_v63  ;;  %v3132_v8 = vsel %vm321_vm4, %v7066_v43, 0.0 }
0x1cb8   : > { %3130 = vadd.xlane.f32.xlu0 %v3129_v5 }
0x1cc0   : > { %3133 = vadd.xlane.f32.xlu0 %v3132_v8 }
0x1cd5   : > { %v3385_v38 = vpop.permute.xlu2 %3384 }
0x1cd6   : > { %5224 = vmatpush.msk.msrb.mxu3 %vm325_vm3, %v3385_v38 }
0x1cd8   : > { %v3346_v12 = vpop.xlane.xlu0 %3345 }
0x1cd9   : > { %5752 = vrcp.f32 %v3346_v12 }
0x1cdf   : > { %v5753_v18 = vpop.eup %5752 }
0x1ce0   : > { %v3376_v53 = vmul.f32 %v5753_v18, %v7002_v33  ;;  %v3349_v35 = vpop.xlane.xlu0 %3348 }
0x1ce1   : > { %5754 = vrcp.f32 %v3349_v35 }
0x1ce2   : > { %5225 = vmatmul.msk.f32.vlgmr.msrb.gmra.mxu3 %vm321_vm4, %v3376_v53 }
0x1ce7   : > { %v5755_v6 = vpop.eup %5754 }
0x1ce8   : > { %v3352_v59 = vpop.xlane.xlu0 %3351  ;;  %v3377_v47 = vmul.f32 %v5755_v6, %v7008_v17 }
0x1ce9   : > { %5756 = vrcp.f32 %v3352_v59 }
0x1cea   : > { %5226 = vmatmul.msk.f32.gmra.mxu3 %vm321_vm4, %v3377_v47  ;;  %v5586_v47 = vld [vmem:[#allocation5 + $0x2f0] ss:$0 sm:$0xff] }
0x1cef   : > { %v5757_v20 = vpop.eup %5756 }
0x1cf0   : > { %v3122_v45 = vpop.xlane.xlu0 %3121  ;;  %v3378_v50 = vmul.f32 %v5757_v20, %v7013_v54 }
0x1cf1   : > { %5758 = vrcp.f32 %v3122_v45 }
0x1cf2   : > { %5227 = vmatmul.msk.f32.gmra.mxu3 %vm321_vm4, %v3378_v50 }
0x1cf7   : > { %v5759_v19 = vpop.eup %5758 }
0x1cf8   : > { %v3125_v33 = vpop.xlane.xlu0 %3124  ;;  %v3146_v48 = vmul.f32 %v5759_v19, %v7018_v2  ;;  %v3358_v44 = vpop.xlane.xlu1 %3357 }
0x1cf9   : > { %5760 = vrcp.f32 %v3125_v33  ;;  %v3195_v58 = vpop.f32.mrf.mxu0 }
0x1cfa   : > { %5210 = vmatmul.msk.f32.gmra.mxu0 %vm321_vm4, %v3146_v48 }
0x1cff   : > { %v5761_v11 = vpop.eup %5760 }
0x1d00   : > { %v3147_v17 = vmul.f32 %v5761_v11, %v7028_v15  ;;  %v3361_v30 = vpop.xlane.xlu1 %3360 }
0x1d02   : > { %5211 = vmatmul.msk.f32.gmra.mxu0 %vm321_vm4, %v3147_v17 }
0x1d08   : > { %v3364_v32 = vpop.xlane.xlu1 %3363 }
0x1d17   : > { %v3355_v39 = vpop.xlane.xlu2 %3354  ;;  %v3198_v56 = vpop.f32.mrf.mxu0 }
0x1d18   : > { %5762 = vrcp.f32 %v3355_v39  ;;  %v3367_v23 = vpop.xlane.xlu1 %3366 }
0x1d19   : > { %5764 = vrcp.f32 %v3358_v44 }
0x1d1e   : > { %v5763_v52 = vpop.eup %5762 }
0x1d1f   : > { %v3379_v54 = vmul.f32 %v5763_v52, %v5741_v26  ;;  %v5765_v4 = vpop.eup %5764 }
0x1d20   : > { %v3380_v57 = vmul.f32 %v5765_v4, %v7031_v22 }
0x1d21   : > { %5228 = vmatmul.msk.f32.gmra.mxu3 %vm321_vm4, %v3379_v54 }
0x1d23   : > { %v3128_v2 = vpop.xlane.xlu0 %3127 }
0x1d24   : > { %5766 = vrcp.f32 %v3128_v2 }
0x1d25   : > { %5768 = vrcp.f32 %v3361_v30 }
0x1d29   : > { %5229 = vmatmul.msk.f32.gmra.mxu3 %vm321_vm4, %v3380_v57 }
0x1d2a   : > { %v5767_v15 = vpop.eup %5766 }
0x1d2b   : > { %v3131_v61 = vpop.xlane.xlu0 %3130  ;;  %v3148_v42 = vmul.f32 %v5767_v15, %v5745_v55  ;;  %v5769_v25 = vpop.eup %5768 }
0x1d2c   : > { %5770 = vrcp.f32 %v3131_v61  ;;  %v3381_v26 = vmul.f32 %v5769_v25, %v7038_v31 }
0x1d2d   : > { %5212 = vmatmul.msk.f32.gmra.mxu0 %vm321_vm4, %v3148_v42  ;;  %5772 = vrcp.f32 %v3364_v32 }
0x1d31   : > { %5230 = vmatmul.msk.f32.gmra.mxu3 %vm321_vm4, %v3381_v26 }
0x1d32   : > { %v5771_v40 = vpop.eup %5770  ;;  %v3201_v51 = vpop.f32.mrf.mxu0 }
0x1d33   : > { %v3134_v0 = vpop.xlane.xlu0 %3133  ;;  %v3149_v22 = vmul.f32 %v5771_v40, %v7061_v1  ;;  %v5773_v13 = vpop.eup %5772 }
0x1d34   : > { %5774 = vrcp.f32 %v3134_v0  ;;  %v3382_v49 = vmul.f32 %v5773_v13, %v7043_v10 }
0x1d35   : > { %5213 = vmatmul.msk.f32.gmra.mxu0 %vm321_vm4, %v3149_v22  ;;  %5776 = vrcp.f32 %v3367_v23 }
0x1d39   : > { %5231 = vmatmul.msk.f32.gmra.mxu3 %vm321_vm4, %v3382_v49 }
0x1d3a   : > { %v5775_v60 = vpop.eup %5774 }
0x1d3b   : > { %v3150_v31 = vmul.f32 %v5775_v60, %v7066_v43  ;;  %v5777_v55 = vpop.eup %5776 }
0x1d3c   : > { %v3383_v28 = vmul.f32 %v5777_v55, %v7050_v62 }
0x1d3d   : > { %5214 = vmatmul.msk.f32.gmra.mxu0 %vm321_vm4, %v3150_v31 }
0x1d41   : > { %5232 = vmatmul.msk.f32.gmra.mxu3 %vm321_vm4, %v3383_v28 }
0x1d45   : > { %5241 = vmatmul.msk.f32.vlgmr.msrb.gmra.mxu0 %vm703_vm8, %v3195_v58 }
0x1d4d   : > { %5242 = vmatmul.msk.f32.gmra.mxu0 %vm703_vm8, %v3198_v56 }
0x1d55   : > { %5243 = vmatmul.msk.f32.gmra.mxu0 %vm703_vm8, %v3201_v51 }
0x1d65   : > { %v3429_v10 = vpop.f32.mrf.mxu3 }
0x1d66   : > { %5233 = vmatmul.msk.f32.vlgmr.msrb.gmra.mxu1 %vm703_vm8, %v3429_v10 }
0x1d6d   : > { %v3432_v63 = vpop.f32.mrf.mxu3 }
0x1d6e   : > { %5234 = vmatmul.msk.f32.gmra.mxu1 %vm703_vm8, %v3432_v63 }
0x1d75   : > { %v3435_v1 = vpop.f32.mrf.mxu3 }
0x1d76   : > { %5235 = vmatmul.msk.f32.gmra.mxu1 %vm703_vm8, %v3435_v1 }
0x1d77   : > { %v3204_v62 = vpop.f32.mrf.mxu0 }
0x1d78   : > { %5244 = vmatmul.msk.f32.gmra.mxu0 %vm703_vm8, %v3204_v62 }
0x1d7f   : > { %v3207_v5 = vpop.f32.mrf.mxu0 }
0x1d80   : > { %5245 = vmatmul.msk.f32.gmra.mxu0 %vm703_vm8, %v3207_v5 }
0x1da4   : > { %v3438_v43 = vpop.f32.mrf.mxu3 }
0x1da5   : > { %5236 = vmatmul.msk.f32.gmra.mxu1 %vm703_vm8, %v3438_v43 }
0x1daa   : > { %v3210_v8 = vpop.f32.mrf.mxu0 }
0x1dab   : > { %5246 = vmatmul.msk.f32.gmra.mxu0 %vm703_vm8, %v3210_v8 }
0x1dac   : > { %v3441_v38 = vpop.f32.mrf.mxu3 }
0x1dad   : > { %5237 = vmatmul.msk.f32.gmra.mxu1 %vm703_vm8, %v3441_v38 }
0x1db2   : > { %v3213_v12 = vpop.f32.mrf.mxu0 }
0x1db3   : > { %5247 = vmatmul.msk.f32.gmra.mxu0 %vm703_vm8, %v3213_v12 }
0x1db4   : > { %v3444_v18 = vpop.f32.mrf.mxu3 }
0x1db5   : > { %5238 = vmatmul.msk.f32.gmra.mxu1 %vm703_vm8, %v3444_v18 }
0x1dba   : > { %v3216_v53 = vpop.f32.mrf.mxu0 }
0x1dbb   : > { %5248 = vmatmul.msk.f32.gmra.mxu0 %vm703_vm8, %v3216_v53 }
0x1dbc   : > { %v3447_v35 = vpop.f32.mrf.mxu3 }
0x1dbd   : > { %5239 = vmatmul.msk.f32.gmra.mxu1 %vm703_vm8, %v3447_v35 }
0x1dc2   : > { %v3559_v59 = vpop.f32.mrf.mxu0 }
0x1dc4   : > { %v3450_v6 = vpop.f32.mrf.mxu3 }
0x1dc5   : > { %5240 = vmatmul.msk.f32.gmra.mxu1 %vm703_vm8, %v3450_v6 }
0x1dca   : > { %v3562_v33 = vpop.f32.mrf.mxu0 }
0x1dd2   : > { %v3565_v54 = vpop.f32.mrf.mxu0 }
0x1de3   : > { %v3494_v20 = vpop.f32.mrf.mxu1 }
0x1de4   : > { %v3560_v45 = vadd.f32 %v3559_v59, %v3494_v20 }
0x1de6   : > { %v3584_v50 = vadd.f32 %v5586_v47, %v3560_v45 }
0x1de8   : > { %v3592_v19 = vadd.f32 %v3584_v50, %v6660_v7 }
0x1dea   : > { %v3601_v48 = vsel %vm255_vm0, %v3592_v19, 0.0 }
0x1deb   : > { %v3497_v11 = vpop.f32.mrf.mxu1  ;;  %3602 = vadd.xlane.f32.xlu1 %v3601_v48 }
0x1dec   : > { %v3563_v17 = vadd.f32 %v3562_v33, %v3497_v11 }
0x1dee   : > { %v3585_v44 = vadd.f32 %v5586_v47, %v3563_v17 }
0x1df0   : > { %v3593_v39 = vadd.f32 %v3585_v44, %v6671_v16 }
0x1df2   : > { %v3604_v52 = vsel %vm255_vm0, %v3593_v39, 0.0 }
0x1df3   : > { %v3500_v30 = vpop.f32.mrf.mxu1  ;;  %3605 = vadd.xlane.f32.xlu0 %v3604_v52 }
0x1df4   : > { %v3566_v24 = vadd.f32 %v3565_v54, %v3500_v30 }
0x1df5   : > { %v3568_v57 = vpop.f32.mrf.mxu0 }
0x1df6   : > { %v3586_v2 = vadd.f32 %v5586_v47, %v3566_v24 }
0x1df8   : > { %v3594_v4 = vadd.f32 %v3586_v2, %v6681_v14 }
0x1dfa   : > { %v3607_v7 = vsel %vm255_vm0, %v3594_v4, 0.0 }
0x1dfb   : > { %3608 = vadd.xlane.f32.xlu1 %v3607_v7 }
0x1dfd   : > { %v3571_v25 = vpop.f32.mrf.mxu0 }
0x1e22   : > { %v3503_v15 = vpop.f32.mrf.mxu1 }
0x1e23   : > { %v3569_v32 = vadd.f32 %v3568_v57, %v3503_v15 }
0x1e25   : > { %v3587_v61 = vadd.f32 %v5586_v47, %v3569_v32 }
0x1e27   : > { %v3595_v42 = vadd.f32 %v3587_v61, %v6690_v21 }
0x1e28   : > { %v3574_v22 = vpop.f32.mrf.mxu0 }
0x1e29   : > { %v3610_v16 = vsel %vm255_vm0, %v3595_v42, 0.0 }
0x1e2a   : > { %v3506_v26 = vpop.f32.mrf.mxu1  ;;  %3611 = vadd.xlane.f32.xlu2 %v3610_v16 }
0x1e2b   : > { %v3572_v40 = vadd.f32 %v3571_v25, %v3506_v26 }
0x1e2d   : > { %v3588_v23 = vadd.f32 %v5586_v47, %v3572_v40 }
0x1e2f   : > { %v3596_v0 = vadd.f32 %v3588_v23, %v6711_v9 }
0x1e30   : > { %v3577_v31 = vpop.f32.mrf.mxu0 }
0x1e31   : > { %v3613_v14 = vsel %vm255_vm0, %v3596_v0, 0.0 }
0x1e32   : > { %v3509_v13 = vpop.f32.mrf.mxu1  ;;  %3614 = vadd.xlane.f32.xlu0 %v3613_v14 }
0x1e33   : > { %v3575_v37 = vadd.f32 %v3574_v22, %v3509_v13 }
0x1e35   : > { %v3589_v49 = vadd.f32 %v5586_v47, %v3575_v37 }
0x1e37   : > { %v3597_v60 = vadd.f32 %v3589_v49, %v6723_v36 }
0x1e38   : > { %v3580_v1 = vpop.f32.mrf.mxu0 }
0x1e39   : > { %v3616_v21 = vsel %vm255_vm0, %v3597_v60, 0.0 }
0x1e3a   : > { %v3512_v55 = vpop.f32.mrf.mxu1  ;;  %3617 = vadd.xlane.f32.xlu1 %v3616_v21 }
0x1e3b   : > { %v3578_v28 = vadd.f32 %v3577_v31, %v3512_v55 }
0x1e3d   : > { %v3590_v58 = vadd.f32 %v5586_v47, %v3578_v28 }
0x1e3f   : > { %v3598_v56 = vadd.f32 %v3590_v58, %v6735_v34 }
0x1e41   : > { %v3619_v9 = vsel %vm255_vm0, %v3598_v56, 0.0 }
0x1e42   : > { %3620 = vadd.xlane.f32.xlu0 %v3619_v9  ;;  %v3515_v51 = vpop.f32.mrf.mxu1 }
0x1e43   : > { %v3581_v62 = vadd.f32 %v3580_v1, %v3515_v51 }
0x1e45   : > { %v3591_v43 = vadd.f32 %v5586_v47, %v3581_v62 }
0x1e47   : > { %v3599_v18 = vadd.f32 %v3591_v43, %v6745_v3  ;;  %v7149_v3 = vld [vmem:[#allocation5 + $0x320] ss:$0 sm:$0xff] }
0x1e49   : > { %v3622_v6 = vsel %vm255_vm0, %v3599_v18, 0.0 }
0x1e5e   : > { %v3603_v10 = vpop.xlane.xlu1 %3602 }
0x1e5f   : > { %v3625_v63 = vmul.f32 %v3603_v10, %v6170_v27 }
0x1e61   : > { %v7126_v5 = vsub.f32 %v3592_v19, %v3625_v63 }
0x1e63   : > { %v3641_v36 = vmul.f32 %v7126_v5, %v7126_v5 }
0x1e65   : > { %v3649_v8 = vsel %vm255_vm0, %v3641_v36, 0.0 }
0x1e66   : > { %v3606_v38 = vpop.xlane.xlu0 %3605  ;;  %3650 = vadd.xlane.f32.xlu2 %v3649_v8 }
0x1e67   : > { %v3626_v34 = vmul.f32 %v3606_v38, %v6170_v27  ;;  %v3600_v38 = vld [vmem:[#allocation5 + $0x2f8] sm:$0x3] }
0x1e69   : > { %v7132_v12 = vsub.f32 %v3593_v39, %v3626_v34 }
0x1e6b   : > { %v3642_v53 = vmul.f32 %v7132_v12, %v7132_v12 }
0x1e6d   : > { %v3652_v35 = vsel %vm255_vm0, %v3642_v53, 0.0 }
0x1e6e   : > { %3653 = vadd.xlane.f32.xlu1 %v3652_v35  ;;  %3623 = vadd.xlane.f32.xlu2 %v3622_v6  ;;  %v3609_v59 = vpop.xlane.xlu1 %3608  ;;  %v7186_v6 = vperm.slane %v3600_v38, 0 }
0x1e6f   : > { %v3627_v47 = vmul.f32 %v3609_v59, %v6170_v27 }
0x1e71   : > { %v7140_v20 = vsub.f32 %v3594_v4, %v3627_v47 }
0x1e73   : > { %v3643_v45 = vmul.f32 %v7140_v20, %v7140_v20 }
0x1e75   : > { %v3655_v50 = vsel %vm255_vm0, %v3643_v45, 0.0 }
0x1e76   : > { %3656 = vadd.xlane.f32.xlu0 %v3655_v50 }
0x1e86   : > { %5529 = vrot.lane.b32.xlu2 %v6931_v46, %s5962_s7 }
0x1e8a   : > { %5534 = vrot.lane.b32.xlu0 %v6933_v41, %s5962_s7 }
0x1e92   : > { %3849 = vrot.lane.b32.xlu0 %v7149_v3, %s5962_s7 }
0x1e9d   : > { %v3612_v19 = vpop.xlane.xlu2 %3611 }
0x1e9e   : > { %v3628_v33 = vmul.f32 %v3612_v19, %v6170_v27  ;;  %v7189_v19 = vperm.slane %v3600_v38, 1 }
0x1ea0   : > { %v7154_v48 = vsub.f32 %v3595_v42, %v3628_v33 }
0x1ea2   : > { %v3644_v11 = vmul.f32 %v7154_v48, %v7154_v48 }
0x1ea4   : > { %v3658_v17 = vsel %vm255_vm0, %v3644_v11, 0.0 }
0x1ea5   : > { %v3615_v44 = vpop.xlane.xlu0 %3614  ;;  %3659 = vadd.xlane.f32.xlu1 %v3658_v17 }
0x1ea6   : > { %v3629_v39 = vmul.f32 %v3615_v44, %v6170_v27 }
0x1ea8   : > { %v7160_v52 = vsub.f32 %v3596_v0, %v3629_v39 }
0x1eaa   : > { %v3645_v54 = vmul.f32 %v7160_v52, %v7160_v52 }
0x1eac   : > { %v3661_v30 = vsel %vm255_vm0, %v3645_v54, 0.0 }
0x1ead   : > { %3662 = vadd.xlane.f32.xlu1 %v3661_v30  ;;  %v3618_v24 = vpop.xlane.xlu1 %3617 }
0x1eae   : > { %v3630_v2 = vmul.f32 %v3618_v24, %v6170_v27 }
0x1eb0   : > { %v7166_v4 = vsub.f32 %v3597_v60, %v3630_v2 }
0x1eb2   : > { %v3646_v7 = vmul.f32 %v7166_v4, %v7166_v4 }
0x1eb4   : > { %v3664_v57 = vsel %vm255_vm0, %v3646_v7, 0.0 }
0x1eb5   : > { %v3621_v15 = vpop.xlane.xlu0 %3620  ;;  %3665 = vadd.xlane.f32.xlu1 %v3664_v57  ;;  %v5851_v57 = vld [vmem:[#allocation5] sm:$0xff] }
0x1eb6   : > { %v3631_v32 = vmul.f32 %v3621_v15, %v6170_v27 }
0x1eb8   : > { %v7172_v61 = vsub.f32 %v3598_v56, %v3631_v32 }
0x1eba   : > { %v3647_v42 = vmul.f32 %v7172_v61, %v7172_v61 }
0x1ebc   : > { %v3667_v25 = vsel %vm255_vm0, %v3647_v42, 0.0 }
0x1ebd   : > { %3668 = vadd.xlane.f32.xlu1 %v3667_v25 }
0x1ed9   : > { %v3651_v16 = vpop.xlane.xlu2 %3650 }
0x1eda   : > { %v3673_v26 = vmul.f32 %v3651_v16, %v6170_v27  ;;  %v5852_v16 = vld [vmem:[#allocation5 + $0x8] sm:$0xff] }
0x1edc   : > { %v3681_v40 = vadd.f32 1e-05, %v3673_v26 }
0x1ede   : > { %5778 = vrsqrt.f32 %v3681_v40  ;;  %vm3695_vm4 = vweird.f32 %v3681_v40 }
0x1ee1   : > { %v3624_v23 = vpop.xlane.xlu2 %3623  ;;  %v3654_v0 = vpop.xlane.xlu1 %3653 }
0x1ee2   : > { %v3632_v22 = vmul.f32 %v3624_v23, %v6170_v27  ;;  %v3674_v14 = vmul.f32 %v3654_v0, %v6170_v27  ;;  %v5853_v23 = vld [vmem:[#allocation5 + $0x10] sm:$0xff] }
0x1ee4   : > { %v5779_v13 = vpop.eup %5778  ;;  %v7180_v37 = vsub.f32 %v3599_v18, %v3632_v22  ;;  %v3682_v49 = vadd.f32 1e-05, %v3674_v14 }
0x1ee5   : > { %v3690_v60 = vmul.f32 %v5779_v13, %v3681_v40  ;;  %vm3696_vm3 = vweird.f32 %v5779_v13 }
0x1ee6   : > { %5780 = vrsqrt.f32 %v3682_v49  ;;  %v3648_v21 = vmul.f32 %v7180_v37, %v7180_v37  ;;  %vm3697_vm10 = vmor %vm3695_vm4, %vm3696_vm3  ;;  %vm3705_vm14 = vweird.f32 %v3682_v49 }
0x1ee7   : > { %v3691_v31 = vmul.f32 %v5779_v13, %v3690_v60 }
0x1ee8   : > { %v3670_v55 = vsel %vm255_vm0, %v3648_v21, 0.0 }
0x1ee9   : > { %v3692_v28 = vmul.f32 0.5, %v3691_v31  ;;  %3671 = vadd.xlane.f32.xlu2 %v3670_v55  ;;  %v3657_v58 = vpop.xlane.xlu0 %3656  ;;  %v5530_v56 = vpop.permute.xlu2 %5529 }
0x1eea   : > { %v3675_v9 = vmul.f32 %v3657_v58, %v6170_v27  ;;  %v5532_v51 = vunpack.i.h.bf16 %v5530_v56  ;;  %v5531_v10 = vunpack.i.l.bf16 %v5530_v56 }
0x1eeb   : > { %v3693_v63 = vsub.f32 1.5, %v3692_v28 }
0x1eec   : > { %v5781_v1 = vpop.eup %5780  ;;  %v3683_v62 = vadd.f32 1e-05, %v3675_v9  ;;  %3888 = vmatpush.msra.mxu2 %v5531_v10 }
0x1eed   : > { %v3694_v36 = vmul.f32 %v5779_v13, %v3693_v63  ;;  %v3700_v43 = vmul.f32 %v5781_v1, %v3682_v49  ;;  %vm3706_vm13 = vweird.f32 %v5781_v1 }
0x1eee   : > { %5782 = vrsqrt.f32 %v3683_v62  ;;  %3889 = vmatpush.msra.mxu2 %v5532_v51  ;;  %vm3707_vm15 = vmor %vm3705_vm14, %vm3706_vm13  ;;  %vm3715_vm7 = vweird.f32 %v3683_v62 }
0x1eef   : > { %v3701_v8 = vmul.f32 %v5781_v1, %v3700_v43  ;;  %v3698_v34 = vsel %vm3697_vm10, %v5779_v13, %v3694_v36 }
0x1ef0   : > { %v3769_v59 = vmul.f32 %v3698_v34, %v7126_v5 }
0x1ef1   : > { %v3702_v18 = vmul.f32 0.5, %v3701_v8 }
0x1ef2   : > { %v3778_v33 = vmul.f32 %v7186_v6, %v3769_v59 }
0x1ef3   : > { %v3703_v53 = vsub.f32 1.5, %v3702_v18 }
0x1ef4   : > { %v5783_v35 = vpop.eup %5782  ;;  %v7193_v39 = vadd.f32 %v7189_v19, %v3778_v33  ;;  %v5854_v33 = vld [vmem:[#allocation5 + $0x18] sm:$0xff] }
0x1ef5   : > { %v3704_v47 = vmul.f32 %v5781_v1, %v3703_v53  ;;  %v3710_v45 = vmul.f32 %v5783_v35, %v3683_v62  ;;  %vm3716_vm6 = vweird.f32 %v5783_v35 }
0x1ef6   : > { %vm3717_vm9 = vmor %vm3715_vm7, %vm3716_vm6  ;;  %v3795_v15 = vadd.f32 %v5851_v57, %v7193_v39 }
0x1ef7   : > { %v3711_v50 = vmul.f32 %v5783_v35, %v3710_v45  ;;  %v3708_v11 = vsel %vm3707_vm15, %v5781_v1, %v3704_v47 }
0x1ef8   : > { %v3770_v54 = vmul.f32 %v3708_v11, %v7132_v12 }
0x1ef9   : > { %v3712_v17 = vmul.f32 0.5, %v3711_v50 }
0x1efa   : > { %v3779_v7 = vmul.f32 %v7186_v6, %v3770_v54 }
0x1efb   : > { %v3713_v44 = vsub.f32 1.5, %v3712_v17 }
0x1efc   : > { %v5535_v30 = vpop.permute.xlu0 %5534  ;;  %v7200_v42 = vadd.f32 %v7189_v19, %v3779_v7 }
0x1efd   : > { %v3714_v5 = vmul.f32 %v5783_v35, %v3713_v44  ;;  %v5537_v24 = vunpack.i.h.bf16 %v5535_v30  ;;  %v5536_v2 = vunpack.i.l.bf16 %v5535_v30 }
0x1efe   : > { %v3796_v26 = vadd.f32 %v5852_v16, %v7200_v42 }
0x1eff   : > { %3890 = vmatpush.msra.mxu2 %v5536_v2  ;;  %v3718_v32 = vsel %vm3717_vm9, %v5783_v35, %v3714_v5 }
0x1f00   : > { %v3771_v12 = vmul.f32 %v3718_v32, %v7140_v20 }
0x1f01   : > { %3891 = vmatpush.msra.mxu2 %v5537_v24 }
0x1f02   : > { %5250 = vmatmul.msk.f32.vlgmr.msra.gmra.mxu2 %vm255_vm0, %v3795_v15  ;;  %v3780_v25 = vmul.f32 %v7186_v6, %v3771_v12  ;;  %v5855_v15 = vld [vmem:[#allocation5 + $0x20] sm:$0xff] }
0x1f04   : > { %v7207_v40 = vadd.f32 %v7189_v19, %v3780_v25 }
0x1f06   : > { %v3797_v0 = vadd.f32 %v5853_v23, %v7207_v40 }
0x1f0a   : > { %5251 = vmatmul.msk.f32.gmra.mxu2 %vm255_vm0, %v3796_v26 }
0x1f12   : > { %5252 = vmatmul.msk.f32.gmra.mxu2 %vm255_vm0, %v3797_v0 }
0x1f18   : > { %v3660_v22 = vpop.xlane.xlu1 %3659 }
0x1f19   : > { %v3676_v14 = vmul.f32 %v3660_v22, %v6170_v27 }
0x1f1b   : > { %v3684_v13 = vadd.f32 1e-05, %v3676_v14  ;;  %v5856_v14 = vld [vmem:[#allocation5 + $0x28] sm:$0xff] }
0x1f1d   : > { %5784 = vrsqrt.f32 %v3684_v13  ;;  %vm3725_vm3 = vweird.f32 %v3684_v13 }
0x1f20   : > { %v3663_v20 = vpop.xlane.xlu1 %3662 }
0x1f21   : > { %v3677_v49 = vmul.f32 %v3663_v20, %v6170_v27 }
0x1f23   : > { %v5785_v60 = vpop.eup %5784  ;;  %v3685_v21 = vadd.f32 1e-05, %v3677_v49 }
0x1f24   : > { %v3720_v31 = vmul.f32 %v5785_v60, %v3684_v13  ;;  %vm3726_vm2 = vweird.f32 %v5785_v60 }
0x1f25   : > { %5786 = vrsqrt.f32 %v3685_v21  ;;  %vm3727_vm4 = vmor %vm3725_vm3, %vm3726_vm2  ;;  %vm3735_vm13 = vweird.f32 %v3685_v21 }
0x1f26   : > { %v3721_v55 = vmul.f32 %v5785_v60, %v3720_v31 }
0x1f28   : > { %v3722_v28 = vmul.f32 0.5, %v3721_v55  ;;  %v3666_v58 = vpop.xlane.xlu1 %3665 }
0x1f29   : > { %v3678_v56 = vmul.f32 %v3666_v58, %v6170_v27 }
0x1f2a   : > { %v3723_v9 = vsub.f32 1.5, %v3722_v28 }
0x1f2b   : > { %v5787_v51 = vpop.eup %5786  ;;  %v3686_v10 = vadd.f32 1e-05, %v3678_v56 }
0x1f2c   : > { %v3724_v63 = vmul.f32 %v5785_v60, %v3723_v9  ;;  %v3730_v1 = vmul.f32 %v5787_v51, %v3685_v21  ;;  %vm3736_vm10 = vweird.f32 %v5787_v51  ;;  %v5857_v21 = vld [vmem:[#allocation5 + $0x30] sm:$0xff] }
0x1f2d   : > { %5788 = vrsqrt.f32 %v3686_v10  ;;  %vm3737_vm14 = vmor %vm3735_vm13, %vm3736_vm10  ;;  %vm3745_vm6 = vweird.f32 %v3686_v10 }
0x1f2e   : > { %v3728_v62 = vsel %vm3727_vm4, %v5785_v60, %v3724_v63  ;;  %v3731_v36 = vmul.f32 %v5787_v51, %v3730_v1 }
0x1f2f   : > { %v3772_v43 = vmul.f32 %v3728_v62, %v7154_v48 }
0x1f30   : > { %v3732_v8 = vmul.f32 0.5, %v3731_v36  ;;  %v3669_v38 = vpop.xlane.xlu1 %3668 }
0x1f31   : > { %v3781_v34 = vmul.f32 %v7186_v6, %v3772_v43  ;;  %v3679_v18 = vmul.f32 %v3669_v38, %v6170_v27 }
0x1f32   : > { %v3733_v53 = vsub.f32 1.5, %v3732_v8  ;;  %v5858_v8 = vld [vmem:[#allocation5 + $0x38] sm:$0xff] }
0x1f33   : > { %v5789_v35 = vpop.eup %5788  ;;  %v7218_v59 = vadd.f32 %v7189_v19, %v3781_v34  ;;  %v3687_v47 = vadd.f32 1e-05, %v3679_v18  ;;  %v3829_v34 = vpop.f32.mrf.mxu2 }
0x1f34   : > { %v3734_v45 = vmul.f32 %v5787_v51, %v3733_v53  ;;  %v3740_v50 = vmul.f32 %v5789_v35, %v3686_v10  ;;  %vm3746_vm15 = vweird.f32 %v5789_v35 }
0x1f35   : > { %5790 = vrsqrt.f32 %v3687_v47  ;;  %v3798_v48 = vadd.f32 %v5854_v33, %v7218_v59  ;;  %vm3747_vm7 = vmor %vm3745_vm6, %vm3746_vm15  ;;  %vm3755_vm2 = vweird.f32 %v3687_v47  ;;  %vm4427_vm15 = vcmask 1048064  }
0x1f36   : > { %v3738_v11 = vsel %vm3737_vm14, %v5787_v51, %v3734_v45  ;;  %v3741_v17 = vmul.f32 %v5789_v35, %v3740_v50 }
0x1f37   : > { %v3773_v44 = vmul.f32 %v3738_v11, %v7160_v52  ;;  %5253 = vmatmul.msk.f32.gmra.mxu2 %vm255_vm0, %v3798_v48 }
0x1f38   : > { %v3742_v54 = vmul.f32 0.5, %v3741_v17 }
0x1f39   : > { %v3782_v30 = vmul.f32 %v7186_v6, %v3773_v44 }
0x1f3a   : > { %v3743_v5 = vsub.f32 1.5, %v3742_v54  ;;  %v3830_v54 = vadd.f32 %v7149_v3, %v3829_v34 }
0x1f3b   : > { %v5791_v24 = vpop.eup %5790  ;;  %v7225_v2 = vadd.f32 %v7189_v19, %v3782_v30 }
0x1f3c   : > { %v3744_v7 = vmul.f32 %v5789_v35, %v3743_v5  ;;  %v3750_v57 = vmul.f32 %v5791_v24, %v3687_v47  ;;  %vm3756_vm9 = vweird.f32 %v5791_v24 }
0x1f3d   : > { %v3799_v32 = vadd.f32 %v5855_v15, %v7225_v2  ;;  %vm3757_vm3 = vmor %vm3755_vm2, %vm3756_vm9 }
0x1f3e   : > { %v3748_v12 = vsel %vm3747_vm7, %v5789_v35, %v3744_v7  ;;  %v3751_v52 = vmul.f32 %v5791_v24, %v3750_v57  ;;  %v3850_v35 = vpop.permute.xlu0 %3849 }
0x1f3f   : > { %v3774_v25 = vmul.f32 %v3748_v12, %v7166_v4  ;;  %5254 = vmatmul.msk.f32.gmra.mxu2 %vm255_vm0, %v3799_v32 }
0x1f40   : > { %v3752_v16 = vmul.f32 0.5, %v3751_v52 }
0x1f41   : > { %v3783_v26 = vmul.f32 %v7186_v6, %v3774_v25 }
0x1f42   : > { %v3753_v23 = vsub.f32 1.5, %v3752_v16 }
0x1f43   : > { %v7232_v0 = vadd.f32 %v7189_v19, %v3783_v26 }
0x1f44   : > { %v3754_v22 = vmul.f32 %v5791_v24, %v3753_v23 }
0x1f45   : > { %v3800_v13 = vadd.f32 %v5856_v14, %v7232_v0 }
0x1f46   : > { %v3758_v20 = vsel %vm3757_vm3, %v5791_v24, %v3754_v22  ;;  %v4279_v22 = vld [vmem:[#allocation5 + $0x3b8] sm:$0xff] }
0x1f47   : > { %v3775_v49 = vmul.f32 %v3758_v20, %v7172_v61  ;;  %5255 = vmatmul.msk.f32.gmra.mxu2 %vm255_vm0, %v3800_v13  ;;  %v4278_v13 = vld [vmem:[#allocation5 + $0x3b0] sm:$0xff] }
0x1f49   : > { %v3784_v4 = vmul.f32 %v7186_v6, %v3775_v49  ;;  %v4277_v49 = vld [vmem:[#allocation5 + $0x3a8] sm:$0xff] }
0x1f4b   : > { %v7239_v60 = vadd.f32 %v7189_v19, %v3784_v4  ;;  %v4276_v4 = vld [vmem:[#allocation5 + $0x3a0] sm:$0xff] }
0x1f4d   : > { %v3801_v31 = vadd.f32 %v5857_v21, %v7239_v60 }
0x1f4f   : > { %5256 = vmatmul.msk.f32.gmra.mxu2 %vm255_vm0, %v3801_v31 }
0x1f5c   : > { %v3672_v55 = vpop.xlane.xlu2 %3671 }
0x1f5d   : > { %v3680_v28 = vmul.f32 %v3672_v55, %v6170_v27 }
0x1f5f   : > { %v3688_v58 = vadd.f32 1e-05, %v3680_v28 }
0x1f61   : > { %5792 = vrsqrt.f32 %v3688_v58  ;;  %vm3765_vm10 = vweird.f32 %v3688_v58 }
0x1f67   : > { %v5793_v56 = vpop.eup %5792 }
0x1f68   : > { %v3760_v9 = vmul.f32 %v5793_v56, %v3688_v58  ;;  %vm3766_vm4 = vweird.f32 %v5793_v56 }
0x1f69   : > { %vm3767_vm13 = vmor %vm3765_vm10, %vm3766_vm4 }
0x1f6a   : > { %v3761_v61 = vmul.f32 %v5793_v56, %v3760_v9 }
0x1f6c   : > { %v3762_v51 = vmul.f32 0.5, %v3761_v61 }
0x1f6e   : > { %v3763_v10 = vsub.f32 1.5, %v3762_v51 }
0x1f70   : > { %v3764_v63 = vmul.f32 %v5793_v56, %v3763_v10 }
0x1f72   : > { %v3768_v1 = vsel %vm3767_vm13, %v5793_v56, %v3764_v63 }
0x1f73   : > { %v3776_v62 = vmul.f32 %v3768_v1, %v7180_v37 }
0x1f75   : > { %v3785_v36 = vmul.f32 %v7186_v6, %v3776_v62 }
0x1f77   : > { %v7247_v43 = vadd.f32 %v7189_v19, %v3785_v36 }
0x1f79   : > { %v3802_v38 = vadd.f32 %v5858_v8, %v7247_v43 }
0x1f7b   : > { %5257 = vmatmul.msk.f32.gmra.mxu2 %vm255_vm0, %v3802_v38 }
0x1f85   : > { %v3893_v18 = vpop.f32.mrf.mxu2 }
0x1f86   : > { %v3894_v24 = vadd.f32 %v3893_v18, %v3850_v35 }
0x1f8d   : > { %v3896_v53 = vpop.f32.mrf.mxu2 }
0x1f8e   : > { %v3897_v44 = vadd.f32 %v3896_v53, %v3850_v35 }
0x1f95   : > { %v3899_v47 = vpop.f32.mrf.mxu2 }
0x1f96   : > { %v3900_v45 = vadd.f32 %v3899_v47, %v3850_v35 }
0x1f98   : > { %4084 = vrot.lane.b32.xlu2 %v3900_v45, %s5968_s12 }
0x1fba   : > { %v3902_v50 = vpop.f32.mrf.mxu2 }
0x1fbb   : > { %v3903_v17 = vadd.f32 %v3902_v50, %v3850_v35 }
0x1fc2   : > { %v3905_v37 = vpop.f32.mrf.mxu2 }
0x1fc3   : > { %v3906_v11 = vadd.f32 %v3905_v37, %v3850_v35 }
0x1fca   : > { %v3908_v33 = vpop.f32.mrf.mxu2 }
0x1fcb   : > { %v3909_v19 = vadd.f32 %v3908_v33, %v3850_v35 }
0x1fd2   : > { %v3911_v6 = vpop.f32.mrf.mxu2 }
0x1fd3   : > { %v3912_v48 = vadd.f32 %v3911_v6, %v3850_v35 }
0x1fd5   : > { %4092 = vrot.lane.b32.xlu0 %v3912_v48, %s5968_s12 }
0x1fdd   : > { %4090 = vrot.lane.b32.xlu0 %v3909_v19, %s5968_s12 }
0x1fe5   : > { %4088 = vrot.lane.b32.xlu0 %v3906_v11, %s5968_s12 }
0x1fed   : > { %4086 = vrot.lane.b32.xlu0 %v3903_v17, %s5968_s12 }
0x1ff2   : > { %v4085_v26 = vpop.permute.xlu2 %4084 }
0x1ff5   : > { %4082 = vrot.lane.b32.xlu0 %v3897_v44, %s5968_s12 }
0x1ffd   : > { %4078 = vrot.lane.b32.xlu0 %v3830_v54, %s5968_s12 }
0x1ffe   : > { %v3914_v30 = vpop.f32.mrf.mxu2 }
0x1fff   : > { %v3915_v5 = vadd.f32 %v3914_v30, %v3850_v35 }
0x2001   : > { %4094 = vrot.lane.b32.xlu1 %v3915_v5, %s5968_s12  ;;  %5266 = vmatpush.xpose.msk.msra.mxu1 %vm703_vm8, %v3915_v5 }
0x2005   : > { %5267 = vmatpush.xpose.msk.msra.mxu1 %vm703_vm8, %v3912_v48  ;;  %3929 = vrot.lane.b32.xlu0 %v7149_v3, %s5963_s8 }
0x2009   : > { %5539 = vrot.lane.b32.xlu1 %v6931_v46, %s5963_s8  ;;  %5268 = vmatpush.xpose.msk.msra.mxu1 %vm703_vm8, %v3909_v19 }
0x200d   : > { %5269 = vmatpush.xpose.msk.msra.mxu1 %vm703_vm8, %v3906_v11 }
0x2011   : > { %5544 = vrot.lane.b32.xlu1 %v6933_v41, %s5963_s8  ;;  %5270 = vmatpush.xpose.msk.msra.mxu1 %vm703_vm8, %v3903_v17 }
0x2015   : > { %5271 = vmatpush.xpose.msk.msra.mxu1 %vm703_vm8, %v3900_v45 }
0x2019   : > { %4080 = vrot.lane.b32.xlu1 %v3894_v24, %s5968_s12  ;;  %5272 = vmatpush.xpose.msk.msra.mxu1 %vm703_vm8, %v3897_v44 }
0x201d   : > { %5273 = vmatpush.xpose.msk.msra.mxu1 %vm703_vm8, %v3894_v24 }
0x2020   : > { %5274 = vmatmul.msk.f32.vlgmr.msra.gmra.mxu1 %vm703_vm8, %v3830_v54 }
0x2047   : > { %v4093_v46 = vpop.permute.xlu0 %4092 }
0x204f   : > { %v4091_v3 = vpop.permute.xlu0 %4090 }
0x2057   : > { %v4089_v57 = vpop.permute.xlu0 %4088 }
0x205f   : > { %v4087_v12 = vpop.permute.xlu0 %4086 }
0x2067   : > { %v4083_v23 = vpop.permute.xlu0 %4082 }
0x206f   : > { %v4079_v20 = vpop.permute.xlu0 %4078 }
0x2073   : > { %v4095_v7 = vpop.permute.xlu1 %4094 }
0x2074   : > { %5276 = vmatpush.xpose.msk.msrb.mxu2 %vm703_vm8, %v4095_v7 }
0x2077   : > { %v3930_v28 = vpop.permute.xlu0 %3929 }
0x2078   : > { %5277 = vmatpush.xpose.msk.msrb.mxu2 %vm703_vm8, %v4093_v46 }
0x207b   : > { %v5540_v41 = vpop.permute.xlu1 %5539 }
0x207c   : > { %v5542_v15 = vunpack.i.h.bf16 %v5540_v41  ;;  %v5541_v32 = vunpack.i.l.bf16 %v5540_v41  ;;  %5278 = vmatpush.xpose.msk.msrb.mxu2 %vm703_vm8, %v4091_v3 }
0x207e   : > { %3968 = vmatpush.msra.mxu3 %v5541_v32 }
0x2080   : > { %5279 = vmatpush.xpose.msk.msrb.mxu2 %vm703_vm8, %v4089_v57  ;;  %3969 = vmatpush.msra.mxu3 %v5542_v15 }
0x2083   : > { %v5545_v52 = vpop.permute.xlu1 %5544 }
0x2084   : > { %v5547_v25 = vunpack.i.h.bf16 %v5545_v52  ;;  %v5546_v16 = vunpack.i.l.bf16 %v5545_v52  ;;  %5280 = vmatpush.xpose.msk.msrb.mxu2 %vm703_vm8, %v4087_v12 }
0x2086   : > { %3970 = vmatpush.msra.mxu3 %v5546_v16 }
0x2088   : > { %3971 = vmatpush.msra.mxu3 %v5547_v25  ;;  %5281 = vmatpush.xpose.msk.msrb.mxu2 %vm703_vm8, %v4085_v26 }
0x2089   : > { %5258 = vmatmul.msk.f32.vlgmr.msra.gmra.mxu3 %vm255_vm0, %v7193_v39 }
0x208a   : > { %5291 = vmatpush.xpose.msk.msrb.mxu3 %vm255_vm0, %v7247_v43 }
0x208b   : > { %v4081_v14 = vpop.permute.xlu1 %4080 }
0x208c   : > { %5282 = vmatpush.xpose.msk.msrb.mxu2 %vm703_vm8, %v4083_v23 }
0x208e   : > { %5292 = vmatpush.xpose.msk.msrb.mxu3 %vm255_vm0, %v7239_v60 }
0x2090   : > { %5283 = vmatpush.xpose.msk.msrb.mxu2 %vm703_vm8, %v4081_v14 }
0x2091   : > { %5259 = vmatmul.msk.f32.gmra.mxu3 %vm255_vm0, %v7200_v42 }
0x2092   : > { %5293 = vmatpush.xpose.msk.msrb.mxu3 %vm255_vm0, %v7232_v0 }
0x2093   : > { %5284 = vmatmul.msk.f32.vlgmr.msrb.gmra.mxu2 %vm703_vm8, %v4079_v20  ;;  %v4308_v20 = vld [vmem:[#allocation5 + $0x3d8] sm:$0xff] }
0x2094   : > { %4297 = vmatpush.msra.mxu2 %v4279_v22 }
0x2096   : > { %4298 = vmatpush.msra.mxu2 %v4278_v13  ;;  %5294 = vmatpush.xpose.msk.msrb.mxu3 %vm255_vm0, %v7225_v2  ;;  %v4309_v13 = vld [vmem:[#allocation5 + $0x3e0] sm:$0xff] }
0x2098   : > { %4299 = vmatpush.msra.mxu2 %v4277_v49  ;;  %v4307_v49 = vld [vmem:[#allocation5 + $0x3d0] sm:$0xff] }
0x2099   : > { %5260 = vmatmul.msk.f32.gmra.mxu3 %vm255_vm0, %v7207_v40 }
0x209a   : > { %4300 = vmatpush.msra.mxu2 %v4276_v4  ;;  %5295 = vmatpush.xpose.msk.msrb.mxu3 %vm255_vm0, %v7218_v59  ;;  %v4306_v4 = vld [vmem:[#allocation5 + $0x3c8] sm:$0xff] }
0x209c   : > { %5300 = vmatpush.xpose.msk.msrb.mxu2 %vm255_vm0, %v7247_v43 }
0x209d   : > { %v4041_v21 = vpop.f32.mrf.mxu1 }
0x209e   : > { %5296 = vmatpush.xpose.msk.msrb.mxu3 %vm255_vm0, %v7207_v40  ;;  %v4044_v31 = vsel %vm751_vm11, %v4041_v21, -inf }
0x209f   : > { %4045 = vmax.xlane.f32.xlu2 %v4044_v31 }
0x20a0   : > { %5301 = vmatpush.xpose.msk.msrb.mxu2 %vm255_vm0, %v7239_v60 }
0x20a1   : > { %5261 = vmatmul.msk.f32.gmra.mxu3 %vm255_vm0, %v7218_v59 }
0x20a2   : > { %5297 = vmatpush.xpose.msk.msrb.mxu3 %vm255_vm0, %v7200_v42 }
0x20a4   : > { %5302 = vmatpush.xpose.msk.msrb.mxu2 %vm255_vm0, %v7232_v0 }
0x20a6   : > { %5298 = vmatpush.xpose.msk.msrb.mxu3 %vm255_vm0, %v7193_v39 }
0x20a8   : > { %5303 = vmatpush.xpose.msk.msrb.mxu2 %vm255_vm0, %v7225_v2 }
0x20a9   : > { %5262 = vmatmul.msk.f32.gmra.mxu3 %vm255_vm0, %v7225_v2 }
0x20ac   : > { %5304 = vmatpush.xpose.msk.msrb.mxu2 %vm255_vm0, %v7218_v59 }
0x20b0   : > { %5305 = vmatpush.xpose.msk.msrb.mxu2 %vm255_vm0, %v7207_v40 }
0x20b1   : > { %5263 = vmatmul.msk.f32.gmra.mxu3 %vm255_vm0, %v7232_v0 }
0x20b4   : > { %5306 = vmatpush.xpose.msk.msrb.mxu2 %vm255_vm0, %v7200_v42 }
0x20b8   : > { %5307 = vmatpush.xpose.msk.msrb.mxu2 %vm255_vm0, %v7193_v39 }
0x20b9   : > { %5264 = vmatmul.msk.f32.gmra.mxu3 %vm255_vm0, %v7239_v60 }
0x20c1   : > { %5265 = vmatmul.msk.f32.gmra.mxu3 %vm255_vm0, %v7247_v43 }
0x210c   : > { %v3973_v55 = vpop.f32.mrf.mxu3 }
0x210d   : > { %v3974_v56 = vadd.f32 %v3973_v55, %v3930_v28 }
0x2112   : > { %v4046_v45 = vpop.xlane.xlu2 %4045 }
0x2113   : > { %v4047_v37 = vsub.f32 %v4041_v21, %v4046_v45 }
0x2114   : > { %v3976_v58 = vpop.f32.mrf.mxu3 }
0x2115   : > { %v3977_v9 = vadd.f32 %v3976_v58, %v3930_v28  ;;  %v4048_v48 = vmul.f32 1.442695, %v4047_v37  ;;  %v3808_v58 = vld [vmem:[#allocation5 + $0x328] sm:$0xff] }
0x2116   : > { %v4131_v61 = vpop.f32.mrf.mxu2 }
0x2117   : > { %v5563_v51 = vpack.i.bf16 %v3974_v56, %v3977_v9  ;;  %v4134_v10 = vsel %vm751_vm11, %v4131_v61, -inf  ;;  %5794 = vpow2.f32 %v4048_v48 }
0x2118   : > { %4135 = vmax.xlane.f32.xlu1 %v4134_v10  ;;  %v4335_v10 = vld [vmem:[#allocation5 + $0x3f0] sm:$0xff] }
0x2119   : > { %5564 = vrot.lane.b32.xlu2 %v5563_v51, %s5968_s12  ;;  %v4336_v51 = vld [vmem:[#allocation5 + $0x3f8] sm:$0xff] }
0x211c   : > { %v3979_v63 = vpop.f32.mrf.mxu3 }
0x211d   : > { %v3980_v8 = vadd.f32 %v3979_v63, %v3930_v28  ;;  %v5795_v11 = vpop.eup %5794 }
0x211e   : > { %v4050_v17 = vsel %vm751_vm11, %v5795_v11, 0.0 }
0x2124   : > { %v3982_v1 = vpop.f32.mrf.mxu3 }
0x2125   : > { %v3983_v62 = vadd.f32 %v3982_v1, %v3930_v28 }
0x2127   : > { %v5558_v38 = vpack.i.bf16 %v3980_v8, %v3983_v62 }
0x212c   : > { %v3985_v36 = vpop.f32.mrf.mxu3 }
0x212d   : > { %v3986_v6 = vadd.f32 %v3985_v36, %v3930_v28 }
0x2131   : > { %5559 = vrot.lane.b32.xlu1 %v5558_v38, %s5968_s12 }
0x2134   : > { %v3988_v34 = vpop.f32.mrf.mxu3 }
0x2135   : > { %v3989_v33 = vadd.f32 %v3988_v34, %v3930_v28 }
0x2137   : > { %v5553_v19 = vpack.i.bf16 %v3986_v6, %v3989_v33 }
0x213c   : > { %v3991_v18 = vpop.f32.mrf.mxu3 }
0x213d   : > { %v3992_v35 = vadd.f32 %v3991_v18, %v3930_v28 }
0x2144   : > { %v3994_v53 = vpop.f32.mrf.mxu3 }
0x2145   : > { %v3995_v47 = vadd.f32 %v3994_v53, %v3930_v28  ;;  %v3809_v28 = vld [vmem:[#allocation5 + $0x330] sm:$0xff]  ;;  %v4370_v53 = vld [vmem:[#allocation5 + $0x368] sm:$0xff] }
0x2147   : > { %v5548_v50 = vpack.i.bf16 %v3992_v35, %v3995_v47  ;;  %4066 = vmatpush.msra.mxu0 %v3995_v47  ;;  %v5969_v47 = vmov 0  }
0x2148   : > { %5568 = vset.pattern.permute.xlu0 %v5969_v47  ;;  %5569 = vset.pattern.permute.xlu1 %v5969_v47 }
0x2149   : > { %5549 = vrot.lane.b32.xlu0 %v5548_v50, %s5968_s12  ;;  %4067 = vmatpush.msra.mxu0 %v3992_v35  ;;  %v4366_v35 = vld [vmem:[#allocation5 + $0x348] sm:$0xff] }
0x214a   : > { %5299 = vmatmul.msk.f32.vlgmr.msrb.gmra.mxu3 %vm255_vm0, %v4366_v35 }
0x214b   : > { %4068 = vmatpush.msra.mxu0 %v3989_v33  ;;  %v4249_v33 = vld [vmem:[#allocation5 + $0x340] sm:$0x3] }
0x214d   : > { %4069 = vmatpush.msra.mxu0 %v3986_v6 }
0x214f   : > { %4070 = vmatpush.msra.mxu0 %v3983_v62 }
0x2151   : > { %5554 = vrot.lane.b32.xlu0 %v5553_v19, %s5968_s12  ;;  %4071 = vmatpush.msra.mxu0 %v3980_v8 }
0x2153   : > { %4072 = vmatpush.msra.mxu0 %v3977_v9 }
0x2155   : > { %4073 = vmatpush.msra.mxu0 %v3974_v56  ;;  %v4338_v56 = vld [vmem:[#allocation5 + $0x408] sm:$0xff] }
0x2157   : > { %4218 = vmatpush.msrb.mxu0 %v3809_v28 }
0x215b   : > { %4051 = vadd.xlane.f32.xlu1 %v4050_v17 }
0x2173   : > { %v5565_v52 = vpop.permute.xlu2 %5564 }
0x2174   : > { %v5566_v16 = vunpack.i.l.bf16 %v5565_v52  ;;  %v5567_v26 = vunpack.i.h.bf16 %v5565_v52 }
0x218b   : > { %v4136_v44 = vpop.xlane.xlu1 %4135 }
0x218c   : > { %v4137_v54 = vsub.f32 %v4131_v61, %v4136_v44  ;;  %v4337_v61 = vld [vmem:[#allocation5 + $0x400] sm:$0xff] }
0x218e   : > { %v4138_v30 = vmul.f32 1.442695, %v4137_v54 }
0x2190   : > { %5796 = vpow2.f32 %v4138_v30 }
0x2196   : > { %v5797_v5 = vpop.eup %5796 }
0x2197   : > { %v4140_v24 = vsel %vm751_vm11, %v5797_v5, 0.0 }
0x2198   : > { %4141 = vadd.xlane.f32.xlu0 %v4140_v24 }
0x21a3   : > { %v5560_v15 = vpop.permute.xlu1 %5559 }
0x21a4   : > { %v5561_v12 = vunpack.i.l.bf16 %v5560_v15  ;;  %v5562_v25 = vunpack.i.h.bf16 %v5560_v15 }
0x21bb   : > { %v5550_v46 = vpop.permute.xlu0 %5549 }
0x21bc   : > { %v5551_v3 = vunpack.i.l.bf16 %v5550_v46  ;;  %v5552_v7 = vunpack.i.h.bf16 %v5550_v46  ;;  %v4546_v46 = vld [vmem:[#allocation5 + $0x370] sm:$0xff] }
0x21be   : > { %4188 = vmatpush.msrb.mxu1 %v5551_v3 }
0x21c0   : > { %4189 = vmatpush.msrb.mxu1 %v5552_v7 }
0x21c3   : > { %v5555_v57 = vpop.permute.xlu0 %5554 }
0x21c4   : > { %v5556_v41 = vunpack.i.l.bf16 %v5555_v57  ;;  %v5557_v32 = vunpack.i.h.bf16 %v5555_v57  ;;  %v4554_v57 = vld [vmem:[#allocation5 + $0x378] sm:$0xff] }
0x21c6   : > { %4190 = vmatpush.msrb.mxu1 %v5556_v41  ;;  %v4280_v41 = vld [vmem:[#allocation5 + $0x3c0] sm:$0x1] }
0x21c8   : > { %4191 = vmatpush.msrb.mxu1 %v5557_v32 }
0x21ca   : > { %4192 = vmatpush.msrb.mxu1 %v5561_v12 }
0x21cc   : > { %4193 = vmatpush.msrb.mxu1 %v5562_v25 }
0x21cd   : > { %v4396_v3 = vpop.f32.mrf.mxu3 }
0x21ce   : > { %v4052_v23 = vpop.xlane.xlu1 %4051  ;;  %4194 = vmatpush.msrb.mxu1 %v5566_v16  ;;  %v5970_v16 = vmov 8.0  }
0x21cf   : > { %5798 = vrcp.f32 %v4052_v23 }
0x21d0   : > { %4195 = vmatpush.msrb.mxu1 %v5567_v26 }
0x21d2   : > { %4326 = vmatpush.msra.mxu1 %v4309_v13 }
0x21d4   : > { %4327 = vmatpush.msra.mxu1 %v4308_v20 }
0x21d5   : > { %v5799_v22 = vpop.eup %5798 }
0x21d6   : > { %v4054_v14 = vmul.f32 %v5799_v22, %v5795_v11  ;;  %4328 = vmatpush.msra.mxu1 %v4307_v49  ;;  %v4274_v11 = vperm.slane %v4249_v33, 1 }
0x21d8   : > { %5275 = vmatmul.msk.f32.vlgmr.msra.gmra.mxu0 %vm763_vm12, %v4054_v14  ;;  %4329 = vmatpush.msra.mxu1 %v4306_v4  ;;  %v4368_v4 = vld [vmem:[#allocation5 + $0x358] sm:$0xff] }
0x21d9   : > { %4241 = vmatpush.msra.mxu0 %v3808_v58 }
0x220b   : > { %v4142_v21 = vpop.xlane.xlu0 %4141 }
0x220c   : > { %5800 = vrcp.f32 %v4142_v21 }
0x2212   : > { %v5801_v31 = vpop.eup %5800 }
0x2213   : > { %v4144_v55 = vmul.f32 %v5801_v31, %v5797_v5  ;;  %v4367_v5 = vld [vmem:[#allocation5 + $0x350] sm:$0xff] }
0x2215   : > { %5285 = vmatmul.msk.f32.vlgmr.msrb.gmra.mxu1 %vm763_vm12, %v4144_v55 }
0x2216   : > { %5309 = vmatpush.xpose.msk.msrb.mxu1 %vm255_vm0, %v7247_v43 }
0x221a   : > { %5310 = vmatpush.xpose.msk.msrb.mxu1 %vm255_vm0, %v7239_v60 }
0x221e   : > { %5311 = vmatpush.xpose.msk.msrb.mxu1 %vm255_vm0, %v7232_v0 }
0x2222   : > { %5312 = vmatpush.xpose.msk.msrb.mxu1 %vm255_vm0, %v7225_v2 }
0x2226   : > { %5313 = vmatpush.xpose.msk.msrb.mxu1 %vm255_vm0, %v7218_v59 }
0x222a   : > { %5314 = vmatpush.xpose.msk.msrb.mxu1 %vm255_vm0, %v7207_v40 }
0x222e   : > { %5315 = vmatpush.xpose.msk.msrb.mxu1 %vm255_vm0, %v7200_v42 }
0x2232   : > { %5316 = vmatpush.xpose.msk.msrb.mxu1 %vm255_vm0, %v7193_v39 }
0x2255   : > { %v4075_v63 = vpop.f32.mrf.mxu0 }
0x2292   : > { %v4197_v9 = vpop.f32.mrf.mxu1 }
0x2293   : > { %5286 = vmatmul.msk.f32.vlgmr.msrb.gmra.mxu0 %vm703_vm8, %v4197_v9 }
0x2294   : > { %4355 = vmatpush.msrb.mxu0 %v4338_v56 }
0x2296   : > { %4356 = vmatpush.msrb.mxu0 %v4337_v61 }
0x2298   : > { %4357 = vmatpush.msrb.mxu0 %v4336_v51  ;;  %v4645_v51 = vld [vmem:[#allocation5 + $0x398] sm:$0xff] }
0x229a   : > { %4358 = vmatpush.msrb.mxu0 %v4335_v10 }
0x229b   : > { %5287 = vmatmul.msk.f32.vlgmr.msra.gmra.mxu0 %vm703_vm8, %v4075_v63 }
0x229c   : > { %5318 = vmatpush.xpose.msk.msra.mxu0 %vm255_vm0, %v7247_v43 }
0x22a0   : > { %5319 = vmatpush.xpose.msk.msra.mxu0 %vm255_vm0, %v7239_v60  ;;  %v5587_v60 = vld [vmem:[#allocation5 + $0x338] ss:$0 sm:$0xff] }
0x22a4   : > { %5320 = vmatpush.xpose.msk.msra.mxu0 %vm255_vm0, %v7232_v0 }
0x22a8   : > { %5321 = vmatpush.xpose.msk.msra.mxu0 %vm255_vm0, %v7225_v2 }
0x22ac   : > { %5322 = vmatpush.xpose.msk.msra.mxu0 %vm255_vm0, %v7218_v59 }
0x22b0   : > { %5323 = vmatpush.xpose.msk.msra.mxu0 %vm255_vm0, %v7207_v40 }
0x22b4   : > { %5324 = vmatpush.xpose.msk.msra.mxu0 %vm255_vm0, %v7200_v42 }
0x22b8   : > { %5325 = vmatpush.xpose.msk.msra.mxu0 %vm255_vm0, %v7193_v39 }
0x2310   : > { %v4220_v43 = vpop.f32.mrf.mxu0 }
0x2318   : > { %v4243_v1 = vpop.f32.mrf.mxu0 }
0x2319   : > { %v4244_v62 = vadd.f32 %v4243_v1, %v4220_v43  ;;  %v4310_v43 = vld [vmem:[#allocation5 + $0x3e8] sm:$0x1] }
0x231b   : > { %v4247_v0 = vadd.f32 %v5587_v60, %v4244_v62 }
0x231d   : > { %v4248_v36 = vadd.f32 %v4247_v0, %v6888_v29 }
0x231f   : > { %v4250_v2 = vsel %vm463_vm5, %v4248_v36, 0.0 }
0x2320   : > { %4251 = vadd.xlane.f32.xlu0 %v4250_v2 }
0x2334   : > { %4373 = vperm.xlu0 %5568, %v4370_v53  }
0x233c   : > { %4549 = vperm.xlu0 %5568, %v4546_v46  }
0x2344   : > { %4557 = vperm.xlu0 %5568, %v4554_v57  }
0x234c   : > { %4653 = vperm.xlu0 %5568, %v4645_v51   ;;  %v7406_v51 = vld [vmem:[#allocation5 + $0x380] sm:$0xff] }
0x2393   : > { %v4252_v59 = vpop.xlane.xlu0 %4251 }
0x2394   : > { %v4253_v8 = vmul.f32 %v4252_v59, %v6170_v27 }
0x2396   : > { %v4254_v40 = vsub.f32 %v4248_v36, %v4253_v8 }
0x2398   : > { %v4255_v38 = vmul.f32 %v4254_v40, %v4254_v40 }
0x239a   : > { %v4256_v42 = vsel %vm463_vm5, %v4255_v38, 0.0  ;;  %v4369_v38 = vld [vmem:[#allocation5 + $0x360] sm:$0xff] }
0x239b   : > { %4257 = vadd.xlane.f32.xlu2 %v4256_v42 }
0x23a6   : > { %v7385_v24 = vpop.permute.xlu0 %4373 }
0x23a7   : > { %v4397_v7 = vadd.f32 %v4396_v3, %v7385_v24 }
0x23a9   : > { %4399 = vst.msk [vmem:[#allocation2] sm:$0xff] %vm763_vm12, %v4397_v7 }
0x23ae   : > { %v7400_v35 = vpop.permute.xlu0 %4549 }
0x240e   : > { %v4258_v34 = vpop.xlane.xlu2 %4257 }
0x240f   : > { %v4259_v39 = vmul.f32 %v4258_v34, %v6170_v27  ;;  %v4272_v27 = vperm.slane %v4249_v33, 0  ;;  %v7402_v33 = vpop.permute.xlu0 %4557 }
0x2411   : > { %v4260_v18 = vadd.f32 1e-05, %v4259_v39 }
0x2413   : > { %5802 = vrsqrt.f32 %v4260_v18  ;;  %vm4267_vm11 = vweird.f32 %v4260_v18 }
0x2414   : > { %5804 = vrcp.f32 %v5970_v16 }
0x2419   : > { %v5803_v29 = vpop.eup %5802 }
0x241a   : > { %v4262_v45 = vmul.f32 %v5803_v29, %v4260_v18  ;;  %vm4268_vm5 = vweird.f32 %v5803_v29  ;;  %v5805_v26 = vpop.eup %5804 }
0x241b   : > { %vm4269_vm14 = vmor %vm4267_vm11, %vm4268_vm5  ;;  %v4496_v22 = vmul.f32 8.0, %v5805_v26  ;;  %vm4500_vm6 = vweird.f32 %v5805_v26 }
0x241c   : > { %v4263_v50 = vmul.f32 %v5803_v29, %v4262_v45 }
0x241d   : > { %v4497_v14 = vsub.f32 1.0, %v4496_v22 }
0x241e   : > { %v4264_v37 = vmul.f32 0.5, %v4263_v50 }
0x241f   : > { %v4498_v49 = vmul.f32 %v5805_v26, %v4497_v14 }
0x2420   : > { %v4265_v6 = vsub.f32 1.5, %v4264_v37 }
0x2421   : > { %v4499_v55 = vadd.f32 %v5805_v26, %v4498_v49 }
0x2422   : > { %v4266_v48 = vmul.f32 %v5803_v29, %v4265_v6 }
0x2423   : > { %v7394_v56 = vsel %vm4500_vm6, %v5805_v26, %v4499_v55 }
0x2424   : > { %v4270_v19 = vsel %vm4269_vm14, %v5803_v29, %v4266_v48 }
0x2425   : > { %v4271_v17 = vmul.f32 %v4270_v19, %v4254_v40 }
0x2427   : > { %v4273_v44 = vmul.f32 %v4272_v27, %v4271_v17 }
0x2429   : > { %v4275_v54 = vadd.f32 %v4274_v11, %v4273_v44 }
0x242b   : > { %v4282_v30 = vrot.slane %v4275_v54, 1 }
0x242d   : > { %5288 = vmatmul.msk.f32.vlgmr.msra.gmra.mxu2 %vm255_vm0, %v4282_v30 }
0x2435   : > { %5308 = vmatmul.msk.f32.vlgmr.msrb.gmra.mxu2 %vm255_vm0, %v4367_v5 }
0x24b0   : > { %v4302_v15 = vpop.f32.mrf.mxu2 }
0x24b1   : > { %v4303_v32 = vadd.f32 %v4302_v15, %v4280_v41 }
0x24b3   : > { %v4305_v12 = vmax.f32 %v4303_v32, 0.0 }
0x24b5   : > { %5289 = vmatmul.msk.f32.vlgmr.msra.gmra.mxu1 %vm255_vm0, %v4305_v12 }
0x24b8   : > { %v4420_v52 = vpop.f32.mrf.mxu2 }
0x24b9   : > { %v4421_v25 = vadd.f32 %v4420_v52, %v7385_v24 }
0x24bb   : > { %4424 = vrot.lane.b32.xlu2 %v4421_v25, %s5965_s10 }
0x24bd   : > { %5317 = vmatmul.msk.f32.vlgmr.msrb.gmra.mxu1 %vm255_vm0, %v4368_v4 }
0x2515   : > { %v4425_v23 = vpop.permute.xlu2 %4424 }
0x2516   : > { %4428 = vst.msk [vmem:[#allocation2] sm:$0xff] %vm4427_vm15, %v4425_v23 }
0x251d   : > { %v4481_v13 = vld [vmem:[#allocation2] sm:$0xff] }
0x251e   : > { %v4483_v20 = vrot.slane %v4481_v13, 4 }
0x2520   : > { %v4484_v21 = vadd.f32 %v4483_v20, %v4481_v13 }
0x2522   : > { %v4485_v31 = vrot.slane %v4484_v21, 2 }
0x2524   : > { %v4486_v28 = vadd.f32 %v4485_v31, %v4484_v21 }
0x2526   : > { %v4487_v58 = vrot.slane %v4486_v28, 1 }
0x2528   : > { %v4488_v9 = vadd.f32 %v4487_v58, %v4486_v28 }
0x252a   : > { %v4502_v61 = vmul.f32 %v7394_v56, %v4488_v9 }
0x252c   : > { %v4504_v10 = vsub.f32 %v4481_v13, %v4502_v61 }
0x252e   : > { %v4506_v63 = vmul.f32 %v4504_v10, %v4504_v10 }
0x2530   : > { %v4508_v60 = vrot.slane %v4506_v63, 4 }
0x2532   : > { %v4331_v1 = vpop.f32.mrf.mxu1  ;;  %v4509_v62 = vadd.f32 %v4508_v60, %v4506_v63 }
0x2533   : > { %v4332_v0 = vadd.f32 %v4331_v1, %v4310_v43 }
0x2534   : > { %v4510_v36 = vrot.slane %v4509_v62, 2 }
0x2535   : > { %v4334_v2 = vmax.f32 %v4332_v0, 0.0  ;;  %v4644_v0 = vld [vmem:[#allocation5 + $0x390] sm:$0xff] }
0x2536   : > { %v4511_v59 = vadd.f32 %v4510_v36, %v4509_v62 }
0x2537   : > { %5290 = vmatmul.msk.f32.vlgmr.msrb.gmra.mxu0 %vm255_vm0, %v4334_v2  ;;  %v7420_v2 = vpop.permute.xlu0 %4653 }
0x2538   : > { %v4512_v8 = vrot.slane %v4511_v59, 1 }
0x253a   : > { %v4513_v40 = vadd.f32 %v4512_v8, %v4511_v59  ;;  %v4449_v63 = vpop.f32.mrf.mxu1 }
0x253b   : > { %v4450_v43 = vadd.f32 %v4449_v63, %v7385_v24 }
0x253c   : > { %v4520_v42 = vmul.f32 %v4513_v40, %v7394_v56 }
0x253d   : > { %4452 = vst.msk [vmem:[#allocation2 + $0x8] sm:$0xff] %vm763_vm12, %v4450_v43 }
0x253e   : > { %v4522_v34 = vadd.f32 1e-06, %v4520_v42 }
0x253f   : > { %5326 = vmatmul.msk.f32.vlgmr.msra.gmra.mxu0 %vm255_vm0, %v4369_v38 }
0x2540   : > { %5806 = vrsqrt.f32 %v4522_v34  ;;  %vm4530_vm7 = vweird.f32 %v4522_v34 }
0x2546   : > { %v5807_v39 = vpop.eup %5806 }
0x2547   : > { %v4525_v18 = vmul.f32 %v5807_v39, %v4522_v34  ;;  %vm4531_vm9 = vweird.f32 %v5807_v39 }
0x2548   : > { %vm4532_vm2 = vmor %vm4530_vm7, %vm4531_vm9 }
0x2549   : > { %v4526_v53 = vmul.f32 %v5807_v39, %v4525_v18 }
0x254b   : > { %v4527_v47 = vmul.f32 0.5, %v4526_v53 }
0x254d   : > { %v4528_v29 = vsub.f32 1.5, %v4527_v47 }
0x254f   : > { %v4529_v45 = vmul.f32 %v5807_v39, %v4528_v29 }
0x2551   : > { %v4533_v50 = vsel %vm4532_vm2, %v5807_v39, %v4529_v45 }
0x2552   : > { %v4544_v37 = vmul.f32 %v4533_v50, %v4504_v10  ;;  %v7410_v10 = vld [vmem:[#allocation5 + $0x388] sm:$0xff] }
0x2554   : > { %v4552_v6 = vmul.f32 %v7400_v35, %v4544_v37 }
0x2556   : > { %v4560_v48 = vadd.f32 %v7402_v33, %v4552_v6 }
0x2558   : > { %v4564_v27 = vmul.f32 0.70710677, %v4560_v48  ;;  %v4562_v28 = vmul.f32 0.5, %v4560_v48 }
0x255a   : > { %v4566_v19 = vand.u32 2147483647, %v4564_v27  ;;  %vm4632_vm13 = vcmp.lt.f32.partialorder %v4564_v27, 0.0 }
0x255c   : > { %v4568_v11 = vmul.f32 0.3275911, %v4566_v19  ;;  %v4620_v41 = vsub.f32 0.0, %v4566_v19 }
0x255e   : > { %v4570_v17 = vadd.f32 1.0, %v4568_v11  ;;  %v4622_v52 = vmul.f32 %v4620_v41, %v4566_v19 }
0x2560   : > { %5808 = vrcp.f32 %v4570_v17  ;;  %v4583_v30 = vand.u32 2147483648, %v4570_v17  ;;  %vm4577_vm0 = vweird.f32 %v4570_v17  ;;  %v4581_v46 = vand.u32 2147483647, %v4570_v17 }
0x2561   : > { %v4624_v26 = vmul.f32 1.442695, %v4622_v52 }
0x2562   : > { %v4584_v7 = vor.u32 1.1754944e-38, %v4583_v30  ;;  %vm4582_vm10 = vcmp.eq.f32.partialorder %v4581_v46, 8.507059e+37 }
0x2563   : > { %5810 = vpow2.f32 %v4624_v26 }
0x2566   : > { %v5809_v44 = vpop.eup %5808 }
0x2567   : > { %v4573_v54 = vmul.f32 %v5809_v44, %v4570_v17  ;;  %vm4578_vm3 = vweird.f32 %v5809_v44 }
0x2568   : > { %vm4579_vm4 = vmor %vm4577_vm0, %vm4578_vm3 }
0x2569   : > { %v4574_v5 = vsub.f32 1.0, %v4573_v54  ;;  %v5811_v49 = vpop.eup %5810 }
0x256b   : > { %v4575_v3 = vmul.f32 %v5809_v44, %v4574_v5 }
0x256d   : > { %v4576_v57 = vadd.f32 %v5809_v44, %v4575_v3 }
0x256f   : > { %v4580_v15 = vsel %vm4579_vm4, %v5809_v44, %v4576_v57 }
0x2570   : > { %v4585_v32 = vsel %vm4582_vm10, %v4584_v7, %v4580_v15 }
0x2571   : > { %v4602_v12 = vmul.f32 1.0614054, %v4585_v32 }
0x2573   : > { %v4604_v25 = vadd.f32 -1.4531521, %v4602_v12 }
0x2575   : > { %v4606_v16 = vmul.f32 %v4604_v25, %v4585_v32 }
0x2577   : > { %v4608_v23 = vadd.f32 1.4214138, %v4606_v16 }
0x2579   : > { %v4610_v22 = vmul.f32 %v4608_v23, %v4585_v32 }
0x257b   : > { %v4612_v14 = vadd.f32 -0.28449672, %v4610_v22 }
0x257d   : > { %v4614_v13 = vmul.f32 %v4612_v14, %v4585_v32 }
0x257f   : > { %v4616_v20 = vadd.f32 0.2548296, %v4614_v13 }
0x2581   : > { %v4618_v4 = vmul.f32 %v4616_v20, %v4585_v32 }
0x2583   : > { %v4628_v21 = vmul.f32 %v5811_v49, %v4618_v4 }
0x2585   : > { %v4630_v31 = vsub.f32 1.0, %v4628_v21 }
0x2587   : > { %v4634_v55 = vsub.f32 0.0, %v4630_v31 }
0x2589   : > { %v4636_v58 = vsel %vm4632_vm13, %v4634_v55, %v4630_v31 }
0x258a   : > { %v4638_v9 = vadd.f32 1.0, %v4636_v58 }
0x258c   : > { %v4640_v61 = vmul.f32 %v4638_v9, %v4562_v28 }
0x258e   : > { %4677 = vmatpush.msra.mxu3 %v4640_v61 }
0x258f   : > { %5327 = vmatmul.msk.f32.vlgmr.msra.gmra.mxu3 %vm703_vm8, %v7406_v51 }
0x2597   : > { %5328 = vmatmul.msk.f32.gmra.mxu3 %vm703_vm8, %v7410_v10 }
0x25b4   : > { %v7416_v60 = vpop.f32.mrf.mxu0 }
0x25bc   : > { %v4473_v1 = vpop.f32.mrf.mxu0 }
0x25bd   : > { %v4474_v62 = vadd.f32 %v4473_v1, %v7385_v24 }
0x25bf   : > { %4477 = vrot.lane.b32.xlu1 %v4474_v62, %s5965_s10 }
0x25c7   : > { %4648 = vperm.xlu1 %5569, %v4644_v0  }
0x2612   : > { %v4679_v36 = vpop.f32.mrf.mxu3 }
0x261a   : > { %v4682_v59 = vpop.f32.mrf.mxu3 }
0x261b   : > { %v7423_v8 = vadd.f32 %v4682_v59, %v7420_v2 }
0x261d   : > { %v7426_v40 = vmul.f32 0.70710677, %v7423_v8 }
0x261f   : > { %v4718_v38 = vand.u32 2147483647, %v7426_v40 }
0x2621   : > { %v4722_v42 = vmul.f32 0.3275911, %v4718_v38  ;;  %v4826_v27 = vsub.f32 0.0, %v4718_v38 }
0x2623   : > { %v4726_v34 = vadd.f32 1.0, %v4722_v42  ;;  %v4830_v17 = vmul.f32 %v4826_v27, %v4718_v38 }
0x2625   : > { %5812 = vrcp.f32 %v4726_v34  ;;  %v4769_v53 = vand.u32 2147483648, %v4726_v34  ;;  %v4767_v29 = vand.u32 2147483647, %v4726_v34  ;;  %vm4763_vm5 = vweird.f32 %v4726_v34 }
0x2626   : > { %v4836_v41 = vmul.f32 1.442695, %v4830_v17 }
0x2627   : > { %v4770_v37 = vor.u32 1.1754944e-38, %v4769_v53  ;;  %vm4768_vm14 = vcmp.eq.f32.partialorder %v4767_v29, 8.507059e+37 }
0x2628   : > { %5814 = vpow2.f32 %v4836_v41 }
0x262b   : > { %v5813_v24 = vpop.eup %5812 }
0x262c   : > { %v4759_v39 = vmul.f32 %v5813_v24, %v4726_v34  ;;  %vm4764_vm12 = vweird.f32 %v5813_v24 }
0x262d   : > { %vm4765_vm11 = vmor %vm4763_vm5, %vm4764_vm12 }
0x262e   : > { %v4760_v18 = vsub.f32 1.0, %v4759_v39  ;;  %v5815_v49 = vpop.eup %5814 }
0x2630   : > { %v4761_v47 = vmul.f32 %v5813_v24, %v4760_v18 }
0x2631   : > { %v4478_v45 = vpop.permute.xlu1 %4477 }
0x2632   : > { %v4762_v50 = vadd.f32 %v5813_v24, %v4761_v47  ;;  %4480 = vst.msk [vmem:[#allocation2 + $0x8] sm:$0xff] %vm4427_vm15, %v4478_v45  ;;  %vm4850_vm15 = vcmp.lt.f32.partialorder %v7426_v40, 0.0 }
0x2634   : > { %v4766_v6 = vsel %vm4765_vm11, %v5813_v24, %v4762_v50 }
0x2635   : > { %v4771_v48 = vsel %vm4768_vm14, %v4770_v37, %v4766_v6 }
0x2636   : > { %v4790_v19 = vmul.f32 1.0614054, %v4771_v48 }
0x2638   : > { %v4794_v11 = vadd.f32 -1.4531521, %v4790_v19 }
0x2639   : > { %v7430_v44 = vpop.permute.xlu1 %4648  ;;  %v4482_v54 = vld [vmem:[#allocation2 + $0x8] sm:$0xff] }
0x263a   : > { %v4798_v30 = vmul.f32 %v4794_v11, %v4771_v48  ;;  %v7433_v5 = vadd.f32 %v4679_v36, %v7430_v44  ;;  %v4489_v46 = vrot.slane %v4482_v54, 4  ;;  %v4710_v36 = vmul.f32 0.5, %v7423_v8 }
0x263c   : > { %v4802_v3 = vadd.f32 1.4214138, %v4798_v30  ;;  %v7436_v7 = vmul.f32 0.70710677, %v7433_v5  ;;  %v4490_v57 = vadd.f32 %v4489_v46, %v4482_v54 }
0x263e   : > { %v4806_v15 = vmul.f32 %v4802_v3, %v4771_v48  ;;  %v4716_v32 = vand.u32 2147483647, %v7436_v7  ;;  %v4491_v12 = vrot.slane %v4490_v57, 2  ;;  %vm4848_vm0 = vcmp.lt.f32.partialorder %v7436_v7, 0.0 }
0x2640   : > { %v4810_v52 = vadd.f32 -0.28449672, %v4806_v15  ;;  %v4720_v25 = vmul.f32 0.3275911, %v4716_v32  ;;  %v4492_v16 = vadd.f32 %v4491_v12, %v4490_v57  ;;  %v4824_v40 = vsub.f32 0.0, %v4716_v32 }
0x2642   : > { %v4814_v26 = vmul.f32 %v4810_v52, %v4771_v48  ;;  %v4724_v23 = vadd.f32 1.0, %v4720_v25  ;;  %v4493_v22 = vrot.slane %v4492_v16, 1  ;;  %v4828_v37 = vmul.f32 %v4824_v40, %v4716_v32  ;;  %v4339_v52 = vld [vmem:[#allocation5 + $0x410] sm:$0x1] }
0x2644   : > { %v4818_v14 = vadd.f32 0.2548296, %v4814_v26  ;;  %5816 = vrcp.f32 %v4724_v23  ;;  %v4494_v13 = vadd.f32 %v4493_v22, %v4492_v16  ;;  %vm4733_vm6 = vweird.f32 %v4724_v23 }
0x2645   : > { %v4739_v63 = vand.u32 2147483648, %v4724_v23  ;;  %v4737_v1 = vand.u32 2147483647, %v4724_v23  ;;  %v4832_v19 = vmul.f32 1.442695, %v4828_v37  ;;  %v4361_v26 = vadd.f32 %v7416_v60, %v4339_v52 }
0x2646   : > { %v4822_v20 = vmul.f32 %v4818_v14, %v4771_v48  ;;  %v4503_v4 = vmul.f32 %v7394_v56, %v4494_v13  ;;  %v4708_v14 = vmul.f32 0.5, %v7433_v5 }
0x2647   : > { %v4740_v34 = vor.u32 1.1754944e-38, %v4739_v63  ;;  %vm4738_vm2 = vcmp.eq.f32.partialorder %v4737_v1, 8.507059e+37 }
0x2648   : > { %v4842_v21 = vmul.f32 %v5815_v49, %v4822_v20  ;;  %v7440_v31 = vsub.f32 %v4482_v54, %v4503_v4  ;;  %v4363_v20 = vperm.slane %v4361_v26, 0  ;;  %v4364_v4 = vld [vmem:[#allocation5 + $0x418] sm:$0xf] }
0x264a   : > { %v5817_v55 = vpop.eup %5816  ;;  %v4846_v28 = vsub.f32 1.0, %v4842_v21  ;;  %v4507_v9 = vmul.f32 %v7440_v31, %v7440_v31  ;;  %v7451_v60 = vmul.f32 %v4364_v4, %v4363_v20 }
0x264b   : > { %v4729_v58 = vmul.f32 %v5817_v55, %v4724_v23  ;;  %vm4734_vm7 = vweird.f32 %v5817_v55 }
0x264c   : > { %v4854_v61 = vsub.f32 0.0, %v4846_v28  ;;  %v4514_v62 = vrot.slane %v4507_v9, 4  ;;  %vm4735_vm9 = vmor %vm4733_vm6, %vm4734_vm7 }
0x264d   : > { %v4730_v43 = vsub.f32 1.0, %v4729_v58 }
0x264e   : > { %v4858_v0 = vsel %vm4850_vm15, %v4854_v61, %v4846_v28  ;;  %v4515_v42 = vadd.f32 %v4514_v62, %v4507_v9 }
0x264f   : > { %v4862_v59 = vadd.f32 1.0, %v4858_v0  ;;  %v4731_v38 = vmul.f32 %v5817_v55, %v4730_v43 }
0x2650   : > { %v4516_v18 = vrot.slane %v4515_v42, 2 }
0x2651   : > { %v4866_v24 = vmul.f32 %v4862_v59, %v4710_v36  ;;  %v4732_v39 = vadd.f32 %v5817_v55, %v4731_v38 }
0x2652   : > { %v4517_v47 = vadd.f32 %v4516_v18, %v4515_v42 }
0x2653   : > { %4885 = vmatpush.msra.mxu1 %v4866_v24  ;;  %v4736_v53 = vsel %vm4735_vm9, %v5817_v55, %v4732_v39 }
0x2654   : > { %v4741_v29 = vsel %vm4738_vm2, %v4740_v34, %v4736_v53  ;;  %v4518_v50 = vrot.slane %v4517_v47, 1 }
0x2655   : > { %v4788_v45 = vmul.f32 1.0614054, %v4741_v29 }
0x2656   : > { %v4519_v48 = vadd.f32 %v4518_v50, %v4517_v47 }
0x2657   : > { %v4792_v6 = vadd.f32 -1.4531521, %v4788_v45 }
0x2658   : > { %v4521_v27 = vmul.f32 %v4519_v48, %v7394_v56 }
0x2659   : > { %v4796_v8 = vmul.f32 %v4792_v6, %v4741_v29 }
0x265a   : > { %v4523_v17 = vadd.f32 1e-06, %v4521_v27 }
0x265b   : > { %v4800_v11 = vadd.f32 1.4214138, %v4796_v8 }
0x265c   : > { %5818 = vrsqrt.f32 %v4523_v17  ;;  %vm4540_vm4 = vweird.f32 %v4523_v17 }
0x265d   : > { %v4804_v54 = vmul.f32 %v4800_v11, %v4741_v29  ;;  %5820 = vpow2.f32 %v4832_v19 }
0x265f   : > { %v4808_v30 = vadd.f32 -0.28449672, %v4804_v54 }
0x2661   : > { %v4812_v46 = vmul.f32 %v4808_v30, %v4741_v29 }
0x2662   : > { %v5819_v3 = vpop.eup %5818 }
0x2663   : > { %v4816_v57 = vadd.f32 0.2548296, %v4812_v46  ;;  %v5821_v41 = vpop.eup %5820  ;;  %v4535_v15 = vmul.f32 %v5819_v3, %v4523_v17  ;;  %vm4541_vm3 = vweird.f32 %v5819_v3 }
0x2664   : > { %vm4542_vm10 = vmor %vm4540_vm4, %vm4541_vm3 }
0x2665   : > { %v4820_v12 = vmul.f32 %v4816_v57, %v4741_v29  ;;  %v4536_v32 = vmul.f32 %v5819_v3, %v4535_v15 }
0x2667   : > { %v4840_v25 = vmul.f32 %v5821_v41, %v4820_v12  ;;  %v4537_v16 = vmul.f32 0.5, %v4536_v32 }
0x2669   : > { %v4844_v56 = vsub.f32 1.0, %v4840_v25  ;;  %v4538_v23 = vsub.f32 1.5, %v4537_v16 }
0x266b   : > { %v4852_v22 = vsub.f32 0.0, %v4844_v56  ;;  %v4539_v13 = vmul.f32 %v5819_v3, %v4538_v23 }
0x266d   : > { %v4856_v49 = vsel %vm4848_vm0, %v4852_v22, %v4844_v56  ;;  %v4543_v55 = vsel %vm4542_vm10, %v5819_v3, %v4539_v13 }
0x266e   : > { %v4860_v21 = vadd.f32 1.0, %v4856_v49  ;;  %v4545_v28 = vmul.f32 %v4543_v55, %v7440_v31 }
0x2670   : > { %v4864_v58 = vmul.f32 %v4860_v21, %v4708_v14  ;;  %v4553_v7 = vmul.f32 %v7400_v35, %v4545_v28 }
0x2672   : > { %4886 = vmatpush.msra.mxu1 %v4864_v58  ;;  %v4561_v5 = vadd.f32 %v7402_v33, %v4553_v7 }
0x2673   : > { %5331 = vmatmul.msk.f32.vlgmr.msra.gmra.mxu1 %vm282_vm1, %v7451_v60 }
0x2674   : > { %v4565_v9 = vmul.f32 0.70710677, %v4561_v5  ;;  %v4563_v17 = vmul.f32 0.5, %v4561_v5 }
0x2676   : > { %v4567_v61 = vand.u32 2147483647, %v4565_v9  ;;  %vm4633_vm14 = vcmp.lt.f32.partialorder %v4565_v9, 0.0 }
0x2678   : > { %v4569_v63 = vmul.f32 0.3275911, %v4567_v61  ;;  %v4621_v33 = vsub.f32 0.0, %v4567_v61 }
0x267a   : > { %v4571_v43 = vadd.f32 1.0, %v4569_v63  ;;  %v4623_v18 = vmul.f32 %v4621_v33, %v4567_v61 }
0x267c   : > { %5822 = vrcp.f32 %v4571_v43  ;;  %v4598_v31 = vand.u32 2147483648, %v4571_v43  ;;  %v4596_v59 = vand.u32 2147483647, %v4571_v43  ;;  %vm4592_vm12 = vweird.f32 %v4571_v43 }
0x267d   : > { %v4626_v47 = vmul.f32 1.442695, %v4623_v18 }
0x267e   : > { %v4599_v35 = vor.u32 1.1754944e-38, %v4598_v31  ;;  %vm4597_vm11 = vcmp.eq.f32.partialorder %v4596_v59, 8.507059e+37 }
0x267f   : > { %5824 = vpow2.f32 %v4626_v47 }
0x2682   : > { %v5823_v1 = vpop.eup %5822 }
0x2683   : > { %v4588_v62 = vmul.f32 %v5823_v1, %v4571_v43  ;;  %vm4593_vm13 = vweird.f32 %v5823_v1 }
0x2684   : > { %vm4594_vm5 = vmor %vm4592_vm12, %vm4593_vm13  ;;  %vm4914_vm13 = vcmask 1043456  }
0x2685   : > { %v4589_v0 = vsub.f32 1.0, %v4588_v62  ;;  %v5825_v48 = vpop.eup %5824 }
0x2687   : > { %v4590_v36 = vmul.f32 %v5823_v1, %v4589_v0 }
0x2689   : > { %v4591_v38 = vadd.f32 %v5823_v1, %v4590_v36 }
0x268b   : > { %v4595_v42 = vsel %vm4594_vm5, %v5823_v1, %v4591_v38 }
0x268c   : > { %v4600_v34 = vsel %vm4597_vm11, %v4599_v35, %v4595_v42 }
0x268d   : > { %v4603_v24 = vmul.f32 1.0614054, %v4600_v34 }
0x268f   : > { %v4605_v39 = vadd.f32 -1.4531521, %v4603_v24 }
0x2691   : > { %v4607_v40 = vmul.f32 %v4605_v39, %v4600_v34 }
0x2693   : > { %v4609_v53 = vadd.f32 1.4214138, %v4607_v40 }
0x2695   : > { %v4611_v29 = vmul.f32 %v4609_v53, %v4600_v34 }
0x2697   : > { %v4613_v45 = vadd.f32 -0.28449672, %v4611_v29 }
0x2699   : > { %v4615_v50 = vmul.f32 %v4613_v45, %v4600_v34 }
0x269b   : > { %v4617_v37 = vadd.f32 0.2548296, %v4615_v50 }
0x269d   : > { %v4619_v6 = vmul.f32 %v4617_v37, %v4600_v34 }
0x269f   : > { %v4629_v8 = vmul.f32 %v5825_v48, %v4619_v6 }
0x26a1   : > { %v4631_v27 = vsub.f32 1.0, %v4629_v8 }
0x26a3   : > { %v4635_v19 = vsub.f32 0.0, %v4631_v27 }
0x26a5   : > { %v4637_v11 = vsel %vm4633_vm14, %v4635_v19, %v4631_v27 }
0x26a6   : > { %v4639_v54 = vadd.f32 1.0, %v4637_v11 }
0x26a8   : > { %v4641_v30 = vmul.f32 %v4639_v54, %v4563_v17 }
0x26aa   : > { %4700 = vmatpush.msra.mxu2 %v4641_v30 }
0x26ab   : > { %5329 = vmatmul.msk.f32.vlgmr.msra.gmra.mxu2 %vm703_vm8, %v7406_v51 }
0x26b3   : > { %5330 = vmatmul.msk.f32.gmra.mxu2 %vm703_vm8, %v7410_v10 }
0x272e   : > { %v4702_v46 = vpop.f32.mrf.mxu2 }
0x272f   : > { %v7462_v3 = vadd.f32 %v4702_v46, %v7430_v44 }
0x2731   : > { %v7465_v57 = vmul.f32 0.70710677, %v7462_v3 }
0x2733   : > { %v4717_v41 = vand.u32 2147483647, %v7465_v57  ;;  %vm4849_vm4 = vcmp.lt.f32.partialorder %v7465_v57, 0.0 }
0x2735   : > { %v4721_v15 = vmul.f32 0.3275911, %v4717_v41  ;;  %v4825_v55 = vsub.f32 0.0, %v4717_v41 }
0x2736   : > { %v4705_v12 = vpop.f32.mrf.mxu2 }
0x2737   : > { %v4725_v52 = vadd.f32 1.0, %v4721_v15  ;;  %v7469_v32 = vadd.f32 %v4705_v12, %v7420_v2  ;;  %v4829_v63 = vmul.f32 %v4825_v55, %v4717_v41 }
0x2739   : > { %5826 = vrcp.f32 %v4725_v52  ;;  %v7472_v51 = vmul.f32 0.70710677, %v7469_v32  ;;  %v4754_v23 = vand.u32 2147483648, %v4725_v52  ;;  %v4752_v14 = vand.u32 2147483647, %v4725_v52 }
0x273a   : > { %vm4748_vm15 = vweird.f32 %v4725_v52  ;;  %v4834_v36 = vmul.f32 1.442695, %v4829_v63  ;;  %v4711_v12 = vmul.f32 0.5, %v7469_v32  ;;  %v4888_v32 = vpop.f32.mrf.mxu1 }
0x273b   : > { %v4719_v10 = vand.u32 2147483647, %v7472_v51  ;;  %v4755_v2 = vor.u32 1.1754944e-38, %v4754_v23  ;;  %vm4753_vm7 = vcmp.eq.f32.partialorder %v4752_v14, 8.507059e+37  ;;  %vm4851_vm10 = vcmp.lt.f32.partialorder %v7472_v51, 0.0 }
0x273d   : > { %v4723_v25 = vmul.f32 0.3275911, %v4719_v10  ;;  %v4827_v38 = vsub.f32 0.0, %v4719_v10 }
0x273f   : > { %v5827_v44 = vpop.eup %5826  ;;  %v4727_v26 = vadd.f32 1.0, %v4723_v25  ;;  %v4831_v24 = vmul.f32 %v4827_v38, %v4719_v10  ;;  %v4709_v25 = vmul.f32 0.5, %v7462_v3 }
0x2740   : > { %v4744_v16 = vmul.f32 %v5827_v44, %v4725_v52  ;;  %vm4749_vm8 = vweird.f32 %v5827_v44 }
0x2741   : > { %5828 = vrcp.f32 %v4727_v26  ;;  %vm4750_vm6 = vmor %vm4748_vm15, %vm4749_vm8  ;;  %v4784_v7 = vand.u32 2147483648, %v4727_v26  ;;  %v4782_v61 = vand.u32 2147483647, %v4727_v26  ;;  %vm4778_vm2 = vweird.f32 %v4727_v26 }
0x2742   : > { %v4745_v56 = vsub.f32 1.0, %v4744_v16  ;;  %5830 = vpow2.f32 %v4834_v36  ;;  %v4838_v47 = vmul.f32 1.442695, %v4831_v24 }
0x2743   : > { %v4785_v62 = vor.u32 1.1754944e-38, %v4784_v7  ;;  %vm4783_vm3 = vcmp.eq.f32.partialorder %v4782_v61, 8.507059e+37 }
0x2744   : > { %v4746_v22 = vmul.f32 %v5827_v44, %v4745_v56  ;;  %5832 = vpow2.f32 %v4838_v47 }
0x2746   : > { %v4747_v13 = vadd.f32 %v5827_v44, %v4746_v22 }
0x2747   : > { %v5829_v20 = vpop.eup %5828 }
0x2748   : > { %v4751_v49 = vsel %vm4750_vm6, %v5827_v44, %v4747_v13  ;;  %v4774_v4 = vmul.f32 %v5829_v20, %v4727_v26  ;;  %vm4779_vm9 = vweird.f32 %v5829_v20  ;;  %v5831_v50 = vpop.eup %5830 }
0x2749   : > { %v4756_v21 = vsel %vm4753_vm7, %v4755_v2, %v4751_v49  ;;  %vm4780_vm0 = vmor %vm4778_vm2, %vm4779_vm9 }
0x274a   : > { %v4789_v28 = vmul.f32 1.0614054, %v4756_v21  ;;  %v4775_v58 = vsub.f32 1.0, %v4774_v4  ;;  %v5833_v11 = vpop.eup %5832 }
0x274c   : > { %v4793_v5 = vadd.f32 -1.4531521, %v4789_v28  ;;  %v4776_v9 = vmul.f32 %v5829_v20, %v4775_v58 }
0x274e   : > { %v4797_v43 = vmul.f32 %v4793_v5, %v4756_v21  ;;  %v4777_v1 = vadd.f32 %v5829_v20, %v4776_v9 }
0x2750   : > { %v4801_v0 = vadd.f32 1.4214138, %v4797_v43  ;;  %v4781_v31 = vsel %vm4780_vm0, %v5829_v20, %v4777_v1 }
0x2751   : > { %v4786_v59 = vsel %vm4783_vm3, %v4785_v62, %v4781_v31 }
0x2752   : > { %v4805_v35 = vmul.f32 %v4801_v0, %v4756_v21  ;;  %v4791_v42 = vmul.f32 1.0614054, %v4786_v59 }
0x2754   : > { %v4809_v34 = vadd.f32 -0.28449672, %v4805_v35  ;;  %v4795_v33 = vadd.f32 -1.4531521, %v4791_v42 }
0x2756   : > { %v4813_v39 = vmul.f32 %v4809_v34, %v4756_v21  ;;  %v4799_v18 = vmul.f32 %v4795_v33, %v4786_v59 }
0x2758   : > { %v4817_v40 = vadd.f32 0.2548296, %v4813_v39  ;;  %v4803_v53 = vadd.f32 1.4214138, %v4799_v18 }
0x275a   : > { %v4821_v29 = vmul.f32 %v4817_v40, %v4756_v21  ;;  %v4807_v45 = vmul.f32 %v4803_v53, %v4786_v59 }
0x275c   : > { %v4811_v37 = vadd.f32 -0.28449672, %v4807_v45  ;;  %v4841_v6 = vmul.f32 %v5831_v50, %v4821_v29 }
0x275e   : > { %v4815_v48 = vmul.f32 %v4811_v37, %v4786_v59  ;;  %v4845_v27 = vsub.f32 1.0, %v4841_v6 }
0x2760   : > { %v4819_v8 = vadd.f32 0.2548296, %v4815_v48  ;;  %v4853_v54 = vsub.f32 0.0, %v4845_v27 }
0x2762   : > { %v4823_v19 = vmul.f32 %v4819_v8, %v4786_v59  ;;  %v4857_v41 = vsel %vm4849_vm4, %v4853_v54, %v4845_v27 }
0x2763   : > { %v4861_v10 = vadd.f32 1.0, %v4857_v41 }
0x2764   : > { %v4843_v17 = vmul.f32 %v5833_v11, %v4823_v19 }
0x2765   : > { %v4865_v16 = vmul.f32 %v4861_v10, %v4709_v25 }
0x2766   : > { %v4847_v30 = vsub.f32 1.0, %v4843_v17 }
0x2768   : > { %v4855_v46 = vsub.f32 0.0, %v4847_v30 }
0x276a   : > { %v4859_v15 = vsel %vm4851_vm10, %v4855_v46, %v4847_v30 }
0x276b   : > { %v4863_v52 = vadd.f32 1.0, %v4859_v15 }
0x276d   : > { %v4867_v44 = vmul.f32 %v4863_v52, %v4711_v12 }
0x276f   : > { %4905 = vmatpush.msrb.mxu0 %v4867_v44 }
0x2771   : > { %4906 = vmatpush.msrb.mxu0 %v4865_v16 }
0x2772   : > { %5332 = vmatmul.msk.f32.vlgmr.msrb.gmra.mxu0 %vm282_vm1, %v7451_v60 }
0x27ef   : > { %v4908_v57 = vpop.f32.mrf.mxu0 }
0x27f0   : > { %v4913_v51 = vrot.slane %v4908_v57, 4 }
0x27f2   : > { %v4915_v26 = vsel %vm4914_vm13, %v4888_v32, %v4913_v51 }
0x27f3   : > { %4917 = vst [vmem:[%s226_s20] sm:$0xff] %v4915_v26 }
0x27f4 PF: > { %p14_p1 = scmp.ge.s32.totalorder %s6034_s24, 4   ;;  %s7506_s12 = smov %s5949_s13 }
0x27f5   : > { %s7507_s13 = smov %s5953_s14  ;;  %s7508_s14 = smov %s6047_s29 }
0x27f6   : > { %s7509_s15 = smov %s6034_s24  ;;  %16 = sbr.rel (!%p14_p1) target bundleno = 4 (0x4), region = 79 }
0x27fb   :  { %4939 = vsyncpa [#allocation4], 1 }
0x27fc   :  { %4941 = vsyncpa [#allocation4 + $0x1], 1 }
0x27fd   :  { %4942 = vsyncpa [#allocation6], 1 }

</bundles_post_ra>
